<compile_context>
chip_gen: v5e
topology: v5e:2x2
jax: 0.10.0
libtpu: 0.0.40
codegen_flags: <defaults>
</compile_context>

<pallas_src>
import functools

import jax
import jax.numpy as jnp
import numpy as np
from jax import lax
from jax.experimental import pallas as pl
from jax.experimental.pallas import tpu as pltpu

EPS = 1e-5  # PyTorch LayerNorm default


def _round_up(x, m):
    return (x + m - 1) // m * m


def _layernorm(x, g, b):
    # One-pass statistics: var = E[x^2] - mean^2 (halves VPU/XLU passes).
    m = jnp.mean(x, axis=-1, keepdims=True)
    m2 = jnp.mean(x * x, axis=-1, keepdims=True)
    var = jnp.maximum(m2 - m * m, 0.0)
    return (x - m) * lax.rsqrt(var + EPS) * g + b


# ---------------------------------------------------------------------------
# Kernel: one grid step = TB tokens x N nodes, fully fused block forward.
# ---------------------------------------------------------------------------
def cy2mixer_kernel(
    x_ref,              # (N, TB, d_model)   node-major activations, f32
    ln1_g, ln1_b,       # (1, d_model) f32
    w1p,                # (d_model, W) matmul dtype; W = 2*Fp + 128 slab layout
    b1p,                # (1, W) f32
    ln2_g, ln2_b,       # (1, d_ffn) f32
    wsp,                # vpu: (N, N) f32 SMEM      | wide: (N, N) matmul dtype
    bsp,                # vpu: (N,)   f32 SMEM      | wide: (N, 1) f32
    w2,                 # (d_ffn, d_model) matmul dtype
    b2,                 # (1, d_model) f32
    out_ref,            # (N, TB, d_model) f32
    *scratch,           # vpu: vn_ref, sp_ref  (N, TB, d_ffn) f32
    d_ffn, f_pad, spatial_mode,
):
    N, TB, d_model = x_ref.shape
    mm_dtype = w1p.dtype

    # (N, TB, D) -> (N*TB, D): merges leading/sublane dims only -> free.
    x2 = x_ref[...].reshape(N * TB, d_model)

    # ---- LayerNorm(d_model), f32 -------------------------------------------
    xn = _layernorm(x2, ln1_g[...], ln1_b[...])

    # ---- channel_proj1 with the latent projection fused in ------------------
    # Lane-aligned slabs: [0, d_ffn) -> u cols, [f_pad, f_pad+d_ffn) -> v cols,
    # [2*f_pad, 2*f_pad+2) -> latent (scale, shift); padded cols are zero.
    z = jnp.dot(xn.astype(mm_dtype), w1p[...],
                preferred_element_type=jnp.float32) + b1p[...]
    scale = z[:, 2 * f_pad:2 * f_pad + 1]          # coords[..., 0:1]
    shift = z[:, 2 * f_pad + 1:2 * f_pad + 2]      # coords[..., 1:2]
    u = jnp.maximum(z[:, :d_ffn] * scale + shift, 0.0)
    v = jnp.maximum(z[:, f_pad:f_pad + d_ffn] * scale + shift, 0.0)

    # ---- SGU LayerNorm(d_ffn), f32 -------------------------------------------
    vn = _layernorm(v, ln2_g[...], ln2_b[...])

    # ---- SGU node mixing: Conv2d(num_node, num_node, k=1) --------------------
    if spatial_mode == "vpu":
        # Broadcast-FMA on the VPU: no relayouts, no tiny M=K=N matmul.
        # Outer fori_loop bounds live ranges / trace size; the inner loop is a
        # static unroll reading one (TB, d_ffn) row from the scratch ref.
        vn_ref, sp_ref = scratch
        vn_ref[...] = vn.reshape(N, TB, d_ffn)

        def node_row(n, carry):
            acc = jnp.full((TB, d_ffn), bsp[n], dtype=jnp.float32)
            for m in range(N):                       # static unroll
                acc = acc + vn_ref[m] * wsp[n, m]
            sp_ref[n] = acc
            return carry

        lax.fori_loop(0, N, node_row, 0)
        sp = sp_ref[...].reshape(N * TB, d_ffn)
    else:
        # Wide MXU path for large N: one (N, N) x (N, TB*d_ffn) matmul.
        vn_wide = vn.reshape(N, TB * d_ffn)
        sp_wide = jnp.dot(wsp[...], vn_wide.astype(mm_dtype),
                          preferred_element_type=jnp.float32) + bsp[...]
        sp = sp_wide.reshape(N * TB, d_ffn)

    gated = u * sp

    # ---- channel_proj2 (no coords -> plain Linear + ReLU) ---------------------
    h2 = jnp.dot(gated.astype(mm_dtype), w2[...],
                 preferred_element_type=jnp.float32) + b2[...]
    h2 = jnp.maximum(h2, 0.0)

    # ---- residual + store ------------------------------------------------------
    out_ref[...] = (h2 + x2).reshape(N, TB, d_model)


# ---------------------------------------------------------------------------
# Sizing helpers
# ---------------------------------------------------------------------------
def _vmem_budget_bytes():
    try:
        cap = getattr(pltpu.get_tpu_info(), "vmem_capacity_bytes", None)
        if cap:
            return int(0.7 * int(cap))
    except Exception:
        pass
    return int(0.7 * 64 * 1024 * 1024)   # conservative: v7x per-core VMEM


def _choose_token_block(BT, N, d_model, d_ffn, W, weight_bytes, spatial_mode,
                        budget, token_block):
    if token_block is not None:
        return max(8, (min(token_block, BT) // 8) * 8)
    # Rough per-token-row (all N nodes) footprint, f32 live values.
    per_tok = 4 * N * (4 * d_model                   # in/out blocks, 2-buffered
                       + W + 4 * d_ffn + d_model)    # z, u/v/vn/sp, h2 (peak)
    if spatial_mode == "vpu":
        per_tok += 4 * N * 2 * d_ffn                 # vn/sp scratch refs
    avail = max(budget - 2 * weight_bytes, per_tok * 8)
    tb = min(avail // per_tok, BT)
    # Keep >= 2 grid steps so the "parallel" axis can split across v7x's 2 TCs.
    if BT >= 16:
        tb = min(tb, BT // 2)
    return max(8, (int(tb) // 8) * 8)


# ---------------------------------------------------------------------------
# Node-major wrapper (use this directly when stacking blocks)
# ---------------------------------------------------------------------------
def cy2mixer_block_node_major(xm, params, *, d_ffn, token_block=None,
                              matmul_dtype=jnp.bfloat16, spatial_mode=None):
    """xm: (N, B*T, d_model) node-major activations."""
    xm = xm.astype(jnp.float32)
    N, BT, d_model = xm.shape
    if spatial_mode is None:
        spatial_mode = "vpu" if N <= 64 else "wide"

    f32 = jnp.float32
    f_pad = _round_up(d_ffn, 128)
    W = 2 * f_pad + 128

    # Fuse latent(d_model->2) into channel_proj1 and lay the columns out in
    # 128-lane-aligned slabs [u | v | latent]; padded columns are zero.
    w1 = params["w1"].astype(f32)
    b1 = params["b1"].astype(f32)
    w1p = jnp.zeros((d_model, W), f32)
    w1p = w1p.at[:, :d_ffn].set(w1[:, :d_ffn])
    w1p = w1p.at[:, f_pad:f_pad + d_ffn].set(w1[:, d_ffn:])
    w1p = w1p.at[:, 2 * f_pad:2 * f_pad + 2].set(params["wlat"].astype(f32))
    b1p = jnp.zeros((W,), f32)
    b1p = b1p.at[:d_ffn].set(b1[:d_ffn])
    b1p = b1p.at[f_pad:f_pad + d_ffn].set(b1[d_ffn:])
    b1p = b1p.at[2 * f_pad:2 * f_pad + 2].set(params["blat"].astype(f32))
    b1p = b1p.reshape(1, W)

    if spatial_mode == "vpu":
        wsp = params["wsp"].astype(f32)                    # SMEM scalars (VPU)
        bsp = params["bsp"].astype(f32).reshape(N)
    else:
        wsp = params["wsp"].astype(matmul_dtype)           # MXU operand
        bsp = params["bsp"].astype(f32).reshape(N, 1)

    weights = (
        params["ln1_g"].reshape(1, d_model).astype(f32),
        params["ln1_b"].reshape(1, d_model).astype(f32),
        w1p.astype(matmul_dtype),        # MXU operands cast host-side
        b1p,
        params["ln2_g"].reshape(1, d_ffn).astype(f32),
        params["ln2_b"].reshape(1, d_ffn).astype(f32),
        wsp,
        bsp,
        params["w2"].astype(matmul_dtype),
        params["b2"].reshape(1, d_model).astype(f32),
    )
    weight_bytes = sum(int(np.prod(a.shape)) * a.dtype.itemsize for a in weights)

    budget = _vmem_budget_bytes()
    TB = _choose_token_block(BT, N, d_model, d_ffn, W, weight_bytes,
                             spatial_mode, budget, token_block)
    BT_pad = _round_up(BT, TB)
    if BT_pad != BT:
        xm = jnp.pad(xm, ((0, 0), (0, BT_pad - BT), (0, 0)))
    grid = (BT_pad // TB,)

    tok_spec = pl.BlockSpec((N, TB, d_model), lambda i: (0, i, 0))

    def build_in_specs(single_buffer_weights):
        specs = [tok_spec]
        for idx, a in enumerate(weights):
            if spatial_mode == "vpu" and idx in (6, 7):    # wsp, bsp -> SMEM
                specs.append(pl.BlockSpec(memory_space=pltpu.MemorySpace.SMEM))
                continue
            nd = a.ndim
            idx_map = (lambda i, _nd=nd: (0,) * _nd)
            if single_buffer_weights:
                # Weights are revisited with the same block every step; a
                # single buffer halves their VMEM footprint.
                specs.append(pl.BlockSpec(a.shape, idx_map,
                                          pipeline_mode=pl.Buffered(1)))
            else:
                specs.append(pl.BlockSpec(a.shape, idx_map))
        return specs

    scratch = []
    if spatial_mode == "vpu":
        scratch = [pltpu.VMEM((N, TB, d_ffn), jnp.float32),
                   pltpu.VMEM((N, TB, d_ffn), jnp.float32)]

    cost = pl.CostEstimate(
        flops=int(2 * BT_pad * N * (d_model * W + N * d_ffn + d_ffn * d_model)),
        transcendentals=int(2 * BT_pad * N),
        bytes_accessed=int(4 * 2 * BT_pad * N * d_model + weight_bytes))

    kernel = functools.partial(cy2mixer_kernel, d_ffn=d_ffn, f_pad=f_pad,
                               spatial_mode=spatial_mode)
    out_shape = jax.ShapeDtypeStruct((N, BT_pad, d_model), jnp.float32)

    def run(single_buffer_weights, alias, vmem_limit):
        call = pl.pallas_call(
            kernel,
            out_shape=out_shape,
            grid=grid,
            in_specs=build_in_specs(single_buffer_weights),
            out_specs=tok_spec,
            scratch_shapes=scratch,
            input_output_aliases=({0: 0} if alias else {}),
            compiler_params=pltpu.CompilerParams(
                dimension_semantics=("parallel",),
                vmem_limit_bytes=vmem_limit),
            cost_estimate=cost,
        )
        return call(xm, *weights)

    # Graceful degradation if this Pallas build rejects Buffered(1) weight
    # specs / aliasing / the explicit VMEM limit.
    attempts = ((True, True, budget), (False, True, budget), (False, False, None))
    out, last_err = None, None
    for sbw, alias, lim in attempts:
        try:
            out = run(sbw, alias, lim)
            break
        except Exception as e:        # pragma: no cover - compatibility fallback
            last_err = e
    if out is None:
        raise last_err
    return out[:, :BT, :]


# ---------------------------------------------------------------------------
# (B, T, N, d_model) entry/exit wrapper
# ---------------------------------------------------------------------------
def cy2mixer_block(x, params, *, d_ffn, **kwargs):
    B, T, N, d_model = x.shape
    xm = x.reshape(B * T, N, d_model).transpose(1, 0, 2)
    out = cy2mixer_block_node_major(xm, params, d_ffn=d_ffn, **kwargs)
    return out.transpose(1, 0, 2).reshape(B, T, N, d_model)


# ---------------------------------------------------------------------------
# Pure-JAX reference (same math, independent two-pass LayerNorm)
# ---------------------------------------------------------------------------
def cy2mixer_reference(x, p, *, d_ffn):
    def ln(y, g, b):
        mu = y.mean(-1, keepdims=True)
        var = ((y - mu) ** 2).mean(-1, keepdims=True)
        return (y - mu) / jnp.sqrt(var + EPS) * g + b

    xn = ln(x, p["ln1_g"], p["ln1_b"])
    coords = xn @ p["wlat"] + p["blat"]
    h = xn @ p["w1"] + p["b1"]
    h = h * coords[..., 0:1] + coords[..., 1:2]
    h = jax.nn.relu(h)
    u, v = h[..., :d_ffn], h[..., d_ffn:]
    vn = ln(v, p["ln2_g"], p["ln2_b"])
    sp = jnp.einsum("nm,btmf->btnf", p["wsp"], vn) + p["bsp"][None, None, :, None]
    gated = u * sp
    h2 = jax.nn.relu(gated @ p["w2"] + p["b2"])
    return h2 + x


# ---------------------------------------------------------------------------
# Deterministic parameter init (mirrors shapes from Cy2MixerBlock.__init__)
# ---------------------------------------------------------------------------
def init_params(key, d_model, d_ffn, num_node):
    def uinit(k, shape, fan_in):
        bound = 1.0 / np.sqrt(fan_in)
        return jax.random.uniform(k, shape, jnp.float32, -bound, bound)

    ks = jax.random.split(key, 8)
    return {
        "ln1_g": jnp.ones((d_model,), jnp.float32),
        "ln1_b": jnp.zeros((d_model,), jnp.float32),
        "wlat": uinit(ks[0], (d_model, 2), d_model),
        "blat": uinit(ks[1], (2,), d_model),
        "w1": uinit(ks[2], (d_model, 2 * d_ffn), d_model),
        "b1": uinit(ks[3], (2 * d_ffn,), d_model),
        "ln2_g": jnp.ones((d_ffn,), jnp.float32),
        "ln2_b": jnp.zeros((d_ffn,), jnp.float32),
        "wsp": uinit(ks[4], (num_node, num_node), num_node),
        "bsp": jnp.ones((num_node,), jnp.float32),   # nn.init.constant_(bias, 1.0)
        "w2": uinit(ks[5], (d_ffn, d_model), d_ffn),
        "b2": uinit(ks[6], (d_model,), d_ffn),
    }


def _check(out, ref, mean_tol, frac_tol, rel_thresh):
    # Aggregate error checks: robust to backend-dependent MXU pass counts and
    # isolated ReLU-threshold crossings, while still catching structural bugs
    # (wrong slab offsets / node mixing / LN), which give O(1) relative error.
    out = np.asarray(out)
    ref = np.asarray(ref)
    assert np.all(np.isfinite(out)), "non-finite values in kernel output"
    rel = np.abs(out - ref) / (np.abs(ref) + 1.0)
    assert float(rel.mean()) < mean_tol, f"mean rel err too large: {rel.mean()}"
    frac = float((rel > rel_thresh).mean())
    assert frac < frac_tol, f"too many large errors: {frac}"


if __name__ == "__main__":
    B, T, num_node, d_model, d_ffn = 2, 8, 16, 32, 32

    key = jax.random.PRNGKey(0)
    kx, kp, kx2 = jax.random.split(key, 3)
    x = jax.random.normal(kx, (B, T, num_node, d_model), jnp.float32)
    params = init_params(kp, d_model, d_ffn, num_node)
    ref = jax.block_until_ready(cy2mixer_reference(x, params, d_ffn=d_ffn))

    # f32 MXU operands.
    out_f32 = jax.block_until_ready(
        cy2mixer_block(x, params, d_ffn=d_ffn, matmul_dtype=jnp.float32))
    _check(out_f32, ref, mean_tol=2e-2, frac_tol=0.01, rel_thresh=0.1)

    # Default path: bf16 MXU operands, f32 accumulation / f32 LayerNorm.
    out_bf16 = jax.block_until_ready(cy2mixer_block(x, params, d_ffn=d_ffn))
    _check(out_bf16, ref, mean_tol=5e-2, frac_tol=0.02, rel_thresh=0.15)

    # Token count not divisible by the block: exercises padding + 2 grid steps.
    x2 = jax.random.normal(kx2, (2, 12, num_node, d_model), jnp.float32)
    ref2 = jax.block_until_ready(cy2mixer_reference(x2, params, d_ffn=d_ffn))
    out2 = jax.block_until_ready(
        cy2mixer_block(x2, params, d_ffn=d_ffn, token_block=16,
                       matmul_dtype=jnp.float32))
    _check(out2, ref2, mean_tol=2e-2, frac_tol=0.01, rel_thresh=0.1)

    print("KERNEL_OK")
</pallas_src>

<mosaic_0001>
module attributes {stable_mosaic.version = 11 : i64} {
  func.func @cy2mixer_kernel(%arg0: i32, %arg1: memref<16x8x32xf32, #tpu.memory_space<vmem>>, %arg2: memref<1x32xf32, #tpu.memory_space<vmem>>, %arg3: memref<1x32xf32, #tpu.memory_space<vmem>>, %arg4: memref<32x384xf32, #tpu.memory_space<vmem>>, %arg5: memref<1x384xf32, #tpu.memory_space<vmem>>, %arg6: memref<1x32xf32, #tpu.memory_space<vmem>>, %arg7: memref<1x32xf32, #tpu.memory_space<vmem>>, %arg8: memref<16x16xf32, #tpu.memory_space<smem>>, %arg9: memref<16xf32, #tpu.memory_space<smem>>, %arg10: memref<32x32xf32, #tpu.memory_space<vmem>>, %arg11: memref<1x32xf32, #tpu.memory_space<vmem>>, %arg12: memref<16x8x32xf32, #tpu.memory_space<vmem>>, %arg13: memref<16x8x32xf32, #tpu.memory_space<vmem>>, %arg14: memref<16x8x32xf32, #tpu.memory_space<vmem>>) attributes {dimension_semantics = [#tpu.dimension_semantics<parallel>], iteration_bounds = array<i64: 2>, scalar_prefetch = 0 : i64, scratch_operands = 2 : i64, tpu.core_type = #tpu.core_type<tc>, window_params = [{transform_indices = @transform_0, window_bounds = array<i64: 16, 8, 32>}, {pipeline_mode = #tpu.pipeline_mode<synchronous>, transform_indices = @transform_1, window_bounds = array<i64: 1, 32>}, {pipeline_mode = #tpu.pipeline_mode<synchronous>, transform_indices = @transform_2, window_bounds = array<i64: 1, 32>}, {pipeline_mode = #tpu.pipeline_mode<synchronous>, transform_indices = @transform_3, window_bounds = array<i64: 32, 384>}, {pipeline_mode = #tpu.pipeline_mode<synchronous>, transform_indices = @transform_4, window_bounds = array<i64: 1, 384>}, {pipeline_mode = #tpu.pipeline_mode<synchronous>, transform_indices = @transform_5, window_bounds = array<i64: 1, 32>}, {pipeline_mode = #tpu.pipeline_mode<synchronous>, transform_indices = @transform_6, window_bounds = array<i64: 1, 32>}, {transform_indices = @transform_7, window_bounds = array<i64: 16, 16>}, {transform_indices = @transform_8, window_bounds = array<i64: 16>}, {pipeline_mode = #tpu.pipeline_mode<synchronous>, transform_indices = @transform_9, window_bounds = array<i64: 32, 32>}, {pipeline_mode = #tpu.pipeline_mode<synchronous>, transform_indices = @transform_10, window_bounds = array<i64: 1, 32>}, {transform_indices = @transform_11, window_bounds = array<i64: 16, 8, 32>}]} {
    %c0 = arith.constant 0 : index
    %c0_0 = arith.constant 0 : index
    %c0_1 = arith.constant 0 : index
    %0 = vector.load %arg1[%c0, %c0_0, %c0_1] : memref<16x8x32xf32, #tpu.memory_space<vmem>>, vector<16x8x32xf32>
    %1 = vector.shape_cast %0 : vector<16x8x32xf32> to vector<128x32xf32>
    %c0_2 = arith.constant 0 : index
    %c0_3 = arith.constant 0 : index
    %2 = vector.load %arg2[%c0_2, %c0_3] : memref<1x32xf32, #tpu.memory_space<vmem>>, vector<1x32xf32>
    %c0_4 = arith.constant 0 : index
    %c0_5 = arith.constant 0 : index
    %3 = vector.load %arg3[%c0_4, %c0_5] : memref<1x32xf32, #tpu.memory_space<vmem>>, vector<1x32xf32>
    %cst = arith.constant dense<0.000000e+00> : vector<128xf32>
    %4 = vector.multi_reduction <add>, %1, %cst [1] : vector<128x32xf32> to vector<128xf32>
    %5 = vector.shape_cast %4 : vector<128xf32> to vector<128x1xf32>
    %cst_6 = arith.constant 3.200000e+01 : f32
    %6 = vector.broadcast %cst_6 : f32 to vector<128x1xf32>
    %7 = arith.divf %5, %6 : vector<128x1xf32>
    %8 = arith.mulf %1, %1 : vector<128x32xf32>
    %cst_7 = arith.constant dense<0.000000e+00> : vector<128xf32>
    %9 = vector.multi_reduction <add>, %8, %cst_7 [1] : vector<128x32xf32> to vector<128xf32>
    %10 = vector.shape_cast %9 : vector<128xf32> to vector<128x1xf32>
    %cst_8 = arith.constant 3.200000e+01 : f32
    %11 = vector.broadcast %cst_8 : f32 to vector<128x1xf32>
    %12 = arith.divf %10, %11 : vector<128x1xf32>
    %13 = arith.mulf %7, %7 : vector<128x1xf32>
    %14 = arith.subf %12, %13 : vector<128x1xf32>
    %cst_9 = arith.constant 0.000000e+00 : f32
    %15 = vector.broadcast %cst_9 : f32 to vector<128x1xf32>
    %16 = arith.maximumf %14, %15 : vector<128x1xf32>
    %17 = vector.broadcast %7 : vector<128x1xf32> to vector<128x32xf32>
    %18 = arith.subf %1, %17 : vector<128x32xf32>
    %cst_10 = arith.constant 9.99999974E-6 : f32
    %19 = vector.broadcast %cst_10 : f32 to vector<128x1xf32>
    %20 = arith.addf %16, %19 : vector<128x1xf32>
    %21 = math.rsqrt %20 : vector<128x1xf32>
    %22 = vector.broadcast %21 : vector<128x1xf32> to vector<128x32xf32>
    %23 = arith.mulf %18, %22 : vector<128x32xf32>
    %24 = vector.broadcast %2 : vector<1x32xf32> to vector<128x32xf32>
    %25 = arith.mulf %23, %24 : vector<128x32xf32>
    %26 = vector.broadcast %3 : vector<1x32xf32> to vector<128x32xf32>
    %27 = arith.addf %25, %26 : vector<128x32xf32>
    %c0_11 = arith.constant 0 : index
    %c0_12 = arith.constant 0 : index
    %28 = vector.load %arg4[%c0_11, %c0_12] : memref<32x384xf32, #tpu.memory_space<vmem>>, vector<32x384xf32>
    %cst_13 = arith.constant dense<0.000000e+00> : vector<128x384xf32>
    %29 = tpu.matmul %27, %28, %cst_13 {dimension_numbers = #tpu.dot_dimension_numbers<[1], [0], [0], [1], [0, 0, 1, 1], [], []>} : vector<128x32xf32>, vector<32x384xf32>, vector<128x384xf32> -> vector<128x384xf32>
    %c0_14 = arith.constant 0 : index
    %c0_15 = arith.constant 0 : index
    %30 = vector.load %arg5[%c0_14, %c0_15] : memref<1x384xf32, #tpu.memory_space<vmem>>, vector<1x384xf32>
    %31 = vector.broadcast %30 : vector<1x384xf32> to vector<128x384xf32>
    %32 = arith.addf %29, %31 : vector<128x384xf32>
    %33 = vector.extract_strided_slice %32 {offsets = [0, 256], sizes = [128, 1], strides = [1, 1]} : vector<128x384xf32> to vector<128x1xf32>
    %34 = vector.extract_strided_slice %32 {offsets = [0, 257], sizes = [128, 1], strides = [1, 1]} : vector<128x384xf32> to vector<128x1xf32>
    %35 = vector.extract_strided_slice %32 {offsets = [0, 0], sizes = [128, 32], strides = [1, 1]} : vector<128x384xf32> to vector<128x32xf32>
    %36 = vector.broadcast %33 : vector<128x1xf32> to vector<128x32xf32>
    %37 = arith.mulf %35, %36 : vector<128x32xf32>
    %38 = vector.broadcast %34 : vector<128x1xf32> to vector<128x32xf32>
    %39 = arith.addf %37, %38 : vector<128x32xf32>
    %cst_16 = arith.constant 0.000000e+00 : f32
    %40 = vector.broadcast %cst_16 : f32 to vector<128x32xf32>
    %41 = arith.maximumf %39, %40 : vector<128x32xf32>
    %42 = vector.extract_strided_slice %32 {offsets = [0, 128], sizes = [128, 32], strides = [1, 1]} : vector<128x384xf32> to vector<128x32xf32>
    %43 = vector.broadcast %33 : vector<128x1xf32> to vector<128x32xf32>
    %44 = arith.mulf %42, %43 : vector<128x32xf32>
    %45 = vector.broadcast %34 : vector<128x1xf32> to vector<128x32xf32>
    %46 = arith.addf %44, %45 : vector<128x32xf32>
    %cst_17 = arith.constant 0.000000e+00 : f32
    %47 = vector.broadcast %cst_17 : f32 to vector<128x32xf32>
    %48 = arith.maximumf %46, %47 : vector<128x32xf32>
    %c0_18 = arith.constant 0 : index
    %c0_19 = arith.constant 0 : index
    %49 = vector.load %arg6[%c0_18, %c0_19] : memref<1x32xf32, #tpu.memory_space<vmem>>, vector<1x32xf32>
    %c0_20 = arith.constant 0 : index
    %c0_21 = arith.constant 0 : index
    %50 = vector.load %arg7[%c0_20, %c0_21] : memref<1x32xf32, #tpu.memory_space<vmem>>, vector<1x32xf32>
    %cst_22 = arith.constant dense<0.000000e+00> : vector<128xf32>
    %51 = vector.multi_reduction <add>, %48, %cst_22 [1] : vector<128x32xf32> to vector<128xf32>
    %52 = vector.shape_cast %51 : vector<128xf32> to vector<128x1xf32>
    %cst_23 = arith.constant 3.200000e+01 : f32
    %53 = vector.broadcast %cst_23 : f32 to vector<128x1xf32>
    %54 = arith.divf %52, %53 : vector<128x1xf32>
    %55 = arith.mulf %48, %48 : vector<128x32xf32>
    %cst_24 = arith.constant dense<0.000000e+00> : vector<128xf32>
    %56 = vector.multi_reduction <add>, %55, %cst_24 [1] : vector<128x32xf32> to vector<128xf32>
    %57 = vector.shape_cast %56 : vector<128xf32> to vector<128x1xf32>
    %cst_25 = arith.constant 3.200000e+01 : f32
    %58 = vector.broadcast %cst_25 : f32 to vector<128x1xf32>
    %59 = arith.divf %57, %58 : vector<128x1xf32>
    %60 = arith.mulf %54, %54 : vector<128x1xf32>
    %61 = arith.subf %59, %60 : vector<128x1xf32>
    %cst_26 = arith.constant 0.000000e+00 : f32
    %62 = vector.broadcast %cst_26 : f32 to vector<128x1xf32>
    %63 = arith.maximumf %61, %62 : vector<128x1xf32>
    %64 = vector.broadcast %54 : vector<128x1xf32> to vector<128x32xf32>
    %65 = arith.subf %48, %64 : vector<128x32xf32>
    %cst_27 = arith.constant 9.99999974E-6 : f32
    %66 = vector.broadcast %cst_27 : f32 to vector<128x1xf32>
    %67 = arith.addf %63, %66 : vector<128x1xf32>
    %68 = math.rsqrt %67 : vector<128x1xf32>
    %69 = vector.broadcast %68 : vector<128x1xf32> to vector<128x32xf32>
    %70 = arith.mulf %65, %69 : vector<128x32xf32>
    %71 = vector.broadcast %49 : vector<1x32xf32> to vector<128x32xf32>
    %72 = arith.mulf %70, %71 : vector<128x32xf32>
    %73 = vector.broadcast %50 : vector<1x32xf32> to vector<128x32xf32>
    %74 = arith.addf %72, %73 : vector<128x32xf32>
    %75 = vector.shape_cast %74 : vector<128x32xf32> to vector<16x8x32xf32>
    %c0_28 = arith.constant 0 : index
    %c0_29 = arith.constant 0 : index
    %c0_30 = arith.constant 0 : index
    %76 = vector.load %arg13[%c0_28, %c0_29, %c0_30] : memref<16x8x32xf32, #tpu.memory_space<vmem>>, vector<16x8x32xf32>
    tpu.vector_store %arg13[%c0_28, %c0_29, %c0_30], %75 {strides = array<i32>} : memref<16x8x32xf32, #tpu.memory_space<vmem>>, vector<16x8x32xf32>,
    %c0_i32 = arith.constant 0 : i32
    %c16_i32 = arith.constant 16 : i32
    %77 = arith.addi %c0_i32, %c16_i32 : i32
    %c1_i32 = arith.constant 1 : i32
    scf.for %arg15 = %c0_i32 to %77 step %c1_i32  : i32 {
      %91 = arith.index_cast %arg15 : i32 to index
      %92 = memref.load %arg9[%91] : memref<16xf32, #tpu.memory_space<smem>>
      %93 = vector.broadcast %92 : f32 to vector<8x32xf32>
      %c0_44 = arith.constant 0 : index
      %c0_45 = arith.constant 0 : index
      %c0_46 = arith.constant 0 : index
      %94 = vector.load %arg13[%c0_44, %c0_45, %c0_46] : memref<16x8x32xf32, #tpu.memory_space<vmem>>, vector<1x8x32xf32>
      %95 = vector.shape_cast %94 : vector<1x8x32xf32> to vector<8x32xf32>
      %96 = arith.index_cast %arg15 : i32 to index
      %c0_47 = arith.constant 0 : index
      %97 = memref.load %arg8[%96, %c0_47] : memref<16x16xf32, #tpu.memory_space<smem>>
      %98 = vector.broadcast %97 : f32 to vector<8x32xf32>
      %99 = arith.mulf %95, %98 : vector<8x32xf32>
      %100 = arith.addf %93, %99 : vector<8x32xf32>
      %c1 = arith.constant 1 : index
      %c0_48 = arith.constant 0 : index
      %c0_49 = arith.constant 0 : index
      %101 = vector.load %arg13[%c1, %c0_48, %c0_49] : memref<16x8x32xf32, #tpu.memory_space<vmem>>, vector<1x8x32xf32>
      %102 = vector.shape_cast %101 : vector<1x8x32xf32> to vector<8x32xf32>
      %103 = arith.index_cast %arg15 : i32 to index
      %c1_50 = arith.constant 1 : index
      %104 = memref.load %arg8[%103, %c1_50] : memref<16x16xf32, #tpu.memory_space<smem>>
      %105 = vector.broadcast %104 : f32 to vector<8x32xf32>
      %106 = arith.mulf %102, %105 : vector<8x32xf32>
      %107 = arith.addf %100, %106 : vector<8x32xf32>
      %c2 = arith.constant 2 : index
      %c0_51 = arith.constant 0 : index
      %c0_52 = arith.constant 0 : index
      %108 = vector.load %arg13[%c2, %c0_51, %c0_52] : memref<16x8x32xf32, #tpu.memory_space<vmem>>, vector<1x8x32xf32>
      %109 = vector.shape_cast %108 : vector<1x8x32xf32> to vector<8x32xf32>
      %110 = arith.index_cast %arg15 : i32 to index
      %c2_53 = arith.constant 2 : index
      %111 = memref.load %arg8[%110, %c2_53] : memref<16x16xf32, #tpu.memory_space<smem>>
      %112 = vector.broadcast %111 : f32 to vector<8x32xf32>
      %113 = arith.mulf %109, %112 : vector<8x32xf32>
      %114 = arith.addf %107, %113 : vector<8x32xf32>
      %c3 = arith.constant 3 : index
      %c0_54 = arith.constant 0 : index
      %c0_55 = arith.constant 0 : index
      %115 = vector.load %arg13[%c3, %c0_54, %c0_55] : memref<16x8x32xf32, #tpu.memory_space<vmem>>, vector<1x8x32xf32>
      %116 = vector.shape_cast %115 : vector<1x8x32xf32> to vector<8x32xf32>
      %117 = arith.index_cast %arg15 : i32 to index
      %c3_56 = arith.constant 3 : index
      %118 = memref.load %arg8[%117, %c3_56] : memref<16x16xf32, #tpu.memory_space<smem>>
      %119 = vector.broadcast %118 : f32 to vector<8x32xf32>
      %120 = arith.mulf %116, %119 : vector<8x32xf32>
      %121 = arith.addf %114, %120 : vector<8x32xf32>
      %c4 = arith.constant 4 : index
      %c0_57 = arith.constant 0 : index
      %c0_58 = arith.constant 0 : index
      %122 = vector.load %arg13[%c4, %c0_57, %c0_58] : memref<16x8x32xf32, #tpu.memory_space<vmem>>, vector<1x8x32xf32>
      %123 = vector.shape_cast %122 : vector<1x8x32xf32> to vector<8x32xf32>
      %124 = arith.index_cast %arg15 : i32 to index
      %c4_59 = arith.constant 4 : index
      %125 = memref.load %arg8[%124, %c4_59] : memref<16x16xf32, #tpu.memory_space<smem>>
      %126 = vector.broadcast %125 : f32 to vector<8x32xf32>
      %127 = arith.mulf %123, %126 : vector<8x32xf32>
      %128 = arith.addf %121, %127 : vector<8x32xf32>
      %c5 = arith.constant 5 : index
      %c0_60 = arith.constant 0 : index
      %c0_61 = arith.constant 0 : index
      %129 = vector.load %arg13[%c5, %c0_60, %c0_61] : memref<16x8x32xf32, #tpu.memory_space<vmem>>, vector<1x8x32xf32>
      %130 = vector.shape_cast %129 : vector<1x8x32xf32> to vector<8x32xf32>
      %131 = arith.index_cast %arg15 : i32 to index
      %c5_62 = arith.constant 5 : index
      %132 = memref.load %arg8[%131, %c5_62] : memref<16x16xf32, #tpu.memory_space<smem>>
      %133 = vector.broadcast %132 : f32 to vector<8x32xf32>
      %134 = arith.mulf %130, %133 : vector<8x32xf32>
      %135 = arith.addf %128, %134 : vector<8x32xf32>
      %c6 = arith.constant 6 : index
      %c0_63 = arith.constant 0 : index
      %c0_64 = arith.constant 0 : index
      %136 = vector.load %arg13[%c6, %c0_63, %c0_64] : memref<16x8x32xf32, #tpu.memory_space<vmem>>, vector<1x8x32xf32>
      %137 = vector.shape_cast %136 : vector<1x8x32xf32> to vector<8x32xf32>
      %138 = arith.index_cast %arg15 : i32 to index
      %c6_65 = arith.constant 6 : index
      %139 = memref.load %arg8[%138, %c6_65] : memref<16x16xf32, #tpu.memory_space<smem>>
      %140 = vector.broadcast %139 : f32 to vector<8x32xf32>
      %141 = arith.mulf %137, %140 : vector<8x32xf32>
      %142 = arith.addf %135, %141 : vector<8x32xf32>
      %c7 = arith.constant 7 : index
      %c0_66 = arith.constant 0 : index
      %c0_67 = arith.constant 0 : index
      %143 = vector.load %arg13[%c7, %c0_66, %c0_67] : memref<16x8x32xf32, #tpu.memory_space<vmem>>, vector<1x8x32xf32>
      %144 = vector.shape_cast %143 : vector<1x8x32xf32> to vector<8x32xf32>
      %145 = arith.index_cast %arg15 : i32 to index
      %c7_68 = arith.constant 7 : index
      %146 = memref.load %arg8[%145, %c7_68] : memref<16x16xf32, #tpu.memory_space<smem>>
      %147 = vector.broadcast %146 : f32 to vector<8x32xf32>
      %148 = arith.mulf %144, %147 : vector<8x32xf32>
      %149 = arith.addf %142, %148 : vector<8x32xf32>
      %c8 = arith.constant 8 : index
      %c0_69 = arith.constant 0 : index
      %c0_70 = arith.constant 0 : index
      %150 = vector.load %arg13[%c8, %c0_69, %c0_70] : memref<16x8x32xf32, #tpu.memory_space<vmem>>, vector<1x8x32xf32>
      %151 = vector.shape_cast %150 : vector<1x8x32xf32> to vector<8x32xf32>
      %152 = arith.index_cast %arg15 : i32 to index
      %c8_71 = arith.constant 8 : index
      %153 = memref.load %arg8[%152, %c8_71] : memref<16x16xf32, #tpu.memory_space<smem>>
      %154 = vector.broadcast %153 : f32 to vector<8x32xf32>
      %155 = arith.mulf %151, %154 : vector<8x32xf32>
      %156 = arith.addf %149, %155 : vector<8x32xf32>
      %c9 = arith.constant 9 : index
      %c0_72 = arith.constant 0 : index
      %c0_73 = arith.constant 0 : index
      %157 = vector.load %arg13[%c9, %c0_72, %c0_73] : memref<16x8x32xf32, #tpu.memory_space<vmem>>, vector<1x8x32xf32>
      %158 = vector.shape_cast %157 : vector<1x8x32xf32> to vector<8x32xf32>
      %159 = arith.index_cast %arg15 : i32 to index
      %c9_74 = arith.constant 9 : index
      %160 = memref.load %arg8[%159, %c9_74] : memref<16x16xf32, #tpu.memory_space<smem>>
      %161 = vector.broadcast %160 : f32 to vector<8x32xf32>
      %162 = arith.mulf %158, %161 : vector<8x32xf32>
      %163 = arith.addf %156, %162 : vector<8x32xf32>
      %c10 = arith.constant 10 : index
      %c0_75 = arith.constant 0 : index
      %c0_76 = arith.constant 0 : index
      %164 = vector.load %arg13[%c10, %c0_75, %c0_76] : memref<16x8x32xf32, #tpu.memory_space<vmem>>, vector<1x8x32xf32>
      %165 = vector.shape_cast %164 : vector<1x8x32xf32> to vector<8x32xf32>
      %166 = arith.index_cast %arg15 : i32 to index
      %c10_77 = arith.constant 10 : index
      %167 = memref.load %arg8[%166, %c10_77] : memref<16x16xf32, #tpu.memory_space<smem>>
      %168 = vector.broadcast %167 : f32 to vector<8x32xf32>
      %169 = arith.mulf %165, %168 : vector<8x32xf32>
      %170 = arith.addf %163, %169 : vector<8x32xf32>
      %c11 = arith.constant 11 : index
      %c0_78 = arith.constant 0 : index
      %c0_79 = arith.constant 0 : index
      %171 = vector.load %arg13[%c11, %c0_78, %c0_79] : memref<16x8x32xf32, #tpu.memory_space<vmem>>, vector<1x8x32xf32>
      %172 = vector.shape_cast %171 : vector<1x8x32xf32> to vector<8x32xf32>
      %173 = arith.index_cast %arg15 : i32 to index
      %c11_80 = arith.constant 11 : index
      %174 = memref.load %arg8[%173, %c11_80] : memref<16x16xf32, #tpu.memory_space<smem>>
      %175 = vector.broadcast %174 : f32 to vector<8x32xf32>
      %176 = arith.mulf %172, %175 : vector<8x32xf32>
      %177 = arith.addf %170, %176 : vector<8x32xf32>
      %c12 = arith.constant 12 : index
      %c0_81 = arith.constant 0 : index
      %c0_82 = arith.constant 0 : index
      %178 = vector.load %arg13[%c12, %c0_81, %c0_82] : memref<16x8x32xf32, #tpu.memory_space<vmem>>, vector<1x8x32xf32>
      %179 = vector.shape_cast %178 : vector<1x8x32xf32> to vector<8x32xf32>
      %180 = arith.index_cast %arg15 : i32 to index
      %c12_83 = arith.constant 12 : index
      %181 = memref.load %arg8[%180, %c12_83] : memref<16x16xf32, #tpu.memory_space<smem>>
      %182 = vector.broadcast %181 : f32 to vector<8x32xf32>
      %183 = arith.mulf %179, %182 : vector<8x32xf32>
      %184 = arith.addf %177, %183 : vector<8x32xf32>
      %c13 = arith.constant 13 : index
      %c0_84 = arith.constant 0 : index
      %c0_85 = arith.constant 0 : index
      %185 = vector.load %arg13[%c13, %c0_84, %c0_85] : memref<16x8x32xf32, #tpu.memory_space<vmem>>, vector<1x8x32xf32>
      %186 = vector.shape_cast %185 : vector<1x8x32xf32> to vector<8x32xf32>
      %187 = arith.index_cast %arg15 : i32 to index
      %c13_86 = arith.constant 13 : index
      %188 = memref.load %arg8[%187, %c13_86] : memref<16x16xf32, #tpu.memory_space<smem>>
      %189 = vector.broadcast %188 : f32 to vector<8x32xf32>
      %190 = arith.mulf %186, %189 : vector<8x32xf32>
      %191 = arith.addf %184, %190 : vector<8x32xf32>
      %c14 = arith.constant 14 : index
      %c0_87 = arith.constant 0 : index
      %c0_88 = arith.constant 0 : index
      %192 = vector.load %arg13[%c14, %c0_87, %c0_88] : memref<16x8x32xf32, #tpu.memory_space<vmem>>, vector<1x8x32xf32>
      %193 = vector.shape_cast %192 : vector<1x8x32xf32> to vector<8x32xf32>
      %194 = arith.index_cast %arg15 : i32 to index
      %c14_89 = arith.constant 14 : index
      %195 = memref.load %arg8[%194, %c14_89] : memref<16x16xf32, #tpu.memory_space<smem>>
      %196 = vector.broadcast %195 : f32 to vector<8x32xf32>
      %197 = arith.mulf %193, %196 : vector<8x32xf32>
      %198 = arith.addf %191, %197 : vector<8x32xf32>
      %c15 = arith.constant 15 : index
      %c0_90 = arith.constant 0 : index
      %c0_91 = arith.constant 0 : index
      %199 = vector.load %arg13[%c15, %c0_90, %c0_91] : memref<16x8x32xf32, #tpu.memory_space<vmem>>, vector<1x8x32xf32>
      %200 = vector.shape_cast %199 : vector<1x8x32xf32> to vector<8x32xf32>
      %201 = arith.index_cast %arg15 : i32 to index
      %c15_92 = arith.constant 15 : index
      %202 = memref.load %arg8[%201, %c15_92] : memref<16x16xf32, #tpu.memory_space<smem>>
      %203 = vector.broadcast %202 : f32 to vector<8x32xf32>
      %204 = arith.mulf %200, %203 : vector<8x32xf32>
      %205 = arith.addf %198, %204 : vector<8x32xf32>
      %206 = arith.index_cast %arg15 : i32 to index
      %c0_93 = arith.constant 0 : index
      %c0_94 = arith.constant 0 : index
      %207 = vector.load %arg14[%206, %c0_93, %c0_94] : memref<16x8x32xf32, #tpu.memory_space<vmem>>, vector<1x8x32xf32>
      %208 = vector.shape_cast %207 : vector<1x8x32xf32> to vector<8x32xf32>
      %209 = vector.shape_cast %205 : vector<8x32xf32> to vector<1x8x32xf32>
      tpu.vector_store %arg14[%206, %c0_93, %c0_94], %209 {strides = array<i32>} : memref<16x8x32xf32, #tpu.memory_space<vmem>>, vector<1x8x32xf32>,
    }
    %c16_i32_31 = arith.constant 16 : i32
    %c0_32 = arith.constant 0 : index
    %c0_33 = arith.constant 0 : index
    %c0_34 = arith.constant 0 : index
    %78 = vector.load %arg14[%c0_32, %c0_33, %c0_34] : memref<16x8x32xf32, #tpu.memory_space<vmem>>, vector<16x8x32xf32>
    %79 = vector.shape_cast %78 : vector<16x8x32xf32> to vector<128x32xf32>
    %80 = arith.mulf %41, %79 : vector<128x32xf32>
    %c0_35 = arith.constant 0 : index
    %c0_36 = arith.constant 0 : index
    %81 = vector.load %arg10[%c0_35, %c0_36] : memref<32x32xf32, #tpu.memory_space<vmem>>, vector<32x32xf32>
    %cst_37 = arith.constant dense<0.000000e+00> : vector<128x32xf32>
    %82 = tpu.matmul %80, %81, %cst_37 {dimension_numbers = #tpu.dot_dimension_numbers<[1], [0], [0], [1], [0, 0, 1, 1], [], []>} : vector<128x32xf32>, vector<32x32xf32>, vector<128x32xf32> -> vector<128x32xf32>
    %c0_38 = arith.constant 0 : index
    %c0_39 = arith.constant 0 : index
    %83 = vector.load %arg11[%c0_38, %c0_39] : memref<1x32xf32, #tpu.memory_space<vmem>>, vector<1x32xf32>
    %84 = vector.broadcast %83 : vector<1x32xf32> to vector<128x32xf32>
    %85 = arith.addf %82, %84 : vector<128x32xf32>
    %cst_40 = arith.constant 0.000000e+00 : f32
    %86 = vector.broadcast %cst_40 : f32 to vector<128x32xf32>
    %87 = arith.maximumf %85, %86 : vector<128x32xf32>
    %88 = arith.addf %87, %1 : vector<128x32xf32>
    %89 = vector.shape_cast %88 : vector<128x32xf32> to vector<16x8x32xf32>
    %c0_41 = arith.constant 0 : index
    %c0_42 = arith.constant 0 : index
    %c0_43 = arith.constant 0 : index
    %90 = vector.load %arg12[%c0_41, %c0_42, %c0_43] : memref<16x8x32xf32, #tpu.memory_space<vmem>>, vector<16x8x32xf32>
    tpu.vector_store %arg12[%c0_41, %c0_42, %c0_43], %89 {strides = array<i32>} : memref<16x8x32xf32, #tpu.memory_space<vmem>>, vector<16x8x32xf32>,
    return
  }
  func.func @transform_0(%arg0: i32) -> (i32, i32, i32) {
    %c0_i32 = arith.constant 0 : i32
    %c0_i32_0 = arith.constant 0 : i32
    %c0_i32_1 = arith.constant 0 : i32
    return %c0_i32, %arg0, %c0_i32_0 : i32, i32, i32
  }
  func.func @transform_1(%arg0: i32) -> (i32, i32) {
    %c0_i32 = arith.constant 0 : i32
    %c0_i32_0 = arith.constant 0 : i32
    %c0_i32_1 = arith.constant 0 : i32
    return %c0_i32, %c0_i32_0 : i32, i32
  }
  func.func @transform_2(%arg0: i32) -> (i32, i32) {
    %c0_i32 = arith.constant 0 : i32
    %c0_i32_0 = arith.constant 0 : i32
    %c0_i32_1 = arith.constant 0 : i32
    return %c0_i32, %c0_i32_0 : i32, i32
  }
  func.func @transform_3(%arg0: i32) -> (i32, i32) {
    %c0_i32 = arith.constant 0 : i32
    %c0_i32_0 = arith.constant 0 : i32
    %c0_i32_1 = arith.constant 0 : i32
    return %c0_i32, %c0_i32_0 : i32, i32
  }
  func.func @transform_4(%arg0: i32) -> (i32, i32) {
    %c0_i32 = arith.constant 0 : i32
    %c0_i32_0 = arith.constant 0 : i32
    %c0_i32_1 = arith.constant 0 : i32
    return %c0_i32, %c0_i32_0 : i32, i32
  }
  func.func @transform_5(%arg0: i32) -> (i32, i32) {
    %c0_i32 = arith.constant 0 : i32
    %c0_i32_0 = arith.constant 0 : i32
    %c0_i32_1 = arith.constant 0 : i32
    return %c0_i32, %c0_i32_0 : i32, i32
  }
  func.func @transform_6(%arg0: i32) -> (i32, i32) {
    %c0_i32 = arith.constant 0 : i32
    %c0_i32_0 = arith.constant 0 : i32
    %c0_i32_1 = arith.constant 0 : i32
    return %c0_i32, %c0_i32_0 : i32, i32
  }
  func.func @transform_7(%arg0: i32) -> (i32, i32) {
    %c0_i32 = arith.constant 0 : i32
    %c0_i32_0 = arith.constant 0 : i32
    %c0_i32_1 = arith.constant 0 : i32
    return %c0_i32, %c0_i32_0 : i32, i32
  }
  func.func @transform_8(%arg0: i32) -> i32 {
    %c0_i32 = arith.constant 0 : i32
    %c0_i32_0 = arith.constant 0 : i32
    return %c0_i32 : i32
  }
  func.func @transform_9(%arg0: i32) -> (i32, i32) {
    %c0_i32 = arith.constant 0 : i32
    %c0_i32_0 = arith.constant 0 : i32
    %c0_i32_1 = arith.constant 0 : i32
    return %c0_i32, %c0_i32_0 : i32, i32
  }
  func.func @transform_10(%arg0: i32) -> (i32, i32) {
    %c0_i32 = arith.constant 0 : i32
    %c0_i32_0 = arith.constant 0 : i32
    %c0_i32_1 = arith.constant 0 : i32
    return %c0_i32, %c0_i32_0 : i32, i32
  }
  func.func @transform_11(%arg0: i32) -> (i32, i32, i32) {
    %c0_i32 = arith.constant 0 : i32
    %c0_i32_0 = arith.constant 0 : i32
    %c0_i32_1 = arith.constant 0 : i32
    return %c0_i32, %arg0, %c0_i32_0 : i32, i32, i32
  }
}

module attributes {stable_mosaic.version = 11 : i64} {
  func.func @cy2mixer_kernel(%arg0: i32, %arg1: memref<16x8x32xf32, #tpu.memory_space<vmem>>, %arg2: memref<1x32xf32, #tpu.memory_space<vmem>>, %arg3: memref<1x32xf32, #tpu.memory_space<vmem>>, %arg4: memref<32x384xf32, #tpu.memory_space<vmem>>, %arg5: memref<1x384xf32, #tpu.memory_space<vmem>>, %arg6: memref<1x32xf32, #tpu.memory_space<vmem>>, %arg7: memref<1x32xf32, #tpu.memory_space<vmem>>, %arg8: memref<16x16xf32, #tpu.memory_space<smem>>, %arg9: memref<16xf32, #tpu.memory_space<smem>>, %arg10: memref<32x32xf32, #tpu.memory_space<vmem>>, %arg11: memref<1x32xf32, #tpu.memory_space<vmem>>, %arg12: memref<16x8x32xf32, #tpu.memory_space<vmem>>, %arg13: memref<16x8x32xf32, #tpu.memory_space<vmem>>, %arg14: memref<16x8x32xf32, #tpu.memory_space<vmem>>) attributes {dimension_semantics = [#tpu.dimension_semantics<parallel>], iteration_bounds = array<i64: 2>, scalar_prefetch = 0 : i64, scratch_operands = 2 : i64, tpu.core_type = #tpu.core_type<tc>, window_params = [{transform_indices = @transform_0, window_bounds = array<i64: 16, 8, 32>}, {pipeline_mode = #tpu.pipeline_mode<synchronous>, transform_indices = @transform_1, window_bounds = array<i64: 1, 32>}, {pipeline_mode = #tpu.pipeline_mode<synchronous>, transform_indices = @transform_2, window_bounds = array<i64: 1, 32>}, {pipeline_mode = #tpu.pipeline_mode<synchronous>, transform_indices = @transform_3, window_bounds = array<i64: 32, 384>}, {pipeline_mode = #tpu.pipeline_mode<synchronous>, transform_indices = @transform_4, window_bounds = array<i64: 1, 384>}, {pipeline_mode = #tpu.pipeline_mode<synchronous>, transform_indices = @transform_5, window_bounds = array<i64: 1, 32>}, {pipeline_mode = #tpu.pipeline_mode<synchronous>, transform_indices = @transform_6, window_bounds = array<i64: 1, 32>}, {transform_indices = @transform_7, window_bounds = array<i64: 16, 16>}, {transform_indices = @transform_8, window_bounds = array<i64: 16>}, {pipeline_mode = #tpu.pipeline_mode<synchronous>, transform_indices = @transform_9, window_bounds = array<i64: 32, 32>}, {pipeline_mode = #tpu.pipeline_mode<synchronous>, transform_indices = @transform_10, window_bounds = array<i64: 1, 32>}, {transform_indices = @transform_11, window_bounds = array<i64: 16, 8, 32>}]} {
    %c0 = arith.constant 0 : index
    %c0_0 = arith.constant 0 : index
    %c0_1 = arith.constant 0 : index
    %0 = vector.load %arg1[%c0, %c0_0, %c0_1] : memref<16x8x32xf32, #tpu.memory_space<vmem>>, vector<16x8x32xf32>
    %1 = vector.shape_cast %0 : vector<16x8x32xf32> to vector<128x32xf32>
    %c0_2 = arith.constant 0 : index
    %c0_3 = arith.constant 0 : index
    %2 = vector.load %arg2[%c0_2, %c0_3] : memref<1x32xf32, #tpu.memory_space<vmem>>, vector<1x32xf32>
    %c0_4 = arith.constant 0 : index
    %c0_5 = arith.constant 0 : index
    %3 = vector.load %arg3[%c0_4, %c0_5] : memref<1x32xf32, #tpu.memory_space<vmem>>, vector<1x32xf32>
    %cst = arith.constant dense<0.000000e+00> : vector<128xf32>
    %4 = vector.multi_reduction <add>, %1, %cst [1] : vector<128x32xf32> to vector<128xf32>
    %5 = vector.shape_cast %4 : vector<128xf32> to vector<128x1xf32>
    %cst_6 = arith.constant 3.200000e+01 : f32
    %6 = vector.broadcast %cst_6 : f32 to vector<128x1xf32>
    %7 = arith.divf %5, %6 : vector<128x1xf32>
    %8 = arith.mulf %1, %1 : vector<128x32xf32>
    %cst_7 = arith.constant dense<0.000000e+00> : vector<128xf32>
    %9 = vector.multi_reduction <add>, %8, %cst_7 [1] : vector<128x32xf32> to vector<128xf32>
    %10 = vector.shape_cast %9 : vector<128xf32> to vector<128x1xf32>
    %cst_8 = arith.constant 3.200000e+01 : f32
    %11 = vector.broadcast %cst_8 : f32 to vector<128x1xf32>
    %12 = arith.divf %10, %11 : vector<128x1xf32>
    %13 = arith.mulf %7, %7 : vector<128x1xf32>
    %14 = arith.subf %12, %13 : vector<128x1xf32>
    %cst_9 = arith.constant 0.000000e+00 : f32
    %15 = vector.broadcast %cst_9 : f32 to vector<128x1xf32>
    %16 = arith.maximumf %14, %15 : vector<128x1xf32>
    %17 = vector.broadcast %7 : vector<128x1xf32> to vector<128x32xf32>
    %18 = arith.subf %1, %17 : vector<128x32xf32>
    %cst_10 = arith.constant 9.99999974E-6 : f32
    %19 = vector.broadcast %cst_10 : f32 to vector<128x1xf32>
    %20 = arith.addf %16, %19 : vector<128x1xf32>
    %21 = math.rsqrt %20 : vector<128x1xf32>
    %22 = vector.broadcast %21 : vector<128x1xf32> to vector<128x32xf32>
    %23 = arith.mulf %18, %22 : vector<128x32xf32>
    %24 = vector.broadcast %2 : vector<1x32xf32> to vector<128x32xf32>
    %25 = arith.mulf %23, %24 : vector<128x32xf32>
    %26 = vector.broadcast %3 : vector<1x32xf32> to vector<128x32xf32>
    %27 = arith.addf %25, %26 : vector<128x32xf32>
    %c0_11 = arith.constant 0 : index
    %c0_12 = arith.constant 0 : index
    %28 = vector.load %arg4[%c0_11, %c0_12] : memref<32x384xf32, #tpu.memory_space<vmem>>, vector<32x384xf32>
    %cst_13 = arith.constant dense<0.000000e+00> : vector<128x384xf32>
    %29 = tpu.matmul %27, %28, %cst_13 {dimension_numbers = #tpu.dot_dimension_numbers<[1], [0], [0], [1], [0, 0, 1, 1], [], []>} : vector<128x32xf32>, vector<32x384xf32>, vector<128x384xf32> -> vector<128x384xf32>
    %c0_14 = arith.constant 0 : index
    %c0_15 = arith.constant 0 : index
    %30 = vector.load %arg5[%c0_14, %c0_15] : memref<1x384xf32, #tpu.memory_space<vmem>>, vector<1x384xf32>
    %31 = vector.broadcast %30 : vector<1x384xf32> to vector<128x384xf32>
    %32 = arith.addf %29, %31 : vector<128x384xf32>
    %33 = vector.extract_strided_slice %32 {offsets = [0, 256], sizes = [128, 1], strides = [1, 1]} : vector<128x384xf32> to vector<128x1xf32>
    %34 = vector.extract_strided_slice %32 {offsets = [0, 257], sizes = [128, 1], strides = [1, 1]} : vector<128x384xf32> to vector<128x1xf32>
    %35 = vector.extract_strided_slice %32 {offsets = [0, 0], sizes = [128, 32], strides = [1, 1]} : vector<128x384xf32> to vector<128x32xf32>
    %36 = vector.broadcast %33 : vector<128x1xf32> to vector<128x32xf32>
    %37 = arith.mulf %35, %36 : vector<128x32xf32>
    %38 = vector.broadcast %34 : vector<128x1xf32> to vector<128x32xf32>
    %39 = arith.addf %37, %38 : vector<128x32xf32>
    %cst_16 = arith.constant 0.000000e+00 : f32
    %40 = vector.broadcast %cst_16 : f32 to vector<128x32xf32>
    %41 = arith.maximumf %39, %40 : vector<128x32xf32>
    %42 = vector.extract_strided_slice %32 {offsets = [0, 128], sizes = [128, 32], strides = [1, 1]} : vector<128x384xf32> to vector<128x32xf32>
    %43 = vector.broadcast %33 : vector<128x1xf32> to vector<128x32xf32>
    %44 = arith.mulf %42, %43 : vector<128x32xf32>
    %45 = vector.broadcast %34 : vector<128x1xf32> to vector<128x32xf32>
    %46 = arith.addf %44, %45 : vector<128x32xf32>
    %cst_17 = arith.constant 0.000000e+00 : f32
    %47 = vector.broadcast %cst_17 : f32 to vector<128x32xf32>
    %48 = arith.maximumf %46, %47 : vector<128x32xf32>
    %c0_18 = arith.constant 0 : index
    %c0_19 = arith.constant 0 : index
    %49 = vector.load %arg6[%c0_18, %c0_19] : memref<1x32xf32, #tpu.memory_space<vmem>>, vector<1x32xf32>
    %c0_20 = arith.constant 0 : index
    %c0_21 = arith.constant 0 : index
    %50 = vector.load %arg7[%c0_20, %c0_21] : memref<1x32xf32, #tpu.memory_space<vmem>>, vector<1x32xf32>
    %cst_22 = arith.constant dense<0.000000e+00> : vector<128xf32>
    %51 = vector.multi_reduction <add>, %48, %cst_22 [1] : vector<128x32xf32> to vector<128xf32>
    %52 = vector.shape_cast %51 : vector<128xf32> to vector<128x1xf32>
    %cst_23 = arith.constant 3.200000e+01 : f32
    %53 = vector.broadcast %cst_23 : f32 to vector<128x1xf32>
    %54 = arith.divf %52, %53 : vector<128x1xf32>
    %55 = arith.mulf %48, %48 : vector<128x32xf32>
    %cst_24 = arith.constant dense<0.000000e+00> : vector<128xf32>
    %56 = vector.multi_reduction <add>, %55, %cst_24 [1] : vector<128x32xf32> to vector<128xf32>
    %57 = vector.shape_cast %56 : vector<128xf32> to vector<128x1xf32>
    %cst_25 = arith.constant 3.200000e+01 : f32
    %58 = vector.broadcast %cst_25 : f32 to vector<128x1xf32>
    %59 = arith.divf %57, %58 : vector<128x1xf32>
    %60 = arith.mulf %54, %54 : vector<128x1xf32>
    %61 = arith.subf %59, %60 : vector<128x1xf32>
    %cst_26 = arith.constant 0.000000e+00 : f32
    %62 = vector.broadcast %cst_26 : f32 to vector<128x1xf32>
    %63 = arith.maximumf %61, %62 : vector<128x1xf32>
    %64 = vector.broadcast %54 : vector<128x1xf32> to vector<128x32xf32>
    %65 = arith.subf %48, %64 : vector<128x32xf32>
    %cst_27 = arith.constant 9.99999974E-6 : f32
    %66 = vector.broadcast %cst_27 : f32 to vector<128x1xf32>
    %67 = arith.addf %63, %66 : vector<128x1xf32>
    %68 = math.rsqrt %67 : vector<128x1xf32>
    %69 = vector.broadcast %68 : vector<128x1xf32> to vector<128x32xf32>
    %70 = arith.mulf %65, %69 : vector<128x32xf32>
    %71 = vector.broadcast %49 : vector<1x32xf32> to vector<128x32xf32>
    %72 = arith.mulf %70, %71 : vector<128x32xf32>
    %73 = vector.broadcast %50 : vector<1x32xf32> to vector<128x32xf32>
    %74 = arith.addf %72, %73 : vector<128x32xf32>
    %75 = vector.shape_cast %74 : vector<128x32xf32> to vector<16x8x32xf32>
    %c0_28 = arith.constant 0 : index
    %c0_29 = arith.constant 0 : index
    %c0_30 = arith.constant 0 : index
    %76 = vector.load %arg13[%c0_28, %c0_29, %c0_30] : memref<16x8x32xf32, #tpu.memory_space<vmem>>, vector<16x8x32xf32>
    tpu.vector_store %arg13[%c0_28, %c0_29, %c0_30], %75 {strides = array<i32>} : memref<16x8x32xf32, #tpu.memory_space<vmem>>, vector<16x8x32xf32>,
    %c0_i32 = arith.constant 0 : i32
    %c16_i32 = arith.constant 16 : i32
    %77 = arith.addi %c0_i32, %c16_i32 : i32
    %c1_i32 = arith.constant 1 : i32
    scf.for %arg15 = %c0_i32 to %77 step %c1_i32  : i32 {
      %91 = arith.index_cast %arg15 : i32 to index
      %92 = memref.load %arg9[%91] : memref<16xf32, #tpu.memory_space<smem>>
      %93 = vector.broadcast %92 : f32 to vector<8x32xf32>
      %c0_44 = arith.constant 0 : index
      %c0_45 = arith.constant 0 : index
      %c0_46 = arith.constant 0 : index
      %94 = vector.load %arg13[%c0_44, %c0_45, %c0_46] : memref<16x8x32xf32, #tpu.memory_space<vmem>>, vector<1x8x32xf32>
      %95 = vector.shape_cast %94 : vector<1x8x32xf32> to vector<8x32xf32>
      %96 = arith.index_cast %arg15 : i32 to index
      %c0_47 = arith.constant 0 : index
      %97 = memref.load %arg8[%96, %c0_47] : memref<16x16xf32, #tpu.memory_space<smem>>
      %98 = vector.broadcast %97 : f32 to vector<8x32xf32>
      %99 = arith.mulf %95, %98 : vector<8x32xf32>
      %100 = arith.addf %93, %99 : vector<8x32xf32>
      %c1 = arith.constant 1 : index
      %c0_48 = arith.constant 0 : index
      %c0_49 = arith.constant 0 : index
      %101 = vector.load %arg13[%c1, %c0_48, %c0_49] : memref<16x8x32xf32, #tpu.memory_space<vmem>>, vector<1x8x32xf32>
      %102 = vector.shape_cast %101 : vector<1x8x32xf32> to vector<8x32xf32>
      %103 = arith.index_cast %arg15 : i32 to index
      %c1_50 = arith.constant 1 : index
      %104 = memref.load %arg8[%103, %c1_50] : memref<16x16xf32, #tpu.memory_space<smem>>
      %105 = vector.broadcast %104 : f32 to vector<8x32xf32>
      %106 = arith.mulf %102, %105 : vector<8x32xf32>
      %107 = arith.addf %100, %106 : vector<8x32xf32>
      %c2 = arith.constant 2 : index
      %c0_51 = arith.constant 0 : index
      %c0_52 = arith.constant 0 : index
      %108 = vector.load %arg13[%c2, %c0_51, %c0_52] : memref<16x8x32xf32, #tpu.memory_space<vmem>>, vector<1x8x32xf32>
      %109 = vector.shape_cast %108 : vector<1x8x32xf32> to vector<8x32xf32>
      %110 = arith.index_cast %arg15 : i32 to index
      %c2_53 = arith.constant 2 : index
      %111 = memref.load %arg8[%110, %c2_53] : memref<16x16xf32, #tpu.memory_space<smem>>
      %112 = vector.broadcast %111 : f32 to vector<8x32xf32>
      %113 = arith.mulf %109, %112 : vector<8x32xf32>
      %114 = arith.addf %107, %113 : vector<8x32xf32>
      %c3 = arith.constant 3 : index
      %c0_54 = arith.constant 0 : index
      %c0_55 = arith.constant 0 : index
      %115 = vector.load %arg13[%c3, %c0_54, %c0_55] : memref<16x8x32xf32, #tpu.memory_space<vmem>>, vector<1x8x32xf32>
      %116 = vector.shape_cast %115 : vector<1x8x32xf32> to vector<8x32xf32>
      %117 = arith.index_cast %arg15 : i32 to index
      %c3_56 = arith.constant 3 : index
      %118 = memref.load %arg8[%117, %c3_56] : memref<16x16xf32, #tpu.memory_space<smem>>
      %119 = vector.broadcast %118 : f32 to vector<8x32xf32>
      %120 = arith.mulf %116, %119 : vector<8x32xf32>
      %121 = arith.addf %114, %120 : vector<8x32xf32>
      %c4 = arith.constant 4 : index
      %c0_57 = arith.constant 0 : index
      %c0_58 = arith.constant 0 : index
      %122 = vector.load %arg13[%c4, %c0_57, %c0_58] : memref<16x8x32xf32, #tpu.memory_space<vmem>>, vector<1x8x32xf32>
      %123 = vector.shape_cast %122 : vector<1x8x32xf32> to vector<8x32xf32>
      %124 = arith.index_cast %arg15 : i32 to index
      %c4_59 = arith.constant 4 : index
      %125 = memref.load %arg8[%124, %c4_59] : memref<16x16xf32, #tpu.memory_space<smem>>
      %126 = vector.broadcast %125 : f32 to vector<8x32xf32>
      %127 = arith.mulf %123, %126 : vector<8x32xf32>
      %128 = arith.addf %121, %127 : vector<8x32xf32>
      %c5 = arith.constant 5 : index
      %c0_60 = arith.constant 0 : index
      %c0_61 = arith.constant 0 : index
      %129 = vector.load %arg13[%c5, %c0_60, %c0_61] : memref<16x8x32xf32, #tpu.memory_space<vmem>>, vector<1x8x32xf32>
      %130 = vector.shape_cast %129 : vector<1x8x32xf32> to vector<8x32xf32>
      %131 = arith.index_cast %arg15 : i32 to index
      %c5_62 = arith.constant 5 : index
      %132 = memref.load %arg8[%131, %c5_62] : memref<16x16xf32, #tpu.memory_space<smem>>
      %133 = vector.broadcast %132 : f32 to vector<8x32xf32>
      %134 = arith.mulf %130, %133 : vector<8x32xf32>
      %135 = arith.addf %128, %134 : vector<8x32xf32>
      %c6 = arith.constant 6 : index
      %c0_63 = arith.constant 0 : index
      %c0_64 = arith.constant 0 : index
      %136 = vector.load %arg13[%c6, %c0_63, %c0_64] : memref<16x8x32xf32, #tpu.memory_space<vmem>>, vector<1x8x32xf32>
      %137 = vector.shape_cast %136 : vector<1x8x32xf32> to vector<8x32xf32>
      %138 = arith.index_cast %arg15 : i32 to index
      %c6_65 = arith.constant 6 : index
      %139 = memref.load %arg8[%138, %c6_65] : memref<16x16xf32, #tpu.memory_space<smem>>
      %140 = vector.broadcast %139 : f32 to vector<8x32xf32>
      %141 = arith.mulf %137, %140 : vector<8x32xf32>
      %142 = arith.addf %135, %141 : vector<8x32xf32>
      %c7 = arith.constant 7 : index
      %c0_66 = arith.constant 0 : index
      %c0_67 = arith.constant 0 : index
      %143 = vector.load %arg13[%c7, %c0_66, %c0_67] : memref<16x8x32xf32, #tpu.memory_space<vmem>>, vector<1x8x32xf32>
      %144 = vector.shape_cast %143 : vector<1x8x32xf32> to vector<8x32xf32>
      %145 = arith.index_cast %arg15 : i32 to index
      %c7_68 = arith.constant 7 : index
      %146 = memref.load %arg8[%145, %c7_68] : memref<16x16xf32, #tpu.memory_space<smem>>
      %147 = vector.broadcast %146 : f32 to vector<8x32xf32>
      %148 = arith.mulf %144, %147 : vector<8x32xf32>
      %149 = arith.addf %142, %148 : vector<8x32xf32>
      %c8 = arith.constant 8 : index
      %c0_69 = arith.constant 0 : index
      %c0_70 = arith.constant 0 : index
      %150 = vector.load %arg13[%c8, %c0_69, %c0_70] : memref<16x8x32xf32, #tpu.memory_space<vmem>>, vector<1x8x32xf32>
      %151 = vector.shape_cast %150 : vector<1x8x32xf32> to vector<8x32xf32>
      %152 = arith.index_cast %arg15 : i32 to index
      %c8_71 = arith.constant 8 : index
      %153 = memref.load %arg8[%152, %c8_71] : memref<16x16xf32, #tpu.memory_space<smem>>
      %154 = vector.broadcast %153 : f32 to vector<8x32xf32>
      %155 = arith.mulf %151, %154 : vector<8x32xf32>
      %156 = arith.addf %149, %155 : vector<8x32xf32>
      %c9 = arith.constant 9 : index
      %c0_72 = arith.constant 0 : index
      %c0_73 = arith.constant 0 : index
      %157 = vector.load %arg13[%c9, %c0_72, %c0_73] : memref<16x8x32xf32, #tpu.memory_space<vmem>>, vector<1x8x32xf32>
      %158 = vector.shape_cast %157 : vector<1x8x32xf32> to vector<8x32xf32>
      %159 = arith.index_cast %arg15 : i32 to index
      %c9_74 = arith.constant 9 : index
      %160 = memref.load %arg8[%159, %c9_74] : memref<16x16xf32, #tpu.memory_space<smem>>
      %161 = vector.broadcast %160 : f32 to vector<8x32xf32>
      %162 = arith.mulf %158, %161 : vector<8x32xf32>
      %163 = arith.addf %156, %162 : vector<8x32xf32>
      %c10 = arith.constant 10 : index
      %c0_75 = arith.constant 0 : index
      %c0_76 = arith.constant 0 : index
      %164 = vector.load %arg13[%c10, %c0_75, %c0_76] : memref<16x8x32xf32, #tpu.memory_space<vmem>>, vector<1x8x32xf32>
      %165 = vector.shape_cast %164 : vector<1x8x32xf32> to vector<8x32xf32>
      %166 = arith.index_cast %arg15 : i32 to index
      %c10_77 = arith.constant 10 : index
      %167 = memref.load %arg8[%166, %c10_77] : memref<16x16xf32, #tpu.memory_space<smem>>
      %168 = vector.broadcast %167 : f32 to vector<8x32xf32>
      %169 = arith.mulf %165, %168 : vector<8x32xf32>
      %170 = arith.addf %163, %169 : vector<8x32xf32>
      %c11 = arith.constant 11 : index
      %c0_78 = arith.constant 0 : index
      %c0_79 = arith.constant 0 : index
      %171 = vector.load %arg13[%c11, %c0_78, %c0_79] : memref<16x8x32xf32, #tpu.memory_space<vmem>>, vector<1x8x32xf32>
      %172 = vector.shape_cast %171 : vector<1x8x32xf32> to vector<8x32xf32>
      %173 = arith.index_cast %arg15 : i32 to index
      %c11_80 = arith.constant 11 : index
      %174 = memref.load %arg8[%173, %c11_80] : memref<16x16xf32, #tpu.memory_space<smem>>
      %175 = vector.broadcast %174 : f32 to vector<8x32xf32>
      %176 = arith.mulf %172, %175 : vector<8x32xf32>
      %177 = arith.addf %170, %176 : vector<8x32xf32>
      %c12 = arith.constant 12 : index
      %c0_81 = arith.constant 0 : index
      %c0_82 = arith.constant 0 : index
      %178 = vector.load %arg13[%c12, %c0_81, %c0_82] : memref<16x8x32xf32, #tpu.memory_space<vmem>>, vector<1x8x32xf32>
      %179 = vector.shape_cast %178 : vector<1x8x32xf32> to vector<8x32xf32>
      %180 = arith.index_cast %arg15 : i32 to index
      %c12_83 = arith.constant 12 : index
      %181 = memref.load %arg8[%180, %c12_83] : memref<16x16xf32, #tpu.memory_space<smem>>
      %182 = vector.broadcast %181 : f32 to vector<8x32xf32>
      %183 = arith.mulf %179, %182 : vector<8x32xf32>
      %184 = arith.addf %177, %183 : vector<8x32xf32>
      %c13 = arith.constant 13 : index
      %c0_84 = arith.constant 0 : index
      %c0_85 = arith.constant 0 : index
      %185 = vector.load %arg13[%c13, %c0_84, %c0_85] : memref<16x8x32xf32, #tpu.memory_space<vmem>>, vector<1x8x32xf32>
      %186 = vector.shape_cast %185 : vector<1x8x32xf32> to vector<8x32xf32>
      %187 = arith.index_cast %arg15 : i32 to index
      %c13_86 = arith.constant 13 : index
      %188 = memref.load %arg8[%187, %c13_86] : memref<16x16xf32, #tpu.memory_space<smem>>
      %189 = vector.broadcast %188 : f32 to vector<8x32xf32>
      %190 = arith.mulf %186, %189 : vector<8x32xf32>
      %191 = arith.addf %184, %190 : vector<8x32xf32>
      %c14 = arith.constant 14 : index
      %c0_87 = arith.constant 0 : index
      %c0_88 = arith.constant 0 : index
      %192 = vector.load %arg13[%c14, %c0_87, %c0_88] : memref<16x8x32xf32, #tpu.memory_space<vmem>>, vector<1x8x32xf32>
      %193 = vector.shape_cast %192 : vector<1x8x32xf32> to vector<8x32xf32>
      %194 = arith.index_cast %arg15 : i32 to index
      %c14_89 = arith.constant 14 : index
      %195 = memref.load %arg8[%194, %c14_89] : memref<16x16xf32, #tpu.memory_space<smem>>
      %196 = vector.broadcast %195 : f32 to vector<8x32xf32>
      %197 = arith.mulf %193, %196 : vector<8x32xf32>
      %198 = arith.addf %191, %197 : vector<8x32xf32>
      %c15 = arith.constant 15 : index
      %c0_90 = arith.constant 0 : index
      %c0_91 = arith.constant 0 : index
      %199 = vector.load %arg13[%c15, %c0_90, %c0_91] : memref<16x8x32xf32, #tpu.memory_space<vmem>>, vector<1x8x32xf32>
      %200 = vector.shape_cast %199 : vector<1x8x32xf32> to vector<8x32xf32>
      %201 = arith.index_cast %arg15 : i32 to index
      %c15_92 = arith.constant 15 : index
      %202 = memref.load %arg8[%201, %c15_92] : memref<16x16xf32, #tpu.memory_space<smem>>
      %203 = vector.broadcast %202 : f32 to vector<8x32xf32>
      %204 = arith.mulf %200, %203 : vector<8x32xf32>
      %205 = arith.addf %198, %204 : vector<8x32xf32>
      %206 = arith.index_cast %arg15 : i32 to index
      %c0_93 = arith.constant 0 : index
      %c0_94 = arith.constant 0 : index
      %207 = vector.load %arg14[%206, %c0_93, %c0_94] : memref<16x8x32xf32, #tpu.memory_space<vmem>>, vector<1x8x32xf32>
      %208 = vector.shape_cast %207 : vector<1x8x32xf32> to vector<8x32xf32>
      %209 = vector.shape_cast %205 : vector<8x32xf32> to vector<1x8x32xf32>
      tpu.vector_store %arg14[%206, %c0_93, %c0_94], %209 {strides = array<i32>} : memref<16x8x32xf32, #tpu.memory_space<vmem>>, vector<1x8x32xf32>,
    }
    %c16_i32_31 = arith.constant 16 : i32
    %c0_32 = arith.constant 0 : index
    %c0_33 = arith.constant 0 : index
    %c0_34 = arith.constant 0 : index
    %78 = vector.load %arg14[%c0_32, %c0_33, %c0_34] : memref<16x8x32xf32, #tpu.memory_space<vmem>>, vector<16x8x32xf32>
    %79 = vector.shape_cast %78 : vector<16x8x32xf32> to vector<128x32xf32>
    %80 = arith.mulf %41, %79 : vector<128x32xf32>
    %c0_35 = arith.constant 0 : index
    %c0_36 = arith.constant 0 : index
    %81 = vector.load %arg10[%c0_35, %c0_36] : memref<32x32xf32, #tpu.memory_space<vmem>>, vector<32x32xf32>
    %cst_37 = arith.constant dense<0.000000e+00> : vector<128x32xf32>
    %82 = tpu.matmul %80, %81, %cst_37 {dimension_numbers = #tpu.dot_dimension_numbers<[1], [0], [0], [1], [0, 0, 1, 1], [], []>} : vector<128x32xf32>, vector<32x32xf32>, vector<128x32xf32> -> vector<128x32xf32>
    %c0_38 = arith.constant 0 : index
    %c0_39 = arith.constant 0 : index
    %83 = vector.load %arg11[%c0_38, %c0_39] : memref<1x32xf32, #tpu.memory_space<vmem>>, vector<1x32xf32>
    %84 = vector.broadcast %83 : vector<1x32xf32> to vector<128x32xf32>
    %85 = arith.addf %82, %84 : vector<128x32xf32>
    %cst_40 = arith.constant 0.000000e+00 : f32
    %86 = vector.broadcast %cst_40 : f32 to vector<128x32xf32>
    %87 = arith.maximumf %85, %86 : vector<128x32xf32>
    %88 = arith.addf %87, %1 : vector<128x32xf32>
    %89 = vector.shape_cast %88 : vector<128x32xf32> to vector<16x8x32xf32>
    %c0_41 = arith.constant 0 : index
    %c0_42 = arith.constant 0 : index
    %c0_43 = arith.constant 0 : index
    %90 = vector.load %arg12[%c0_41, %c0_42, %c0_43] : memref<16x8x32xf32, #tpu.memory_space<vmem>>, vector<16x8x32xf32>
    tpu.vector_store %arg12[%c0_41, %c0_42, %c0_43], %89 {strides = array<i32>} : memref<16x8x32xf32, #tpu.memory_space<vmem>>, vector<16x8x32xf32>,
    return
  }
  func.func @transform_0(%arg0: i32) -> (i32, i32, i32) {
    %c0_i32 = arith.constant 0 : i32
    %c0_i32_0 = arith.constant 0 : i32
    %c0_i32_1 = arith.constant 0 : i32
    return %c0_i32, %arg0, %c0_i32_0 : i32, i32, i32
  }
  func.func @transform_1(%arg0: i32) -> (i32, i32) {
    %c0_i32 = arith.constant 0 : i32
    %c0_i32_0 = arith.constant 0 : i32
    %c0_i32_1 = arith.constant 0 : i32
    return %c0_i32, %c0_i32_0 : i32, i32
  }
  func.func @transform_2(%arg0: i32) -> (i32, i32) {
    %c0_i32 = arith.constant 0 : i32
    %c0_i32_0 = arith.constant 0 : i32
    %c0_i32_1 = arith.constant 0 : i32
    return %c0_i32, %c0_i32_0 : i32, i32
  }
  func.func @transform_3(%arg0: i32) -> (i32, i32) {
    %c0_i32 = arith.constant 0 : i32
    %c0_i32_0 = arith.constant 0 : i32
    %c0_i32_1 = arith.constant 0 : i32
    return %c0_i32, %c0_i32_0 : i32, i32
  }
  func.func @transform_4(%arg0: i32) -> (i32, i32) {
    %c0_i32 = arith.constant 0 : i32
    %c0_i32_0 = arith.constant 0 : i32
    %c0_i32_1 = arith.constant 0 : i32
    return %c0_i32, %c0_i32_0 : i32, i32
  }
  func.func @transform_5(%arg0: i32) -> (i32, i32) {
    %c0_i32 = arith.constant 0 : i32
    %c0_i32_0 = arith.constant 0 : i32
    %c0_i32_1 = arith.constant 0 : i32
    return %c0_i32, %c0_i32_0 : i32, i32
  }
  func.func @transform_6(%arg0: i32) -> (i32, i32) {
    %c0_i32 = arith.constant 0 : i32
    %c0_i32_0 = arith.constant 0 : i32
    %c0_i32_1 = arith.constant 0 : i32
    return %c0_i32, %c0_i32_0 : i32, i32
  }
  func.func @transform_7(%arg0: i32) -> (i32, i32) {
    %c0_i32 = arith.constant 0 : i32
    %c0_i32_0 = arith.constant 0 : i32
    %c0_i32_1 = arith.constant 0 : i32
    return %c0_i32, %c0_i32_0 : i32, i32
  }
  func.func @transform_8(%arg0: i32) -> i32 {
    %c0_i32 = arith.constant 0 : i32
    %c0_i32_0 = arith.constant 0 : i32
    return %c0_i32 : i32
  }
  func.func @transform_9(%arg0: i32) -> (i32, i32) {
    %c0_i32 = arith.constant 0 : i32
    %c0_i32_0 = arith.constant 0 : i32
    %c0_i32_1 = arith.constant 0 : i32
    return %c0_i32, %c0_i32_0 : i32, i32
  }
  func.func @transform_10(%arg0: i32) -> (i32, i32) {
    %c0_i32 = arith.constant 0 : i32
    %c0_i32_0 = arith.constant 0 : i32
    %c0_i32_1 = arith.constant 0 : i32
    return %c0_i32, %c0_i32_0 : i32, i32
  }
  func.func @transform_11(%arg0: i32) -> (i32, i32, i32) {
    %c0_i32 = arith.constant 0 : i32
    %c0_i32_0 = arith.constant 0 : i32
    %c0_i32_1 = arith.constant 0 : i32
    return %c0_i32, %arg0, %c0_i32_0 : i32, i32, i32
  }
}

module attributes {stable_mosaic.version = 11 : i64} {
  func.func @cy2mixer_kernel(%arg0: i32, %arg1: memref<16x8x32xf32, #tpu.memory_space<vmem>>, %arg2: memref<1x32xf32, #tpu.memory_space<vmem>>, %arg3: memref<1x32xf32, #tpu.memory_space<vmem>>, %arg4: memref<32x384xf32, #tpu.memory_space<vmem>>, %arg5: memref<1x384xf32, #tpu.memory_space<vmem>>, %arg6: memref<1x32xf32, #tpu.memory_space<vmem>>, %arg7: memref<1x32xf32, #tpu.memory_space<vmem>>, %arg8: memref<16x16xf32, #tpu.memory_space<smem>>, %arg9: memref<16xf32, #tpu.memory_space<smem>>, %arg10: memref<32x32xf32, #tpu.memory_space<vmem>>, %arg11: memref<1x32xf32, #tpu.memory_space<vmem>>, %arg12: memref<16x8x32xf32, #tpu.memory_space<vmem>>, %arg13: memref<16x8x32xf32, #tpu.memory_space<vmem>>, %arg14: memref<16x8x32xf32, #tpu.memory_space<vmem>>) attributes {dimension_semantics = [#tpu.dimension_semantics<parallel>], iteration_bounds = array<i64: 2>, scalar_prefetch = 0 : i64, scratch_operands = 2 : i64, tpu.core_type = #tpu.core_type<tc>, window_params = [{transform_indices = @transform_0, window_bounds = array<i64: 16, 8, 32>}, {pipeline_mode = #tpu.pipeline_mode<synchronous>, transform_indices = @transform_1, window_bounds = array<i64: 1, 32>}, {pipeline_mode = #tpu.pipeline_mode<synchronous>, transform_indices = @transform_2, window_bounds = array<i64: 1, 32>}, {pipeline_mode = #tpu.pipeline_mode<synchronous>, transform_indices = @transform_3, window_bounds = array<i64: 32, 384>}, {pipeline_mode = #tpu.pipeline_mode<synchronous>, transform_indices = @transform_4, window_bounds = array<i64: 1, 384>}, {pipeline_mode = #tpu.pipeline_mode<synchronous>, transform_indices = @transform_5, window_bounds = array<i64: 1, 32>}, {pipeline_mode = #tpu.pipeline_mode<synchronous>, transform_indices = @transform_6, window_bounds = array<i64: 1, 32>}, {transform_indices = @transform_7, window_bounds = array<i64: 16, 16>}, {transform_indices = @transform_8, window_bounds = array<i64: 16>}, {pipeline_mode = #tpu.pipeline_mode<synchronous>, transform_indices = @transform_9, window_bounds = array<i64: 32, 32>}, {pipeline_mode = #tpu.pipeline_mode<synchronous>, transform_indices = @transform_10, window_bounds = array<i64: 1, 32>}, {transform_indices = @transform_11, window_bounds = array<i64: 16, 8, 32>}]} {
    %c0 = arith.constant 0 : index
    %c0_0 = arith.constant 0 : index
    %c0_1 = arith.constant 0 : index
    %0 = vector.load %arg1[%c0, %c0_0, %c0_1] : memref<16x8x32xf32, #tpu.memory_space<vmem>>, vector<16x8x32xf32>
    %1 = vector.shape_cast %0 : vector<16x8x32xf32> to vector<128x32xf32>
    %c0_2 = arith.constant 0 : index
    %c0_3 = arith.constant 0 : index
    %2 = vector.load %arg2[%c0_2, %c0_3] : memref<1x32xf32, #tpu.memory_space<vmem>>, vector<1x32xf32>
    %c0_4 = arith.constant 0 : index
    %c0_5 = arith.constant 0 : index
    %3 = vector.load %arg3[%c0_4, %c0_5] : memref<1x32xf32, #tpu.memory_space<vmem>>, vector<1x32xf32>
    %cst = arith.constant dense<0.000000e+00> : vector<128xf32>
    %4 = vector.multi_reduction <add>, %1, %cst [1] : vector<128x32xf32> to vector<128xf32>
    %5 = vector.shape_cast %4 : vector<128xf32> to vector<128x1xf32>
    %cst_6 = arith.constant 3.200000e+01 : f32
    %6 = vector.broadcast %cst_6 : f32 to vector<128x1xf32>
    %7 = arith.divf %5, %6 : vector<128x1xf32>
    %8 = arith.mulf %1, %1 : vector<128x32xf32>
    %cst_7 = arith.constant dense<0.000000e+00> : vector<128xf32>
    %9 = vector.multi_reduction <add>, %8, %cst_7 [1] : vector<128x32xf32> to vector<128xf32>
    %10 = vector.shape_cast %9 : vector<128xf32> to vector<128x1xf32>
    %cst_8 = arith.constant 3.200000e+01 : f32
    %11 = vector.broadcast %cst_8 : f32 to vector<128x1xf32>
    %12 = arith.divf %10, %11 : vector<128x1xf32>
    %13 = arith.mulf %7, %7 : vector<128x1xf32>
    %14 = arith.subf %12, %13 : vector<128x1xf32>
    %cst_9 = arith.constant 0.000000e+00 : f32
    %15 = vector.broadcast %cst_9 : f32 to vector<128x1xf32>
    %16 = arith.maximumf %14, %15 : vector<128x1xf32>
    %17 = vector.broadcast %7 : vector<128x1xf32> to vector<128x32xf32>
    %18 = arith.subf %1, %17 : vector<128x32xf32>
    %cst_10 = arith.constant 9.99999974E-6 : f32
    %19 = vector.broadcast %cst_10 : f32 to vector<128x1xf32>
    %20 = arith.addf %16, %19 : vector<128x1xf32>
    %21 = math.rsqrt %20 : vector<128x1xf32>
    %22 = vector.broadcast %21 : vector<128x1xf32> to vector<128x32xf32>
    %23 = arith.mulf %18, %22 : vector<128x32xf32>
    %24 = vector.broadcast %2 : vector<1x32xf32> to vector<128x32xf32>
    %25 = arith.mulf %23, %24 : vector<128x32xf32>
    %26 = vector.broadcast %3 : vector<1x32xf32> to vector<128x32xf32>
    %27 = arith.addf %25, %26 : vector<128x32xf32>
    %c0_11 = arith.constant 0 : index
    %c0_12 = arith.constant 0 : index
    %28 = vector.load %arg4[%c0_11, %c0_12] : memref<32x384xf32, #tpu.memory_space<vmem>>, vector<32x384xf32>
    %cst_13 = arith.constant dense<0.000000e+00> : vector<128x384xf32>
    %29 = tpu.matmul %27, %28, %cst_13 {dimension_numbers = #tpu.dot_dimension_numbers<[1], [0], [0], [1], [0, 0, 1, 1], [], []>} : vector<128x32xf32>, vector<32x384xf32>, vector<128x384xf32> -> vector<128x384xf32>
    %c0_14 = arith.constant 0 : index
    %c0_15 = arith.constant 0 : index
    %30 = vector.load %arg5[%c0_14, %c0_15] : memref<1x384xf32, #tpu.memory_space<vmem>>, vector<1x384xf32>
    %31 = vector.broadcast %30 : vector<1x384xf32> to vector<128x384xf32>
    %32 = arith.addf %29, %31 : vector<128x384xf32>
    %33 = vector.extract_strided_slice %32 {offsets = [0, 256], sizes = [128, 1], strides = [1, 1]} : vector<128x384xf32> to vector<128x1xf32>
    %34 = vector.extract_strided_slice %32 {offsets = [0, 257], sizes = [128, 1], strides = [1, 1]} : vector<128x384xf32> to vector<128x1xf32>
    %35 = vector.extract_strided_slice %32 {offsets = [0, 0], sizes = [128, 32], strides = [1, 1]} : vector<128x384xf32> to vector<128x32xf32>
    %36 = vector.broadcast %33 : vector<128x1xf32> to vector<128x32xf32>
    %37 = arith.mulf %35, %36 : vector<128x32xf32>
    %38 = vector.broadcast %34 : vector<128x1xf32> to vector<128x32xf32>
    %39 = arith.addf %37, %38 : vector<128x32xf32>
    %cst_16 = arith.constant 0.000000e+00 : f32
    %40 = vector.broadcast %cst_16 : f32 to vector<128x32xf32>
    %41 = arith.maximumf %39, %40 : vector<128x32xf32>
    %42 = vector.extract_strided_slice %32 {offsets = [0, 128], sizes = [128, 32], strides = [1, 1]} : vector<128x384xf32> to vector<128x32xf32>
    %43 = vector.broadcast %33 : vector<128x1xf32> to vector<128x32xf32>
    %44 = arith.mulf %42, %43 : vector<128x32xf32>
    %45 = vector.broadcast %34 : vector<128x1xf32> to vector<128x32xf32>
    %46 = arith.addf %44, %45 : vector<128x32xf32>
    %cst_17 = arith.constant 0.000000e+00 : f32
    %47 = vector.broadcast %cst_17 : f32 to vector<128x32xf32>
    %48 = arith.maximumf %46, %47 : vector<128x32xf32>
    %c0_18 = arith.constant 0 : index
    %c0_19 = arith.constant 0 : index
    %49 = vector.load %arg6[%c0_18, %c0_19] : memref<1x32xf32, #tpu.memory_space<vmem>>, vector<1x32xf32>
    %c0_20 = arith.constant 0 : index
    %c0_21 = arith.constant 0 : index
    %50 = vector.load %arg7[%c0_20, %c0_21] : memref<1x32xf32, #tpu.memory_space<vmem>>, vector<1x32xf32>
    %cst_22 = arith.constant dense<0.000000e+00> : vector<128xf32>
    %51 = vector.multi_reduction <add>, %48, %cst_22 [1] : vector<128x32xf32> to vector<128xf32>
    %52 = vector.shape_cast %51 : vector<128xf32> to vector<128x1xf32>
    %cst_23 = arith.constant 3.200000e+01 : f32
    %53 = vector.broadcast %cst_23 : f32 to vector<128x1xf32>
    %54 = arith.divf %52, %53 : vector<128x1xf32>
    %55 = arith.mulf %48, %48 : vector<128x32xf32>
    %cst_24 = arith.constant dense<0.000000e+00> : vector<128xf32>
    %56 = vector.multi_reduction <add>, %55, %cst_24 [1] : vector<128x32xf32> to vector<128xf32>
    %57 = vector.shape_cast %56 : vector<128xf32> to vector<128x1xf32>
    %cst_25 = arith.constant 3.200000e+01 : f32
    %58 = vector.broadcast %cst_25 : f32 to vector<128x1xf32>
    %59 = arith.divf %57, %58 : vector<128x1xf32>
    %60 = arith.mulf %54, %54 : vector<128x1xf32>
    %61 = arith.subf %59, %60 : vector<128x1xf32>
    %cst_26 = arith.constant 0.000000e+00 : f32
    %62 = vector.broadcast %cst_26 : f32 to vector<128x1xf32>
    %63 = arith.maximumf %61, %62 : vector<128x1xf32>
    %64 = vector.broadcast %54 : vector<128x1xf32> to vector<128x32xf32>
    %65 = arith.subf %48, %64 : vector<128x32xf32>
    %cst_27 = arith.constant 9.99999974E-6 : f32
    %66 = vector.broadcast %cst_27 : f32 to vector<128x1xf32>
    %67 = arith.addf %63, %66 : vector<128x1xf32>
    %68 = math.rsqrt %67 : vector<128x1xf32>
    %69 = vector.broadcast %68 : vector<128x1xf32> to vector<128x32xf32>
    %70 = arith.mulf %65, %69 : vector<128x32xf32>
    %71 = vector.broadcast %49 : vector<1x32xf32> to vector<128x32xf32>
    %72 = arith.mulf %70, %71 : vector<128x32xf32>
    %73 = vector.broadcast %50 : vector<1x32xf32> to vector<128x32xf32>
    %74 = arith.addf %72, %73 : vector<128x32xf32>
    %75 = vector.shape_cast %74 : vector<128x32xf32> to vector<16x8x32xf32>
    %c0_28 = arith.constant 0 : index
    %c0_29 = arith.constant 0 : index
    %c0_30 = arith.constant 0 : index
    %76 = vector.load %arg13[%c0_28, %c0_29, %c0_30] : memref<16x8x32xf32, #tpu.memory_space<vmem>>, vector<16x8x32xf32>
    tpu.vector_store %arg13[%c0_28, %c0_29, %c0_30], %75 {strides = array<i32>} : memref<16x8x32xf32, #tpu.memory_space<vmem>>, vector<16x8x32xf32>,
    %c0_i32 = arith.constant 0 : i32
    %c16_i32 = arith.constant 16 : i32
    %77 = arith.addi %c0_i32, %c16_i32 : i32
    %c1_i32 = arith.constant 1 : i32
    scf.for %arg15 = %c0_i32 to %77 step %c1_i32  : i32 {
      %91 = arith.index_cast %arg15 : i32 to index
      %92 = memref.load %arg9[%91] : memref<16xf32, #tpu.memory_space<smem>>
      %93 = vector.broadcast %92 : f32 to vector<8x32xf32>
      %c0_44 = arith.constant 0 : index
      %c0_45 = arith.constant 0 : index
      %c0_46 = arith.constant 0 : index
      %94 = vector.load %arg13[%c0_44, %c0_45, %c0_46] : memref<16x8x32xf32, #tpu.memory_space<vmem>>, vector<1x8x32xf32>
      %95 = vector.shape_cast %94 : vector<1x8x32xf32> to vector<8x32xf32>
      %96 = arith.index_cast %arg15 : i32 to index
      %c0_47 = arith.constant 0 : index
      %97 = memref.load %arg8[%96, %c0_47] : memref<16x16xf32, #tpu.memory_space<smem>>
      %98 = vector.broadcast %97 : f32 to vector<8x32xf32>
      %99 = arith.mulf %95, %98 : vector<8x32xf32>
      %100 = arith.addf %93, %99 : vector<8x32xf32>
      %c1 = arith.constant 1 : index
      %c0_48 = arith.constant 0 : index
      %c0_49 = arith.constant 0 : index
      %101 = vector.load %arg13[%c1, %c0_48, %c0_49] : memref<16x8x32xf32, #tpu.memory_space<vmem>>, vector<1x8x32xf32>
      %102 = vector.shape_cast %101 : vector<1x8x32xf32> to vector<8x32xf32>
      %103 = arith.index_cast %arg15 : i32 to index
      %c1_50 = arith.constant 1 : index
      %104 = memref.load %arg8[%103, %c1_50] : memref<16x16xf32, #tpu.memory_space<smem>>
      %105 = vector.broadcast %104 : f32 to vector<8x32xf32>
      %106 = arith.mulf %102, %105 : vector<8x32xf32>
      %107 = arith.addf %100, %106 : vector<8x32xf32>
      %c2 = arith.constant 2 : index
      %c0_51 = arith.constant 0 : index
      %c0_52 = arith.constant 0 : index
      %108 = vector.load %arg13[%c2, %c0_51, %c0_52] : memref<16x8x32xf32, #tpu.memory_space<vmem>>, vector<1x8x32xf32>
      %109 = vector.shape_cast %108 : vector<1x8x32xf32> to vector<8x32xf32>
      %110 = arith.index_cast %arg15 : i32 to index
      %c2_53 = arith.constant 2 : index
      %111 = memref.load %arg8[%110, %c2_53] : memref<16x16xf32, #tpu.memory_space<smem>>
      %112 = vector.broadcast %111 : f32 to vector<8x32xf32>
      %113 = arith.mulf %109, %112 : vector<8x32xf32>
      %114 = arith.addf %107, %113 : vector<8x32xf32>
      %c3 = arith.constant 3 : index
      %c0_54 = arith.constant 0 : index
      %c0_55 = arith.constant 0 : index
      %115 = vector.load %arg13[%c3, %c0_54, %c0_55] : memref<16x8x32xf32, #tpu.memory_space<vmem>>, vector<1x8x32xf32>
      %116 = vector.shape_cast %115 : vector<1x8x32xf32> to vector<8x32xf32>
      %117 = arith.index_cast %arg15 : i32 to index
      %c3_56 = arith.constant 3 : index
      %118 = memref.load %arg8[%117, %c3_56] : memref<16x16xf32, #tpu.memory_space<smem>>
      %119 = vector.broadcast %118 : f32 to vector<8x32xf32>
      %120 = arith.mulf %116, %119 : vector<8x32xf32>
      %121 = arith.addf %114, %120 : vector<8x32xf32>
      %c4 = arith.constant 4 : index
      %c0_57 = arith.constant 0 : index
      %c0_58 = arith.constant 0 : index
      %122 = vector.load %arg13[%c4, %c0_57, %c0_58] : memref<16x8x32xf32, #tpu.memory_space<vmem>>, vector<1x8x32xf32>
      %123 = vector.shape_cast %122 : vector<1x8x32xf32> to vector<8x32xf32>
      %124 = arith.index_cast %arg15 : i32 to index
      %c4_59 = arith.constant 4 : index
      %125 = memref.load %arg8[%124, %c4_59] : memref<16x16xf32, #tpu.memory_space<smem>>
      %126 = vector.broadcast %125 : f32 to vector<8x32xf32>
      %127 = arith.mulf %123, %126 : vector<8x32xf32>
      %128 = arith.addf %121, %127 : vector<8x32xf32>
      %c5 = arith.constant 5 : index
      %c0_60 = arith.constant 0 : index
      %c0_61 = arith.constant 0 : index
      %129 = vector.load %arg13[%c5, %c0_60, %c0_61] : memref<16x8x32xf32, #tpu.memory_space<vmem>>, vector<1x8x32xf32>
      %130 = vector.shape_cast %129 : vector<1x8x32xf32> to vector<8x32xf32>
      %131 = arith.index_cast %arg15 : i32 to index
      %c5_62 = arith.constant 5 : index
      %132 = memref.load %arg8[%131, %c5_62] : memref<16x16xf32, #tpu.memory_space<smem>>
      %133 = vector.broadcast %132 : f32 to vector<8x32xf32>
      %134 = arith.mulf %130, %133 : vector<8x32xf32>
      %135 = arith.addf %128, %134 : vector<8x32xf32>
      %c6 = arith.constant 6 : index
      %c0_63 = arith.constant 0 : index
      %c0_64 = arith.constant 0 : index
      %136 = vector.load %arg13[%c6, %c0_63, %c0_64] : memref<16x8x32xf32, #tpu.memory_space<vmem>>, vector<1x8x32xf32>
      %137 = vector.shape_cast %136 : vector<1x8x32xf32> to vector<8x32xf32>
      %138 = arith.index_cast %arg15 : i32 to index
      %c6_65 = arith.constant 6 : index
      %139 = memref.load %arg8[%138, %c6_65] : memref<16x16xf32, #tpu.memory_space<smem>>
      %140 = vector.broadcast %139 : f32 to vector<8x32xf32>
      %141 = arith.mulf %137, %140 : vector<8x32xf32>
      %142 = arith.addf %135, %141 : vector<8x32xf32>
      %c7 = arith.constant 7 : index
      %c0_66 = arith.constant 0 : index
      %c0_67 = arith.constant 0 : index
      %143 = vector.load %arg13[%c7, %c0_66, %c0_67] : memref<16x8x32xf32, #tpu.memory_space<vmem>>, vector<1x8x32xf32>
      %144 = vector.shape_cast %143 : vector<1x8x32xf32> to vector<8x32xf32>
      %145 = arith.index_cast %arg15 : i32 to index
      %c7_68 = arith.constant 7 : index
      %146 = memref.load %arg8[%145, %c7_68] : memref<16x16xf32, #tpu.memory_space<smem>>
      %147 = vector.broadcast %146 : f32 to vector<8x32xf32>
      %148 = arith.mulf %144, %147 : vector<8x32xf32>
      %149 = arith.addf %142, %148 : vector<8x32xf32>
      %c8 = arith.constant 8 : index
      %c0_69 = arith.constant 0 : index
      %c0_70 = arith.constant 0 : index
      %150 = vector.load %arg13[%c8, %c0_69, %c0_70] : memref<16x8x32xf32, #tpu.memory_space<vmem>>, vector<1x8x32xf32>
      %151 = vector.shape_cast %150 : vector<1x8x32xf32> to vector<8x32xf32>
      %152 = arith.index_cast %arg15 : i32 to index
      %c8_71 = arith.constant 8 : index
      %153 = memref.load %arg8[%152, %c8_71] : memref<16x16xf32, #tpu.memory_space<smem>>
      %154 = vector.broadcast %153 : f32 to vector<8x32xf32>
      %155 = arith.mulf %151, %154 : vector<8x32xf32>
      %156 = arith.addf %149, %155 : vector<8x32xf32>
      %c9 = arith.constant 9 : index
      %c0_72 = arith.constant 0 : index
      %c0_73 = arith.constant 0 : index
      %157 = vector.load %arg13[%c9, %c0_72, %c0_73] : memref<16x8x32xf32, #tpu.memory_space<vmem>>, vector<1x8x32xf32>
      %158 = vector.shape_cast %157 : vector<1x8x32xf32> to vector<8x32xf32>
      %159 = arith.index_cast %arg15 : i32 to index
      %c9_74 = arith.constant 9 : index
      %160 = memref.load %arg8[%159, %c9_74] : memref<16x16xf32, #tpu.memory_space<smem>>
      %161 = vector.broadcast %160 : f32 to vector<8x32xf32>
      %162 = arith.mulf %158, %161 : vector<8x32xf32>
      %163 = arith.addf %156, %162 : vector<8x32xf32>
      %c10 = arith.constant 10 : index
      %c0_75 = arith.constant 0 : index
      %c0_76 = arith.constant 0 : index
      %164 = vector.load %arg13[%c10, %c0_75, %c0_76] : memref<16x8x32xf32, #tpu.memory_space<vmem>>, vector<1x8x32xf32>
      %165 = vector.shape_cast %164 : vector<1x8x32xf32> to vector<8x32xf32>
      %166 = arith.index_cast %arg15 : i32 to index
      %c10_77 = arith.constant 10 : index
      %167 = memref.load %arg8[%166, %c10_77] : memref<16x16xf32, #tpu.memory_space<smem>>
      %168 = vector.broadcast %167 : f32 to vector<8x32xf32>
      %169 = arith.mulf %165, %168 : vector<8x32xf32>
      %170 = arith.addf %163, %169 : vector<8x32xf32>
      %c11 = arith.constant 11 : index
      %c0_78 = arith.constant 0 : index
      %c0_79 = arith.constant 0 : index
      %171 = vector.load %arg13[%c11, %c0_78, %c0_79] : memref<16x8x32xf32, #tpu.memory_space<vmem>>, vector<1x8x32xf32>
      %172 = vector.shape_cast %171 : vector<1x8x32xf32> to vector<8x32xf32>
      %173 = arith.index_cast %arg15 : i32 to index
      %c11_80 = arith.constant 11 : index
      %174 = memref.load %arg8[%173, %c11_80] : memref<16x16xf32, #tpu.memory_space<smem>>
      %175 = vector.broadcast %174 : f32 to vector<8x32xf32>
      %176 = arith.mulf %172, %175 : vector<8x32xf32>
      %177 = arith.addf %170, %176 : vector<8x32xf32>
      %c12 = arith.constant 12 : index
      %c0_81 = arith.constant 0 : index
      %c0_82 = arith.constant 0 : index
      %178 = vector.load %arg13[%c12, %c0_81, %c0_82] : memref<16x8x32xf32, #tpu.memory_space<vmem>>, vector<1x8x32xf32>
      %179 = vector.shape_cast %178 : vector<1x8x32xf32> to vector<8x32xf32>
      %180 = arith.index_cast %arg15 : i32 to index
      %c12_83 = arith.constant 12 : index
      %181 = memref.load %arg8[%180, %c12_83] : memref<16x16xf32, #tpu.memory_space<smem>>
      %182 = vector.broadcast %181 : f32 to vector<8x32xf32>
      %183 = arith.mulf %179, %182 : vector<8x32xf32>
      %184 = arith.addf %177, %183 : vector<8x32xf32>
      %c13 = arith.constant 13 : index
      %c0_84 = arith.constant 0 : index
      %c0_85 = arith.constant 0 : index
      %185 = vector.load %arg13[%c13, %c0_84, %c0_85] : memref<16x8x32xf32, #tpu.memory_space<vmem>>, vector<1x8x32xf32>
      %186 = vector.shape_cast %185 : vector<1x8x32xf32> to vector<8x32xf32>
      %187 = arith.index_cast %arg15 : i32 to index
      %c13_86 = arith.constant 13 : index
      %188 = memref.load %arg8[%187, %c13_86] : memref<16x16xf32, #tpu.memory_space<smem>>
      %189 = vector.broadcast %188 : f32 to vector<8x32xf32>
      %190 = arith.mulf %186, %189 : vector<8x32xf32>
      %191 = arith.addf %184, %190 : vector<8x32xf32>
      %c14 = arith.constant 14 : index
      %c0_87 = arith.constant 0 : index
      %c0_88 = arith.constant 0 : index
      %192 = vector.load %arg13[%c14, %c0_87, %c0_88] : memref<16x8x32xf32, #tpu.memory_space<vmem>>, vector<1x8x32xf32>
      %193 = vector.shape_cast %192 : vector<1x8x32xf32> to vector<8x32xf32>
      %194 = arith.index_cast %arg15 : i32 to index
      %c14_89 = arith.constant 14 : index
      %195 = memref.load %arg8[%194, %c14_89] : memref<16x16xf32, #tpu.memory_space<smem>>
      %196 = vector.broadcast %195 : f32 to vector<8x32xf32>
      %197 = arith.mulf %193, %196 : vector<8x32xf32>
      %198 = arith.addf %191, %197 : vector<8x32xf32>
      %c15 = arith.constant 15 : index
      %c0_90 = arith.constant 0 : index
      %c0_91 = arith.constant 0 : index
      %199 = vector.load %arg13[%c15, %c0_90, %c0_91] : memref<16x8x32xf32, #tpu.memory_space<vmem>>, vector<1x8x32xf32>
      %200 = vector.shape_cast %199 : vector<1x8x32xf32> to vector<8x32xf32>
      %201 = arith.index_cast %arg15 : i32 to index
      %c15_92 = arith.constant 15 : index
      %202 = memref.load %arg8[%201, %c15_92] : memref<16x16xf32, #tpu.memory_space<smem>>
      %203 = vector.broadcast %202 : f32 to vector<8x32xf32>
      %204 = arith.mulf %200, %203 : vector<8x32xf32>
      %205 = arith.addf %198, %204 : vector<8x32xf32>
      %206 = arith.index_cast %arg15 : i32 to index
      %c0_93 = arith.constant 0 : index
      %c0_94 = arith.constant 0 : index
      %207 = vector.load %arg14[%206, %c0_93, %c0_94] : memref<16x8x32xf32, #tpu.memory_space<vmem>>, vector<1x8x32xf32>
      %208 = vector.shape_cast %207 : vector<1x8x32xf32> to vector<8x32xf32>
      %209 = vector.shape_cast %205 : vector<8x32xf32> to vector<1x8x32xf32>
      tpu.vector_store %arg14[%206, %c0_93, %c0_94], %209 {strides = array<i32>} : memref<16x8x32xf32, #tpu.memory_space<vmem>>, vector<1x8x32xf32>,
    }
    %c16_i32_31 = arith.constant 16 : i32
    %c0_32 = arith.constant 0 : index
    %c0_33 = arith.constant 0 : index
    %c0_34 = arith.constant 0 : index
    %78 = vector.load %arg14[%c0_32, %c0_33, %c0_34] : memref<16x8x32xf32, #tpu.memory_space<vmem>>, vector<16x8x32xf32>
    %79 = vector.shape_cast %78 : vector<16x8x32xf32> to vector<128x32xf32>
    %80 = arith.mulf %41, %79 : vector<128x32xf32>
    %c0_35 = arith.constant 0 : index
    %c0_36 = arith.constant 0 : index
    %81 = vector.load %arg10[%c0_35, %c0_36] : memref<32x32xf32, #tpu.memory_space<vmem>>, vector<32x32xf32>
    %cst_37 = arith.constant dense<0.000000e+00> : vector<128x32xf32>
    %82 = tpu.matmul %80, %81, %cst_37 {dimension_numbers = #tpu.dot_dimension_numbers<[1], [0], [0], [1], [0, 0, 1, 1], [], []>} : vector<128x32xf32>, vector<32x32xf32>, vector<128x32xf32> -> vector<128x32xf32>
    %c0_38 = arith.constant 0 : index
    %c0_39 = arith.constant 0 : index
    %83 = vector.load %arg11[%c0_38, %c0_39] : memref<1x32xf32, #tpu.memory_space<vmem>>, vector<1x32xf32>
    %84 = vector.broadcast %83 : vector<1x32xf32> to vector<128x32xf32>
    %85 = arith.addf %82, %84 : vector<128x32xf32>
    %cst_40 = arith.constant 0.000000e+00 : f32
    %86 = vector.broadcast %cst_40 : f32 to vector<128x32xf32>
    %87 = arith.maximumf %85, %86 : vector<128x32xf32>
    %88 = arith.addf %87, %1 : vector<128x32xf32>
    %89 = vector.shape_cast %88 : vector<128x32xf32> to vector<16x8x32xf32>
    %c0_41 = arith.constant 0 : index
    %c0_42 = arith.constant 0 : index
    %c0_43 = arith.constant 0 : index
    %90 = vector.load %arg12[%c0_41, %c0_42, %c0_43] : memref<16x8x32xf32, #tpu.memory_space<vmem>>, vector<16x8x32xf32>
    tpu.vector_store %arg12[%c0_41, %c0_42, %c0_43], %89 {strides = array<i32>} : memref<16x8x32xf32, #tpu.memory_space<vmem>>, vector<16x8x32xf32>,
    return
  }
  func.func @transform_0(%arg0: i32) -> (i32, i32, i32) {
    %c0_i32 = arith.constant 0 : i32
    %c0_i32_0 = arith.constant 0 : i32
    %c0_i32_1 = arith.constant 0 : i32
    return %c0_i32, %arg0, %c0_i32_0 : i32, i32, i32
  }
  func.func @transform_1(%arg0: i32) -> (i32, i32) {
    %c0_i32 = arith.constant 0 : i32
    %c0_i32_0 = arith.constant 0 : i32
    %c0_i32_1 = arith.constant 0 : i32
    return %c0_i32, %c0_i32_0 : i32, i32
  }
  func.func @transform_2(%arg0: i32) -> (i32, i32) {
    %c0_i32 = arith.constant 0 : i32
    %c0_i32_0 = arith.constant 0 : i32
    %c0_i32_1 = arith.constant 0 : i32
    return %c0_i32, %c0_i32_0 : i32, i32
  }
  func.func @transform_3(%arg0: i32) -> (i32, i32) {
    %c0_i32 = arith.constant 0 : i32
    %c0_i32_0 = arith.constant 0 : i32
    %c0_i32_1 = arith.constant 0 : i32
    return %c0_i32, %c0_i32_0 : i32, i32
  }
  func.func @transform_4(%arg0: i32) -> (i32, i32) {
    %c0_i32 = arith.constant 0 : i32
    %c0_i32_0 = arith.constant 0 : i32
    %c0_i32_1 = arith.constant 0 : i32
    return %c0_i32, %c0_i32_0 : i32, i32
  }
  func.func @transform_5(%arg0: i32) -> (i32, i32) {
    %c0_i32 = arith.constant 0 : i32
    %c0_i32_0 = arith.constant 0 : i32
    %c0_i32_1 = arith.constant 0 : i32
    return %c0_i32, %c0_i32_0 : i32, i32
  }
  func.func @transform_6(%arg0: i32) -> (i32, i32) {
    %c0_i32 = arith.constant 0 : i32
    %c0_i32_0 = arith.constant 0 : i32
    %c0_i32_1 = arith.constant 0 : i32
    return %c0_i32, %c0_i32_0 : i32, i32
  }
  func.func @transform_7(%arg0: i32) -> (i32, i32) {
    %c0_i32 = arith.constant 0 : i32
    %c0_i32_0 = arith.constant 0 : i32
    %c0_i32_1 = arith.constant 0 : i32
    return %c0_i32, %c0_i32_0 : i32, i32
  }
  func.func @transform_8(%arg0: i32) -> i32 {
    %c0_i32 = arith.constant 0 : i32
    %c0_i32_0 = arith.constant 0 : i32
    return %c0_i32 : i32
  }
  func.func @transform_9(%arg0: i32) -> (i32, i32) {
    %c0_i32 = arith.constant 0 : i32
    %c0_i32_0 = arith.constant 0 : i32
    %c0_i32_1 = arith.constant 0 : i32
    return %c0_i32, %c0_i32_0 : i32, i32
  }
  func.func @transform_10(%arg0: i32) -> (i32, i32) {
    %c0_i32 = arith.constant 0 : i32
    %c0_i32_0 = arith.constant 0 : i32
    %c0_i32_1 = arith.constant 0 : i32
    return %c0_i32, %c0_i32_0 : i32, i32
  }
  func.func @transform_11(%arg0: i32) -> (i32, i32, i32) {
    %c0_i32 = arith.constant 0 : i32
    %c0_i32_0 = arith.constant 0 : i32
    %c0_i32_1 = arith.constant 0 : i32
    return %c0_i32, %arg0, %c0_i32_0 : i32, i32, i32
  }
}

</mosaic_0001>

<bundles_post_ra>
// kernel: tpu_custom_call.1
= control target key start
LH: loop header
LB: loop body
LE: loop exit
PB: predicated region body
PF: predicated region fallthrough
CT: control target
= control target key end

     0   :  { %s4293_s0 = inlined_call_operand.hbm [shape: f32[16,16,32], index: 0, kind: input, shape index: {}, may-alias: {0,11}]   ;;  %s4294_s1 = inlined_call_operand.vmem [shape: f32[1,32], index: 1, kind: input, shape index: {}]   ;;  %s4295_s2 = inlined_call_operand.vmem [shape: f32[1,32], index: 2, kind: input, shape index: {}]   ;;  %s4296_s3 = inlined_call_operand.vmem [shape: f32[32,384], index: 3, kind: input, shape index: {}]   ;;  %s4297_s4 = inlined_call_operand.vmem [shape: f32[1,384], index: 4, kind: input, shape index: {}]   ;;  %s4298_s5 = inlined_call_operand.vmem [shape: f32[1,32], index: 5, kind: input, shape index: {}]   ;;  %s4299_s6 = inlined_call_operand.vmem [shape: f32[1,32], index: 6, kind: input, shape index: {}]   ;;  %s4300_s7 = inlined_call_operand.vmem [shape: f32[16,16], index: 7, kind: input, shape index: {}]   ;;  %s4301_s8 = inlined_call_operand.vmem [shape: f32[16], index: 8, kind: input, shape index: {}]   ;;  %s4302_s9 = inlined_call_operand.vmem [shape: f32[32,32], index: 9, kind: input, shape index: {}]   ;;  %s4303_s10 = inlined_call_operand.vmem [shape: f32[1,32], index: 10, kind: input, shape index: {}]   ;;  %s4304_s11 = inlined_call_operand.hbm [shape: f32[16,16,32], index: 11, kind: output, shape index: {}, may-alias: {0,11}]  }
   0x1   :  { %4326 = sst [smem:[#allocation35_spill]] %s4293_s0 }
   0x2   :  { %4327 = sst [smem:[#allocation36_spill]] %s4300_s7 }
   0x3   :  { %4328 = sst [smem:[#allocation37_spill]] %s4301_s8 }
   0x4   :  { %16 = vsyncpa [#allocation5], 0 }
   0x5   :  { %18 = vsyncpa [#allocation5 + $0x1], 0 }
   0x6   :  { %19 = vsyncpa [#allocation7], 0 }
   0x7   :  { %20 = vsyncpa [#allocation10], 0 }
   0x8   :  { %21 = vsyncpa [#allocation6], 0 }
   0x9   :  { %23 = vsyncpa [#allocation6 + $0x1], 0  ;;  %s2780_s17 = smov 0   ;;  %s2782_s18 = smov 0  }
   0xa   :  { %s2784_s19 = smov 0   ;;  %s2786_s20 = smov 0  }
   0xb LB: > { %4329 = sst [smem:[#allocation16_spill]] %s2699_s19  ;;  %s2801_s21 = sadd.s32 4294967295, %s2703_s20   ;;  %s2703_s20 = sphi %s2786_s20, %s4411_s20   ;;  %s2699_s19 = sphi %s2784_s19, %s4416_s19   ;;  %s2695_s18 = sphi %s2782_s18, %s4415_s18   ;;  %s2691_s17 = sphi %s2780_s17, %s4414_s17  }
   0xc   : > { %4330 = sst [smem:[#allocation17_spill]] %s2703_s20  ;;  %s2298_s22 = sadd.s32 4294967294, %s2703_s20  }
   0xd   : > { %p49_p0 = scmp.ne.s32.totalorder %s2695_s18, %s2691_s17  ;;  %p50_p1 = scmp.eq.s32.totalorder %s2801_s21, 0 }
   0xe   : > { %p283_p2 = scmp.eq.s32.totalorder %s2801_s21, 1  ;;  %p289_p3 = scmp.eq.s32.totalorder %s2298_s22, 1 }
   0xf   : > { %p2810_p4 = por %p50_p1, %p49_p0  ;;  %p2299_p5 = scmp.ge.s32.totalorder %s2703_s20, 1 }
  0x10   : > { %p2815_p6 = por %p289_p3, %p49_p0  ;;  %p296_p7 = scmp.lt.s32.totalorder %s2703_s20, 3 }
  0x11   : > { %s4333_s7 = sld [smem:[#allocation36_spill]]  ;;  %s2709_s13 = smov [#allocation8]  }
  0x12   : > { %p2823_p8 = pnand %p2299_p5, %p296_p7  ;;  %s4335_s8 = sld [smem:[#allocation37_spill]] }
  0x13   : > { %s4305_s14 = smov 128   ;;  %s4306_s15 = smov 8  }
  0x14   : > { %p2392_p9 = pneg %p2823_p8  ;;  %s2712_s16 = smov [#allocation9]  }
  0x15   : > { %s2839_s22 = sadd.s32 1, %s2703_s20   ;;  %s36_s25 = sadd.s32 1, %s2699_s19 }
  0x16   : > { %p2393_p11 = pnand %p2392_p9, %p50_p1  ;;  %4336 = sst [smem:[#allocation18_spill]] %s2839_s22 }
  0x17   : > { %s325_s27 = sshll.u32 %s4333_s7, 4  ;;  %s33_s26 = ssub.s32 %s2703_s20, %s2839_s22  ;;  %s326_s27 = int_to_ptr.vmem [resolvable:$true] %s325_s27 }
  0x18   : > { %s338_s12 = sshll.u32 %s4335_s8, 4  ;;  %p43_p12 = scmp.ne.s32.totalorder %s2699_s19, %s2695_s18  ;;  %s339_s12 = int_to_ptr.vmem [resolvable:$true] %s338_s12 }
  0x19   : > { %2395 = dma.vmem_to_smem (!%p2393_p11), %s326_s27, 256, %s2709_s13, [#allocation7], %s4305_s14, %s4305_s14, %s4306_s15  }
  0x1a   : > { %2398 = dma.vmem_to_smem (!%p2393_p11), %s339_s12, 16, %s2712_s16, [#allocation10]  }
  0x1b   : > { %p34_p13 = scmp.eq.s32.totalorder %s33_s26, 0  ;;  %p44_p0 = scmp.eq.s32.totalorder %s2703_s20, 0 }
  0x1c   : > { %p2849_p3 = por %p283_p2, %p43_p12  ;;  %p2409_p5 = scmp.lt.s32.totalorder %s2703_s20, 2 }
  0x1d   : > { %s2855_s30 = scalar_select %p34_p13, %s2699_s19, %s36_s25  }
  0x1e   : > { %p45_p7 = por %p44_p0, %p43_p12  ;;  %s355_s27 = sand.u32 1, %s2699_s19  }
  0x1f   : > { %4338 = sst [smem:[#allocation19_spill]] %s2855_s30  ;;  %s2303_s13 = sshll.u32 %s355_s27, 7 }
  0x20   : > { %s2304_s12 = sshll.u32 %s2703_s20, 3  ;;  %s4339_s0 = sld [smem:[#allocation35_spill]] }
  0x21   : > { %s359_s7 = scalar_lea.vmem [#allocation4], %s2303_s13  ;;  %p2862_p2 = pnand %p2409_p5, %p45_p7 }
  0x22   : > { %s366_s8 = sshll.u32 %s359_s7, 4  ;;  %s356_s25 = scalar_lea.sflag [#allocation5], %s355_s27  ;;  %s367_s8 = int_to_ptr.vmem [resolvable:$true] %s366_s8 }
  0x23   : > { %p2599_p11 = pneg %p2862_p2 }
  0x26   : > { %s363_s15 = scalar_lea.hbm %s4339_s0, %s2304_s12  ;;  %s2602_s7 = scalar_lea.hbm %s4339_s0, 256 }
  0x27   : > { %s364_s26 = sshll.u32 %s363_s15, 4  ;;  %s365_s26 = int_to_ptr.hbm [resolvable:$true] %s364_s26 }
  0x28   : > { %s2595_s30 = sshra.s32 %s365_s26, 4  ;;  %s2596_s30 = int_to_ptr.hbm [resolvable:$true] %s2595_s30 }
  0x29   : > { %s2597_s19 = scalar_lea.hbm %s2596_s30, 128  ;;  %p2603_p0 = scmp.lt.s32.totalorder %s2596_s30, %s4339_s0 }
  0x2a   : > { %p2598_p9 = scmp.ne.s32.totalorder %s2596_s30, %s2597_s19  ;;  %p2604_p5 = scmp.lt.s32.totalorder %s2602_s7, %s2597_s19 }
  0x2c   : > { %p2600_p12 = pnand %p2599_p11, %p2598_p9  ;;  %p2605_p7 = por %p2604_p5, %p2603_p0 }
  0x2e   : > { %p2601_p13 = pneg %p2600_p12 }
  0x30   : > { %p2606_p10 = pnand %p2605_p7, %p2601_p13 }
  0x32   : > { %2609 = shalt.err (!%p2606_p10)
}
  0x33   : > { %s2713_s27 = smov 256   ;;  %s4341_s16 = smov 8  }
  0x34   : > { %s4342_s20 = smov 128   ;;  %378 = sbr.rel (%p2823_p8) target bundleno = 1075 (0x433), region = 64 }
  0x35   : > { %2402 = dma.hbm_to_vmem [thread:$0]  (!%p2862_p2), %s365_s26, 2048, %s367_s8, %s356_s25, %s2713_s27, %s4342_s20, %s4341_s16  }
  0x39   : > { %s2881_s14 = sand.u32 1, %s2695_s18  }
  0x3a   : > { %s2306_s19 = sshll.u32 %s2881_s14, 7  ;;  %s381_s30 = scalar_lea.sflag [#allocation5], %s2881_s14 }
  0x3b   : > { %s2887_s13 = scalar_lea.vmem [#allocation4], %s2306_s19 }
  0x3c   : > { %2674 = dma.done.wait (%p2810_p4), %s381_s30, 2048  }
  0x3d   : > { %2676 = vsyncadd (%p2810_p4), %s381_s30, 4294965248 }
  0x3e   : > { %2678 = dma.done.wait (%p50_p1), [#allocation7], 256  }
  0x3f   : > { %2680 = vsyncadd (%p50_p1), [#allocation7], 4294967040 }
  0x40   : > { %2682 = dma.done.wait (%p50_p1), [#allocation10], 16  }
  0x41   : > { %2684 = vsyncadd (%p50_p1), [#allocation10], 4294967280 }
  0x42   : > { %400 = sfence }
  0x43   : > { %v2902_v0 = vld [vmem:[%s2887_s13 + $0x10] sm:$0xff]  ;;  %vm453_vm0 = vcmask 261120   ;;  %v2905_v1 = vld [vmem:[%s2887_s13 + $0x8] sm:$0xff]  ;;  %v2908_v2 = vld [vmem:[%s2887_s13] sm:$0xff]  ;;  %s4077_s25 = scalar_lea.vmem [#allocation11], %s2306_s19  ;;  %s4079_s7 = smov 0  }
  0x44   : > { %4343 = vst [vmem:[#allocation20_spill] sm:$0xff] %v2902_v0  ;;  %v460_v3 = vsel %vm453_vm0, %v2902_v0, 0.0  ;;  %v457_v4 = vsel %vm453_vm0, %v2905_v1, 0.0  ;;  %v454_v5 = vsel %vm453_vm0, %v2908_v2, 0.0  ;;  %v527_v6 = vmul.f32 %v2902_v0, %v2902_v0  ;;  %v2926_v12 = vld [vmem:[%s2887_s13 + $0x18] sm:$0xff]  ;;  %v2931_v14 = vld [vmem:[%s2887_s13 + $0x20] sm:$0xff] }
  0x45   : > { %4344 = vst [vmem:[#allocation21_spill] sm:$0xff] %v2905_v1  ;;  %461 = vadd.xlane.f32.xlu2 %v460_v3  ;;  %458 = vadd.xlane.f32.xlu1 %v457_v4  ;;  %v526_v7 = vmul.f32 %v2905_v1, %v2905_v1  ;;  %v525_v8 = vmul.f32 %v2908_v2, %v2908_v2  ;;  %v466_v16 = vsel %vm453_vm0, %v2931_v14, 0.0  ;;  %v463_v17 = vsel %vm453_vm0, %v2926_v12, 0.0  ;;  %v2939_v18 = vld [vmem:[%s2887_s13 + $0x28] sm:$0xff]  ;;  %v2950_v24 = vld [vmem:[%s2887_s13 + $0x30] sm:$0xff]  ;;  %v2955_v26 = vld [vmem:[%s2887_s13 + $0x38] sm:$0xff] }
  0x46   : > { %455 = vadd.xlane.f32.xlu0 %v454_v5  ;;  %v547_v9 = vsel %vm453_vm0, %v527_v6, 0.0  ;;  %4345 = vst [vmem:[#allocation22_spill] sm:$0xff] %v2926_v12  ;;  %v528_v13 = vmul.f32 %v2926_v12, %v2926_v12  ;;  %v530_v19 = vmul.f32 %v2939_v18, %v2939_v18  ;;  %v529_v20 = vmul.f32 %v2931_v14, %v2931_v14  ;;  %v2963_v30 = vld [vmem:[%s2887_s13 + $0x40] sm:$0xff]  ;;  %v2974_v36 = vld [vmem:[%s2887_s13 + $0x48] sm:$0xff]  ;;  %v2979_v38 = vld [vmem:[%s2887_s13 + $0x50] sm:$0xff] }
  0x47   : > { %v544_v10 = vsel %vm453_vm0, %v526_v7, 0.0  ;;  %v541_v11 = vsel %vm453_vm0, %v525_v8, 0.0  ;;  %4346 = vst [vmem:[#allocation23_spill] sm:$0xff] %v2931_v14  ;;  %v469_v21 = vsel %vm453_vm0, %v2939_v18, 0.0  ;;  %v531_v25 = vmul.f32 %v2950_v24, %v2950_v24  ;;  %v2987_v42 = vld [vmem:[%s2887_s13 + $0x58] sm:$0xff]  ;;  %v2998_v48 = vld [vmem:[%s2887_s13 + $0x60] sm:$0xff] }
  0x48   : > { %v550_v15 = vsel %vm453_vm0, %v528_v13, 0.0  ;;  %4347 = vst [vmem:[#allocation24_spill] sm:$0xff] %v2939_v18  ;;  %v556_v22 = vsel %vm453_vm0, %v530_v19, 0.0  ;;  %v553_v23 = vsel %vm453_vm0, %v529_v20, 0.0  ;;  %v475_v28 = vsel %vm453_vm0, %v2955_v26, 0.0  ;;  %v3003_v50 = vld [vmem:[%s2887_s13 + $0x68] sm:$0xff] }
  0x49   : > { %4348 = vst [vmem:[#allocation25_spill] sm:$0xff] %v2950_v24  ;;  %v559_v27 = vsel %vm453_vm0, %v531_v25, 0.0  ;;  %v472_v29 = vsel %vm453_vm0, %v2950_v24, 0.0  ;;  %v533_v31 = vmul.f32 %v2963_v30, %v2963_v30  ;;  %v532_v32 = vmul.f32 %v2955_v26, %v2955_v26  ;;  %v3011_v54 = vld [vmem:[%s2887_s13 + $0x70] sm:$0xff]  ;;  %v3022_v60 = vld [vmem:[%s2887_s13 + $0x78] sm:$0xff] }
  0x4a   : > { %4349 = vst [vmem:[#allocation26_spill] sm:$0xff] %v2955_v26  ;;  %v478_v33 = vsel %vm453_vm0, %v2963_v30, 0.0  ;;  %v534_v37 = vmul.f32 %v2974_v36, %v2974_v36  ;;  %v484_v40 = vsel %vm453_vm0, %v2979_v38, 0.0  ;;  %v481_v41 = vsel %vm453_vm0, %v2974_v36, 0.0  ;;  %v909_v19 = vld [vmem:[%s4296_s3 + $0x50] sm:$0xff]  ;;  %v910_v20 = vld [vmem:[%s4296_s3 + $0x58] sm:$0xff] }
  0x4b   : > { %4350 = vst [vmem:[#allocation27_spill] sm:$0xff] %v2963_v30  ;;  %v565_v34 = vsel %vm453_vm0, %v533_v31, 0.0  ;;  %v562_v35 = vsel %vm453_vm0, %v532_v32, 0.0  ;;  %v536_v43 = vmul.f32 %v2987_v42, %v2987_v42  ;;  %v535_v44 = vmul.f32 %v2979_v38, %v2979_v38  ;;  %1044 = vmatpush.msra.mxu1 %v909_v19  ;;  %1109 = vmatpush.msra.mxu2 %v910_v20  ;;  %v903_v31 = vld [vmem:[%s4296_s3 + $0x20] sm:$0xff]  ;;  %v904_v32 = vld [vmem:[%s4296_s3 + $0x28] sm:$0xff] }
  0x4c   : > { %4351 = vst [vmem:[#allocation28_spill] sm:$0xff] %v2974_v36  ;;  %v568_v39 = vsel %vm453_vm0, %v534_v37, 0.0  ;;  %v487_v45 = vsel %vm453_vm0, %v2987_v42, 0.0  ;;  %v537_v49 = vmul.f32 %v2998_v48, %v2998_v48  ;;  %v493_v52 = vsel %vm453_vm0, %v3003_v50, 0.0 }
  0x4d   : > { %548 = vadd.xlane.f32.xlu2 %v547_v9  ;;  %545 = vadd.xlane.f32.xlu1 %v544_v10  ;;  %4352 = vst [vmem:[#allocation29_spill] sm:$0xff] %v2979_v38  ;;  %v574_v46 = vsel %vm453_vm0, %v536_v43, 0.0  ;;  %v571_v47 = vsel %vm453_vm0, %v535_v44, 0.0  ;;  %v490_v53 = vsel %vm453_vm0, %v2998_v48, 0.0  ;;  %v539_v55 = vmul.f32 %v3011_v54, %v3011_v54  ;;  %v901_v43 = vld [vmem:[%s4296_s3 + $0x10] sm:$0xff] }
  0x4e   : > { %542 = vadd.xlane.f32.xlu0 %v541_v11  ;;  %4353 = vst [vmem:[#allocation30_spill] sm:$0xff] %v2987_v42  ;;  %v577_v51 = vsel %vm453_vm0, %v537_v49, 0.0  ;;  %v538_v56 = vmul.f32 %v3003_v50, %v3003_v50  ;;  %v496_v57 = vsel %vm453_vm0, %v3011_v54, 0.0  ;;  %v540_v61 = vmul.f32 %v3022_v60, %v3022_v60 }
  0x4f   : > { %4354 = vst [vmem:[#allocation31_spill] sm:$0xff] %v2998_v48  ;;  %v583_v58 = vsel %vm453_vm0, %v539_v55, 0.0  ;;  %v499_v63 = vsel %vm453_vm0, %v3022_v60, 0.0  ;;  %v2714_v3 = vmov 32.0  }
  0x50   : > { %4355 = vst [vmem:[#allocation32_spill] sm:$0xff] %v3003_v50  ;;  %v580_v59 = vsel %vm453_vm0, %v538_v56, 0.0  ;;  %v586_v62 = vsel %vm453_vm0, %v540_v61, 0.0  ;;  %2498 = vrcp.f32 %v2714_v3 }
  0x51   : > { %4356 = vst [vmem:[#allocation33_spill] sm:$0xff] %v3011_v54 }
  0x52   : > { %4357 = vst [vmem:[#allocation34_spill] sm:$0xff] %v3022_v60 }
  0x55   : > { %551 = vadd.xlane.f32.xlu1 %v550_v15  ;;  %467 = vadd.xlane.f32.xlu2 %v466_v16 }
  0x56   : > { %464 = vadd.xlane.f32.xlu0 %v463_v17  ;;  %v2499_v4 = vpop.eup %2498  ;;  %v908_v17 = vld [vmem:[%s4296_s3 + $0x48] sm:$0xff] }
  0x57   : > { %v503_v5 = vmul.f32 32.0, %v2499_v4  ;;  %vm507_vm1 = vweird.f32 %v2499_v4  ;;  %979 = vmatpush.msra.mxu0 %v908_v17 }
  0x59   : > { %v504_v6 = vsub.f32 1.0, %v503_v5 }
  0x5b   : > { %v505_v7 = vmul.f32 %v2499_v4, %v504_v6 }
  0x5d   : > { %470 = vadd.xlane.f32.xlu1 %v469_v21  ;;  %557 = vadd.xlane.f32.xlu2 %v556_v22  ;;  %v506_v8 = vadd.f32 %v2499_v4, %v505_v7  ;;  %v905_v21 = vld [vmem:[%s4296_s3 + $0x30] sm:$0xff]  ;;  %v906_v22 = vld [vmem:[%s4296_s3 + $0x38] sm:$0xff] }
  0x5e   : > { %554 = vadd.xlane.f32.xlu0 %v553_v23  ;;  %v907_v23 = vld [vmem:[%s4296_s3 + $0x40] sm:$0xff]  ;;  %980 = vmatpush.msra.mxu0 %v905_v21 }
  0x5f   : > { %v3029_v13 = vsel %vm507_vm1, %v2499_v4, %v506_v8  ;;  %1045 = vmatpush.msra.mxu1 %v906_v22  ;;  %1110 = vmatpush.msra.mxu2 %v907_v23 }
  0x61   : > { %1046 = vmatpush.msra.mxu1 %v903_v31  ;;  %1111 = vmatpush.msra.mxu2 %v904_v32 }
  0x63   : > { %1112 = vmatpush.msra.mxu2 %v901_v43 }
  0x65   : > { %560 = vadd.xlane.f32.xlu1 %v559_v27  ;;  %476 = vadd.xlane.f32.xlu2 %v475_v28 }
  0x66   : > { %473 = vadd.xlane.f32.xlu0 %v472_v29  ;;  %v902_v29 = vld [vmem:[%s4296_s3 + $0x18] sm:$0xff] }
  0x67   : > { %981 = vmatpush.msra.mxu0 %v902_v29 }
  0x6d   : > { %479 = vadd.xlane.f32.xlu1 %v478_v33  ;;  %566 = vadd.xlane.f32.xlu2 %v565_v34 }
  0x6e   : > { %563 = vadd.xlane.f32.xlu0 %v562_v35 }
  0x75   : > { %569 = vadd.xlane.f32.xlu1 %v568_v39  ;;  %485 = vadd.xlane.f32.xlu2 %v484_v40  ;;  %v899_v40 = vld [vmem:[%s4296_s3] sm:$0xff] }
  0x76   : > { %482 = vadd.xlane.f32.xlu0 %v481_v41  ;;  %v900_v41 = vld [vmem:[%s4296_s3 + $0x8] sm:$0xff]  ;;  %982 = vmatpush.msra.mxu0 %v899_v40 }
  0x77   : > { %1047 = vmatpush.msra.mxu1 %v900_v41 }
  0x7d   : > { %488 = vadd.xlane.f32.xlu1 %v487_v45  ;;  %575 = vadd.xlane.f32.xlu2 %v574_v46 }
  0x7e   : > { %572 = vadd.xlane.f32.xlu0 %v571_v47 }
  0x85   : > { %578 = vadd.xlane.f32.xlu1 %v577_v51  ;;  %494 = vadd.xlane.f32.xlu2 %v493_v52 }
  0x86   : > { %491 = vadd.xlane.f32.xlu0 %v490_v53 }
  0x8d   : > { %497 = vadd.xlane.f32.xlu1 %v496_v57  ;;  %584 = vadd.xlane.f32.xlu2 %v583_v58 }
  0x8e   : > { %581 = vadd.xlane.f32.xlu0 %v580_v59 }
  0x95   : > { %587 = vadd.xlane.f32.xlu1 %v586_v62 }
  0x96   : > { %500 = vadd.xlane.f32.xlu0 %v499_v63 }
  0xb8   : > { %v462_v9 = vpop.xlane.xlu2 %461  ;;  %v459_v10 = vpop.xlane.xlu1 %458 }
  0xb9   : > { %v456_v11 = vpop.xlane.xlu0 %455  ;;  %v3032_v15 = vmul.f32 %v3029_v13, %v462_v9  ;;  %v3035_v16 = vmul.f32 %v3029_v13, %v459_v10 }
  0xba   : > { %v3056_v25 = vmul.f32 %v3029_v13, %v456_v11 }
  0xbb   : > { %v607_v27 = vmul.f32 %v3032_v15, %v3032_v15  ;;  %v606_v28 = vmul.f32 %v3035_v16, %v3035_v16 }
  0xbc   : > { %v605_v44 = vmul.f32 %v3056_v25, %v3056_v25 }
  0xc0   : > { %v549_v33 = vpop.xlane.xlu2 %548  ;;  %v546_v34 = vpop.xlane.xlu1 %545 }
  0xc1   : > { %v591_v35 = vmul.f32 %v549_v33, %v3029_v13  ;;  %v590_v37 = vmul.f32 %v546_v34, %v3029_v13  ;;  %v543_v39 = vpop.xlane.xlu0 %542 }
  0xc2   : > { %v589_v45 = vmul.f32 %v543_v39, %v3029_v13 }
  0xc3   : > { %v623_v46 = vsub.f32 %v591_v35, %v607_v27  ;;  %v622_v47 = vsub.f32 %v590_v37, %v606_v28 }
  0xc4   : > { %v621_v49 = vsub.f32 %v589_v45, %v605_v44 }
  0xc5   : > { %v639_v51 = vmax.f32 %v623_v46, 0.0  ;;  %v638_v52 = vmax.f32 %v622_v47, 0.0 }
  0xc6   : > { %v637_v53 = vmax.f32 %v621_v49, 0.0 }
  0xc7   : > { %v3085_v55 = vadd.f32 1e-05, %v639_v51  ;;  %v3087_v56 = vadd.f32 1e-05, %v638_v52 }
  0xc8   : > { %v669_v57 = vadd.f32 1e-05, %v637_v53  ;;  %v552_v58 = vpop.xlane.xlu1 %551  ;;  %v468_v59 = vpop.xlane.xlu2 %467 }
  0xc9   : > { %2500 = vrsqrt.f32 %v3085_v55  ;;  %v465_v61 = vpop.xlane.xlu0 %464  ;;  %v592_v62 = vmul.f32 %v552_v58, %v3029_v13  ;;  %v3098_v4 = vmul.f32 %v3029_v13, %v468_v59  ;;  %vm701_vm6 = vweird.f32 %v3087_v56 }
  0xca   : > { %2502 = vrsqrt.f32 %v3087_v56  ;;  %v3093_v63 = vmul.f32 %v3029_v13, %v465_v61  ;;  %vm691_vm3 = vweird.f32 %v669_v57  ;;  %vm711_vm8 = vweird.f32 %v3085_v55 }
  0xcb   : > { %2504 = vrsqrt.f32 %v669_v57  ;;  %v609_v19 = vmul.f32 %v3098_v4, %v3098_v4 }
  0xcc   : > { %v608_v3 = vmul.f32 %v3093_v63, %v3093_v63 }
  0xce   : > { %v624_v5 = vsub.f32 %v592_v62, %v608_v3  ;;  %v653_v3 = vsub.f32 %v2908_v2, %v3056_v25 }
  0xcf   : > { %v3100_v6 = vpop.eup %2500 }
  0xd0   : > { %v3102_v7 = vpop.eup %2502  ;;  %v640_v8 = vmax.f32 %v624_v5, 0.0  ;;  %v471_v9 = vpop.xlane.xlu1 %470  ;;  %v706_v23 = vmul.f32 %v3100_v6, %v3085_v55  ;;  %vm712_vm9 = vweird.f32 %v3100_v6  ;;  %v655_v55 = vsub.f32 %v2902_v0, %v3032_v15 }
  0xd1   : > { %v558_v10 = vpop.xlane.xlu2 %557  ;;  %v2505_v11 = vpop.eup %2504  ;;  %v696_v17 = vmul.f32 %v3102_v7, %v3087_v56  ;;  %v3109_v20 = vmul.f32 %v3029_v13, %v471_v9  ;;  %vm702_vm4 = vweird.f32 %v3102_v7  ;;  %vm3186_vm10 = vmor %vm711_vm8, %vm712_vm9 }
  0xd2   : > { %v555_v21 = vpop.xlane.xlu0 %554  ;;  %v594_v22 = vmul.f32 %v558_v10, %v3029_v13  ;;  %v686_v27 = vmul.f32 %v2505_v11, %v669_v57  ;;  %v3114_v28 = vadd.f32 1e-05, %v640_v8  ;;  %v707_v39 = vmul.f32 %v3100_v6, %v706_v23  ;;  %v3143_v57 = vld [vmem:[%s4294_s1] ss:$0 sm:$0xff]  ;;  %vm3151_vm7 = vmor %vm701_vm6, %vm702_vm4 }
  0xd3   : > { %v697_v29 = vmul.f32 %v3102_v7, %v696_v17  ;;  %v610_v31 = vmul.f32 %v3109_v20, %v3109_v20  ;;  %v593_v32 = vmul.f32 %v555_v21, %v3029_v13  ;;  %vm692_vm2 = vweird.f32 %v2505_v11 }
  0xd4   : > { %v687_v33 = vmul.f32 %v2505_v11, %v686_v27  ;;  %2506 = vrsqrt.f32 %v3114_v28  ;;  %v708_v52 = vmul.f32 0.5, %v707_v39  ;;  %vm693_vm5 = vmor %vm691_vm3, %vm692_vm2  ;;  %v3159_v27 = vld [vmem:[%s4295_s2] ss:$0 sm:$0xff]  ;;  %vm721_vm11 = vweird.f32 %v3114_v28 }
  0xd5   : > { %v698_v34 = vmul.f32 0.5, %v697_v29  ;;  %v625_v35 = vsub.f32 %v593_v32, %v609_v19  ;;  %v626_v37 = vsub.f32 %v594_v22, %v610_v31  ;;  %v654_v31 = vsub.f32 %v2905_v1, %v3035_v16 }
  0xd6   : > { %v688_v40 = vmul.f32 0.5, %v687_v33  ;;  %v709_v25 = vsub.f32 1.5, %v708_v52 }
  0xd7   : > { %v641_v41 = vmax.f32 %v625_v35, 0.0  ;;  %v699_v43 = vsub.f32 1.5, %v698_v34  ;;  %v642_v47 = vmax.f32 %v626_v37, 0.0 }
  0xd8   : > { %v689_v44 = vsub.f32 1.5, %v688_v40  ;;  %v561_v45 = vpop.xlane.xlu1 %560  ;;  %v710_v33 = vmul.f32 %v3100_v6, %v709_v25 }
  0xd9   : > { %v3122_v46 = vadd.f32 1e-05, %v641_v41  ;;  %v595_v59 = vmul.f32 %v561_v45, %v3029_v13  ;;  %v477_v62 = vpop.xlane.xlu2 %476  ;;  %v700_v5 = vmul.f32 %v3102_v7, %v699_v43  ;;  %v3146_v9 = vadd.f32 1e-05, %v642_v47 }
  0xda   : > { %v474_v49 = vpop.xlane.xlu0 %473  ;;  %v3124_v51 = vpop.eup %2506  ;;  %v690_v53 = vmul.f32 %v2505_v11, %v689_v44  ;;  %v3149_v19 = vmul.f32 %v3029_v13, %v477_v62 }
  0xdb   : > { %v3127_v58 = vmul.f32 %v3029_v13, %v474_v49  ;;  %v716_v61 = vmul.f32 %v3124_v51, %v3114_v28  ;;  %2508 = vrsqrt.f32 %v3122_v46  ;;  %vm722_vm12 = vweird.f32 %v3124_v51 }
  0xdc   : > { %v694_v10 = vsel %vm693_vm5, %v2505_v11, %v690_v53  ;;  %v704_v11 = vsel %vm3151_vm7, %v3102_v7, %v700_v5  ;;  %2510 = vrsqrt.f32 %v3146_v9  ;;  %v612_v35 = vmul.f32 %v3149_v19, %v3149_v19  ;;  %vm3212_vm13 = vmor %vm721_vm11, %vm722_vm12 }
  0xdd   : > { %v611_v8 = vmul.f32 %v3127_v58, %v3127_v58  ;;  %v845_v21 = vmul.f32 %v694_v10, %v653_v3  ;;  %v717_v23 = vmul.f32 %v3124_v51, %v716_v61  ;;  %v846_v16 = vmul.f32 %v704_v11, %v654_v31 }
  0xde   : > { %v714_v61 = vsel %vm3186_vm10, %v3100_v6, %v710_v33  ;;  %vm731_vm14 = vweird.f32 %v3122_v46  ;;  %vm741_vm2 = vweird.f32 %v3146_v9 }
  0xdf   : > { %v627_v17 = vsub.f32 %v595_v59, %v611_v8  ;;  %v864_v56 = vmul.f32 %v3143_v57, %v845_v21  ;;  %v718_v7 = vmul.f32 0.5, %v717_v23  ;;  %v865_v59 = vmul.f32 %v3143_v57, %v846_v16 }
  0xe0   : > { %v480_v37 = vpop.xlane.xlu1 %479  ;;  %v847_v6 = vmul.f32 %v714_v61, %v655_v55 }
  0xe1   : > { %v3165_v29 = vpop.eup %2508  ;;  %v643_v34 = vmax.f32 %v627_v17, 0.0  ;;  %v883_v40 = vadd.f32 %v3159_v27, %v864_v56  ;;  %v3182_v43 = vmul.f32 %v3029_v13, %v480_v37  ;;  %v567_v47 = vpop.xlane.xlu2 %566  ;;  %v719_v52 = vsub.f32 1.5, %v718_v7 }
  0xe2   : > { %v564_v32 = vpop.xlane.xlu0 %563  ;;  %v726_v41 = vmul.f32 %v3165_v29, %v3122_v46  ;;  %v3193_v49 = vpop.eup %2510  ;;  %v597_v5 = vmul.f32 %v567_v47, %v3029_v13  ;;  %v884_v25 = vadd.f32 %v3159_v27, %v865_v59  ;;  %v866_v56 = vmul.f32 %v3143_v57, %v847_v6 }
  0xe3   : > { %v596_v39 = vmul.f32 %v564_v32, %v3029_v13  ;;  %2310 = vmatmul.msk.f32.vlgmr.msra.gmra.mxu0 %vm453_vm0, %v883_v40  ;;  %2326 = vmatmul.msk.f32.vlgmr.msra.gmra.mxu1 %vm453_vm0, %v883_v40  ;;  %v3190_v45 = vadd.f32 1e-05, %v643_v34  ;;  %v613_v3 = vmul.f32 %v3182_v43, %v3182_v43  ;;  %v736_v8 = vmul.f32 %v3193_v49, %v3146_v9 }
  0xe4   : > { %2342 = vmatmul.msk.f32.vlgmr.msra.gmra.mxu2 %vm453_vm0, %v883_v40  ;;  %v727_v62 = vmul.f32 %v3165_v29, %v726_v41  ;;  %v720_v10 = vmul.f32 %v3124_v51, %v719_v52  ;;  %v656_v34 = vsub.f32 %v2926_v12, %v3093_v63  ;;  %vm732_vm15 = vweird.f32 %v3165_v29 }
  0xe5   : > { %v628_v53 = vsub.f32 %v596_v39, %v612_v35  ;;  %2512 = vrsqrt.f32 %v3190_v45  ;;  %v629_v22 = vsub.f32 %v597_v5, %v613_v3  ;;  %v737_v23 = vmul.f32 %v3193_v49, %v736_v8  ;;  %vm3243_vm1 = vmor %vm731_vm14, %vm732_vm15 }
  0xe6   : > { %v728_v17 = vmul.f32 0.5, %v727_v62  ;;  %v724_v11 = vsel %vm3212_vm13, %v3124_v51, %v720_v10  ;;  %v885_v51 = vadd.f32 %v3159_v27, %v866_v56  ;;  %vm742_vm3 = vweird.f32 %v3193_v49 }
  0xe7   : > { %v644_v15 = vmax.f32 %v628_v53, 0.0  ;;  %v645_v7 = vmax.f32 %v629_v22, 0.0  ;;  %v848_v39 = vmul.f32 %v724_v11, %v656_v34  ;;  %v738_v40 = vmul.f32 0.5, %v737_v23  ;;  %vm3271_vm4 = vmor %vm741_vm2, %vm742_vm3 }
  0xe8   : > { %v729_v35 = vsub.f32 1.5, %v728_v17  ;;  %v570_v37 = vpop.xlane.xlu1 %569  ;;  %v657_v6 = vsub.f32 %v2931_v14, %v3098_v4  ;;  %vm751_vm5 = vweird.f32 %v3190_v45  ;;  %v3872_v14 = vld [vmem:[%s4299_s6] ss:$0 sm:$0xff] }
  0xe9   : > { %v3224_v31 = vadd.f32 1e-05, %v644_v15  ;;  %v598_v63 = vmul.f32 %v570_v37, %v3029_v13  ;;  %v486_v44 = vpop.xlane.xlu2 %485  ;;  %v3247_v52 = vadd.f32 1e-05, %v645_v7  ;;  %v739_v53 = vsub.f32 1.5, %v738_v40 }
  0xea   : > { %v483_v21 = vpop.xlane.xlu0 %482  ;;  %v730_v46 = vmul.f32 %v3165_v29, %v729_v35  ;;  %v3253_v59 = vmul.f32 %v3029_v13, %v486_v44  ;;  %v867_v61 = vmul.f32 %v3143_v57, %v848_v39  ;;  %v658_v40 = vsub.f32 %v2939_v18, %v3109_v20 }
  0xeb   : > { %2311 = vmatmul.msk.f32.gmra.mxu0 %vm453_vm0, %v884_v25  ;;  %2327 = vmatmul.msk.f32.gmra.mxu1 %vm453_vm0, %v884_v25  ;;  %v3227_v32 = vmul.f32 %v3029_v13, %v483_v21  ;;  %v3229_v33 = vpop.eup %2512  ;;  %2514 = vrsqrt.f32 %v3224_v31  ;;  %v740_v10 = vmul.f32 %v3193_v49, %v739_v53  ;;  %vm761_vm8 = vweird.f32 %v3224_v31 }
  0xec   : > { %2343 = vmatmul.msk.f32.gmra.mxu2 %vm453_vm0, %v884_v25  ;;  %v746_v16 = vmul.f32 %v3229_v33, %v3190_v45  ;;  %v734_v5 = vsel %vm3243_vm1, %v3165_v29, %v730_v46  ;;  %2516 = vrsqrt.f32 %v3247_v52  ;;  %v615_v15 = vmul.f32 %v3253_v59, %v3253_v59 }
  0xed   : > { %v614_v41 = vmul.f32 %v3227_v32, %v3227_v32  ;;  %v886_v9 = vadd.f32 %v3159_v27, %v867_v61  ;;  %v849_v22 = vmul.f32 %v734_v5, %v657_v6  ;;  %v744_v56 = vsel %vm3271_vm4, %v3193_v49, %v740_v10 }
  0xee   : > { %v747_v55 = vmul.f32 %v3229_v33, %v746_v16  ;;  %vm752_vm6 = vweird.f32 %v3229_v33  ;;  %v659_v10 = vsub.f32 %v2950_v24, %v3127_v58  ;;  %vm771_vm11 = vweird.f32 %v3247_v52 }
  0xef   : > { %v630_v62 = vsub.f32 %v598_v63, %v614_v41  ;;  %v868_v39 = vmul.f32 %v3143_v57, %v849_v22  ;;  %v850_v63 = vmul.f32 %v744_v56, %v658_v40  ;;  %vm3305_vm7 = vmor %vm751_vm5, %vm752_vm6 }
  0xf0   : > { %v748_v28 = vmul.f32 0.5, %v747_v55  ;;  %v489_v21 = vpop.xlane.xlu1 %488 }
  0xf1   : > { %v3262_v8 = vpop.eup %2514  ;;  %v646_v29 = vmax.f32 %v630_v62, 0.0  ;;  %v3282_v23 = vmul.f32 %v3029_v13, %v489_v21  ;;  %v576_v7 = vpop.xlane.xlu2 %575  ;;  %v887_v46 = vadd.f32 %v3159_v27, %v868_v39  ;;  %v869_v5 = vmul.f32 %v3143_v57, %v850_v63 }
  0xf2   : > { %v573_v3 = vpop.xlane.xlu0 %572  ;;  %v756_v4 = vmul.f32 %v3262_v8, %v3224_v31  ;;  %v3287_v11 = vpop.eup %2516  ;;  %v749_v34 = vsub.f32 1.5, %v748_v28  ;;  %v600_v41 = vmul.f32 %v576_v7, %v3029_v13  ;;  %vm762_vm9 = vweird.f32 %v3262_v8 }
  0xf3   : > { %2312 = vmatmul.msk.f32.gmra.mxu0 %vm453_vm0, %v885_v51  ;;  %2328 = vmatmul.msk.f32.gmra.mxu1 %vm453_vm0, %v885_v51  ;;  %v599_v17 = vmul.f32 %v573_v3, %v3029_v13  ;;  %v3289_v35 = vadd.f32 1e-05, %v646_v29  ;;  %v766_v49 = vmul.f32 %v3287_v11, %v3247_v52  ;;  %v616_v16 = vmul.f32 %v3282_v23, %v3282_v23  ;;  %vm3336_vm10 = vmor %vm761_vm8, %vm762_vm9 }
  0xf4   : > { %2344 = vmatmul.msk.f32.gmra.mxu2 %vm453_vm0, %v885_v51  ;;  %v757_v51 = vmul.f32 %v3262_v8, %v756_v4  ;;  %v750_v44 = vmul.f32 %v3229_v33, %v749_v34  ;;  %v888_v58 = vadd.f32 %v3159_v27, %v869_v5  ;;  %v660_v39 = vsub.f32 %v2955_v26, %v3149_v19 }
  0xf5   : > { %v631_v37 = vsub.f32 %v599_v17, %v615_v15  ;;  %2518 = vrsqrt.f32 %v3289_v35  ;;  %v767_v61 = vmul.f32 %v3287_v11, %v766_v49  ;;  %v632_v55 = vsub.f32 %v600_v41, %v616_v16 }
  0xf6   : > { %v758_v47 = vmul.f32 0.5, %v757_v51  ;;  %v754_v6 = vsel %vm3305_vm7, %v3229_v33, %v750_v44  ;;  %vm772_vm12 = vweird.f32 %v3287_v11  ;;  %vm781_vm14 = vweird.f32 %v3289_v35 }
  0xf7   : > { %v647_v20 = vmax.f32 %v631_v37, 0.0  ;;  %v768_v28 = vmul.f32 0.5, %v767_v61  ;;  %v648_v29 = vmax.f32 %v632_v55, 0.0  ;;  %v851_v17 = vmul.f32 %v754_v6, %v659_v10  ;;  %vm3365_vm13 = vmor %vm771_vm11, %vm772_vm12 }
  0xf8   : > { %v759_v15 = vsub.f32 1.5, %v758_v47  ;;  %v661_v55 = vsub.f32 %v2963_v30, %v3182_v43 }
  0xf9   : > { %v3313_v62 = vadd.f32 1e-05, %v647_v20  ;;  %v495_v22 = vpop.xlane.xlu2 %494  ;;  %v769_v34 = vsub.f32 1.5, %v768_v28  ;;  %v3342_v37 = vadd.f32 1e-05, %v648_v29  ;;  %v870_v51 = vmul.f32 %v3143_v57, %v851_v17 }
  0xfa   : > { %v492_v53 = vpop.xlane.xlu0 %491  ;;  %v760_v4 = vmul.f32 %v3262_v8, %v759_v15  ;;  %v3346_v7 = vmul.f32 %v3029_v13, %v495_v22 }
  0xfb   : > { %2313 = vmatmul.msk.f32.gmra.mxu0 %vm453_vm0, %v886_v9  ;;  %2329 = vmatmul.msk.f32.gmra.mxu1 %vm453_vm0, %v886_v9  ;;  %v3316_v3 = vmul.f32 %v3029_v13, %v492_v53  ;;  %v3324_v25 = vpop.eup %2518  ;;  %2520 = vrsqrt.f32 %v3313_v62  ;;  %v770_v44 = vmul.f32 %v3287_v11, %v769_v34  ;;  %v889_v45 = vadd.f32 %v3159_v27, %v870_v51 }
  0xfc   : > { %2345 = vmatmul.msk.f32.gmra.mxu2 %vm453_vm0, %v886_v9  ;;  %v579_v9 = vpop.xlane.xlu1 %578  ;;  %v776_v31 = vmul.f32 %v3324_v25, %v3289_v35  ;;  %v764_v41 = vsel %vm3336_vm10, %v3262_v8, %v760_v4  ;;  %2522 = vrsqrt.f32 %v3342_v37  ;;  %v618_v19 = vmul.f32 %v3346_v7, %v3346_v7 }
  0xfd   : > { %v617_v21 = vmul.f32 %v3316_v3, %v3316_v3  ;;  %v601_v33 = vmul.f32 %v579_v9, %v3029_v13  ;;  %v852_v8 = vmul.f32 %v764_v41, %v660_v39  ;;  %v774_v28 = vsel %vm3365_vm13, %v3287_v11, %v770_v44 }
  0xfe   : > { %v777_v49 = vmul.f32 %v3324_v25, %v776_v31  ;;  %vm782_vm15 = vweird.f32 %v3324_v25  ;;  %v662_v51 = vsub.f32 %v2974_v36, %v3227_v32  ;;  %vm791_vm2 = vweird.f32 %v3313_v62 }
  0xff   : > { %v633_v40 = vsub.f32 %v601_v33, %v617_v21  ;;  %v871_v9 = vmul.f32 %v3143_v57, %v852_v8  ;;  %vm3398_vm1 = vmor %vm781_vm14, %vm782_vm15  ;;  %vm801_vm5 = vweird.f32 %v3342_v37 }
 0x100   : > { %v778_v52 = vmul.f32 0.5, %v777_v49 }
 0x101   : > { %v3355_v63 = vpop.eup %2520  ;;  %v649_v20 = vmax.f32 %v633_v40, 0.0  ;;  %v585_v15 = vpop.xlane.xlu2 %584  ;;  %v890_v11 = vadd.f32 %v3159_v27, %v871_v9 }
 0x102   : > { %v582_v16 = vpop.xlane.xlu0 %581  ;;  %v786_v61 = vmul.f32 %v3355_v63, %v3313_v62  ;;  %v3385_v29 = vpop.eup %2522  ;;  %v779_v17 = vsub.f32 1.5, %v778_v52  ;;  %v603_v33 = vmul.f32 %v585_v15, %v3029_v13  ;;  %vm792_vm3 = vweird.f32 %v3355_v63 }
 0x103   : > { %2314 = vmatmul.msk.f32.gmra.mxu0 %vm453_vm0, %v887_v46  ;;  %2330 = vmatmul.msk.f32.gmra.mxu1 %vm453_vm0, %v887_v46  ;;  %v3379_v6 = vadd.f32 1e-05, %v649_v20  ;;  %v796_v56 = vmul.f32 %v3385_v29, %v3342_v37  ;;  %vm3429_vm4 = vmor %vm791_vm2, %vm792_vm3  ;;  %vm802_vm6 = vweird.f32 %v3385_v29  ;;  %v664_v37 = vsub.f32 %v2987_v42, %v3282_v23 }
 0x104   : > { %2346 = vmatmul.msk.f32.gmra.mxu2 %vm453_vm0, %v887_v46  ;;  %v602_v46 = vmul.f32 %v582_v16, %v3029_v13  ;;  %v498_v47 = vpop.xlane.xlu1 %497  ;;  %v787_v43 = vmul.f32 %v3355_v63, %v786_v61  ;;  %v780_v4 = vmul.f32 %v3324_v25, %v779_v17  ;;  %vm803_vm7 = vmor %vm801_vm5, %vm802_vm6 }
 0x105   : > { %v3377_v5 = vmul.f32 %v3029_v13, %v498_v47  ;;  %2524 = vrsqrt.f32 %v3379_v6  ;;  %v797_v44 = vmul.f32 %v3385_v29, %v796_v56  ;;  %vm811_vm8 = vweird.f32 %v3379_v6 }
 0x106   : > { %v634_v10 = vsub.f32 %v602_v46, %v618_v19  ;;  %v788_v31 = vmul.f32 0.5, %v787_v43  ;;  %v784_v20 = vsel %vm3398_vm1, %v3324_v25, %v780_v4 }
 0x107   : > { %v619_v21 = vmul.f32 %v3377_v5, %v3377_v5  ;;  %v854_v53 = vmul.f32 %v784_v20, %v662_v51  ;;  %v798_v25 = vmul.f32 0.5, %v797_v44 }
 0x108   : > { %v650_v22 = vmax.f32 %v634_v10, 0.0  ;;  %v789_v41 = vsub.f32 1.5, %v788_v31 }
 0x109   : > { %v635_v39 = vsub.f32 %v603_v33, %v619_v21  ;;  %v873_v9 = vmul.f32 %v3143_v57, %v854_v53 }
 0x10a   : > { %v501_v35 = vpop.xlane.xlu0 %500  ;;  %v3408_v49 = vadd.f32 1e-05, %v650_v22  ;;  %v790_v52 = vmul.f32 %v3355_v63, %v789_v41 }
 0x10b   : > { %2315 = vmatmul.msk.f32.gmra.mxu0 %vm453_vm0, %v888_v58  ;;  %2331 = vmatmul.msk.f32.gmra.mxu1 %vm453_vm0, %v888_v58  ;;  %v3411_v16 = vmul.f32 %v3029_v13, %v501_v35  ;;  %v3417_v46 = vpop.eup %2524  ;;  %v651_v32 = vmax.f32 %v635_v39, 0.0  ;;  %v892_v33 = vadd.f32 %v3159_v27, %v873_v9 }
 0x10c   : > { %2347 = vmatmul.msk.f32.gmra.mxu2 %vm453_vm0, %v888_v58  ;;  %v853_v58 = vmul.f32 %v774_v28, %v661_v55  ;;  %v588_v19 = vpop.xlane.xlu1 %587  ;;  %2526 = vrsqrt.f32 %v3408_v49  ;;  %v806_v61 = vmul.f32 %v3417_v46, %v3379_v6  ;;  %v663_v55 = vsub.f32 %v2979_v38, %v3253_v59 }
 0x10d   : > { %v620_v47 = vmul.f32 %v3411_v16, %v3411_v16  ;;  %v604_v8 = vmul.f32 %v588_v19, %v3029_v13  ;;  %v3438_v10 = vadd.f32 1e-05, %v651_v32  ;;  %v799_v28 = vsub.f32 1.5, %v798_v25 }
 0x10e   : > { %v872_v40 = vmul.f32 %v3143_v57, %v853_v58  ;;  %v807_v17 = vmul.f32 %v3417_v46, %v806_v61  ;;  %v794_v43 = vsel %vm3429_vm4, %v3355_v63, %v790_v52  ;;  %vm812_vm9 = vweird.f32 %v3417_v46 }
 0x10f   : > { %v636_v15 = vsub.f32 %v604_v8, %v620_v47  ;;  %2528 = vrsqrt.f32 %v3438_v10  ;;  %v855_v58 = vmul.f32 %v794_v43, %v663_v55  ;;  %v800_v22 = vmul.f32 %v3385_v29, %v799_v28  ;;  %vm813_vm10 = vmor %vm811_vm8, %vm812_vm9 }
 0x110   : > { %v665_v6 = vsub.f32 %v2998_v48, %v3316_v3  ;;  %vm821_vm11 = vweird.f32 %v3408_v49  ;;  %v666_v3 = vsub.f32 %v3003_v50, %v3346_v7  ;;  %vm831_vm14 = vweird.f32 %v3438_v10 }
 0x111   : > { %v652_v59 = vmax.f32 %v636_v15, 0.0  ;;  %v874_v31 = vmul.f32 %v3143_v57, %v855_v58  ;;  %v804_v34 = vsel %vm803_vm7, %v3385_v29, %v800_v22  ;;  %v667_v7 = vsub.f32 %v3011_v54, %v3377_v5 }
 0x112   : > { %v2527_v21 = vpop.eup %2526  ;;  %v856_v51 = vmul.f32 %v804_v34, %v664_v37  ;;  %v2716_v58 = vmov 0   ;;  %v668_v5 = vsub.f32 %v3022_v60, %v3411_v16  ;;  %v3510_v16 = vld [vmem:[%s4297_s4] sm:$0x7] }
 0x113   : > { %2316 = vmatmul.msk.f32.gmra.mxu0 %vm453_vm0, %v889_v45  ;;  %2332 = vmatmul.msk.f32.gmra.mxu1 %vm453_vm0, %v889_v45  ;;  %v816_v4 = vmul.f32 %v2527_v21, %v3408_v49  ;;  %v3456_v63 = vadd.f32 1e-05, %v652_v59  ;;  %vm822_vm12 = vweird.f32 %v2527_v21 }
 0x114   : > { %2348 = vmatmul.msk.f32.gmra.mxu2 %vm453_vm0, %v889_v45  ;;  %v891_v45 = vadd.f32 %v3159_v27, %v872_v40  ;;  %v893_v40 = vadd.f32 %v3159_v27, %v874_v31  ;;  %v875_v29 = vmul.f32 %v3143_v57, %v856_v51  ;;  %vm823_vm13 = vmor %vm821_vm11, %vm822_vm12  ;;  %2464 = vset.pattern.permute.xlu2 %v2716_v58 }
 0x115   : > { %v817_v35 = vmul.f32 %v2527_v21, %v816_v4  ;;  %v2529_v39 = vpop.eup %2528  ;;  %2530 = vrsqrt.f32 %v3456_v63  ;;  %vm841_vm2 = vweird.f32 %v3456_v63  ;;  %2466 = vset.pattern.permute.xlu0 %v2716_v58 }
 0x116   : > { %v826_v44 = vmul.f32 %v2529_v39, %v3438_v10  ;;  %v894_v47 = vadd.f32 %v3159_v27, %v875_v29  ;;  %vm832_vm15 = vweird.f32 %v2529_v39 }
 0x117   : > { %v818_v41 = vmul.f32 0.5, %v817_v35  ;;  %vm833_vm1 = vmor %vm831_vm14, %vm832_vm15  ;;  %v3516_v35 = vperm.slane %v3510_v16, 0 }
 0x118   : > { %v827_v20 = vmul.f32 %v2529_v39, %v826_v44 }
 0x119   : > { %v819_v19 = vsub.f32 1.5, %v818_v41 }
 0x11a   : > { %v828_v52 = vmul.f32 0.5, %v827_v20 }
 0x11b   : > { %2317 = vmatmul.msk.f32.gmra.mxu0 %vm453_vm0, %v890_v11  ;;  %2333 = vmatmul.msk.f32.gmra.mxu1 %vm453_vm0, %v890_v11  ;;  %v820_v53 = vmul.f32 %v2527_v21, %v819_v19 }
 0x11c   : > { %2349 = vmatmul.msk.f32.gmra.mxu2 %vm453_vm0, %v890_v11  ;;  %v808_v11 = vmul.f32 0.5, %v807_v17 }
 0x11d   : > { %v824_v62 = vsel %vm823_vm13, %v2527_v21, %v820_v53 }
 0x11e   : > { %v809_v56 = vsub.f32 1.5, %v808_v11  ;;  %v858_v15 = vmul.f32 %v824_v62, %v666_v3 }
 0x120   : > { %v810_v23 = vmul.f32 %v3417_v46, %v809_v56  ;;  %v877_v17 = vmul.f32 %v3143_v57, %v858_v15 }
 0x122   : > { %v814_v32 = vsel %vm813_vm10, %v3417_v46, %v810_v23  ;;  %v829_v46 = vsub.f32 1.5, %v828_v52  ;;  %v896_v21 = vadd.f32 %v3159_v27, %v877_v17 }
 0x123   : > { %2318 = vmatmul.msk.f32.gmra.mxu0 %vm453_vm0, %v891_v45  ;;  %2334 = vmatmul.msk.f32.gmra.mxu1 %vm453_vm0, %v891_v45  ;;  %v857_v8 = vmul.f32 %v814_v32, %v665_v6 }
 0x124   : > { %2350 = vmatmul.msk.f32.gmra.mxu2 %vm453_vm0, %v891_v45  ;;  %v2531_v45 = vpop.eup %2530  ;;  %v830_v9 = vmul.f32 %v2529_v39, %v829_v46 }
 0x125   : > { %v836_v25 = vmul.f32 %v2531_v45, %v3456_v63  ;;  %v876_v49 = vmul.f32 %v3143_v57, %v857_v8  ;;  %vm842_vm3 = vweird.f32 %v2531_v45 }
 0x126   : > { %v834_v10 = vsel %vm833_vm1, %v2529_v39, %v830_v9  ;;  %vm843_vm4 = vmor %vm841_vm2, %vm842_vm3 }
 0x127   : > { %v837_v61 = vmul.f32 %v2531_v45, %v836_v25  ;;  %v895_v55 = vadd.f32 %v3159_v27, %v876_v49  ;;  %v859_v59 = vmul.f32 %v834_v10, %v667_v7 }
 0x129   : > { %v838_v28 = vmul.f32 0.5, %v837_v61  ;;  %v878_v11 = vmul.f32 %v3143_v57, %v859_v59 }
 0x12b   : > { %2319 = vmatmul.msk.f32.gmra.mxu0 %vm453_vm0, %v892_v33  ;;  %2335 = vmatmul.msk.f32.gmra.mxu1 %vm453_vm0, %v892_v33  ;;  %v839_v43 = vsub.f32 1.5, %v838_v28  ;;  %v897_v37 = vadd.f32 %v3159_v27, %v878_v11 }
 0x12c   : > { %2351 = vmatmul.msk.f32.gmra.mxu2 %vm453_vm0, %v892_v33  ;;  %v2715_v33 = vmov 1  }
 0x12d   : > { %2465 = vset.pattern.permute.xlu1 %v2715_v33  ;;  %v840_v22 = vmul.f32 %v2531_v45, %v839_v43 }
 0x12f   : > { %v844_v4 = vsel %vm843_vm4, %v2531_v45, %v840_v22 }
 0x130   : > { %v860_v63 = vmul.f32 %v844_v4, %v668_v5 }
 0x132   : > { %v879_v31 = vmul.f32 %v3143_v57, %v860_v63  ;;  %v3522_v57 = vperm.slane %v3510_v16, 2 }
 0x133   : > { %2320 = vmatmul.msk.f32.gmra.mxu0 %vm453_vm0, %v893_v40  ;;  %2336 = vmatmul.msk.f32.gmra.mxu1 %vm453_vm0, %v893_v40 }
 0x134   : > { %2352 = vmatmul.msk.f32.gmra.mxu2 %vm453_vm0, %v893_v40  ;;  %v898_v56 = vadd.f32 %v3159_v27, %v879_v31 }
 0x13b   : > { %2321 = vmatmul.msk.f32.gmra.mxu0 %vm453_vm0, %v894_v47  ;;  %2337 = vmatmul.msk.f32.gmra.mxu1 %vm453_vm0, %v894_v47 }
 0x13c   : > { %2353 = vmatmul.msk.f32.gmra.mxu2 %vm453_vm0, %v894_v47 }
 0x143   : > { %2322 = vmatmul.msk.f32.gmra.mxu0 %vm453_vm0, %v895_v55  ;;  %2338 = vmatmul.msk.f32.gmra.mxu1 %vm453_vm0, %v895_v55 }
 0x144   : > { %2354 = vmatmul.msk.f32.gmra.mxu2 %vm453_vm0, %v895_v55 }
 0x14b   : > { %2323 = vmatmul.msk.f32.gmra.mxu0 %vm453_vm0, %v896_v21  ;;  %2339 = vmatmul.msk.f32.gmra.mxu1 %vm453_vm0, %v896_v21 }
 0x14c   : > { %2355 = vmatmul.msk.f32.gmra.mxu2 %vm453_vm0, %v896_v21 }
 0x153   : > { %2324 = vmatmul.msk.f32.gmra.mxu0 %vm453_vm0, %v897_v37  ;;  %2340 = vmatmul.msk.f32.gmra.mxu1 %vm453_vm0, %v897_v37 }
 0x154   : > { %2356 = vmatmul.msk.f32.gmra.mxu2 %vm453_vm0, %v897_v37 }
 0x15b   : > { %2325 = vmatmul.msk.f32.gmra.mxu0 %vm453_vm0, %v898_v56  ;;  %2341 = vmatmul.msk.f32.gmra.mxu1 %vm453_vm0, %v898_v56 }
 0x15c   : > { %2357 = vmatmul.msk.f32.gmra.mxu2 %vm453_vm0, %v898_v56 }
 0x160   : > { %v984_v34 = vpop.f32.mrf.mxu0  ;;  %v1049_v37 = vpop.f32.mrf.mxu1 }
 0x161   : > { %v3519_v39 = vadd.f32 %v984_v34, %v3516_v35 }
 0x167   : > { %v1114_v27 = vpop.f32.mrf.mxu2 }
 0x168   : > { %v1115_v40 = vadd.f32 %v1114_v27, %v3522_v57  ;;  %v987_v51 = vpop.f32.mrf.mxu0  ;;  %v3576_v56 = vpop.f32.mrf.mxu1 }
 0x169   : > { %v3526_v23 = vadd.f32 %v987_v51, %v3516_v35 }
 0x16a   : > { %1259 = vperm.xlu1 %2465, %v1115_v40   ;;  %1164 = vperm.xlu2 %2464, %v1115_v40  }
 0x16f   : > { %v1117_v41 = vpop.f32.mrf.mxu2 }
 0x170   : > { %v1118_v44 = vadd.f32 %v1117_v41, %v3522_v57  ;;  %v990_v6 = vpop.f32.mrf.mxu0  ;;  %v1055_v41 = vpop.f32.mrf.mxu1 }
 0x171   : > { %v3530_v29 = vadd.f32 %v990_v6, %v3516_v35 }
 0x172   : > { %1169 = vperm.xlu0 %2466, %v1118_v44   ;;  %2468 = vset.pattern.permute.xlu1 %v2716_v58 }
 0x173   : > { %2469 = vset.pattern.permute.xlu2 %v2715_v33 }
 0x177   : > { %v1120_v19 = vpop.f32.mrf.mxu2 }
 0x178   : > { %v1121_v20 = vadd.f32 %v1120_v19, %v3522_v57  ;;  %v993_v32 = vpop.f32.mrf.mxu0  ;;  %v1058_v19 = vpop.f32.mrf.mxu1 }
 0x179   : > { %v3536_v45 = vadd.f32 %v993_v32, %v3516_v35 }
 0x17a   : > { %2467 = vset.pattern.permute.xlu0 %v2715_v33  ;;  %1174 = vperm.xlu1 %2468, %v1121_v20  }
 0x17b   : > { %1267 = vperm.xlu2 %2469, %v1121_v20   ;;  %1263 = vperm.xlu0 %2467, %v1118_v44  }
 0x17f   : > { %v1123_v47 = vpop.f32.mrf.mxu2 }
 0x180   : > { %v1124_v8 = vadd.f32 %v1123_v47, %v3522_v57  ;;  %v996_v53 = vpop.f32.mrf.mxu0 }
 0x181   : > { %v3541_v52 = vadd.f32 %v996_v53, %v3516_v35 }
 0x182   : > { %2471 = vset.pattern.permute.xlu1 %v2715_v33 }
 0x183   : > { %2470 = vset.pattern.permute.xlu2 %v2716_v58  ;;  %1271 = vperm.xlu1 %2471, %v1124_v8  }
 0x184   : > { %1179 = vperm.xlu2 %2470, %v1124_v8  }
 0x187   : > { %v1126_v25 = vpop.f32.mrf.mxu2 }
 0x188   : > { %v1127_v3 = vadd.f32 %v1126_v25, %v3522_v57  ;;  %v999_v49 = vpop.f32.mrf.mxu0 }
 0x189   : > { %v3547_v46 = vadd.f32 %v999_v49, %v3516_v35 }
 0x18b   : > { %2473 = vset.pattern.permute.xlu1 %v2716_v58 }
 0x18c   : > { %1184 = vperm.xlu2 %2470, %v1127_v3  }
 0x18f   : > { %v1129_v61 = vpop.f32.mrf.mxu2 }
 0x190   : > { %v1130_v62 = vadd.f32 %v1129_v61, %v3522_v57  ;;  %v1002_v55 = vpop.f32.mrf.mxu0 }
 0x191   : > { %v3552_v15 = vadd.f32 %v1002_v55, %v3516_v35 }
 0x192   : > { %1189 = vperm.xlu1 %2473, %v1130_v62  }
 0x194   : > { %2472 = vset.pattern.permute.xlu2 %v2715_v33 }
 0x195   : > { %1275 = vperm.xlu2 %2472, %v1127_v3  }
 0x197   : > { %v1132_v9 = vpop.f32.mrf.mxu2 }
 0x198   : > { %v1133_v28 = vadd.f32 %v1132_v9, %v3522_v57  ;;  %v1005_v7 = vpop.f32.mrf.mxu0 }
 0x199   : > { %v3557_v17 = vadd.f32 %v1005_v7, %v3516_v35 }
 0x19a   : > { %2474 = vset.pattern.permute.xlu1 %v2715_v33  ;;  %1283 = vperm.xlu0 %2467, %v1133_v28  }
 0x19b   : > { %1279 = vperm.xlu1 %2474, %v1130_v62   ;;  %v3594_v62 = vpop.f32.mrf.mxu1 }
 0x19d   : > { %2475 = vset.pattern.permute.xlu2 %v2716_v58 }
 0x19e   : > { %1194 = vperm.xlu2 %2475, %v1133_v28  }
 0x19f   : > { %v1135_v43 = vpop.f32.mrf.mxu2 }
 0x1a0   : > { %v1136_v10 = vadd.f32 %v1135_v43, %v3522_v57 }
 0x1a2   : > { %2478 = vset.pattern.permute.xlu0 %v2716_v58 }
 0x1a3   : > { %2476 = vset.pattern.permute.xlu1 %v2716_v58  ;;  %v1064_v7 = vpop.f32.mrf.mxu1 }
 0x1a4   : > { %1199 = vperm.xlu1 %2476, %v1136_v10  }
 0x1a6   : > { %2477 = vset.pattern.permute.xlu2 %v2715_v33 }
 0x1a7   : > { %1287 = vperm.xlu2 %2477, %v1136_v10   ;;  %v1138_v21 = vpop.f32.mrf.mxu2 }
 0x1a8   : > { %v1139_v59 = vadd.f32 %v1138_v21, %v3522_v57 }
 0x1aa   : > { %1204 = vperm.xlu0 %2478, %v1139_v59  }
 0x1ac   : > { %2479 = vset.pattern.permute.xlu1 %v2715_v33 }
 0x1ad   : > { %1291 = vperm.xlu1 %2479, %v1139_v59   ;;  %v3610_v59 = vperm.slane %v3510_v16, 1 }
 0x1af   : > { %v1141_v22 = vpop.f32.mrf.mxu2  ;;  %2480 = vset.pattern.permute.xlu2 %v2716_v58 }
 0x1b0   : > { %v1142_v5 = vadd.f32 %v1141_v22, %v3522_v57 }
 0x1b2   : > { %2481 = vset.pattern.permute.xlu0 %v2715_v33  ;;  %1209 = vperm.xlu2 %2480, %v1142_v5  }
 0x1b3   : > { %1295 = vperm.xlu0 %2481, %v1142_v5  }
 0x1b5   : > { %2482 = vset.pattern.permute.xlu1 %v2716_v58 }
 0x1b7   : > { %v1144_v11 = vpop.f32.mrf.mxu2 }
 0x1b8   : > { %v1145_v4 = vadd.f32 %v1144_v11, %v3522_v57  ;;  %v1067_v11 = vpop.f32.mrf.mxu1 }
 0x1ba   : > { %2483 = vset.pattern.permute.xlu2 %v2715_v33  ;;  %1214 = vperm.xlu1 %2482, %v1145_v4  }
 0x1bb   : > { %1299 = vperm.xlu2 %2483, %v1145_v4   ;;  %2484 = vset.pattern.permute.xlu0 %v2716_v58 }
 0x1bf   : > { %v1147_v63 = vpop.f32.mrf.mxu2 }
 0x1c0   : > { %v1148_v31 = vadd.f32 %v1147_v63, %v3522_v57 }
 0x1c2   : > { %1219 = vperm.xlu0 %2484, %v1148_v31   ;;  %2485 = vset.pattern.permute.xlu1 %v2715_v33 }
 0x1c3   : > { %1303 = vperm.xlu1 %2485, %v1148_v31   ;;  %2486 = vset.pattern.permute.xlu2 %v2716_v58 }
 0x1c4   : > { %v1165_v34 = vpop.permute.xlu2 %1164 }
 0x1c5   : > { %v1242_v27 = vmul.f32 %v1165_v34, %v3519_v39 }
 0x1c7   : > { %v1150_v40 = vpop.f32.mrf.mxu2 }
 0x1c8   : > { %v1151_v51 = vadd.f32 %v1150_v40, %v3522_v57 }
 0x1ca   : > { %2487 = vset.pattern.permute.xlu0 %v2715_v33  ;;  %1224 = vperm.xlu2 %2486, %v1151_v51  }
 0x1cb   : > { %1307 = vperm.xlu0 %2487, %v1151_v51   ;;  %2488 = vset.pattern.permute.xlu1 %v2716_v58 }
 0x1cf   : > { %v1153_v44 = vpop.f32.mrf.mxu2 }
 0x1d0   : > { %v1154_v6 = vadd.f32 %v1153_v44, %v3522_v57 }
 0x1d2   : > { %2489 = vset.pattern.permute.xlu2 %v2715_v33  ;;  %1229 = vperm.xlu1 %2488, %v1154_v6  }
 0x1d3   : > { %1311 = vperm.xlu2 %2489, %v1154_v6   ;;  %2490 = vset.pattern.permute.xlu0 %v2716_v58 }
 0x1d5   : > { %v1268_v39 = vpop.permute.xlu2 %1267 }
 0x1d7   : > { %v1156_v20 = vpop.f32.mrf.mxu2 }
 0x1d8   : > { %v1157_v32 = vadd.f32 %v1156_v20, %v3522_v57  ;;  %v1056_v20 = vadd.f32 %v1055_v41, %v3610_v59 }
 0x1da   : > { %1234 = vperm.xlu0 %2490, %v1157_v32   ;;  %2491 = vset.pattern.permute.xlu1 %v2715_v33 }
 0x1db   : > { %1315 = vperm.xlu1 %2491, %v1157_v32   ;;  %2492 = vset.pattern.permute.xlu2 %v2716_v58  ;;  %v3628_v32 = vpop.f32.mrf.mxu1 }
 0x1dc   : > { %v1260_v47 = vpop.permute.xlu1 %1259 }
 0x1dd   : > { %v3589_v8 = vadd.f32 %v1260_v47, %v1242_v27  ;;  %v3621_v27 = vpop.f32.mrf.mxu0 }
 0x1de   : > { %v1180_v53 = vpop.permute.xlu2 %1179 }
 0x1df   : > { %v1245_v3 = vmul.f32 %v1180_v53, %v3536_v45  ;;  %v1159_v49 = vpop.f32.mrf.mxu2 }
 0x1e0   : > { %v1160_v61 = vadd.f32 %v1159_v49, %v3522_v57 }
 0x1e2   : > { %2493 = vset.pattern.permute.xlu0 %v2715_v33  ;;  %1239 = vperm.xlu2 %2492, %v1160_v61  }
 0x1e3   : > { %1319 = vperm.xlu0 %2493, %v1160_v61  }
 0x1e4   : > { %v1170_v55 = vpop.permute.xlu0 %1169 }
 0x1e5   : > { %v1243_v58 = vmul.f32 %v1170_v55, %v3526_v23  ;;  %v1011_v49 = vpop.f32.mrf.mxu0 }
 0x1e6   : > { %v3598_v9 = vpop.permute.xlu2 %1184 }
 0x1e7   : > { %v1246_v28 = vmul.f32 %v3598_v9, %v3541_v52 }
 0x1ec   : > { %v1175_v43 = vpop.permute.xlu1 %1174 }
 0x1ed   : > { %v1244_v45 = vmul.f32 %v1175_v43, %v3530_v29  ;;  %v1264_v10 = vpop.permute.xlu0 %1263  ;;  %v1050_v29 = vadd.f32 %v1049_v37, %v3610_v59  ;;  %v1356_v37 = vmul.f32 %v1175_v43, %v1056_v20 }
 0x1ee   : > { %v3603_v57 = vadd.f32 %v1264_v10, %v1243_v58 }
 0x1ef   : > { %v3605_v21 = vadd.f32 %v1268_v39, %v1244_v45  ;;  %v3607_v33 = vpop.permute.xlu2 %1275  ;;  %v1354_v63 = vmul.f32 %v1165_v34, %v1050_v29  ;;  %v1372_v61 = vadd.f32 %v1356_v37, %v1268_v39  ;;  %v1059_v45 = vadd.f32 %v1058_v19, %v3610_v59  ;;  %v3646_v37 = vpop.f32.mrf.mxu0 }
 0x1f0   : > { %v3614_v22 = vadd.f32 %v3607_v33, %v1246_v28  ;;  %v1065_v19 = vadd.f32 %v1064_v7, %v3610_v59 }
 0x1f1   : > { %v1370_v16 = vadd.f32 %v1354_v63, %v1260_v47  ;;  %v1357_v43 = vmul.f32 %v1180_v53, %v1059_v45  ;;  %v3639_v63 = vmax.f32 %v1372_v61, 0.0 }
 0x1f3   : > { %v3625_v6 = vmax.f32 %v1370_v16, 0.0  ;;  %v1073_v16 = vpop.f32.mrf.mxu1  ;;  %v1410_v53 = vsel %vm453_vm0, %v3639_v63, 0.0 }
 0x1f5   : > { %v1272_v4 = vpop.permute.xlu1 %1271  ;;  %v1468_v34 = vmul.f32 %v3625_v6, %v3625_v6  ;;  %v1404_v39 = vsel %vm453_vm0, %v3625_v6, 0.0 }
 0x1f6   : > { %v3619_v31 = vadd.f32 %v1272_v4, %v1245_v3  ;;  %v1053_v3 = vadd.f32 %v3576_v56, %v3610_v59  ;;  %v1373_v56 = vadd.f32 %v1357_v43, %v1272_v4 }
 0x1f8   : > { %v1195_v51 = vpop.permute.xlu2 %1194  ;;  %v1355_v47 = vmul.f32 %v1170_v55, %v1053_v3  ;;  %v1012_v55 = vadd.f32 %v1011_v49, %v3516_v35 }
 0x1f9   : > { %v1248_v44 = vmul.f32 %v1195_v51, %v3552_v15  ;;  %v1484_v15 = vsel %vm453_vm0, %v1468_v34, 0.0  ;;  %v3653_v34 = vmax.f32 %v1373_v56, 0.0  ;;  %v1062_v56 = vadd.f32 %v3594_v62, %v3610_v59 }
 0x1fa   : > { %v1371_v41 = vadd.f32 %v1355_v47, %v1264_v10 }
 0x1fc   : > { %v3641_v20 = vmax.f32 %v1371_v41, 0.0 }
 0x1fe   : > { %v1407_v49 = vsel %vm453_vm0, %v3641_v20, 0.0 }
 0x201   : > { %v3634_v58 = vpop.permute.xlu2 %1287 }
 0x204   : > { %v1190_v28 = vpop.permute.xlu1 %1189 }
 0x205   : > { %v1247_v29 = vmul.f32 %v1190_v28, %v3547_v46  ;;  %1485 = vadd.xlane.f32.xlu1 %v1484_v15  ;;  %v1359_v61 = vmul.f32 %v1190_v28, %v1065_v19  ;;  %v1469_v15 = vmul.f32 %v3641_v20, %v3641_v20  ;;  %v1471_v28 = vmul.f32 %v3653_v34, %v3653_v34 }
 0x207   : > { %v1493_v62 = vsel %vm453_vm0, %v1471_v28, 0.0  ;;  %v1074_v28 = vadd.f32 %v1073_v16, %v3610_v59  ;;  %v1071_v16 = vadd.f32 %v3628_v32, %v3610_v59 }
 0x20b   : > { %1405 = vadd.xlane.f32.xlu2 %v1404_v39  ;;  %v1076_v39 = vpop.f32.mrf.mxu1 }
 0x20c   : > { %v3649_v10 = vpop.permute.xlu2 %1209  ;;  %v1284_v46 = vpop.permute.xlu0 %1283 }
 0x20d   : > { %v3656_v4 = vmul.f32 %v3649_v10, %v1012_v55  ;;  %v3658_v3 = vadd.f32 %v1284_v46, %v1248_v44  ;;  %v1280_v47 = vpop.permute.xlu1 %1279  ;;  %1411 = vadd.xlane.f32.xlu0 %v1410_v53  ;;  %1408 = vadd.xlane.f32.xlu1 %v1407_v49  ;;  %v1470_v44 = vmul.f32 %v3639_v63, %v3639_v63 }
 0x20e   : > { %v3662_v7 = vadd.f32 %v1280_v47, %v1247_v29  ;;  %v1375_v43 = vadd.f32 %v1359_v61, %v1280_v47  ;;  %v1487_v29 = vsel %vm453_vm0, %v1469_v15, 0.0  ;;  %v1358_v55 = vmul.f32 %v3598_v9, %v1062_v56  ;;  %v3682_v61 = vpop.f32.mrf.mxu0 }
 0x20f   : > { %v1490_v53 = vsel %vm453_vm0, %v1470_v44, 0.0  ;;  %v1068_v47 = vadd.f32 %v1067_v11, %v3610_v59  ;;  %v1009_v56 = vadd.f32 %v3621_v27, %v3516_v35 }
 0x210   : > { %v3676_v19 = vmax.f32 %v1375_v43, 0.0  ;;  %v1374_v49 = vadd.f32 %v1358_v55, %v3607_v33  ;;  %v1413_v33 = vsel %vm453_vm0, %v3653_v34, 0.0 }
 0x211   : > { %v1360_v15 = vmul.f32 %v1195_v51, %v1068_v47 }
 0x212   : > { %v1473_v9 = vmul.f32 %v3676_v19, %v3676_v19  ;;  %v3687_v43 = vmax.f32 %v1374_v49, 0.0 }
 0x213   : > { %1488 = vadd.xlane.f32.xlu2 %v1487_v29  ;;  %v1376_v44 = vadd.f32 %v1360_v15, %v1284_v46 }
 0x214   : > { %v1499_v55 = vsel %vm453_vm0, %v1473_v9, 0.0  ;;  %v1416_v49 = vsel %vm453_vm0, %v3687_v43, 0.0  ;;  %v1472_v27 = vmul.f32 %v3687_v43, %v3687_v43 }
 0x215   : > { %1491 = vadd.xlane.f32.xlu0 %v1490_v53  ;;  %1494 = vadd.xlane.f32.xlu1 %v1493_v62  ;;  %v1079_v53 = vpop.f32.mrf.mxu1  ;;  %v3699_v46 = vmax.f32 %v1376_v44, 0.0 }
 0x216   : > { %v1200_v45 = vpop.permute.xlu1 %1199  ;;  %v1020_v15 = vpop.f32.mrf.mxu0 }
 0x217   : > { %v1249_v41 = vmul.f32 %v1200_v45, %v3557_v17  ;;  %v1300_v17 = vpop.permute.xlu2 %1299  ;;  %v1361_v44 = vmul.f32 %v1200_v45, %v1071_v16  ;;  %v1422_v32 = vsel %vm453_vm0, %v3699_v46, 0.0 }
 0x219   : > { %v3690_v11 = vadd.f32 %v3634_v58, %v1249_v41  ;;  %v1377_v45 = vadd.f32 %v1361_v44, %v3634_v58  ;;  %v1419_v44 = vsel %vm453_vm0, %v3676_v19, 0.0 }
 0x21b   : > { %1414 = vadd.xlane.f32.xlu2 %v1413_v33 }
 0x21c   : > { %v1205_v29 = vpop.permute.xlu0 %1204 }
 0x21d   : > { %v1250_v41 = vmul.f32 %v1205_v29, %v1009_v56  ;;  %v1362_v47 = vmul.f32 %v1205_v29, %v1074_v28  ;;  %1500 = vadd.xlane.f32.xlu0 %v1499_v55  ;;  %1417 = vadd.xlane.f32.xlu1 %v1416_v49  ;;  %v1474_v56 = vmul.f32 %v3699_v46, %v3699_v46  ;;  %v1496_v29 = vsel %vm453_vm0, %v1472_v27, 0.0 }
 0x21e   : > { %v1021_v55 = vadd.f32 %v1020_v15, %v3516_v35  ;;  %v1082_v15 = vpop.f32.mrf.mxu1 }
 0x21f   : > { %v1292_v62 = vpop.permute.xlu1 %1291  ;;  %v1502_v16 = vsel %vm453_vm0, %v1474_v56, 0.0  ;;  %v1015_v56 = vadd.f32 %v3646_v37, %v3516_v35 }
 0x220   : > { %v3707_v33 = vadd.f32 %v1292_v62, %v1250_v41  ;;  %v1378_v9 = vadd.f32 %v1362_v47, %v1292_v62  ;;  %v1077_v41 = vadd.f32 %v1076_v39, %v3610_v59  ;;  %v3728_v39 = vmax.f32 %v1377_v45, 0.0 }
 0x222   : > { %v3714_v49 = vmax.f32 %v1378_v9, 0.0  ;;  %v1363_v9 = vmul.f32 %v3649_v10, %v1077_v41  ;;  %v1425_v41 = vsel %vm453_vm0, %v3728_v39, 0.0  ;;  %v1475_v45 = vmul.f32 %v3728_v39, %v3728_v39 }
 0x223   : > { %1497 = vadd.xlane.f32.xlu2 %v1496_v29 }
 0x224   : > { %v1225_v51 = vpop.permute.xlu2 %1224  ;;  %v1476_v28 = vmul.f32 %v3714_v49, %v3714_v49 }
 0x225   : > { %v1254_v47 = vmul.f32 %v1225_v51, %v1021_v55  ;;  %1423 = vadd.xlane.f32.xlu0 %v1422_v32  ;;  %v1296_v62 = vpop.permute.xlu0 %1295  ;;  %1503 = vadd.xlane.f32.xlu1 %v1502_v16  ;;  %v1080_v16 = vadd.f32 %v1079_v53, %v3610_v59 }
 0x226   : > { %v3722_v27 = vadd.f32 %v1296_v62, %v3656_v4  ;;  %v1379_v58 = vadd.f32 %v1363_v9, %v1296_v62  ;;  %v1508_v55 = vsel %vm453_vm0, %v1476_v28, 0.0  ;;  %v1085_v37 = vpop.f32.mrf.mxu1 }
 0x228   : > { %v3735_v32 = vmax.f32 %v1379_v58, 0.0  ;;  %v1505_v58 = vsel %vm453_vm0, %v1475_v45, 0.0 }
 0x22a   : > { %v1477_v28 = vmul.f32 %v3735_v32, %v3735_v32  ;;  %v1431_v53 = vsel %vm453_vm0, %v3735_v32, 0.0 }
 0x22b   : > { %1420 = vadd.xlane.f32.xlu2 %v1419_v44 }
 0x22c   : > { %v1215_v4 = vpop.permute.xlu1 %1214 }
 0x22d   : > { %v1252_v10 = vmul.f32 %v1215_v4, %v1015_v56  ;;  %1509 = vadd.xlane.f32.xlu0 %v1508_v55  ;;  %1426 = vadd.xlane.f32.xlu1 %v1425_v41  ;;  %v1364_v44 = vmul.f32 %v1215_v4, %v1080_v16  ;;  %v1018_v56 = vadd.f32 %v3682_v61, %v3516_v35  ;;  %v1511_v4 = vsel %vm453_vm0, %v1477_v28, 0.0 }
 0x22e   : > { %v1083_v55 = vadd.f32 %v1082_v15, %v3610_v59 }
 0x22f   : > { %v3742_v62 = vadd.f32 %v1300_v17, %v1252_v10  ;;  %v1380_v10 = vadd.f32 %v1364_v44, %v1300_v17  ;;  %v1428_v17 = vsel %vm453_vm0, %v3714_v49, 0.0  ;;  %v1023_v44 = vpop.f32.mrf.mxu0 }
 0x231   : > { %v3756_v40 = vmax.f32 %v1380_v10, 0.0  ;;  %v1312_v10 = vpop.permute.xlu2 %1311 }
 0x233   : > { %1506 = vadd.xlane.f32.xlu2 %v1505_v58  ;;  %v1086_v58 = vadd.f32 %v1085_v37, %v3610_v59 }
 0x234   : > { %v1220_v41 = vpop.permute.xlu0 %1219 }
 0x235   : > { %v1253_v29 = vmul.f32 %v1220_v41, %v1018_v56  ;;  %v1365_v5 = vmul.f32 %v1220_v41, %v1083_v55  ;;  %v1304_v9 = vpop.permute.xlu1 %1303  ;;  %1432 = vadd.xlane.f32.xlu0 %v1431_v53  ;;  %1512 = vadd.xlane.f32.xlu1 %v1511_v4  ;;  %v1088_v56 = vpop.f32.mrf.mxu1  ;;  %v1478_v53 = vmul.f32 %v3756_v40, %v3756_v40 }
 0x237   : > { %v3754_v16 = vadd.f32 %v1304_v9, %v1253_v29  ;;  %v1381_v45 = vadd.f32 %v1365_v5, %v1304_v9  ;;  %v1366_v29 = vmul.f32 %v1225_v51, %v1086_v58  ;;  %v1434_v5 = vsel %vm453_vm0, %v3756_v40, 0.0 }
 0x238   : > { %v1514_v51 = vsel %vm453_vm0, %v1478_v53, 0.0  ;;  %v1024_v58 = vadd.f32 %v1023_v44, %v3516_v35 }
 0x239   : > { %v3759_v15 = vmax.f32 %v1381_v45, 0.0 }
 0x23b   : > { %1429 = vadd.xlane.f32.xlu2 %v1428_v17  ;;  %v1479_v28 = vmul.f32 %v3759_v15, %v3759_v15  ;;  %v1089_v17 = vadd.f32 %v1088_v56, %v3610_v59 }
 0x23c   : > { %v1240_v52 = vpop.permute.xlu2 %1239 }
 0x23d   : > { %v1308_v9 = vpop.permute.xlu0 %1307  ;;  %v1517_v55 = vsel %vm453_vm0, %v1479_v28, 0.0  ;;  %1435 = vadd.xlane.f32.xlu1 %v1434_v5  ;;  %v1091_v5 = vpop.f32.mrf.mxu1 }
 0x23e   : > { %v3769_v41 = vadd.f32 %v1308_v9, %v1254_v47  ;;  %v1382_v37 = vadd.f32 %v1366_v29, %v1308_v9  ;;  %1518 = vadd.xlane.f32.xlu0 %v1517_v55  ;;  %v1026_v29 = vpop.f32.mrf.mxu0 }
 0x240   : > { %v3774_v4 = vmax.f32 %v1382_v37, 0.0 }
 0x242   : > { %v1480_v45 = vmul.f32 %v3774_v4, %v3774_v4  ;;  %v1440_v37 = vsel %vm453_vm0, %v3774_v4, 0.0 }
 0x243   : > { %1515 = vadd.xlane.f32.xlu2 %v1514_v51  ;;  %v1437_v51 = vsel %vm453_vm0, %v3759_v15, 0.0 }
 0x244   : > { %v1230_v47 = vpop.permute.xlu1 %1229  ;;  %v1520_v28 = vsel %vm453_vm0, %v1480_v45, 0.0  ;;  %v1027_v45 = vadd.f32 %v1026_v29, %v3516_v35 }
 0x245   : > { %v1255_v9 = vmul.f32 %v1230_v47, %v1024_v58  ;;  %v1367_v55 = vmul.f32 %v1230_v47, %v1089_v17  ;;  %1521 = vadd.xlane.f32.xlu1 %v1520_v28  ;;  %v1092_v58 = vadd.f32 %v1091_v5, %v3610_v59 }
 0x246   : > { %1441 = vadd.xlane.f32.xlu0 %v1440_v37 }
 0x247   : > { %v3784_v53 = vadd.f32 %v1312_v10, %v1255_v9  ;;  %v1383_v61 = vadd.f32 %v1367_v55, %v1312_v10  ;;  %v1029_v10 = vpop.f32.mrf.mxu0  ;;  %v1094_v55 = vpop.f32.mrf.mxu1 }
 0x248   : > { %v1030_v5 = vadd.f32 %v1029_v10, %v3516_v35 }
 0x249   : > { %v3787_v56 = vmax.f32 %v1383_v61, 0.0 }
 0x24b   : > { %1438 = vadd.xlane.f32.xlu2 %v1437_v51  ;;  %v1443_v17 = vsel %vm453_vm0, %v3787_v56, 0.0  ;;  %v1095_v51 = vadd.f32 %v1094_v55, %v3610_v59 }
 0x24c   : > { %v1235_v47 = vpop.permute.xlu0 %1234 }
 0x24d   : > { %v1256_v28 = vmul.f32 %v1235_v47, %v1027_v45  ;;  %v1368_v9 = vmul.f32 %v1235_v47, %v1092_v58  ;;  %v1316_v37 = vpop.permute.xlu1 %1315  ;;  %1444 = vadd.xlane.f32.xlu1 %v1443_v17  ;;  %v1257_v58 = vmul.f32 %v1240_v52, %v1030_v5  ;;  %v1369_v47 = vmul.f32 %v1240_v52, %v1095_v51 }
 0x24f   : > { %v3795_v61 = vadd.f32 %v1316_v37, %v1256_v28  ;;  %v1384_v44 = vadd.f32 %v1368_v9, %v1316_v37  ;;  %v1481_v9 = vmul.f32 %v3787_v56, %v3787_v56 }
 0x251   : > { %v3798_v29 = vmax.f32 %v1384_v44, 0.0  ;;  %v1523_v52 = vsel %vm453_vm0, %v1481_v9, 0.0 }
 0x253   : > { %v1446_v45 = vsel %vm453_vm0, %v3798_v29, 0.0  ;;  %v1482_v55 = vmul.f32 %v3798_v29, %v3798_v29 }
 0x254   : > { %1447 = vadd.xlane.f32.xlu2 %v1446_v45 }
 0x255   : > { %v1320_v17 = vpop.permute.xlu0 %1319  ;;  %v1526_v5 = vsel %vm453_vm0, %v1482_v55, 0.0 }
 0x256   : > { %v3804_v25 = vadd.f32 %v1320_v17, %v1257_v58  ;;  %v1385_v28 = vadd.f32 %v1369_v47, %v1320_v17 }
 0x258   : > { %v3809_v37 = vmax.f32 %v1385_v28, 0.0 }
 0x25a   : > { %v1449_v35 = vsel %vm453_vm0, %v3809_v37, 0.0  ;;  %v1483_v59 = vmul.f32 %v3809_v37, %v3809_v37 }
 0x25b   : > { %1450 = vadd.xlane.f32.xlu0 %v1449_v35 }
 0x25c   : > { %1524 = vadd.xlane.f32.xlu2 %v1523_v52  ;;  %v1529_v10 = vsel %vm453_vm0, %v1483_v59, 0.0 }
 0x25d   : > { %1530 = vadd.xlane.f32.xlu1 %v1529_v10 }
 0x263   : > { %1527 = vadd.xlane.f32.xlu0 %v1526_v5 }
 0x278   : > { %v1486_v51 = vpop.xlane.xlu1 %1485 }
 0x279   : > { %v1532_v17 = vmul.f32 %v1486_v51, %v3029_v13 }
 0x27e   : > { %v1406_v45 = vpop.xlane.xlu2 %1405 }
 0x27f   : > { %v3821_v58 = vmul.f32 %v1406_v45, %v3029_v13 }
 0x280   : > { %v1412_v47 = vpop.xlane.xlu0 %1411  ;;  %v1409_v9 = vpop.xlane.xlu1 %1408 }
 0x281   : > { %v1548_v28 = vmul.f32 %v3821_v58, %v3821_v58  ;;  %v3827_v59 = vmul.f32 %v1409_v9, %v3029_v13  ;;  %v3830_v10 = vmul.f32 %v1412_v47, %v3029_v13 }
 0x283   : > { %v1564_v35 = vsub.f32 %v1532_v17, %v1548_v28  ;;  %v1549_v45 = vmul.f32 %v3827_v59, %v3827_v59  ;;  %v1550_v23 = vmul.f32 %v3830_v10, %v3830_v10 }
 0x285   : > { %v1580_v52 = vmax.f32 %v1564_v35, 0.0 }
 0x286   : > { %v1489_v55 = vpop.xlane.xlu2 %1488 }
 0x287   : > { %v1612_v5 = vadd.f32 1e-05, %v1580_v52  ;;  %v1533_v44 = vmul.f32 %v1489_v55, %v3029_v13 }
 0x288   : > { %v1492_v51 = vpop.xlane.xlu0 %1491  ;;  %v1495_v28 = vpop.xlane.xlu1 %1494 }
 0x289   : > { %2532 = vrsqrt.f32 %v1612_v5  ;;  %v1565_v17 = vsub.f32 %v1533_v44, %v1549_v45  ;;  %v1534_v9 = vmul.f32 %v1492_v51, %v3029_v13  ;;  %v1535_v44 = vmul.f32 %v1495_v28, %v3029_v13 }
 0x28a   : > { %vm1634_vm6 = vweird.f32 %v1612_v5 }
 0x28b   : > { %v1581_v35 = vmax.f32 %v1565_v17, 0.0  ;;  %v1566_v60 = vsub.f32 %v1534_v9, %v1550_v23 }
 0x28d   : > { %v1613_v47 = vadd.f32 1e-05, %v1581_v35  ;;  %v1582_v54 = vmax.f32 %v1566_v60, 0.0 }
 0x28e   : > { %v1415_v50 = vpop.xlane.xlu2 %1414 }
 0x28f   : > { %v2533_v52 = vpop.eup %2532  ;;  %2534 = vrsqrt.f32 %v1613_v47  ;;  %v3838_v48 = vadd.f32 1e-05, %v1582_v54  ;;  %v3841_v55 = vmul.f32 %v1415_v50, %v3029_v13  ;;  %vm1644_vm9 = vweird.f32 %v1613_v47 }
 0x290   : > { %v1629_v42 = vmul.f32 %v2533_v52, %v1612_v5  ;;  %v3843_v38 = vpop.xlane.xlu0 %1500  ;;  %v1418_v45 = vpop.xlane.xlu1 %1417  ;;  %vm1635_vm5 = vweird.f32 %v2533_v52 }
 0x291   : > { %2536 = vrsqrt.f32 %v3838_v48  ;;  %v1551_v23 = vmul.f32 %v3841_v55, %v3841_v55  ;;  %v3850_v17 = vmul.f32 %v1418_v45, %v3029_v13  ;;  %vm1636_vm7 = vmor %vm1634_vm6, %vm1635_vm5  ;;  %vm1654_vm12 = vweird.f32 %v3838_v48 }
 0x292   : > { %v1630_v60 = vmul.f32 %v2533_v52, %v1629_v42 }
 0x293   : > { %v1567_v51 = vsub.f32 %v1535_v44, %v1551_v23  ;;  %v1552_v24 = vmul.f32 %v3850_v17, %v3850_v17 }
 0x294   : > { %v1631_v54 = vmul.f32 0.5, %v1630_v60  ;;  %v3861_v60 = vld [vmem:[%s4298_s5] ss:$0 sm:$0xff] }
 0x295   : > { %v2535_v9 = vpop.eup %2534  ;;  %v1583_v50 = vmax.f32 %v1567_v51, 0.0  ;;  %v1596_v51 = vsub.f32 %v3625_v6, %v3821_v58 }
 0x296   : > { %v1632_v35 = vsub.f32 1.5, %v1631_v54  ;;  %v1639_v36 = vmul.f32 %v2535_v9, %v1613_v47  ;;  %v1498_v30 = vpop.xlane.xlu2 %1497  ;;  %vm1645_vm8 = vweird.f32 %v2535_v9 }
 0x297   : > { %v2537_v26 = vpop.eup %2536  ;;  %v3852_v28 = vadd.f32 1e-05, %v1583_v50  ;;  %v1536_v18 = vmul.f32 %v1498_v30, %v3029_v13  ;;  %vm1646_vm11 = vmor %vm1644_vm9, %vm1645_vm8 }
 0x298   : > { %v1633_v42 = vmul.f32 %v2533_v52, %v1632_v35  ;;  %v1640_v44 = vmul.f32 %v2535_v9, %v1639_v36  ;;  %v1649_v23 = vmul.f32 %v2537_v26, %v3838_v48  ;;  %v1424_v45 = vpop.xlane.xlu0 %1423  ;;  %v1504_v50 = vpop.xlane.xlu1 %1503  ;;  %vm1655_vm10 = vweird.f32 %v2537_v26 }
 0x299   : > { %2538 = vrsqrt.f32 %v3852_v28  ;;  %v1568_v54 = vsub.f32 %v1536_v18, %v1552_v24  ;;  %v3867_v30 = vmul.f32 %v1424_v45, %v3029_v13  ;;  %v1538_v6 = vmul.f32 %v1504_v50, %v3029_v13  ;;  %vm1656_vm13 = vmor %vm1654_vm12, %vm1655_vm10 }
 0x29a   : > { %v1637_v36 = vsel %vm1636_vm7, %v2533_v52, %v1633_v42  ;;  %v1641_v5 = vmul.f32 0.5, %v1640_v44  ;;  %v1650_v35 = vmul.f32 %v2537_v26, %v1649_v23  ;;  %v1597_v50 = vsub.f32 %v3641_v20, %v3827_v59 }
 0x29b   : > { %v1788_v12 = vmul.f32 %v1637_v36, %v1596_v51  ;;  %v1584_v0 = vmax.f32 %v1568_v54, 0.0  ;;  %v1554_v58 = vmul.f32 %v3867_v30, %v3867_v30  ;;  %vm1664_vm15 = vweird.f32 %v3852_v28 }
 0x29c   : > { %v1642_v18 = vsub.f32 1.5, %v1641_v5  ;;  %v1651_v24 = vmul.f32 0.5, %v1650_v35  ;;  %v1598_v35 = vsub.f32 %v3639_v63, %v3830_v10  ;;  %v1537_v10 = vmul.f32 %v3843_v38, %v3029_v13 }
 0x29d   : > { %v1807_v45 = vmul.f32 %v3861_v60, %v1788_v12  ;;  %v3878_v52 = vadd.f32 1e-05, %v1584_v0  ;;  %v1570_v42 = vsub.f32 %v1538_v6, %v1554_v58 }
 0x29e   : > { %v1643_v44 = vmul.f32 %v2535_v9, %v1642_v18  ;;  %v1652_v23 = vsub.f32 1.5, %v1651_v24  ;;  %v1421_v1 = vpop.xlane.xlu2 %1420 }
 0x29f   : > { %v2539_v51 = vpop.eup %2538  ;;  %v1826_v54 = vadd.f32 %v3872_v14, %v1807_v45  ;;  %2540 = vrsqrt.f32 %v3878_v52  ;;  %v1586_v36 = vmax.f32 %v1570_v42, 0.0  ;;  %v3895_v59 = vmul.f32 %v1421_v1, %v3029_v13 }
 0x2a0   : > { %v1647_v5 = vsel %vm1646_vm11, %v2535_v9, %v1643_v44  ;;  %v1653_v12 = vmul.f32 %v2537_v26, %v1652_v23  ;;  %v1659_v0 = vmul.f32 %v2539_v51, %v3852_v28  ;;  %v3886_v47 = vpop.xlane.xlu0 %1509  ;;  %v1427_v9 = vpop.xlane.xlu1 %1426  ;;  %vm1665_vm14 = vweird.f32 %v2539_v51 }
 0x2a1   : > { %1842 = vst.msk [vmem:[#allocation2] sm:$0xff] %vm453_vm0, %v1826_v54  ;;  %v1789_v6 = vmul.f32 %v1647_v5, %v1597_v50  ;;  %v3892_v20 = vadd.f32 1e-05, %v1586_v36  ;;  %v3900_v45 = vmul.f32 %v1427_v9, %v3029_v13  ;;  %v1553_v42 = vmul.f32 %v3895_v59, %v3895_v59  ;;  %vm1666_vm1 = vmor %vm1664_vm15, %vm1665_vm14 }
 0x2a2   : > { %v1657_v58 = vsel %vm1656_vm13, %v2537_v26, %v1653_v12  ;;  %v1660_v48 = vmul.f32 %v2539_v51, %v1659_v0  ;;  %vm1674_vm3 = vweird.f32 %v3878_v52 }
 0x2a3   : > { %v1808_v18 = vmul.f32 %v3861_v60, %v1789_v6  ;;  %v1790_v24 = vmul.f32 %v1657_v58, %v1598_v35  ;;  %2542 = vrsqrt.f32 %v3892_v20  ;;  %v1569_v50 = vsub.f32 %v1537_v10, %v1553_v42 }
 0x2a4   : > { %v1661_v63 = vmul.f32 0.5, %v1660_v48  ;;  %v1555_v38 = vmul.f32 %v3900_v45, %v3900_v45  ;;  %v1599_v48 = vsub.f32 %v3653_v34, %v3841_v55  ;;  %vm1694_vm6 = vweird.f32 %v3892_v20 }
 0x2a5   : > { %v2541_v1 = vpop.eup %2540  ;;  %v1827_v44 = vadd.f32 %v3872_v14, %v1808_v18  ;;  %v1809_v26 = vmul.f32 %v3861_v60, %v1790_v24  ;;  %v1585_v6 = vmax.f32 %v1569_v50, 0.0 }
 0x2a6   : > { %v1662_v23 = vsub.f32 1.5, %v1661_v63  ;;  %v1669_v54 = vmul.f32 %v2541_v1, %v3878_v52  ;;  %v1507_v36 = vpop.xlane.xlu2 %1506  ;;  %vm1675_vm2 = vweird.f32 %v2541_v1 }
 0x2a7   : > { %1843 = vst.msk [vmem:[#allocation2 + $0x8] sm:$0xff] %vm453_vm0, %v1827_v44  ;;  %v1828_v5 = vadd.f32 %v3872_v14, %v1809_v26  ;;  %v1539_v12 = vmul.f32 %v1507_v36, %v3029_v13  ;;  %v3923_v26 = vadd.f32 1e-05, %v1585_v6  ;;  %v1600_v6 = vsub.f32 %v3687_v43, %v3850_v17  ;;  %vm1676_vm4 = vmor %vm1674_vm3, %vm1675_vm2 }
 0x2a8   : > { %v1663_v0 = vmul.f32 %v2539_v51, %v1662_v23  ;;  %v1670_v35 = vmul.f32 %v2541_v1, %v1669_v54  ;;  %v1433_v9 = vpop.xlane.xlu0 %1432  ;;  %v1513_v24 = vpop.xlane.xlu1 %1512 }
 0x2a9   : > { %v2543_v58 = vpop.eup %2542  ;;  %1844 = vst.msk [vmem:[#allocation2 + $0x10] sm:$0xff] %vm453_vm0, %v1828_v5  ;;  %v1571_v18 = vsub.f32 %v1539_v12, %v1555_v38  ;;  %v3920_v63 = vmul.f32 %v1433_v9, %v3029_v13  ;;  %v1541_v34 = vmul.f32 %v1513_v24, %v3029_v13  ;;  %2544 = vrsqrt.f32 %v3923_v26 }
 0x2aa   : > { %v1667_v10 = vsel %vm1666_vm1, %v2539_v51, %v1663_v0  ;;  %v1671_v42 = vmul.f32 0.5, %v1670_v35  ;;  %v1689_v28 = vmul.f32 %v2543_v58, %v3892_v20  ;;  %vm1695_vm5 = vweird.f32 %v2543_v58 }
 0x2ab   : > { %v1791_v44 = vmul.f32 %v1667_v10, %v1599_v48  ;;  %v1587_v23 = vmax.f32 %v1571_v18, 0.0  ;;  %v1557_v55 = vmul.f32 %v3920_v63, %v3920_v63  ;;  %v1540_v10 = vmul.f32 %v3886_v47, %v3029_v13  ;;  %vm1696_vm7 = vmor %vm1694_vm6, %vm1695_vm5 }
 0x2ac   : > { %v1672_v54 = vsub.f32 1.5, %v1671_v42  ;;  %v1690_v50 = vmul.f32 %v2543_v58, %v1689_v28  ;;  %vm1684_vm9 = vweird.f32 %v3923_v26 }
 0x2ad   : > { %v1810_v36 = vmul.f32 %v3861_v60, %v1791_v44  ;;  %v3930_v51 = vadd.f32 1e-05, %v1587_v23  ;;  %v1573_v12 = vsub.f32 %v1541_v34, %v1557_v55 }
 0x2ae   : > { %v1673_v5 = vmul.f32 %v2541_v1, %v1672_v54  ;;  %v1691_v38 = vmul.f32 0.5, %v1690_v50  ;;  %v1430_v0 = vpop.xlane.xlu2 %1429  ;;  %v1602_v54 = vsub.f32 %v3699_v46, %v3867_v30 }
 0x2af   : > { %v1829_v35 = vadd.f32 %v3872_v14, %v1810_v36  ;;  %2546 = vrsqrt.f32 %v3930_v51  ;;  %v3939_v9 = vmul.f32 %v1430_v0, %v3029_v13  ;;  %v1589_v24 = vmax.f32 %v1573_v12, 0.0 }
 0x2b0   : > { %v1677_v48 = vsel %vm1676_vm4, %v2541_v1, %v1673_v5  ;;  %v1692_v18 = vsub.f32 1.5, %v1691_v38  ;;  %v1436_v17 = vpop.xlane.xlu1 %1435  ;;  %v2545_v1 = vpop.eup %2544  ;;  %vm1704_vm12 = vweird.f32 %v3930_v51 }
 0x2b1   : > { %1845 = vst.msk [vmem:[#allocation2 + $0x18] sm:$0xff] %vm453_vm0, %v1829_v35  ;;  %v1792_v52 = vmul.f32 %v1677_v48, %v1600_v6  ;;  %v1556_v43 = vmul.f32 %v3939_v9, %v3939_v9  ;;  %v3946_v42 = vpop.xlane.xlu0 %1518  ;;  %v3949_v44 = vadd.f32 1e-05, %v1589_v24  ;;  %v3955_v47 = vmul.f32 %v1436_v17, %v3029_v13 }
 0x2b2   : > { %v1693_v28 = vmul.f32 %v2543_v58, %v1692_v18  ;;  %v1679_v55 = vmul.f32 %v2545_v1, %v3923_v26  ;;  %vm1685_vm8 = vweird.f32 %v2545_v1 }
 0x2b3   : > { %v1811_v23 = vmul.f32 %v3861_v60, %v1792_v52  ;;  %v1572_v50 = vsub.f32 %v1540_v10, %v1556_v43  ;;  %2548 = vrsqrt.f32 %v3949_v44  ;;  %vm1686_vm11 = vmor %vm1684_vm9, %vm1685_vm8  ;;  %vm1724_vm15 = vweird.f32 %v3949_v44 }
 0x2b4   : > { %v1697_v34 = vsel %vm1696_vm7, %v2543_v58, %v1693_v28  ;;  %v1680_v12 = vmul.f32 %v2545_v1, %v1679_v55  ;;  %v1558_v58 = vmul.f32 %v3955_v47, %v3955_v47 }
 0x2b5   : > { %v2547_v36 = vpop.eup %2546  ;;  %v1830_v20 = vadd.f32 %v3872_v14, %v1811_v23  ;;  %v1794_v5 = vmul.f32 %v1697_v34, %v1602_v54  ;;  %v1588_v38 = vmax.f32 %v1572_v50, 0.0 }
 0x2b6   : > { %v1699_v0 = vmul.f32 %v2547_v36, %v3930_v51  ;;  %v1516_v35 = vpop.xlane.xlu2 %1515  ;;  %v1681_v48 = vmul.f32 0.5, %v1680_v12  ;;  %vm1705_vm10 = vweird.f32 %v2547_v36  ;;  %v1601_v12 = vsub.f32 %v3676_v19, %v3895_v59 }
 0x2b7   : > { %1846 = vst.msk [vmem:[#allocation2 + $0x20] sm:$0xff] %vm453_vm0, %v1830_v20  ;;  %v1813_v46 = vmul.f32 %v3861_v60, %v1794_v5  ;;  %v3963_v30 = vadd.f32 1e-05, %v1588_v38  ;;  %v1542_v6 = vmul.f32 %v1516_v35, %v3029_v13  ;;  %vm1706_vm13 = vmor %vm1704_vm12, %vm1705_vm10 }
 0x2b8   : > { %v1700_v18 = vmul.f32 %v2547_v36, %v1699_v0  ;;  %v1522_v10 = vpop.xlane.xlu1 %1521  ;;  %v1682_v28 = vsub.f32 1.5, %v1681_v48 }
 0x2b9   : > { %v1832_v24 = vadd.f32 %v3872_v14, %v1813_v46  ;;  %2550 = vrsqrt.f32 %v3963_v30  ;;  %v1574_v52 = vsub.f32 %v1542_v6, %v1558_v58  ;;  %v1442_v43 = vpop.xlane.xlu0 %1441  ;;  %v2549_v17 = vpop.eup %2548  ;;  %v1544_v5 = vmul.f32 %v1522_v10, %v3029_v13 }
 0x2ba   : > { %v1701_v23 = vmul.f32 0.5, %v1700_v18  ;;  %v3971_v54 = vmul.f32 %v1442_v43, %v3029_v13  ;;  %v1719_v50 = vmul.f32 %v2549_v17, %v3949_v44  ;;  %v1683_v55 = vmul.f32 %v2545_v1, %v1682_v28 }
 0x2bb   : > { %1848 = vst.msk [vmem:[#allocation2 + $0x30] sm:$0xff] %vm453_vm0, %v1832_v24  ;;  %v1590_v34 = vmax.f32 %v1574_v52, 0.0  ;;  %v1603_v24 = vsub.f32 %v3728_v39, %v3900_v45  ;;  %vm1725_vm14 = vweird.f32 %v2549_v17  ;;  %v1543_v45 = vmul.f32 %v3946_v42, %v3029_v13 }
 0x2bc   : > { %v1702_v20 = vsub.f32 1.5, %v1701_v23  ;;  %v1560_v38 = vmul.f32 %v3971_v54, %v3971_v54  ;;  %v1720_v0 = vmul.f32 %v2549_v17, %v1719_v50  ;;  %v1687_v46 = vsel %vm1686_vm11, %v2545_v1, %v1683_v55  ;;  %vm1726_vm1 = vmor %vm1724_vm15, %vm1725_vm14 }
 0x2bd   : > { %v3981_v35 = vadd.f32 1e-05, %v1590_v34  ;;  %v1793_v18 = vmul.f32 %v1687_v46, %v1601_v12  ;;  %vm1714_vm3 = vweird.f32 %v3963_v30 }
 0x2be   : > { %v1703_v26 = vmul.f32 %v2547_v36, %v1702_v20  ;;  %v1576_v58 = vsub.f32 %v1544_v5, %v1560_v38  ;;  %v1439_v6 = vpop.xlane.xlu2 %1438  ;;  %v1721_v52 = vmul.f32 0.5, %v1720_v0  ;;  %v1605_v20 = vsub.f32 %v3735_v32, %v3920_v63 }
 0x2bf   : > { %v2551_v48 = vpop.eup %2550  ;;  %2552 = vrsqrt.f32 %v3981_v35  ;;  %v1812_v10 = vmul.f32 %v3861_v60, %v1793_v18  ;;  %v3991_v28 = vmul.f32 %v1439_v6, %v3029_v13  ;;  %vm1734_vm6 = vweird.f32 %v3981_v35 }
 0x2c0   : > { %v1707_v19 = vsel %vm1706_vm13, %v2547_v36, %v1703_v26  ;;  %v1709_v59 = vmul.f32 %v2551_v48, %v3963_v30  ;;  %v1592_v1 = vmax.f32 %v1576_v58, 0.0  ;;  %v1722_v43 = vsub.f32 1.5, %v1721_v52 }
 0x2c1   : > { %v1795_v51 = vmul.f32 %v1707_v19, %v1603_v24  ;;  %v1831_v36 = vadd.f32 %v3872_v14, %v1812_v10  ;;  %v1559_v55 = vmul.f32 %v3991_v28, %v3991_v28  ;;  %vm1715_vm2 = vweird.f32 %v2551_v48  ;;  %v1445_v24 = vpop.xlane.xlu1 %1444 }
 0x2c2   : > { %v1710_v39 = vmul.f32 %v2551_v48, %v1709_v59  ;;  %v3996_v23 = vadd.f32 1e-05, %v1592_v1  ;;  %v1723_v34 = vmul.f32 %v2549_v17, %v1722_v43  ;;  %vm1716_vm4 = vmor %vm1714_vm3, %vm1715_vm2 }
 0x2c3   : > { %v1814_v50 = vmul.f32 %v3861_v60, %v1795_v51  ;;  %1847 = vst.msk [vmem:[#allocation2 + $0x28] sm:$0xff] %vm453_vm0, %v1831_v36  ;;  %v1575_v12 = vsub.f32 %v1543_v45, %v1559_v55 }
 0x2c4   : > { %v1711_v44 = vmul.f32 0.5, %v1710_v39  ;;  %2554 = vrsqrt.f32 %v3996_v23  ;;  %v1727_v38 = vsel %vm1726_vm1, %v2549_v17, %v1723_v34  ;;  %v1604_v17 = vsub.f32 %v3714_v49, %v3939_v9 }
 0x2c5   : > { %v2553_v5 = vpop.eup %2552  ;;  %v1833_v42 = vadd.f32 %v3872_v14, %v1814_v50  ;;  %v1797_v0 = vmul.f32 %v1727_v38, %v1605_v20  ;;  %v1591_v32 = vmax.f32 %v1575_v12, 0.0  ;;  %v4021_v39 = vmul.f32 %v1445_v24, %v3029_v13 }
 0x2c6   : > { %v1712_v46 = vsub.f32 1.5, %v1711_v44  ;;  %v1729_v26 = vmul.f32 %v2553_v5, %v3981_v35  ;;  %vm1735_vm5 = vweird.f32 %v2553_v5  ;;  %v1606_v50 = vsub.f32 %v3756_v40, %v3955_v47 }
 0x2c7   : > { %1849 = vst.msk [vmem:[#allocation2 + $0x38] sm:$0xff] %vm453_vm0, %v1833_v42  ;;  %v1448_v63 = vpop.xlane.xlu2 %1447  ;;  %v1816_v58 = vmul.f32 %v3861_v60, %v1797_v0  ;;  %v4014_v52 = vadd.f32 1e-05, %v1591_v32  ;;  %vm1736_vm7 = vmor %vm1734_vm6, %vm1735_vm5  ;;  %v1561_v42 = vmul.f32 %v4021_v39, %v4021_v39  ;;  %vm1754_vm9 = vweird.f32 %v3996_v23 }
 0x2c8   : > { %v1713_v6 = vmul.f32 %v2551_v48, %v1712_v46  ;;  %v1730_v18 = vmul.f32 %v2553_v5, %v1729_v26 }
 0x2c9   : > { %v1835_v59 = vadd.f32 %v3872_v14, %v1816_v58  ;;  %2556 = vrsqrt.f32 %v4014_v52  ;;  %vm1744_vm12 = vweird.f32 %v4014_v52 }
 0x2ca   : > { %v2555_v19 = vpop.eup %2554  ;;  %v1717_v1 = vsel %vm1716_vm4, %v2551_v48, %v1713_v6  ;;  %v1731_v10 = vmul.f32 0.5, %v1730_v18  ;;  %v4042_v6 = vmul.f32 %v1448_v63, %v3029_v13  ;;  %v1608_v18 = vsub.f32 %v3774_v4, %v3971_v54 }
 0x2cb   : > { %v1796_v51 = vmul.f32 %v1717_v1, %v1604_v17  ;;  %v1749_v43 = vmul.f32 %v2555_v19, %v3996_v23  ;;  %1851 = vst.msk [vmem:[#allocation2 + $0x48] sm:$0xff] %vm453_vm0, %v1835_v59  ;;  %vm1755_vm8 = vweird.f32 %v2555_v19 }
 0x2cc   : > { %v1732_v30 = vsub.f32 1.5, %v1731_v10  ;;  %vm1756_vm10 = vmor %vm1754_vm9, %vm1755_vm8  ;;  %v1562_v23 = vmul.f32 %v4042_v6, %v4042_v6 }
 0x2cd   : > { %v1815_v49 = vmul.f32 %v3861_v60, %v1796_v51  ;;  %v1750_v9 = vmul.f32 %v2555_v19, %v1749_v43 }
 0x2ce   : > { %v1733_v45 = vmul.f32 %v2553_v5, %v1732_v30  ;;  %v1451_v48 = vpop.xlane.xlu0 %1450 }
 0x2cf   : > { %v1834_v36 = vadd.f32 %v3872_v14, %v1815_v49  ;;  %v1751_v34 = vmul.f32 0.5, %v1750_v9  ;;  %v4029_v55 = vmul.f32 %v1451_v48, %v3029_v13  ;;  %v1525_v20 = vpop.xlane.xlu2 %1524  ;;  %v2557_v35 = vpop.eup %2556 }
 0x2d0   : > { %v1737_v44 = vsel %vm1736_vm7, %v2553_v5, %v1733_v45  ;;  %v1545_v38 = vmul.f32 %v1525_v20, %v3029_v13  ;;  %v1531_v12 = vpop.xlane.xlu1 %1530  ;;  %v1739_v47 = vmul.f32 %v2557_v35, %v4014_v52  ;;  %vm1745_vm11 = vweird.f32 %v2557_v35 }
 0x2d1   : > { %1850 = vst.msk [vmem:[#allocation2 + $0x40] sm:$0xff] %vm453_vm0, %v1834_v36  ;;  %v1798_v0 = vmul.f32 %v1737_v44, %v1606_v50  ;;  %v1752_v46 = vsub.f32 1.5, %v1751_v34  ;;  %v1563_v40 = vmul.f32 %v4029_v55, %v4029_v55  ;;  %v1547_v5 = vmul.f32 %v1531_v12, %v3029_v13  ;;  %vm1746_vm13 = vmor %vm1744_vm12, %vm1745_vm11 }
 0x2d2   : > { %v1577_v26 = vsub.f32 %v1545_v38, %v1561_v42  ;;  %v1740_v24 = vmul.f32 %v2557_v35, %v1739_v47  ;;  %v1607_v50 = vsub.f32 %v3759_v15, %v3991_v28 }
 0x2d3   : > { %v1817_v32 = vmul.f32 %v3861_v60, %v1798_v0  ;;  %v1753_v58 = vmul.f32 %v2555_v19, %v1752_v46  ;;  %v1579_v59 = vsub.f32 %v1547_v5, %v1563_v40 }
 0x2d4   : > { %v1593_v17 = vmax.f32 %v1577_v26, 0.0  ;;  %v1741_v43 = vmul.f32 0.5, %v1740_v24 }
 0x2d5   : > { %v1836_v1 = vadd.f32 %v3872_v14, %v1817_v32  ;;  %v1757_v10 = vsel %vm1756_vm10, %v2555_v19, %v1753_v58  ;;  %v1595_v49 = vmax.f32 %v1579_v59, 0.0  ;;  %v1609_v58 = vsub.f32 %v3787_v56, %v4021_v39 }
 0x2d6   : > { %v1800_v51 = vmul.f32 %v1757_v10, %v1608_v18  ;;  %v1625_v30 = vadd.f32 1e-05, %v1593_v17  ;;  %v1528_v9 = vpop.xlane.xlu0 %1527  ;;  %v1742_v54 = vsub.f32 1.5, %v1741_v43 }
 0x2d7   : > { %1852 = vst.msk [vmem:[#allocation2 + $0x50] sm:$0xff] %vm453_vm0, %v1836_v1  ;;  %v1546_v63 = vmul.f32 %v1528_v9, %v3029_v13  ;;  %v1627_v45 = vadd.f32 1e-05, %v1595_v49 }
 0x2d8   : > { %v1819_v4 = vmul.f32 %v3861_v60, %v1800_v51  ;;  %2558 = vrsqrt.f32 %v1625_v30  ;;  %v1743_v36 = vmul.f32 %v2557_v35, %v1742_v54  ;;  %vm1764_vm15 = vweird.f32 %v1625_v30 }
 0x2d9   : > { %v1578_v48 = vsub.f32 %v1546_v63, %v1562_v23  ;;  %2560 = vrsqrt.f32 %v1627_v45  ;;  %vm1784_vm3 = vweird.f32 %v1627_v45  ;;  %v1611_v51 = vsub.f32 %v3809_v37, %v4029_v55 }
 0x2da   : > { %v1838_v19 = vadd.f32 %v3872_v14, %v1819_v4  ;;  %v1747_v13 = vsel %vm1746_vm13, %v2557_v35, %v1743_v36  ;;  %v1610_v23 = vsub.f32 %v3798_v29, %v4042_v6 }
 0x2db   : > { %v1594_v34 = vmax.f32 %v1578_v48, 0.0  ;;  %v1799_v20 = vmul.f32 %v1747_v13, %v1607_v50 }
 0x2dc   : > { %1854 = vst.msk [vmem:[#allocation2 + $0x60] sm:$0xff] %vm453_vm0, %v1838_v19 }
 0x2dd   : > { %v1626_v44 = vadd.f32 1e-05, %v1594_v34  ;;  %v1818_v38 = vmul.f32 %v3861_v60, %v1799_v20 }
 0x2de   : > { %v2559_v42 = vpop.eup %2558 }
 0x2df   : > { %v1759_v12 = vmul.f32 %v2559_v42, %v1625_v30  ;;  %2562 = vrsqrt.f32 %v1626_v44  ;;  %v2561_v0 = vpop.eup %2560  ;;  %v1837_v46 = vadd.f32 %v3872_v14, %v1818_v38  ;;  %vm1765_vm14 = vweird.f32 %v2559_v42 }
 0x2e0   : > { %v1779_v40 = vmul.f32 %v2561_v0, %v1627_v45  ;;  %vm1766_vm1 = vmor %vm1764_vm15, %vm1765_vm14  ;;  %vm1785_vm2 = vweird.f32 %v2561_v0  ;;  %vm1774_vm6 = vweird.f32 %v1626_v44 }
 0x2e1   : > { %v1760_v52 = vmul.f32 %v2559_v42, %v1759_v12  ;;  %1853 = vst.msk [vmem:[#allocation2 + $0x58] sm:$0xff] %vm453_vm0, %v1837_v46  ;;  %vm1786_vm4 = vmor %vm1784_vm3, %vm1785_vm2 }
 0x2e2   : > { %v1780_v28 = vmul.f32 %v2561_v0, %v1779_v40 }
 0x2e3   : > { %v1761_v15 = vmul.f32 0.5, %v1760_v52 }
 0x2e4   : > { %v1781_v35 = vmul.f32 0.5, %v1780_v28 }
 0x2e5   : > { %v2563_v47 = vpop.eup %2562  ;;  %v1762_v26 = vsub.f32 1.5, %v1761_v15 }
 0x2e6   : > { %v1769_v5 = vmul.f32 %v2563_v47, %v1626_v44  ;;  %v1782_v18 = vsub.f32 1.5, %v1781_v35  ;;  %vm1775_vm5 = vweird.f32 %v2563_v47 }
 0x2e7   : > { %v1763_v32 = vmul.f32 %v2559_v42, %v1762_v26  ;;  %vm1776_vm7 = vmor %vm1774_vm6, %vm1775_vm5 }
 0x2e8   : > { %v1770_v24 = vmul.f32 %v2563_v47, %v1769_v5  ;;  %v1783_v1 = vmul.f32 %v2561_v0, %v1782_v18 }
 0x2e9   : > { %v1767_v17 = vsel %vm1766_vm1, %v2559_v42, %v1763_v32 }
 0x2ea   : > { %v1801_v59 = vmul.f32 %v1767_v17, %v1609_v58  ;;  %v1771_v10 = vmul.f32 0.5, %v1770_v24  ;;  %v1787_v49 = vsel %vm1786_vm4, %v2561_v0, %v1783_v1 }
 0x2eb   : > { %v1803_v56 = vmul.f32 %v1787_v49, %v1611_v51 }
 0x2ec   : > { %v1820_v43 = vmul.f32 %v3861_v60, %v1801_v59  ;;  %v1772_v30 = vsub.f32 1.5, %v1771_v10 }
 0x2ed   : > { %v1822_v63 = vmul.f32 %v3861_v60, %v1803_v56 }
 0x2ee   : > { %v1839_v39 = vadd.f32 %v3872_v14, %v1820_v43  ;;  %v1773_v9 = vmul.f32 %v2563_v47, %v1772_v30 }
 0x2ef   : > { %v1841_v55 = vadd.f32 %v3872_v14, %v1822_v63 }
 0x2f0   : > { %1855 = vst.msk [vmem:[#allocation2 + $0x68] sm:$0xff] %vm453_vm0, %v1839_v39  ;;  %v1777_v37 = vsel %vm1776_vm7, %v2563_v47, %v1773_v9 }
 0x2f1   : > { %v1802_v4 = vmul.f32 %v1777_v37, %v1610_v23  ;;  %1857 = vst.msk [vmem:[#allocation2 + $0x78] sm:$0xff] %vm453_vm0, %v1841_v55 }
 0x2f3   : > { %v1821_v54 = vmul.f32 %v3861_v60, %v1802_v4 }
 0x2f5   : > { %v1840_v45 = vadd.f32 %v3872_v14, %v1821_v54 }
 0x2f7   : > { %1856 = vst.msk [vmem:[#allocation2 + $0x70] sm:$0xff] %vm453_vm0, %v1840_v45 }
 0x2f8 LB: >> { %s1864_s15 = sld [smem:[#allocation9 + %s2707_s7]]  ;;  %s4086_s12 = sshll.u32 %s2707_s7, 7  ;;  %v1866_v14 = vld [vmem:[#allocation2] sm:$0xff]  ;;  %v1873_v29 = vld [vmem:[#allocation2 + $0x8] sm:$0xff]  ;;  %v1880_v48 = vld [vmem:[#allocation2 + $0x10] sm:$0xff]  ;;  %s2707_s7 = sphi %s4079_s7, %s1863_s7  }
 0x2f9   : >> { %s1868_s19 = sld [smem:[#allocation8 + %s4086_s12]]  ;;  %s1874_s27 = sadd.s32 1, %s4086_s12  ;;  %v1887_v13 = vld [vmem:[#allocation2 + $0x18] sm:$0xff]  ;;  %v1894_v38 = vld [vmem:[#allocation2 + $0x20] sm:$0xff]  ;;  %v1901_v52 = vld [vmem:[#allocation2 + $0x28] sm:$0xff] }
 0x2fa   : >> { %s1875_s16 = sld [smem:[#allocation8 + %s1874_s27]]  ;;  %s1881_s30 = sadd.s32 2, %s4086_s12  ;;  %v1908_v47 = vld [vmem:[#allocation2 + $0x30] sm:$0xff]  ;;  %v1915_v32 = vld [vmem:[#allocation2 + $0x38] sm:$0xff]  ;;  %v1922_v17 = vld [vmem:[#allocation2 + $0x40] sm:$0xff] }
 0x2fb   : >> { %s1882_s13 = sld [smem:[#allocation8 + %s1881_s30]]  ;;  %s1888_s8 = sadd.s32 3, %s4086_s12  ;;  %v1929_v51 = vld [vmem:[#allocation2 + $0x48] sm:$0xff]  ;;  %v1936_v56 = vld [vmem:[#allocation2 + $0x50] sm:$0xff]  ;;  %v1943_v63 = vld [vmem:[#allocation2 + $0x58] sm:$0xff] }
 0x2fc   : >> { %s1889_s20 = sld [smem:[#allocation8 + %s1888_s8]]  ;;  %s1895_s23 = sadd.s32 4, %s4086_s12  ;;  %v1950_v54 = vld [vmem:[#allocation2 + $0x60] sm:$0xff] }
 0x2fd   : >> { %s4093_s28 = sld [smem:[#allocation8 + %s1895_s23]]  ;;  %s1902_s22 = sadd.s32 5, %s4086_s12 }
 0x2fe   : >> { %s4096_s26 = sld [smem:[#allocation8 + %s1902_s22]]  ;;  %s1909_s0 = sadd.s32 6, %s4086_s12  ;;  %v1865_v60 = vstv %s1864_s15 }
 0x2ff   : >> { %v1869_v6 = vstv %s1868_s19  ;;  %s4099_s27 = sld [smem:[#allocation8 + %s1909_s0]]  ;;  %s1916_s30 = sadd.s32 7, %s4086_s12 }
 0x300   : >> { %v1870_v19 = vmul.f32 %v1869_v6, %v1866_v14  ;;  %v1876_v36 = vstv %s1875_s16  ;;  %s1923_s8 = sadd.s32 8, %s4086_s12  ;;  %s4103_s23 = sld [smem:[#allocation8 + %s1916_s30]] }
 0x301   : >> { %v1877_v50 = vmul.f32 %v1876_v36, %v1873_v29  ;;  %v1883_v34 = vstv %s1882_s13  ;;  %s1930_s15 = sadd.s32 9, %s4086_s12  ;;  %s4107_s0 = sld [smem:[#allocation8 + %s1923_s8]]  ;;  %v1964_v36 = vld [vmem:[#allocation2 + $0x70] sm:$0xff] }
 0x302   : >> { %v1871_v20 = vadd.f32 %v1870_v19, %v1865_v60  ;;  %v1884_v44 = vmul.f32 %v1883_v34, %v1880_v48  ;;  %v1890_v42 = vstv %s1889_s20  ;;  %s1937_s19 = sadd.s32 10, %s4086_s12  ;;  %s4111_s16 = sld [smem:[#allocation8 + %s1930_s15]]  ;;  %v1957_v60 = vld [vmem:[#allocation2 + $0x68] sm:$0xff] }
 0x303   : >> { %v1897_v12 = vstv %s4093_s28  ;;  %v1891_v46 = vmul.f32 %v1890_v42, %v1887_v13  ;;  %s1944_s13 = sadd.s32 11, %s4086_s12  ;;  %s4115_s20 = sld [smem:[#allocation8 + %s1937_s19]] }
 0x304   : >> { %v1878_v0 = vadd.f32 %v1877_v50, %v1871_v20  ;;  %v1904_v40 = vstv %s4096_s26  ;;  %v1898_v28 = vmul.f32 %v1897_v12, %v1894_v38  ;;  %s1951_s28 = sadd.s32 12, %s4086_s12  ;;  %s1945_s22 = sld [smem:[#allocation8 + %s1944_s13]]  ;;  %v1971_v20 = vld [vmem:[#allocation2 + $0x78] sm:$0xff] }
 0x305   : >> { %v1911_v26 = vstv %s4099_s27  ;;  %v1905_v5 = vmul.f32 %v1904_v40, %v1901_v52  ;;  %s1958_s26 = sadd.s32 13, %s4086_s12  ;;  %s1952_s30 = sld [smem:[#allocation8 + %s1951_s28]] }
 0x306   : >> { %v1885_v15 = vadd.f32 %v1884_v44, %v1878_v0  ;;  %v1918_v58 = vstv %s4103_s23  ;;  %v1912_v24 = vmul.f32 %v1911_v26, %v1908_v47  ;;  %s1965_s27 = sadd.s32 14, %s4086_s12  ;;  %s1959_s8 = sld [smem:[#allocation8 + %s1958_s26]] }
 0x307   : >> { %v1925_v59 = vstv %s4107_s0  ;;  %v1919_v10 = vmul.f32 %v1918_v58, %v1915_v32  ;;  %s1972_s15 = sadd.s32 15, %s4086_s12  ;;  %s1966_s23 = sld [smem:[#allocation8 + %s1965_s27]] }
 0x308   : >> { %v1892_v35 = vadd.f32 %v1891_v46, %v1885_v15  ;;  %v1932_v43 = vstv %s4111_s16  ;;  %v1926_v30 = vmul.f32 %v1925_v59, %v1922_v17  ;;  %s1973_s19 = sld [smem:[#allocation8 + %s1972_s15]]  ;;  %s2359_s12 = sshll.u32 %s2707_s7, 3 }
 0x309   : >> { %v1939_v39 = vstv %s4115_s20  ;;  %v1933_v23 = vmul.f32 %v1932_v43, %v1929_v51  ;;  %s1978_s0 = scalar_lea.vmem [#allocation3], %s2359_s12  ;;  %s1863_s7 = sadd.s32 1, %s2707_s7  }
 0x30a   : >> { %v1899_v18 = vadd.f32 %v1898_v28, %v1892_v35  ;;  %v1946_v37 = vstv %s1945_s22  ;;  %v1940_v4 = vmul.f32 %v1939_v39, %v1936_v56  ;;  %p1860_p1 = scmp.ge.s32.totalorder %s1863_s7, 16  }
 0x30b   : >> { %v1953_v45 = vstv %s1952_s30  ;;  %v1947_v29 = vmul.f32 %v1946_v37, %v1943_v63  ;;  %v2015_v40 = vld [vmem:[%s4302_s9 + $0x18] sm:$0xff] (%p1860_p1)  ;;  %v2014_v15 = vld [vmem:[%s4302_s9 + $0x10] sm:$0xff] (%p1860_p1)  ;;  %v2013_v47 = vld [vmem:[%s4302_s9 + $0x8] sm:$0xff] (%p1860_p1)  ;;  %v4378_v35 = vmax.f32 (%p1860_p1), %v3589_v8, 0.0  ;;  %v4379_v58 = vmax.f32 (%p1860_p1), %v3603_v57, 0.0  ;;  %s2377_s15 = sshll.u32 (%p1860_p1), %s2801_s21, 3 }
 0x30c   : >> { %v1906_v1 = vadd.f32 %v1905_v5, %v1899_v18  ;;  %v1960_v6 = vstv %s1959_s8  ;;  %v1954_v19 = vmul.f32 %v1953_v45, %v1950_v54  ;;  %2080 = vmatpush.msra.mxu3 (%p1860_p1), %v2015_v40  ;;  %v2012_v26 = vld [vmem:[%s4302_s9] sm:$0xff] (%p1860_p1)  ;;  %v4380_v17 = vmax.f32 (%p1860_p1), %v3605_v21, 0.0  ;;  %s2192_s12 = scalar_lea.hbm (%p1860_p1), %s4304_s11, %s2377_s15  ;;  %s2182_s21 = scalar_lea.sflag (%p1860_p1), [#allocation6], %s2881_s14 }
 0x30d   : >> { %v1967_v50 = vstv %s1966_s23  ;;  %v1961_v13 = vmul.f32 %v1960_v6, %v1957_v60  ;;  %v4381_v8 = vmax.f32 (%p1860_p1), %v3619_v31, 0.0  ;;  %v4382_v43 = vmax.f32 (%p1860_p1), %v3614_v22, 0.0  ;;  %s2195_s16 = sshll.u32 (%p1860_p1), %s2192_s12, 4  ;;  %s2645_s26 = scalar_lea.hbm (%p1860_p1), %s4304_s11, 256  ;;  %s2196_s16 = int_to_ptr.hbm [resolvable:$true] %s2195_s16 }
 0x30e   : >> { %v1913_v49 = vadd.f32 %v1912_v24, %v1906_v1  ;;  %v1974_v44 = vstv %s1973_s19  ;;  %v1968_v38 = vmul.f32 %v1967_v50, %v1964_v36  ;;  %2081 = vmatpush.msra.mxu3 (%p1860_p1), %v2014_v15  ;;  %v4384_v39 = vmax.f32 (%p1860_p1), %v3658_v3, 0.0  ;;  %s2639_s13 = sshra.s32 (%p1860_p1), %s2196_s16, 4  ;;  %s2640_s13 = int_to_ptr.hbm [resolvable:$true] %s2639_s13 }
 0x30f   : >> { %v1975_v0 = vmul.f32 %v1974_v44, %v1971_v20  ;;  %v4386_v37 = vmax.f32 (%p1860_p1), %v3707_v33, 0.0  ;;  %v4388_v45 = vmax.f32 (%p1860_p1), %v3742_v62, 0.0  ;;  %v4390_v6 = vmax.f32 (%p1860_p1), %v3769_v41, 0.0  ;;  %s2641_s20 = scalar_lea.hbm (%p1860_p1), %s2640_s13, 128  ;;  %p2646_p2 = scmp.lt.s32.totalorder (%p1860_p1), %s2640_s13, %s4304_s11 }
 0x310   : >> { %v1920_v9 = vadd.f32 %v1919_v10, %v1913_v49  ;;  %2082 = vmatpush.msra.mxu3 (%p1860_p1), %v2013_v47  ;;  %v4392_v50 = vmax.f32 (%p1860_p1), %v3795_v61, 0.0  ;;  %v4393_v41 = vmax.f32 (%p1860_p1), %v3804_v25, 0.0  ;;  %p2642_p4 = scmp.ne.s32.totalorder (%p1860_p1), %s2640_s13, %s2641_s20  ;;  %p2647_p9 = scmp.lt.s32.totalorder (%p1860_p1), %s2645_s26, %s2641_s20 }
 0x312   : >> { %v1927_v55 = vadd.f32 %v1926_v30, %v1920_v9  ;;  %2083 = vmatpush.msra.mxu3 (%p1860_p1), %v2012_v26  ;;  %v4383_v30 = vmax.f32 (%p1860_p1), %v3662_v7, 0.0  ;;  %p2643_p8 = pnand (%p1860_p1), %p2642_p4, %p2849_p3  ;;  %p2648_p11 = por (%p1860_p1), %p2647_p9, %p2646_p2 }
 0x314   : >> { %v1934_v14 = vadd.f32 %v1933_v23, %v1927_v55  ;;  %v4385_v23 = vmax.f32 (%p1860_p1), %v3690_v11, 0.0  ;;  %p2644_p10 = pneg (%p1860_p1), %p2643_p8 }
 0x316   : >> { %v1941_v48 = vadd.f32 %v1940_v4, %v1934_v14  ;;  %v4387_v4 = vmax.f32 (%p1860_p1), %v3722_v27, 0.0  ;;  %p2649_p12 = pnand (%p1860_p1), %p2648_p11, %p2644_p10 }
 0x318   : >> { %v1948_v34 = vadd.f32 %v1947_v29, %v1941_v48  ;;  %v4389_v29 = vmax.f32 (%p1860_p1), %v3754_v16, 0.0 }
 0x31a   : >> { %v1955_v42 = vadd.f32 %v1954_v19, %v1948_v34  ;;  %v4391_v19 = vmax.f32 (%p1860_p1), %v3784_v53, 0.0  ;;  %v4193_v53 = vld [vmem:[%s4303_s10] ss:$0 sm:$0xff] (%p1860_p1) }
 0x31c   : >> { %v1962_v12 = vadd.f32 %v1961_v13, %v1955_v42 }
 0x31e   : >> { %v1969_v46 = vadd.f32 %v1968_v38, %v1962_v12  ;;  %1862 = sbr.rel (!%p1860_p1) target bundleno = 760 (0x2f8), region = 141 }
 0x320   : >> { %v1976_v52 = vadd.f32 %v1975_v0, %v1969_v46  ;;  %v4394_v0 = vld [vmem:[#allocation21_spill] sm:$0xff] (%p1860_p1) }
 0x322   : >> { %1979 = vst.msk [vmem:[%s1978_s0] sm:$0xff] %vm453_vm0, %v1976_v52  ;;  %s2193_s0 = sshll.u32 (%p1860_p1), %s4077_s25, 4  ;;  %s2194_s0 = int_to_ptr.vmem [resolvable:$true] %s2193_s0 }
 0x329   : > { %v1980_v28 = vld [vmem:[#allocation3] sm:$0xff]  ;;  %v1981_v32 = vld [vmem:[#allocation3 + $0x8] sm:$0xff]  ;;  %v1982_v24 = vld [vmem:[#allocation3 + $0x10] sm:$0xff] }
 0x32a   : > { %v1996_v5 = vmul.f32 %v1980_v28, %v4378_v35  ;;  %v1997_v18 = vmul.f32 %v1981_v32, %v4379_v58  ;;  %v1998_v59 = vmul.f32 %v1982_v24, %v4380_v17  ;;  %v1983_v1 = vld [vmem:[#allocation3 + $0x18] sm:$0xff]  ;;  %v1984_v51 = vld [vmem:[#allocation3 + $0x20] sm:$0xff]  ;;  %v1985_v57 = vld [vmem:[#allocation3 + $0x28] sm:$0xff] }
 0x32b   : > { %v1999_v10 = vmul.f32 %v1983_v1, %v4381_v8  ;;  %v2000_v49 = vmul.f32 %v1984_v51, %v4382_v43  ;;  %v2001_v56 = vmul.f32 %v1985_v57, %v4383_v30  ;;  %v1986_v21 = vld [vmem:[#allocation3 + $0x30] sm:$0xff]  ;;  %v1987_v31 = vld [vmem:[#allocation3 + $0x38] sm:$0xff]  ;;  %v1988_v22 = vld [vmem:[#allocation3 + $0x40] sm:$0xff] }
 0x32c   : > { %2360 = vmatmul.msk.f32.vlgmr.msra.gmra.mxu3 %vm453_vm0, %v1996_v5  ;;  %v2002_v9 = vmul.f32 %v1986_v21, %v4384_v39  ;;  %v2003_v63 = vmul.f32 %v1987_v31, %v4385_v23  ;;  %v2004_v55 = vmul.f32 %v1988_v22, %v4386_v37  ;;  %v1989_v7 = vld [vmem:[#allocation3 + $0x48] sm:$0xff]  ;;  %v1990_v3 = vld [vmem:[#allocation3 + $0x50] sm:$0xff]  ;;  %v1991_v11 = vld [vmem:[#allocation3 + $0x58] sm:$0xff] }
 0x32d   : > { %v2005_v54 = vmul.f32 %v1989_v7, %v4387_v4  ;;  %v2006_v14 = vmul.f32 %v1990_v3, %v4388_v45  ;;  %v2007_v60 = vmul.f32 %v1991_v11, %v4389_v29  ;;  %v1992_v33 = vld [vmem:[#allocation3 + $0x60] sm:$0xff]  ;;  %v1993_v27 = vld [vmem:[#allocation3 + $0x68] sm:$0xff]  ;;  %v1994_v36 = vld [vmem:[#allocation3 + $0x70] sm:$0xff] }
 0x32e   : > { %v2008_v48 = vmul.f32 %v1992_v33, %v4390_v6  ;;  %v2009_v62 = vmul.f32 %v1993_v27, %v4391_v19  ;;  %v2010_v16 = vmul.f32 %v1994_v36, %v4392_v50  ;;  %v1995_v34 = vld [vmem:[#allocation3 + $0x78] sm:$0xff]  ;;  %v4395_v28 = vld [vmem:[#allocation20_spill] sm:$0xff]  ;;  %v4396_v5 = vld [vmem:[#allocation22_spill] sm:$0xff] }
 0x32f   : > { %v2011_v13 = vmul.f32 %v1995_v34, %v4393_v41  ;;  %v4397_v17 = vld [vmem:[#allocation23_spill] sm:$0xff]  ;;  %v4398_v51 = vld [vmem:[#allocation24_spill] sm:$0xff]  ;;  %v4400_v23 = vld [vmem:[#allocation26_spill] sm:$0xff] }
 0x330   : > { %v4401_v7 = vld [vmem:[#allocation27_spill] sm:$0xff]  ;;  %v4403_v6 = vld [vmem:[#allocation29_spill] sm:$0xff]  ;;  %v4404_v36 = vld [vmem:[#allocation30_spill] sm:$0xff] }
 0x334   : > { %2361 = vmatmul.msk.f32.gmra.mxu3 %vm453_vm0, %v1997_v18 }
 0x33c   : > { %2362 = vmatmul.msk.f32.gmra.mxu3 %vm453_vm0, %v1998_v59 }
 0x344   : > { %2363 = vmatmul.msk.f32.gmra.mxu3 %vm453_vm0, %v1999_v10 }
 0x34c   : > { %2364 = vmatmul.msk.f32.gmra.mxu3 %vm453_vm0, %v2000_v49 }
 0x354   : > { %2365 = vmatmul.msk.f32.gmra.mxu3 %vm453_vm0, %v2001_v56  ;;  %v4399_v56 = vld [vmem:[#allocation25_spill] sm:$0xff] }
 0x35c   : > { %2366 = vmatmul.msk.f32.gmra.mxu3 %vm453_vm0, %v2002_v9 }
 0x364   : > { %2367 = vmatmul.msk.f32.gmra.mxu3 %vm453_vm0, %v2003_v63 }
 0x36c   : > { %2368 = vmatmul.msk.f32.gmra.mxu3 %vm453_vm0, %v2004_v55 }
 0x374   : > { %2369 = vmatmul.msk.f32.gmra.mxu3 %vm453_vm0, %v2005_v54 }
 0x37c   : > { %2370 = vmatmul.msk.f32.gmra.mxu3 %vm453_vm0, %v2006_v14  ;;  %v4402_v14 = vld [vmem:[#allocation28_spill] sm:$0xff] }
 0x384   : > { %2371 = vmatmul.msk.f32.gmra.mxu3 %vm453_vm0, %v2007_v60 }
 0x38c   : > { %2372 = vmatmul.msk.f32.gmra.mxu3 %vm453_vm0, %v2008_v48 }
 0x394   : > { %2373 = vmatmul.msk.f32.gmra.mxu3 %vm453_vm0, %v2009_v62 }
 0x39c   : > { %2374 = vmatmul.msk.f32.gmra.mxu3 %vm453_vm0, %v2010_v16 }
 0x3a4   : > { %2375 = vmatmul.msk.f32.gmra.mxu3 %vm453_vm0, %v2011_v13  ;;  %v4405_v13 = vld [vmem:[#allocation31_spill] sm:$0xff] }
 0x3af   : > { %v2085_v20 = vpop.f32.mrf.mxu3 }
 0x3b0   : > { %v2086_v44 = vadd.f32 %v4193_v53, %v2085_v20 }
 0x3b2   : > { %v2133_v61 = vmax.f32 %v2086_v44, 0.0 }
 0x3b4   : > { %v2149_v42 = vadd.f32 %v2133_v61, %v2908_v2 }
 0x3b6   : > { %2165 = vst.msk [vmem:[%s4077_s25] sm:$0xff] %vm453_vm0, %v2149_v42 }
 0x3b7   : > { %v2088_v38 = vpop.f32.mrf.mxu3 }
 0x3b8   : > { %v2089_v25 = vadd.f32 %v4193_v53, %v2088_v38  ;;  %v4406_v38 = vld [vmem:[#allocation32_spill] sm:$0xff] }
 0x3ba   : > { %v2134_v12 = vmax.f32 %v2089_v25, 0.0 }
 0x3bc   : > { %v2150_v46 = vadd.f32 %v2134_v12, %v4394_v0 }
 0x3be   : > { %2166 = vst.msk [vmem:[%s4077_s25 + $0x8] sm:$0xff] %vm453_vm0, %v2150_v46 }
 0x3bf   : > { %v2091_v52 = vpop.f32.mrf.mxu3 }
 0x3c0   : > { %v2092_v40 = vadd.f32 %v4193_v53, %v2091_v52  ;;  %v4407_v52 = vld [vmem:[#allocation33_spill] sm:$0xff] }
 0x3c2   : > { %v2135_v15 = vmax.f32 %v2092_v40, 0.0 }
 0x3c4   : > { %v2151_v47 = vadd.f32 %v2135_v15, %v4395_v28 }
 0x3c6   : > { %2167 = vst.msk [vmem:[%s4077_s25 + $0x10] sm:$0xff] %vm453_vm0, %v2151_v47 }
 0x3c7   : > { %v2094_v2 = vpop.f32.mrf.mxu3 }
 0x3c8   : > { %v2095_v26 = vadd.f32 %v4193_v53, %v2094_v2  ;;  %v4408_v2 = vld [vmem:[#allocation34_spill] sm:$0xff] }
 0x3ca   : > { %v2136_v35 = vmax.f32 %v2095_v26, 0.0 }
 0x3cc   : > { %v2152_v32 = vadd.f32 %v2136_v35, %v4396_v5 }
 0x3ce   : > { %2168 = vst.msk [vmem:[%s4077_s25 + $0x18] sm:$0xff] %vm453_vm0, %v2152_v32 }
 0x3cf   : > { %v2097_v58 = vpop.f32.mrf.mxu3 }
 0x3d0   : > { %v2098_v18 = vadd.f32 %v4193_v53, %v2097_v58 }
 0x3d2   : > { %v2137_v24 = vmax.f32 %v2098_v18, 0.0 }
 0x3d4   : > { %v2153_v59 = vadd.f32 %v2137_v24, %v4397_v17 }
 0x3d6   : > { %2169 = vst.msk [vmem:[%s4077_s25 + $0x20] sm:$0xff] %vm453_vm0, %v2153_v59 }
 0x3d7   : > { %v2100_v1 = vpop.f32.mrf.mxu3 }
 0x3d8   : > { %v2101_v8 = vadd.f32 %v4193_v53, %v2100_v1 }
 0x3da   : > { %v2138_v10 = vmax.f32 %v2101_v8, 0.0 }
 0x3dc   : > { %v2154_v43 = vadd.f32 %v2138_v10, %v4398_v51 }
 0x3de   : > { %2170 = vst.msk [vmem:[%s4077_s25 + $0x28] sm:$0xff] %vm453_vm0, %v2154_v43 }
 0x3df   : > { %v2103_v49 = vpop.f32.mrf.mxu3 }
 0x3e0   : > { %v2104_v57 = vadd.f32 %v4193_v53, %v2103_v49 }
 0x3e2   : > { %v2139_v30 = vmax.f32 %v2104_v57, 0.0 }
 0x3e4   : > { %v2155_v21 = vadd.f32 %v2139_v30, %v4399_v56 }
 0x3e6   : > { %2171 = vst.msk [vmem:[%s4077_s25 + $0x30] sm:$0xff] %vm453_vm0, %v2155_v21 }
 0x3e7   : > { %v2106_v39 = vpop.f32.mrf.mxu3 }
 0x3e8   : > { %v2107_v9 = vadd.f32 %v4193_v53, %v2106_v39 }
 0x3ea   : > { %v2140_v31 = vmax.f32 %v2107_v9, 0.0 }
 0x3ec   : > { %v2156_v63 = vadd.f32 %v2140_v31, %v4400_v23 }
 0x3ee   : > { %2172 = vst.msk [vmem:[%s4077_s25 + $0x38] sm:$0xff] %vm453_vm0, %v2156_v63 }
 0x3ef   : > { %v2109_v22 = vpop.f32.mrf.mxu3 }
 0x3f0   : > { %v2110_v37 = vadd.f32 %v4193_v53, %v2109_v22 }
 0x3f2   : > { %v2141_v55 = vmax.f32 %v2110_v37, 0.0 }
 0x3f4   : > { %v2157_v4 = vadd.f32 %v2141_v55, %v4401_v7 }
 0x3f6   : > { %2173 = vst.msk [vmem:[%s4077_s25 + $0x40] sm:$0xff] %vm453_vm0, %v2157_v4 }
 0x3f7   : > { %v2112_v54 = vpop.f32.mrf.mxu3 }
 0x3f8   : > { %v2113_v3 = vadd.f32 %v4193_v53, %v2112_v54 }
 0x3fa   : > { %v2142_v45 = vmax.f32 %v2113_v3, 0.0 }
 0x3fc   : > { %v2158_v11 = vadd.f32 %v2142_v45, %v4402_v14 }
 0x3fe   : > { %2174 = vst.msk [vmem:[%s4077_s25 + $0x48] sm:$0xff] %vm453_vm0, %v2158_v11 }
 0x3ff   : > { %v2115_v29 = vpop.f32.mrf.mxu3 }
 0x400   : > { %v2116_v60 = vadd.f32 %v4193_v53, %v2115_v29 }
 0x402   : > { %v2143_v33 = vmax.f32 %v2116_v60, 0.0 }
 0x404   : > { %v2159_v48 = vadd.f32 %v2143_v33, %v4403_v6 }
 0x406   : > { %2175 = vst.msk [vmem:[%s4077_s25 + $0x50] sm:$0xff] %vm453_vm0, %v2159_v48 }
 0x407   : > { %v2118_v27 = vpop.f32.mrf.mxu3 }
 0x408   : > { %v2119_v19 = vadd.f32 %v4193_v53, %v2118_v27 }
 0x40a   : > { %v2144_v62 = vmax.f32 %v2119_v19, 0.0 }
 0x40c   : > { %v2160_v50 = vadd.f32 %v2144_v62, %v4404_v36 }
 0x40e   : > { %2176 = vst.msk [vmem:[%s4077_s25 + $0x58] sm:$0xff] %vm453_vm0, %v2160_v50 }
 0x40f   : > { %v2121_v16 = vpop.f32.mrf.mxu3 }
 0x410   : > { %v2122_v34 = vadd.f32 %v4193_v53, %v2121_v16 }
 0x412   : > { %v2145_v41 = vmax.f32 %v2122_v34, 0.0 }
 0x414   : > { %v2161_v20 = vadd.f32 %v2145_v41, %v4405_v13 }
 0x416   : > { %2177 = vst.msk [vmem:[%s4077_s25 + $0x60] sm:$0xff] %vm453_vm0, %v2161_v20 }
 0x417   : > { %v2124_v44 = vpop.f32.mrf.mxu3 }
 0x418   : > { %v2125_v61 = vadd.f32 %v4193_v53, %v2124_v44 }
 0x41a   : > { %v2146_v42 = vmax.f32 %v2125_v61, 0.0 }
 0x41c   : > { %v2162_v25 = vadd.f32 %v2146_v42, %v4406_v38 }
 0x41e   : > { %2178 = vst.msk [vmem:[%s4077_s25 + $0x68] sm:$0xff] %vm453_vm0, %v2162_v25 }
 0x41f   : > { %v2127_v12 = vpop.f32.mrf.mxu3 }
 0x420   : > { %v2128_v0 = vadd.f32 %v4193_v53, %v2127_v12 }
 0x422   : > { %v2147_v46 = vmax.f32 %v2128_v0, 0.0 }
 0x424   : > { %v2163_v40 = vadd.f32 %v2147_v46, %v4407_v52 }
 0x426   : > { %2179 = vst.msk [vmem:[%s4077_s25 + $0x70] sm:$0xff] %vm453_vm0, %v2163_v40 }
 0x427   : > { %v2130_v15 = vpop.f32.mrf.mxu3 }
 0x428   : > { %v2131_v28 = vadd.f32 %v4193_v53, %v2130_v15 }
 0x42a   : > { %v2148_v47 = vmax.f32 %v2131_v28, 0.0 }
 0x42c   : > { %v2164_v26 = vadd.f32 %v2148_v47, %v4408_v2 }
 0x42e   : > { %2180 = vst.msk [vmem:[%s4077_s25 + $0x78] sm:$0xff] %vm453_vm0, %v2164_v26 }
 0x42f   : > { %2652 = shalt.err (!%p2649_p12)
}
 0x430   : > { %s2717_s14 = smov 128   ;;  %s2718_s25 = smov 256  }
 0x431   : > { %s2719_s7 = smov 8  }
 0x432   : > { %2390 = dma.vmem_to_hbm [thread:$0]  (%p2849_p3), %s2194_s0, 2048, %s2196_s16, %s2182_s21, %s2717_s14, %s2718_s25, %s2719_s7  }
 0x433 PF: > { %s4409_s8 = sld [smem:[#allocation17_spill]]  ;;  %s2210_s15 = sand.u32 1, %s2691_s17  }
 0x434   : > { %s2211_s23 = scalar_lea.sflag [#allocation6], %s2210_s15 }
 0x439   : > { %p4410_p13 = scmp.ge.s32.totalorder %s4409_s8, 2 }
 0x43b   : > { %p2404_p0 = pnand %p4410_p13, %p2815_p6 }
 0x43d   : > { %p2405_p5 = pneg %p2404_p0 }
 0x43f   : > { %2686 = dma.done.wait (%p2405_p5), %s2211_s23, 2048  }
 0x440   : > { %2688 = vsyncadd (%p2405_p5), %s2211_s23, 4294965248  ;;  %s4411_s20 = sld [smem:[#allocation18_spill]]  ;;  %s4414_s17 = smov %s2695_s18 }
 0x441   : > { %s4412_s19 = sld [smem:[#allocation16_spill]] }
 0x442   : > { %s4413_s12 = sld [smem:[#allocation19_spill]] }
 0x446   : > { %p26_p7 = scmp.ge.s32.totalorder %s4411_s20, 4  }
 0x447   : > { %s4415_s18 = smov %s4412_s19 }
 0x448   : > { %s4416_s19 = smov %s4413_s12  ;;  %28 = sbr.rel (!%p26_p7) target bundleno = 11 (0xb), region = 152 }
 0x44d   :  { %2217 = vsyncpa [#allocation5], 1 }
 0x44e   :  { %2219 = vsyncpa [#allocation5 + $0x1], 1 }
 0x44f   :  { %2220 = vsyncpa [#allocation6], 1 }
 0x450   :  { %2222 = vsyncpa [#allocation6 + $0x1], 1 }
 0x451   :  { %2223 = vsyncpa [#allocation7], 1 }
 0x452   :  { %2225 = vsyncpa [#allocation7 + $0x1], 1 }
 0x453   :  { %2226 = vsyncpa [#allocation10], 1 }

// kernel: tpu_custom_call.1
= control target key start
LH: loop header
LB: loop body
LE: loop exit
PB: predicated region body
PF: predicated region fallthrough
CT: control target
= control target key end

     0   :  { %s4293_s0 = inlined_call_operand.hbm [shape: f32[16,16,32], index: 0, kind: input, shape index: {}, may-alias: {0,11}]   ;;  %s4294_s1 = inlined_call_operand.vmem [shape: f32[1,32], index: 1, kind: input, shape index: {}]   ;;  %s4295_s2 = inlined_call_operand.vmem [shape: f32[1,32], index: 2, kind: input, shape index: {}]   ;;  %s4296_s3 = inlined_call_operand.vmem [shape: f32[32,384], index: 3, kind: input, shape index: {}]   ;;  %s4297_s4 = inlined_call_operand.vmem [shape: f32[1,384], index: 4, kind: input, shape index: {}]   ;;  %s4298_s5 = inlined_call_operand.vmem [shape: f32[1,32], index: 5, kind: input, shape index: {}]   ;;  %s4299_s6 = inlined_call_operand.vmem [shape: f32[1,32], index: 6, kind: input, shape index: {}]   ;;  %s4300_s7 = inlined_call_operand.vmem [shape: f32[16,16], index: 7, kind: input, shape index: {}]   ;;  %s4301_s8 = inlined_call_operand.vmem [shape: f32[16], index: 8, kind: input, shape index: {}]   ;;  %s4302_s9 = inlined_call_operand.vmem [shape: f32[32,32], index: 9, kind: input, shape index: {}]   ;;  %s4303_s10 = inlined_call_operand.vmem [shape: f32[1,32], index: 10, kind: input, shape index: {}]   ;;  %s4304_s11 = inlined_call_operand.hbm [shape: f32[16,16,32], index: 11, kind: output, shape index: {}, may-alias: {0,11}]  }
   0x1   :  { %4326 = sst [smem:[#allocation35_spill]] %s4293_s0 }
   0x2   :  { %4327 = sst [smem:[#allocation36_spill]] %s4300_s7 }
   0x3   :  { %4328 = sst [smem:[#allocation37_spill]] %s4301_s8 }
   0x4   :  { %16 = vsyncpa [#allocation5], 0 }
   0x5   :  { %18 = vsyncpa [#allocation5 + $0x1], 0 }
   0x6   :  { %19 = vsyncpa [#allocation7], 0 }
   0x7   :  { %20 = vsyncpa [#allocation10], 0 }
   0x8   :  { %21 = vsyncpa [#allocation6], 0 }
   0x9   :  { %23 = vsyncpa [#allocation6 + $0x1], 0  ;;  %s2780_s17 = smov 0   ;;  %s2782_s18 = smov 0  }
   0xa   :  { %s2784_s19 = smov 0   ;;  %s2786_s20 = smov 0  }
   0xb LB: > { %4329 = sst [smem:[#allocation16_spill]] %s2699_s19  ;;  %s2801_s21 = sadd.s32 4294967295, %s2703_s20   ;;  %s2703_s20 = sphi %s2786_s20, %s4411_s20   ;;  %s2699_s19 = sphi %s2784_s19, %s4416_s19   ;;  %s2695_s18 = sphi %s2782_s18, %s4415_s18   ;;  %s2691_s17 = sphi %s2780_s17, %s4414_s17  }
   0xc   : > { %4330 = sst [smem:[#allocation17_spill]] %s2703_s20  ;;  %s2298_s22 = sadd.s32 4294967294, %s2703_s20  }
   0xd   : > { %p49_p0 = scmp.ne.s32.totalorder %s2695_s18, %s2691_s17  ;;  %p50_p1 = scmp.eq.s32.totalorder %s2801_s21, 0 }
   0xe   : > { %p283_p2 = scmp.eq.s32.totalorder %s2801_s21, 1  ;;  %p289_p3 = scmp.eq.s32.totalorder %s2298_s22, 1 }
   0xf   : > { %p2810_p4 = por %p50_p1, %p49_p0  ;;  %p2299_p5 = scmp.ge.s32.totalorder %s2703_s20, 1 }
  0x10   : > { %p2815_p6 = por %p289_p3, %p49_p0  ;;  %p296_p7 = scmp.lt.s32.totalorder %s2703_s20, 3 }
  0x11   : > { %s4333_s7 = sld [smem:[#allocation36_spill]]  ;;  %s2709_s13 = smov [#allocation8]  }
  0x12   : > { %p2823_p8 = pnand %p2299_p5, %p296_p7  ;;  %s4335_s8 = sld [smem:[#allocation37_spill]] }
  0x13   : > { %s4305_s14 = smov 128   ;;  %s4306_s15 = smov 8  }
  0x14   : > { %p2392_p9 = pneg %p2823_p8  ;;  %s2712_s16 = smov [#allocation9]  }
  0x15   : > { %s2839_s22 = sadd.s32 1, %s2703_s20   ;;  %s36_s25 = sadd.s32 1, %s2699_s19 }
  0x16   : > { %p2393_p11 = pnand %p2392_p9, %p50_p1  ;;  %4336 = sst [smem:[#allocation18_spill]] %s2839_s22 }
  0x17   : > { %s325_s27 = sshll.u32 %s4333_s7, 4  ;;  %s33_s26 = ssub.s32 %s2703_s20, %s2839_s22  ;;  %s326_s27 = int_to_ptr.vmem [resolvable:$true] %s325_s27 }
  0x18   : > { %s338_s12 = sshll.u32 %s4335_s8, 4  ;;  %p43_p12 = scmp.ne.s32.totalorder %s2699_s19, %s2695_s18  ;;  %s339_s12 = int_to_ptr.vmem [resolvable:$true] %s338_s12 }
  0x19   : > { %2395 = dma.vmem_to_smem (!%p2393_p11), %s326_s27, 256, %s2709_s13, [#allocation7], %s4305_s14, %s4305_s14, %s4306_s15  }
  0x1a   : > { %2398 = dma.vmem_to_smem (!%p2393_p11), %s339_s12, 16, %s2712_s16, [#allocation10]  }
  0x1b   : > { %p34_p13 = scmp.eq.s32.totalorder %s33_s26, 0  ;;  %p44_p0 = scmp.eq.s32.totalorder %s2703_s20, 0 }
  0x1c   : > { %p2849_p3 = por %p283_p2, %p43_p12  ;;  %p2409_p5 = scmp.lt.s32.totalorder %s2703_s20, 2 }
  0x1d   : > { %s2855_s30 = scalar_select %p34_p13, %s2699_s19, %s36_s25  }
  0x1e   : > { %p45_p7 = por %p44_p0, %p43_p12  ;;  %s355_s27 = sand.u32 1, %s2699_s19  }
  0x1f   : > { %4338 = sst [smem:[#allocation19_spill]] %s2855_s30  ;;  %s2303_s13 = sshll.u32 %s355_s27, 7 }
  0x20   : > { %s2304_s12 = sshll.u32 %s2703_s20, 3  ;;  %s4339_s0 = sld [smem:[#allocation35_spill]] }
  0x21   : > { %s359_s7 = scalar_lea.vmem [#allocation4], %s2303_s13  ;;  %p2862_p2 = pnand %p2409_p5, %p45_p7 }
  0x22   : > { %s366_s8 = sshll.u32 %s359_s7, 4  ;;  %s356_s25 = scalar_lea.sflag [#allocation5], %s355_s27  ;;  %s367_s8 = int_to_ptr.vmem [resolvable:$true] %s366_s8 }
  0x23   : > { %p2599_p11 = pneg %p2862_p2 }
  0x26   : > { %s363_s15 = scalar_lea.hbm %s4339_s0, %s2304_s12  ;;  %s2602_s7 = scalar_lea.hbm %s4339_s0, 256 }
  0x27   : > { %s364_s26 = sshll.u32 %s363_s15, 4  ;;  %s365_s26 = int_to_ptr.hbm [resolvable:$true] %s364_s26 }
  0x28   : > { %s2595_s30 = sshra.s32 %s365_s26, 4  ;;  %s2596_s30 = int_to_ptr.hbm [resolvable:$true] %s2595_s30 }
  0x29   : > { %s2597_s19 = scalar_lea.hbm %s2596_s30, 128  ;;  %p2603_p0 = scmp.lt.s32.totalorder %s2596_s30, %s4339_s0 }
  0x2a   : > { %p2598_p9 = scmp.ne.s32.totalorder %s2596_s30, %s2597_s19  ;;  %p2604_p5 = scmp.lt.s32.totalorder %s2602_s7, %s2597_s19 }
  0x2c   : > { %p2600_p12 = pnand %p2599_p11, %p2598_p9  ;;  %p2605_p7 = por %p2604_p5, %p2603_p0 }
  0x2e   : > { %p2601_p13 = pneg %p2600_p12 }
  0x30   : > { %p2606_p10 = pnand %p2605_p7, %p2601_p13 }
  0x32   : > { %2609 = shalt.err (!%p2606_p10)
}
  0x33   : > { %s2713_s27 = smov 256   ;;  %s4341_s16 = smov 8  }
  0x34   : > { %s4342_s20 = smov 128   ;;  %378 = sbr.rel (%p2823_p8) target bundleno = 1075 (0x433), region = 64 }
  0x35   : > { %2402 = dma.hbm_to_vmem [thread:$0]  (!%p2862_p2), %s365_s26, 2048, %s367_s8, %s356_s25, %s2713_s27, %s4342_s20, %s4341_s16  }
  0x39   : > { %s2881_s14 = sand.u32 1, %s2695_s18  }
  0x3a   : > { %s2306_s19 = sshll.u32 %s2881_s14, 7  ;;  %s381_s30 = scalar_lea.sflag [#allocation5], %s2881_s14 }
  0x3b   : > { %s2887_s13 = scalar_lea.vmem [#allocation4], %s2306_s19 }
  0x3c   : > { %2674 = dma.done.wait (%p2810_p4), %s381_s30, 2048  }
  0x3d   : > { %2676 = vsyncadd (%p2810_p4), %s381_s30, 4294965248 }
  0x3e   : > { %2678 = dma.done.wait (%p50_p1), [#allocation7], 256  }
  0x3f   : > { %2680 = vsyncadd (%p50_p1), [#allocation7], 4294967040 }
  0x40   : > { %2682 = dma.done.wait (%p50_p1), [#allocation10], 16  }
  0x41   : > { %2684 = vsyncadd (%p50_p1), [#allocation10], 4294967280 }
  0x42   : > { %400 = sfence }
  0x43   : > { %v2902_v0 = vld [vmem:[%s2887_s13 + $0x10] sm:$0xff]  ;;  %vm453_vm0 = vcmask 261120   ;;  %v2905_v1 = vld [vmem:[%s2887_s13 + $0x8] sm:$0xff]  ;;  %v2908_v2 = vld [vmem:[%s2887_s13] sm:$0xff]  ;;  %s4077_s25 = scalar_lea.vmem [#allocation11], %s2306_s19  ;;  %s4079_s7 = smov 0  }
  0x44   : > { %4343 = vst [vmem:[#allocation20_spill] sm:$0xff] %v2902_v0  ;;  %v460_v3 = vsel %vm453_vm0, %v2902_v0, 0.0  ;;  %v457_v4 = vsel %vm453_vm0, %v2905_v1, 0.0  ;;  %v454_v5 = vsel %vm453_vm0, %v2908_v2, 0.0  ;;  %v527_v6 = vmul.f32 %v2902_v0, %v2902_v0  ;;  %v2926_v12 = vld [vmem:[%s2887_s13 + $0x18] sm:$0xff]  ;;  %v2931_v14 = vld [vmem:[%s2887_s13 + $0x20] sm:$0xff] }
  0x45   : > { %4344 = vst [vmem:[#allocation21_spill] sm:$0xff] %v2905_v1  ;;  %461 = vadd.xlane.f32.xlu2 %v460_v3  ;;  %458 = vadd.xlane.f32.xlu1 %v457_v4  ;;  %v526_v7 = vmul.f32 %v2905_v1, %v2905_v1  ;;  %v525_v8 = vmul.f32 %v2908_v2, %v2908_v2  ;;  %v466_v16 = vsel %vm453_vm0, %v2931_v14, 0.0  ;;  %v463_v17 = vsel %vm453_vm0, %v2926_v12, 0.0  ;;  %v2939_v18 = vld [vmem:[%s2887_s13 + $0x28] sm:$0xff]  ;;  %v2950_v24 = vld [vmem:[%s2887_s13 + $0x30] sm:$0xff]  ;;  %v2955_v26 = vld [vmem:[%s2887_s13 + $0x38] sm:$0xff] }
  0x46   : > { %455 = vadd.xlane.f32.xlu0 %v454_v5  ;;  %v547_v9 = vsel %vm453_vm0, %v527_v6, 0.0  ;;  %4345 = vst [vmem:[#allocation22_spill] sm:$0xff] %v2926_v12  ;;  %v528_v13 = vmul.f32 %v2926_v12, %v2926_v12  ;;  %v530_v19 = vmul.f32 %v2939_v18, %v2939_v18  ;;  %v529_v20 = vmul.f32 %v2931_v14, %v2931_v14  ;;  %v2963_v30 = vld [vmem:[%s2887_s13 + $0x40] sm:$0xff]  ;;  %v2974_v36 = vld [vmem:[%s2887_s13 + $0x48] sm:$0xff]  ;;  %v2979_v38 = vld [vmem:[%s2887_s13 + $0x50] sm:$0xff] }
  0x47   : > { %v544_v10 = vsel %vm453_vm0, %v526_v7, 0.0  ;;  %v541_v11 = vsel %vm453_vm0, %v525_v8, 0.0  ;;  %4346 = vst [vmem:[#allocation23_spill] sm:$0xff] %v2931_v14  ;;  %v469_v21 = vsel %vm453_vm0, %v2939_v18, 0.0  ;;  %v531_v25 = vmul.f32 %v2950_v24, %v2950_v24  ;;  %v2987_v42 = vld [vmem:[%s2887_s13 + $0x58] sm:$0xff]  ;;  %v2998_v48 = vld [vmem:[%s2887_s13 + $0x60] sm:$0xff] }
  0x48   : > { %v550_v15 = vsel %vm453_vm0, %v528_v13, 0.0  ;;  %4347 = vst [vmem:[#allocation24_spill] sm:$0xff] %v2939_v18  ;;  %v556_v22 = vsel %vm453_vm0, %v530_v19, 0.0  ;;  %v553_v23 = vsel %vm453_vm0, %v529_v20, 0.0  ;;  %v475_v28 = vsel %vm453_vm0, %v2955_v26, 0.0  ;;  %v3003_v50 = vld [vmem:[%s2887_s13 + $0x68] sm:$0xff] }
  0x49   : > { %4348 = vst [vmem:[#allocation25_spill] sm:$0xff] %v2950_v24  ;;  %v559_v27 = vsel %vm453_vm0, %v531_v25, 0.0  ;;  %v472_v29 = vsel %vm453_vm0, %v2950_v24, 0.0  ;;  %v533_v31 = vmul.f32 %v2963_v30, %v2963_v30  ;;  %v532_v32 = vmul.f32 %v2955_v26, %v2955_v26  ;;  %v3011_v54 = vld [vmem:[%s2887_s13 + $0x70] sm:$0xff]  ;;  %v3022_v60 = vld [vmem:[%s2887_s13 + $0x78] sm:$0xff] }
  0x4a   : > { %4349 = vst [vmem:[#allocation26_spill] sm:$0xff] %v2955_v26  ;;  %v478_v33 = vsel %vm453_vm0, %v2963_v30, 0.0  ;;  %v534_v37 = vmul.f32 %v2974_v36, %v2974_v36  ;;  %v484_v40 = vsel %vm453_vm0, %v2979_v38, 0.0  ;;  %v481_v41 = vsel %vm453_vm0, %v2974_v36, 0.0  ;;  %v909_v19 = vld [vmem:[%s4296_s3 + $0x50] sm:$0xff]  ;;  %v910_v20 = vld [vmem:[%s4296_s3 + $0x58] sm:$0xff] }
  0x4b   : > { %4350 = vst [vmem:[#allocation27_spill] sm:$0xff] %v2963_v30  ;;  %v565_v34 = vsel %vm453_vm0, %v533_v31, 0.0  ;;  %v562_v35 = vsel %vm453_vm0, %v532_v32, 0.0  ;;  %v536_v43 = vmul.f32 %v2987_v42, %v2987_v42  ;;  %v535_v44 = vmul.f32 %v2979_v38, %v2979_v38  ;;  %1044 = vmatpush.msra.mxu1 %v909_v19  ;;  %1109 = vmatpush.msra.mxu2 %v910_v20  ;;  %v903_v31 = vld [vmem:[%s4296_s3 + $0x20] sm:$0xff]  ;;  %v904_v32 = vld [vmem:[%s4296_s3 + $0x28] sm:$0xff] }
  0x4c   : > { %4351 = vst [vmem:[#allocation28_spill] sm:$0xff] %v2974_v36  ;;  %v568_v39 = vsel %vm453_vm0, %v534_v37, 0.0  ;;  %v487_v45 = vsel %vm453_vm0, %v2987_v42, 0.0  ;;  %v537_v49 = vmul.f32 %v2998_v48, %v2998_v48  ;;  %v493_v52 = vsel %vm453_vm0, %v3003_v50, 0.0 }
  0x4d   : > { %548 = vadd.xlane.f32.xlu2 %v547_v9  ;;  %545 = vadd.xlane.f32.xlu1 %v544_v10  ;;  %4352 = vst [vmem:[#allocation29_spill] sm:$0xff] %v2979_v38  ;;  %v574_v46 = vsel %vm453_vm0, %v536_v43, 0.0  ;;  %v571_v47 = vsel %vm453_vm0, %v535_v44, 0.0  ;;  %v490_v53 = vsel %vm453_vm0, %v2998_v48, 0.0  ;;  %v539_v55 = vmul.f32 %v3011_v54, %v3011_v54  ;;  %v901_v43 = vld [vmem:[%s4296_s3 + $0x10] sm:$0xff] }
  0x4e   : > { %542 = vadd.xlane.f32.xlu0 %v541_v11  ;;  %4353 = vst [vmem:[#allocation30_spill] sm:$0xff] %v2987_v42  ;;  %v577_v51 = vsel %vm453_vm0, %v537_v49, 0.0  ;;  %v538_v56 = vmul.f32 %v3003_v50, %v3003_v50  ;;  %v496_v57 = vsel %vm453_vm0, %v3011_v54, 0.0  ;;  %v540_v61 = vmul.f32 %v3022_v60, %v3022_v60 }
  0x4f   : > { %4354 = vst [vmem:[#allocation31_spill] sm:$0xff] %v2998_v48  ;;  %v583_v58 = vsel %vm453_vm0, %v539_v55, 0.0  ;;  %v499_v63 = vsel %vm453_vm0, %v3022_v60, 0.0  ;;  %v2714_v3 = vmov 32.0  }
  0x50   : > { %4355 = vst [vmem:[#allocation32_spill] sm:$0xff] %v3003_v50  ;;  %v580_v59 = vsel %vm453_vm0, %v538_v56, 0.0  ;;  %v586_v62 = vsel %vm453_vm0, %v540_v61, 0.0  ;;  %2498 = vrcp.f32 %v2714_v3 }
  0x51   : > { %4356 = vst [vmem:[#allocation33_spill] sm:$0xff] %v3011_v54 }
  0x52   : > { %4357 = vst [vmem:[#allocation34_spill] sm:$0xff] %v3022_v60 }
  0x55   : > { %551 = vadd.xlane.f32.xlu1 %v550_v15  ;;  %467 = vadd.xlane.f32.xlu2 %v466_v16 }
  0x56   : > { %464 = vadd.xlane.f32.xlu0 %v463_v17  ;;  %v2499_v4 = vpop.eup %2498  ;;  %v908_v17 = vld [vmem:[%s4296_s3 + $0x48] sm:$0xff] }
  0x57   : > { %v503_v5 = vmul.f32 32.0, %v2499_v4  ;;  %vm507_vm1 = vweird.f32 %v2499_v4  ;;  %979 = vmatpush.msra.mxu0 %v908_v17 }
  0x59   : > { %v504_v6 = vsub.f32 1.0, %v503_v5 }
  0x5b   : > { %v505_v7 = vmul.f32 %v2499_v4, %v504_v6 }
  0x5d   : > { %470 = vadd.xlane.f32.xlu1 %v469_v21  ;;  %557 = vadd.xlane.f32.xlu2 %v556_v22  ;;  %v506_v8 = vadd.f32 %v2499_v4, %v505_v7  ;;  %v905_v21 = vld [vmem:[%s4296_s3 + $0x30] sm:$0xff]  ;;  %v906_v22 = vld [vmem:[%s4296_s3 + $0x38] sm:$0xff] }
  0x5e   : > { %554 = vadd.xlane.f32.xlu0 %v553_v23  ;;  %v907_v23 = vld [vmem:[%s4296_s3 + $0x40] sm:$0xff]  ;;  %980 = vmatpush.msra.mxu0 %v905_v21 }
  0x5f   : > { %v3029_v13 = vsel %vm507_vm1, %v2499_v4, %v506_v8  ;;  %1045 = vmatpush.msra.mxu1 %v906_v22  ;;  %1110 = vmatpush.msra.mxu2 %v907_v23 }
  0x61   : > { %1046 = vmatpush.msra.mxu1 %v903_v31  ;;  %1111 = vmatpush.msra.mxu2 %v904_v32 }
  0x63   : > { %1112 = vmatpush.msra.mxu2 %v901_v43 }
  0x65   : > { %560 = vadd.xlane.f32.xlu1 %v559_v27  ;;  %476 = vadd.xlane.f32.xlu2 %v475_v28 }
  0x66   : > { %473 = vadd.xlane.f32.xlu0 %v472_v29  ;;  %v902_v29 = vld [vmem:[%s4296_s3 + $0x18] sm:$0xff] }
  0x67   : > { %981 = vmatpush.msra.mxu0 %v902_v29 }
  0x6d   : > { %479 = vadd.xlane.f32.xlu1 %v478_v33  ;;  %566 = vadd.xlane.f32.xlu2 %v565_v34 }
  0x6e   : > { %563 = vadd.xlane.f32.xlu0 %v562_v35 }
  0x75   : > { %569 = vadd.xlane.f32.xlu1 %v568_v39  ;;  %485 = vadd.xlane.f32.xlu2 %v484_v40  ;;  %v899_v40 = vld [vmem:[%s4296_s3] sm:$0xff] }
  0x76   : > { %482 = vadd.xlane.f32.xlu0 %v481_v41  ;;  %v900_v41 = vld [vmem:[%s4296_s3 + $0x8] sm:$0xff]  ;;  %982 = vmatpush.msra.mxu0 %v899_v40 }
  0x77   : > { %1047 = vmatpush.msra.mxu1 %v900_v41 }
  0x7d   : > { %488 = vadd.xlane.f32.xlu1 %v487_v45  ;;  %575 = vadd.xlane.f32.xlu2 %v574_v46 }
  0x7e   : > { %572 = vadd.xlane.f32.xlu0 %v571_v47 }
  0x85   : > { %578 = vadd.xlane.f32.xlu1 %v577_v51  ;;  %494 = vadd.xlane.f32.xlu2 %v493_v52 }
  0x86   : > { %491 = vadd.xlane.f32.xlu0 %v490_v53 }
  0x8d   : > { %497 = vadd.xlane.f32.xlu1 %v496_v57  ;;  %584 = vadd.xlane.f32.xlu2 %v583_v58 }
  0x8e   : > { %581 = vadd.xlane.f32.xlu0 %v580_v59 }
  0x95   : > { %587 = vadd.xlane.f32.xlu1 %v586_v62 }
  0x96   : > { %500 = vadd.xlane.f32.xlu0 %v499_v63 }
  0xb8   : > { %v462_v9 = vpop.xlane.xlu2 %461  ;;  %v459_v10 = vpop.xlane.xlu1 %458 }
  0xb9   : > { %v456_v11 = vpop.xlane.xlu0 %455  ;;  %v3032_v15 = vmul.f32 %v3029_v13, %v462_v9  ;;  %v3035_v16 = vmul.f32 %v3029_v13, %v459_v10 }
  0xba   : > { %v3056_v25 = vmul.f32 %v3029_v13, %v456_v11 }
  0xbb   : > { %v607_v27 = vmul.f32 %v3032_v15, %v3032_v15  ;;  %v606_v28 = vmul.f32 %v3035_v16, %v3035_v16 }
  0xbc   : > { %v605_v44 = vmul.f32 %v3056_v25, %v3056_v25 }
  0xc0   : > { %v549_v33 = vpop.xlane.xlu2 %548  ;;  %v546_v34 = vpop.xlane.xlu1 %545 }
  0xc1   : > { %v591_v35 = vmul.f32 %v549_v33, %v3029_v13  ;;  %v590_v37 = vmul.f32 %v546_v34, %v3029_v13  ;;  %v543_v39 = vpop.xlane.xlu0 %542 }
  0xc2   : > { %v589_v45 = vmul.f32 %v543_v39, %v3029_v13 }
  0xc3   : > { %v623_v46 = vsub.f32 %v591_v35, %v607_v27  ;;  %v622_v47 = vsub.f32 %v590_v37, %v606_v28 }
  0xc4   : > { %v621_v49 = vsub.f32 %v589_v45, %v605_v44 }
  0xc5   : > { %v639_v51 = vmax.f32 %v623_v46, 0.0  ;;  %v638_v52 = vmax.f32 %v622_v47, 0.0 }
  0xc6   : > { %v637_v53 = vmax.f32 %v621_v49, 0.0 }
  0xc7   : > { %v3085_v55 = vadd.f32 1e-05, %v639_v51  ;;  %v3087_v56 = vadd.f32 1e-05, %v638_v52 }
  0xc8   : > { %v669_v57 = vadd.f32 1e-05, %v637_v53  ;;  %v552_v58 = vpop.xlane.xlu1 %551  ;;  %v468_v59 = vpop.xlane.xlu2 %467 }
  0xc9   : > { %2500 = vrsqrt.f32 %v3085_v55  ;;  %v465_v61 = vpop.xlane.xlu0 %464  ;;  %v592_v62 = vmul.f32 %v552_v58, %v3029_v13  ;;  %v3098_v4 = vmul.f32 %v3029_v13, %v468_v59  ;;  %vm701_vm6 = vweird.f32 %v3087_v56 }
  0xca   : > { %2502 = vrsqrt.f32 %v3087_v56  ;;  %v3093_v63 = vmul.f32 %v3029_v13, %v465_v61  ;;  %vm691_vm3 = vweird.f32 %v669_v57  ;;  %vm711_vm8 = vweird.f32 %v3085_v55 }
  0xcb   : > { %2504 = vrsqrt.f32 %v669_v57  ;;  %v609_v19 = vmul.f32 %v3098_v4, %v3098_v4 }
  0xcc   : > { %v608_v3 = vmul.f32 %v3093_v63, %v3093_v63 }
  0xce   : > { %v624_v5 = vsub.f32 %v592_v62, %v608_v3  ;;  %v653_v3 = vsub.f32 %v2908_v2, %v3056_v25 }
  0xcf   : > { %v3100_v6 = vpop.eup %2500 }
  0xd0   : > { %v3102_v7 = vpop.eup %2502  ;;  %v640_v8 = vmax.f32 %v624_v5, 0.0  ;;  %v471_v9 = vpop.xlane.xlu1 %470  ;;  %v706_v23 = vmul.f32 %v3100_v6, %v3085_v55  ;;  %vm712_vm9 = vweird.f32 %v3100_v6  ;;  %v655_v55 = vsub.f32 %v2902_v0, %v3032_v15 }
  0xd1   : > { %v558_v10 = vpop.xlane.xlu2 %557  ;;  %v2505_v11 = vpop.eup %2504  ;;  %v696_v17 = vmul.f32 %v3102_v7, %v3087_v56  ;;  %v3109_v20 = vmul.f32 %v3029_v13, %v471_v9  ;;  %vm702_vm4 = vweird.f32 %v3102_v7  ;;  %vm3186_vm10 = vmor %vm711_vm8, %vm712_vm9 }
  0xd2   : > { %v555_v21 = vpop.xlane.xlu0 %554  ;;  %v594_v22 = vmul.f32 %v558_v10, %v3029_v13  ;;  %v686_v27 = vmul.f32 %v2505_v11, %v669_v57  ;;  %v3114_v28 = vadd.f32 1e-05, %v640_v8  ;;  %v707_v39 = vmul.f32 %v3100_v6, %v706_v23  ;;  %v3143_v57 = vld [vmem:[%s4294_s1] ss:$0 sm:$0xff]  ;;  %vm3151_vm7 = vmor %vm701_vm6, %vm702_vm4 }
  0xd3   : > { %v697_v29 = vmul.f32 %v3102_v7, %v696_v17  ;;  %v610_v31 = vmul.f32 %v3109_v20, %v3109_v20  ;;  %v593_v32 = vmul.f32 %v555_v21, %v3029_v13  ;;  %vm692_vm2 = vweird.f32 %v2505_v11 }
  0xd4   : > { %v687_v33 = vmul.f32 %v2505_v11, %v686_v27  ;;  %2506 = vrsqrt.f32 %v3114_v28  ;;  %v708_v52 = vmul.f32 0.5, %v707_v39  ;;  %vm693_vm5 = vmor %vm691_vm3, %vm692_vm2  ;;  %v3159_v27 = vld [vmem:[%s4295_s2] ss:$0 sm:$0xff]  ;;  %vm721_vm11 = vweird.f32 %v3114_v28 }
  0xd5   : > { %v698_v34 = vmul.f32 0.5, %v697_v29  ;;  %v625_v35 = vsub.f32 %v593_v32, %v609_v19  ;;  %v626_v37 = vsub.f32 %v594_v22, %v610_v31  ;;  %v654_v31 = vsub.f32 %v2905_v1, %v3035_v16 }
  0xd6   : > { %v688_v40 = vmul.f32 0.5, %v687_v33  ;;  %v709_v25 = vsub.f32 1.5, %v708_v52 }
  0xd7   : > { %v641_v41 = vmax.f32 %v625_v35, 0.0  ;;  %v699_v43 = vsub.f32 1.5, %v698_v34  ;;  %v642_v47 = vmax.f32 %v626_v37, 0.0 }
  0xd8   : > { %v689_v44 = vsub.f32 1.5, %v688_v40  ;;  %v561_v45 = vpop.xlane.xlu1 %560  ;;  %v710_v33 = vmul.f32 %v3100_v6, %v709_v25 }
  0xd9   : > { %v3122_v46 = vadd.f32 1e-05, %v641_v41  ;;  %v595_v59 = vmul.f32 %v561_v45, %v3029_v13  ;;  %v477_v62 = vpop.xlane.xlu2 %476  ;;  %v700_v5 = vmul.f32 %v3102_v7, %v699_v43  ;;  %v3146_v9 = vadd.f32 1e-05, %v642_v47 }
  0xda   : > { %v474_v49 = vpop.xlane.xlu0 %473  ;;  %v3124_v51 = vpop.eup %2506  ;;  %v690_v53 = vmul.f32 %v2505_v11, %v689_v44  ;;  %v3149_v19 = vmul.f32 %v3029_v13, %v477_v62 }
  0xdb   : > { %v3127_v58 = vmul.f32 %v3029_v13, %v474_v49  ;;  %v716_v61 = vmul.f32 %v3124_v51, %v3114_v28  ;;  %2508 = vrsqrt.f32 %v3122_v46  ;;  %vm722_vm12 = vweird.f32 %v3124_v51 }
  0xdc   : > { %v694_v10 = vsel %vm693_vm5, %v2505_v11, %v690_v53  ;;  %v704_v11 = vsel %vm3151_vm7, %v3102_v7, %v700_v5  ;;  %2510 = vrsqrt.f32 %v3146_v9  ;;  %v612_v35 = vmul.f32 %v3149_v19, %v3149_v19  ;;  %vm3212_vm13 = vmor %vm721_vm11, %vm722_vm12 }
  0xdd   : > { %v611_v8 = vmul.f32 %v3127_v58, %v3127_v58  ;;  %v845_v21 = vmul.f32 %v694_v10, %v653_v3  ;;  %v717_v23 = vmul.f32 %v3124_v51, %v716_v61  ;;  %v846_v16 = vmul.f32 %v704_v11, %v654_v31 }
  0xde   : > { %v714_v61 = vsel %vm3186_vm10, %v3100_v6, %v710_v33  ;;  %vm731_vm14 = vweird.f32 %v3122_v46  ;;  %vm741_vm2 = vweird.f32 %v3146_v9 }
  0xdf   : > { %v627_v17 = vsub.f32 %v595_v59, %v611_v8  ;;  %v864_v56 = vmul.f32 %v3143_v57, %v845_v21  ;;  %v718_v7 = vmul.f32 0.5, %v717_v23  ;;  %v865_v59 = vmul.f32 %v3143_v57, %v846_v16 }
  0xe0   : > { %v480_v37 = vpop.xlane.xlu1 %479  ;;  %v847_v6 = vmul.f32 %v714_v61, %v655_v55 }
  0xe1   : > { %v3165_v29 = vpop.eup %2508  ;;  %v643_v34 = vmax.f32 %v627_v17, 0.0  ;;  %v883_v40 = vadd.f32 %v3159_v27, %v864_v56  ;;  %v3182_v43 = vmul.f32 %v3029_v13, %v480_v37  ;;  %v567_v47 = vpop.xlane.xlu2 %566  ;;  %v719_v52 = vsub.f32 1.5, %v718_v7 }
  0xe2   : > { %v564_v32 = vpop.xlane.xlu0 %563  ;;  %v726_v41 = vmul.f32 %v3165_v29, %v3122_v46  ;;  %v3193_v49 = vpop.eup %2510  ;;  %v597_v5 = vmul.f32 %v567_v47, %v3029_v13  ;;  %v884_v25 = vadd.f32 %v3159_v27, %v865_v59  ;;  %v866_v56 = vmul.f32 %v3143_v57, %v847_v6 }
  0xe3   : > { %v596_v39 = vmul.f32 %v564_v32, %v3029_v13  ;;  %2310 = vmatmul.msk.f32.vlgmr.msra.gmra.mxu0 %vm453_vm0, %v883_v40  ;;  %2326 = vmatmul.msk.f32.vlgmr.msra.gmra.mxu1 %vm453_vm0, %v883_v40  ;;  %v3190_v45 = vadd.f32 1e-05, %v643_v34  ;;  %v613_v3 = vmul.f32 %v3182_v43, %v3182_v43  ;;  %v736_v8 = vmul.f32 %v3193_v49, %v3146_v9 }
  0xe4   : > { %2342 = vmatmul.msk.f32.vlgmr.msra.gmra.mxu2 %vm453_vm0, %v883_v40  ;;  %v727_v62 = vmul.f32 %v3165_v29, %v726_v41  ;;  %v720_v10 = vmul.f32 %v3124_v51, %v719_v52  ;;  %v656_v34 = vsub.f32 %v2926_v12, %v3093_v63  ;;  %vm732_vm15 = vweird.f32 %v3165_v29 }
  0xe5   : > { %v628_v53 = vsub.f32 %v596_v39, %v612_v35  ;;  %2512 = vrsqrt.f32 %v3190_v45  ;;  %v629_v22 = vsub.f32 %v597_v5, %v613_v3  ;;  %v737_v23 = vmul.f32 %v3193_v49, %v736_v8  ;;  %vm3243_vm1 = vmor %vm731_vm14, %vm732_vm15 }
  0xe6   : > { %v728_v17 = vmul.f32 0.5, %v727_v62  ;;  %v724_v11 = vsel %vm3212_vm13, %v3124_v51, %v720_v10  ;;  %v885_v51 = vadd.f32 %v3159_v27, %v866_v56  ;;  %vm742_vm3 = vweird.f32 %v3193_v49 }
  0xe7   : > { %v644_v15 = vmax.f32 %v628_v53, 0.0  ;;  %v645_v7 = vmax.f32 %v629_v22, 0.0  ;;  %v848_v39 = vmul.f32 %v724_v11, %v656_v34  ;;  %v738_v40 = vmul.f32 0.5, %v737_v23  ;;  %vm3271_vm4 = vmor %vm741_vm2, %vm742_vm3 }
  0xe8   : > { %v729_v35 = vsub.f32 1.5, %v728_v17  ;;  %v570_v37 = vpop.xlane.xlu1 %569  ;;  %v657_v6 = vsub.f32 %v2931_v14, %v3098_v4  ;;  %vm751_vm5 = vweird.f32 %v3190_v45  ;;  %v3872_v14 = vld [vmem:[%s4299_s6] ss:$0 sm:$0xff] }
  0xe9   : > { %v3224_v31 = vadd.f32 1e-05, %v644_v15  ;;  %v598_v63 = vmul.f32 %v570_v37, %v3029_v13  ;;  %v486_v44 = vpop.xlane.xlu2 %485  ;;  %v3247_v52 = vadd.f32 1e-05, %v645_v7  ;;  %v739_v53 = vsub.f32 1.5, %v738_v40 }
  0xea   : > { %v483_v21 = vpop.xlane.xlu0 %482  ;;  %v730_v46 = vmul.f32 %v3165_v29, %v729_v35  ;;  %v3253_v59 = vmul.f32 %v3029_v13, %v486_v44  ;;  %v867_v61 = vmul.f32 %v3143_v57, %v848_v39  ;;  %v658_v40 = vsub.f32 %v2939_v18, %v3109_v20 }
  0xeb   : > { %2311 = vmatmul.msk.f32.gmra.mxu0 %vm453_vm0, %v884_v25  ;;  %2327 = vmatmul.msk.f32.gmra.mxu1 %vm453_vm0, %v884_v25  ;;  %v3227_v32 = vmul.f32 %v3029_v13, %v483_v21  ;;  %v3229_v33 = vpop.eup %2512  ;;  %2514 = vrsqrt.f32 %v3224_v31  ;;  %v740_v10 = vmul.f32 %v3193_v49, %v739_v53  ;;  %vm761_vm8 = vweird.f32 %v3224_v31 }
  0xec   : > { %2343 = vmatmul.msk.f32.gmra.mxu2 %vm453_vm0, %v884_v25  ;;  %v746_v16 = vmul.f32 %v3229_v33, %v3190_v45  ;;  %v734_v5 = vsel %vm3243_vm1, %v3165_v29, %v730_v46  ;;  %2516 = vrsqrt.f32 %v3247_v52  ;;  %v615_v15 = vmul.f32 %v3253_v59, %v3253_v59 }
  0xed   : > { %v614_v41 = vmul.f32 %v3227_v32, %v3227_v32  ;;  %v886_v9 = vadd.f32 %v3159_v27, %v867_v61  ;;  %v849_v22 = vmul.f32 %v734_v5, %v657_v6  ;;  %v744_v56 = vsel %vm3271_vm4, %v3193_v49, %v740_v10 }
  0xee   : > { %v747_v55 = vmul.f32 %v3229_v33, %v746_v16  ;;  %vm752_vm6 = vweird.f32 %v3229_v33  ;;  %v659_v10 = vsub.f32 %v2950_v24, %v3127_v58  ;;  %vm771_vm11 = vweird.f32 %v3247_v52 }
  0xef   : > { %v630_v62 = vsub.f32 %v598_v63, %v614_v41  ;;  %v868_v39 = vmul.f32 %v3143_v57, %v849_v22  ;;  %v850_v63 = vmul.f32 %v744_v56, %v658_v40  ;;  %vm3305_vm7 = vmor %vm751_vm5, %vm752_vm6 }
  0xf0   : > { %v748_v28 = vmul.f32 0.5, %v747_v55  ;;  %v489_v21 = vpop.xlane.xlu1 %488 }
  0xf1   : > { %v3262_v8 = vpop.eup %2514  ;;  %v646_v29 = vmax.f32 %v630_v62, 0.0  ;;  %v3282_v23 = vmul.f32 %v3029_v13, %v489_v21  ;;  %v576_v7 = vpop.xlane.xlu2 %575  ;;  %v887_v46 = vadd.f32 %v3159_v27, %v868_v39  ;;  %v869_v5 = vmul.f32 %v3143_v57, %v850_v63 }
  0xf2   : > { %v573_v3 = vpop.xlane.xlu0 %572  ;;  %v756_v4 = vmul.f32 %v3262_v8, %v3224_v31  ;;  %v3287_v11 = vpop.eup %2516  ;;  %v749_v34 = vsub.f32 1.5, %v748_v28  ;;  %v600_v41 = vmul.f32 %v576_v7, %v3029_v13  ;;  %vm762_vm9 = vweird.f32 %v3262_v8 }
  0xf3   : > { %2312 = vmatmul.msk.f32.gmra.mxu0 %vm453_vm0, %v885_v51  ;;  %2328 = vmatmul.msk.f32.gmra.mxu1 %vm453_vm0, %v885_v51  ;;  %v599_v17 = vmul.f32 %v573_v3, %v3029_v13  ;;  %v3289_v35 = vadd.f32 1e-05, %v646_v29  ;;  %v766_v49 = vmul.f32 %v3287_v11, %v3247_v52  ;;  %v616_v16 = vmul.f32 %v3282_v23, %v3282_v23  ;;  %vm3336_vm10 = vmor %vm761_vm8, %vm762_vm9 }
  0xf4   : > { %2344 = vmatmul.msk.f32.gmra.mxu2 %vm453_vm0, %v885_v51  ;;  %v757_v51 = vmul.f32 %v3262_v8, %v756_v4  ;;  %v750_v44 = vmul.f32 %v3229_v33, %v749_v34  ;;  %v888_v58 = vadd.f32 %v3159_v27, %v869_v5  ;;  %v660_v39 = vsub.f32 %v2955_v26, %v3149_v19 }
  0xf5   : > { %v631_v37 = vsub.f32 %v599_v17, %v615_v15  ;;  %2518 = vrsqrt.f32 %v3289_v35  ;;  %v767_v61 = vmul.f32 %v3287_v11, %v766_v49  ;;  %v632_v55 = vsub.f32 %v600_v41, %v616_v16 }
  0xf6   : > { %v758_v47 = vmul.f32 0.5, %v757_v51  ;;  %v754_v6 = vsel %vm3305_vm7, %v3229_v33, %v750_v44  ;;  %vm772_vm12 = vweird.f32 %v3287_v11  ;;  %vm781_vm14 = vweird.f32 %v3289_v35 }
  0xf7   : > { %v647_v20 = vmax.f32 %v631_v37, 0.0  ;;  %v768_v28 = vmul.f32 0.5, %v767_v61  ;;  %v648_v29 = vmax.f32 %v632_v55, 0.0  ;;  %v851_v17 = vmul.f32 %v754_v6, %v659_v10  ;;  %vm3365_vm13 = vmor %vm771_vm11, %vm772_vm12 }
  0xf8   : > { %v759_v15 = vsub.f32 1.5, %v758_v47  ;;  %v661_v55 = vsub.f32 %v2963_v30, %v3182_v43 }
  0xf9   : > { %v3313_v62 = vadd.f32 1e-05, %v647_v20  ;;  %v495_v22 = vpop.xlane.xlu2 %494  ;;  %v769_v34 = vsub.f32 1.5, %v768_v28  ;;  %v3342_v37 = vadd.f32 1e-05, %v648_v29  ;;  %v870_v51 = vmul.f32 %v3143_v57, %v851_v17 }
  0xfa   : > { %v492_v53 = vpop.xlane.xlu0 %491  ;;  %v760_v4 = vmul.f32 %v3262_v8, %v759_v15  ;;  %v3346_v7 = vmul.f32 %v3029_v13, %v495_v22 }
  0xfb   : > { %2313 = vmatmul.msk.f32.gmra.mxu0 %vm453_vm0, %v886_v9  ;;  %2329 = vmatmul.msk.f32.gmra.mxu1 %vm453_vm0, %v886_v9  ;;  %v3316_v3 = vmul.f32 %v3029_v13, %v492_v53  ;;  %v3324_v25 = vpop.eup %2518  ;;  %2520 = vrsqrt.f32 %v3313_v62  ;;  %v770_v44 = vmul.f32 %v3287_v11, %v769_v34  ;;  %v889_v45 = vadd.f32 %v3159_v27, %v870_v51 }
  0xfc   : > { %2345 = vmatmul.msk.f32.gmra.mxu2 %vm453_vm0, %v886_v9  ;;  %v579_v9 = vpop.xlane.xlu1 %578  ;;  %v776_v31 = vmul.f32 %v3324_v25, %v3289_v35  ;;  %v764_v41 = vsel %vm3336_vm10, %v3262_v8, %v760_v4  ;;  %2522 = vrsqrt.f32 %v3342_v37  ;;  %v618_v19 = vmul.f32 %v3346_v7, %v3346_v7 }
  0xfd   : > { %v617_v21 = vmul.f32 %v3316_v3, %v3316_v3  ;;  %v601_v33 = vmul.f32 %v579_v9, %v3029_v13  ;;  %v852_v8 = vmul.f32 %v764_v41, %v660_v39  ;;  %v774_v28 = vsel %vm3365_vm13, %v3287_v11, %v770_v44 }
  0xfe   : > { %v777_v49 = vmul.f32 %v3324_v25, %v776_v31  ;;  %vm782_vm15 = vweird.f32 %v3324_v25  ;;  %v662_v51 = vsub.f32 %v2974_v36, %v3227_v32  ;;  %vm791_vm2 = vweird.f32 %v3313_v62 }
  0xff   : > { %v633_v40 = vsub.f32 %v601_v33, %v617_v21  ;;  %v871_v9 = vmul.f32 %v3143_v57, %v852_v8  ;;  %vm3398_vm1 = vmor %vm781_vm14, %vm782_vm15  ;;  %vm801_vm5 = vweird.f32 %v3342_v37 }
 0x100   : > { %v778_v52 = vmul.f32 0.5, %v777_v49 }
 0x101   : > { %v3355_v63 = vpop.eup %2520  ;;  %v649_v20 = vmax.f32 %v633_v40, 0.0  ;;  %v585_v15 = vpop.xlane.xlu2 %584  ;;  %v890_v11 = vadd.f32 %v3159_v27, %v871_v9 }
 0x102   : > { %v582_v16 = vpop.xlane.xlu0 %581  ;;  %v786_v61 = vmul.f32 %v3355_v63, %v3313_v62  ;;  %v3385_v29 = vpop.eup %2522  ;;  %v779_v17 = vsub.f32 1.5, %v778_v52  ;;  %v603_v33 = vmul.f32 %v585_v15, %v3029_v13  ;;  %vm792_vm3 = vweird.f32 %v3355_v63 }
 0x103   : > { %2314 = vmatmul.msk.f32.gmra.mxu0 %vm453_vm0, %v887_v46  ;;  %2330 = vmatmul.msk.f32.gmra.mxu1 %vm453_vm0, %v887_v46  ;;  %v3379_v6 = vadd.f32 1e-05, %v649_v20  ;;  %v796_v56 = vmul.f32 %v3385_v29, %v3342_v37  ;;  %vm3429_vm4 = vmor %vm791_vm2, %vm792_vm3  ;;  %vm802_vm6 = vweird.f32 %v3385_v29  ;;  %v664_v37 = vsub.f32 %v2987_v42, %v3282_v23 }
 0x104   : > { %2346 = vmatmul.msk.f32.gmra.mxu2 %vm453_vm0, %v887_v46  ;;  %v602_v46 = vmul.f32 %v582_v16, %v3029_v13  ;;  %v498_v47 = vpop.xlane.xlu1 %497  ;;  %v787_v43 = vmul.f32 %v3355_v63, %v786_v61  ;;  %v780_v4 = vmul.f32 %v3324_v25, %v779_v17  ;;  %vm803_vm7 = vmor %vm801_vm5, %vm802_vm6 }
 0x105   : > { %v3377_v5 = vmul.f32 %v3029_v13, %v498_v47  ;;  %2524 = vrsqrt.f32 %v3379_v6  ;;  %v797_v44 = vmul.f32 %v3385_v29, %v796_v56  ;;  %vm811_vm8 = vweird.f32 %v3379_v6 }
 0x106   : > { %v634_v10 = vsub.f32 %v602_v46, %v618_v19  ;;  %v788_v31 = vmul.f32 0.5, %v787_v43  ;;  %v784_v20 = vsel %vm3398_vm1, %v3324_v25, %v780_v4 }
 0x107   : > { %v619_v21 = vmul.f32 %v3377_v5, %v3377_v5  ;;  %v854_v53 = vmul.f32 %v784_v20, %v662_v51  ;;  %v798_v25 = vmul.f32 0.5, %v797_v44 }
 0x108   : > { %v650_v22 = vmax.f32 %v634_v10, 0.0  ;;  %v789_v41 = vsub.f32 1.5, %v788_v31 }
 0x109   : > { %v635_v39 = vsub.f32 %v603_v33, %v619_v21  ;;  %v873_v9 = vmul.f32 %v3143_v57, %v854_v53 }
 0x10a   : > { %v501_v35 = vpop.xlane.xlu0 %500  ;;  %v3408_v49 = vadd.f32 1e-05, %v650_v22  ;;  %v790_v52 = vmul.f32 %v3355_v63, %v789_v41 }
 0x10b   : > { %2315 = vmatmul.msk.f32.gmra.mxu0 %vm453_vm0, %v888_v58  ;;  %2331 = vmatmul.msk.f32.gmra.mxu1 %vm453_vm0, %v888_v58  ;;  %v3411_v16 = vmul.f32 %v3029_v13, %v501_v35  ;;  %v3417_v46 = vpop.eup %2524  ;;  %v651_v32 = vmax.f32 %v635_v39, 0.0  ;;  %v892_v33 = vadd.f32 %v3159_v27, %v873_v9 }
 0x10c   : > { %2347 = vmatmul.msk.f32.gmra.mxu2 %vm453_vm0, %v888_v58  ;;  %v853_v58 = vmul.f32 %v774_v28, %v661_v55  ;;  %v588_v19 = vpop.xlane.xlu1 %587  ;;  %2526 = vrsqrt.f32 %v3408_v49  ;;  %v806_v61 = vmul.f32 %v3417_v46, %v3379_v6  ;;  %v663_v55 = vsub.f32 %v2979_v38, %v3253_v59 }
 0x10d   : > { %v620_v47 = vmul.f32 %v3411_v16, %v3411_v16  ;;  %v604_v8 = vmul.f32 %v588_v19, %v3029_v13  ;;  %v3438_v10 = vadd.f32 1e-05, %v651_v32  ;;  %v799_v28 = vsub.f32 1.5, %v798_v25 }
 0x10e   : > { %v872_v40 = vmul.f32 %v3143_v57, %v853_v58  ;;  %v807_v17 = vmul.f32 %v3417_v46, %v806_v61  ;;  %v794_v43 = vsel %vm3429_vm4, %v3355_v63, %v790_v52  ;;  %vm812_vm9 = vweird.f32 %v3417_v46 }
 0x10f   : > { %v636_v15 = vsub.f32 %v604_v8, %v620_v47  ;;  %2528 = vrsqrt.f32 %v3438_v10  ;;  %v855_v58 = vmul.f32 %v794_v43, %v663_v55  ;;  %v800_v22 = vmul.f32 %v3385_v29, %v799_v28  ;;  %vm813_vm10 = vmor %vm811_vm8, %vm812_vm9 }
 0x110   : > { %v665_v6 = vsub.f32 %v2998_v48, %v3316_v3  ;;  %vm821_vm11 = vweird.f32 %v3408_v49  ;;  %v666_v3 = vsub.f32 %v3003_v50, %v3346_v7  ;;  %vm831_vm14 = vweird.f32 %v3438_v10 }
 0x111   : > { %v652_v59 = vmax.f32 %v636_v15, 0.0  ;;  %v874_v31 = vmul.f32 %v3143_v57, %v855_v58  ;;  %v804_v34 = vsel %vm803_vm7, %v3385_v29, %v800_v22  ;;  %v667_v7 = vsub.f32 %v3011_v54, %v3377_v5 }
 0x112   : > { %v2527_v21 = vpop.eup %2526  ;;  %v856_v51 = vmul.f32 %v804_v34, %v664_v37  ;;  %v2716_v58 = vmov 0   ;;  %v668_v5 = vsub.f32 %v3022_v60, %v3411_v16  ;;  %v3510_v16 = vld [vmem:[%s4297_s4] sm:$0x7] }
 0x113   : > { %2316 = vmatmul.msk.f32.gmra.mxu0 %vm453_vm0, %v889_v45  ;;  %2332 = vmatmul.msk.f32.gmra.mxu1 %vm453_vm0, %v889_v45  ;;  %v816_v4 = vmul.f32 %v2527_v21, %v3408_v49  ;;  %v3456_v63 = vadd.f32 1e-05, %v652_v59  ;;  %vm822_vm12 = vweird.f32 %v2527_v21 }
 0x114   : > { %2348 = vmatmul.msk.f32.gmra.mxu2 %vm453_vm0, %v889_v45  ;;  %v891_v45 = vadd.f32 %v3159_v27, %v872_v40  ;;  %v893_v40 = vadd.f32 %v3159_v27, %v874_v31  ;;  %v875_v29 = vmul.f32 %v3143_v57, %v856_v51  ;;  %vm823_vm13 = vmor %vm821_vm11, %vm822_vm12  ;;  %2464 = vset.pattern.permute.xlu2 %v2716_v58 }
 0x115   : > { %v817_v35 = vmul.f32 %v2527_v21, %v816_v4  ;;  %v2529_v39 = vpop.eup %2528  ;;  %2530 = vrsqrt.f32 %v3456_v63  ;;  %vm841_vm2 = vweird.f32 %v3456_v63  ;;  %2466 = vset.pattern.permute.xlu0 %v2716_v58 }
 0x116   : > { %v826_v44 = vmul.f32 %v2529_v39, %v3438_v10  ;;  %v894_v47 = vadd.f32 %v3159_v27, %v875_v29  ;;  %vm832_vm15 = vweird.f32 %v2529_v39 }
 0x117   : > { %v818_v41 = vmul.f32 0.5, %v817_v35  ;;  %vm833_vm1 = vmor %vm831_vm14, %vm832_vm15  ;;  %v3516_v35 = vperm.slane %v3510_v16, 0 }
 0x118   : > { %v827_v20 = vmul.f32 %v2529_v39, %v826_v44 }
 0x119   : > { %v819_v19 = vsub.f32 1.5, %v818_v41 }
 0x11a   : > { %v828_v52 = vmul.f32 0.5, %v827_v20 }
 0x11b   : > { %2317 = vmatmul.msk.f32.gmra.mxu0 %vm453_vm0, %v890_v11  ;;  %2333 = vmatmul.msk.f32.gmra.mxu1 %vm453_vm0, %v890_v11  ;;  %v820_v53 = vmul.f32 %v2527_v21, %v819_v19 }
 0x11c   : > { %2349 = vmatmul.msk.f32.gmra.mxu2 %vm453_vm0, %v890_v11  ;;  %v808_v11 = vmul.f32 0.5, %v807_v17 }
 0x11d   : > { %v824_v62 = vsel %vm823_vm13, %v2527_v21, %v820_v53 }
 0x11e   : > { %v809_v56 = vsub.f32 1.5, %v808_v11  ;;  %v858_v15 = vmul.f32 %v824_v62, %v666_v3 }
 0x120   : > { %v810_v23 = vmul.f32 %v3417_v46, %v809_v56  ;;  %v877_v17 = vmul.f32 %v3143_v57, %v858_v15 }
 0x122   : > { %v814_v32 = vsel %vm813_vm10, %v3417_v46, %v810_v23  ;;  %v829_v46 = vsub.f32 1.5, %v828_v52  ;;  %v896_v21 = vadd.f32 %v3159_v27, %v877_v17 }
 0x123   : > { %2318 = vmatmul.msk.f32.gmra.mxu0 %vm453_vm0, %v891_v45  ;;  %2334 = vmatmul.msk.f32.gmra.mxu1 %vm453_vm0, %v891_v45  ;;  %v857_v8 = vmul.f32 %v814_v32, %v665_v6 }
 0x124   : > { %2350 = vmatmul.msk.f32.gmra.mxu2 %vm453_vm0, %v891_v45  ;;  %v2531_v45 = vpop.eup %2530  ;;  %v830_v9 = vmul.f32 %v2529_v39, %v829_v46 }
 0x125   : > { %v836_v25 = vmul.f32 %v2531_v45, %v3456_v63  ;;  %v876_v49 = vmul.f32 %v3143_v57, %v857_v8  ;;  %vm842_vm3 = vweird.f32 %v2531_v45 }
 0x126   : > { %v834_v10 = vsel %vm833_vm1, %v2529_v39, %v830_v9  ;;  %vm843_vm4 = vmor %vm841_vm2, %vm842_vm3 }
 0x127   : > { %v837_v61 = vmul.f32 %v2531_v45, %v836_v25  ;;  %v895_v55 = vadd.f32 %v3159_v27, %v876_v49  ;;  %v859_v59 = vmul.f32 %v834_v10, %v667_v7 }
 0x129   : > { %v838_v28 = vmul.f32 0.5, %v837_v61  ;;  %v878_v11 = vmul.f32 %v3143_v57, %v859_v59 }
 0x12b   : > { %2319 = vmatmul.msk.f32.gmra.mxu0 %vm453_vm0, %v892_v33  ;;  %2335 = vmatmul.msk.f32.gmra.mxu1 %vm453_vm0, %v892_v33  ;;  %v839_v43 = vsub.f32 1.5, %v838_v28  ;;  %v897_v37 = vadd.f32 %v3159_v27, %v878_v11 }
 0x12c   : > { %2351 = vmatmul.msk.f32.gmra.mxu2 %vm453_vm0, %v892_v33  ;;  %v2715_v33 = vmov 1  }
 0x12d   : > { %2465 = vset.pattern.permute.xlu1 %v2715_v33  ;;  %v840_v22 = vmul.f32 %v2531_v45, %v839_v43 }
 0x12f   : > { %v844_v4 = vsel %vm843_vm4, %v2531_v45, %v840_v22 }
 0x130   : > { %v860_v63 = vmul.f32 %v844_v4, %v668_v5 }
 0x132   : > { %v879_v31 = vmul.f32 %v3143_v57, %v860_v63  ;;  %v3522_v57 = vperm.slane %v3510_v16, 2 }
 0x133   : > { %2320 = vmatmul.msk.f32.gmra.mxu0 %vm453_vm0, %v893_v40  ;;  %2336 = vmatmul.msk.f32.gmra.mxu1 %vm453_vm0, %v893_v40 }
 0x134   : > { %2352 = vmatmul.msk.f32.gmra.mxu2 %vm453_vm0, %v893_v40  ;;  %v898_v56 = vadd.f32 %v3159_v27, %v879_v31 }
 0x13b   : > { %2321 = vmatmul.msk.f32.gmra.mxu0 %vm453_vm0, %v894_v47  ;;  %2337 = vmatmul.msk.f32.gmra.mxu1 %vm453_vm0, %v894_v47 }
 0x13c   : > { %2353 = vmatmul.msk.f32.gmra.mxu2 %vm453_vm0, %v894_v47 }
 0x143   : > { %2322 = vmatmul.msk.f32.gmra.mxu0 %vm453_vm0, %v895_v55  ;;  %2338 = vmatmul.msk.f32.gmra.mxu1 %vm453_vm0, %v895_v55 }
 0x144   : > { %2354 = vmatmul.msk.f32.gmra.mxu2 %vm453_vm0, %v895_v55 }
 0x14b   : > { %2323 = vmatmul.msk.f32.gmra.mxu0 %vm453_vm0, %v896_v21  ;;  %2339 = vmatmul.msk.f32.gmra.mxu1 %vm453_vm0, %v896_v21 }
 0x14c   : > { %2355 = vmatmul.msk.f32.gmra.mxu2 %vm453_vm0, %v896_v21 }
 0x153   : > { %2324 = vmatmul.msk.f32.gmra.mxu0 %vm453_vm0, %v897_v37  ;;  %2340 = vmatmul.msk.f32.gmra.mxu1 %vm453_vm0, %v897_v37 }
 0x154   : > { %2356 = vmatmul.msk.f32.gmra.mxu2 %vm453_vm0, %v897_v37 }
 0x15b   : > { %2325 = vmatmul.msk.f32.gmra.mxu0 %vm453_vm0, %v898_v56  ;;  %2341 = vmatmul.msk.f32.gmra.mxu1 %vm453_vm0, %v898_v56 }
 0x15c   : > { %2357 = vmatmul.msk.f32.gmra.mxu2 %vm453_vm0, %v898_v56 }
 0x160   : > { %v984_v34 = vpop.f32.mrf.mxu0  ;;  %v1049_v37 = vpop.f32.mrf.mxu1 }
 0x161   : > { %v3519_v39 = vadd.f32 %v984_v34, %v3516_v35 }
 0x167   : > { %v1114_v27 = vpop.f32.mrf.mxu2 }
 0x168   : > { %v1115_v40 = vadd.f32 %v1114_v27, %v3522_v57  ;;  %v987_v51 = vpop.f32.mrf.mxu0  ;;  %v3576_v56 = vpop.f32.mrf.mxu1 }
 0x169   : > { %v3526_v23 = vadd.f32 %v987_v51, %v3516_v35 }
 0x16a   : > { %1259 = vperm.xlu1 %2465, %v1115_v40   ;;  %1164 = vperm.xlu2 %2464, %v1115_v40  }
 0x16f   : > { %v1117_v41 = vpop.f32.mrf.mxu2 }
 0x170   : > { %v1118_v44 = vadd.f32 %v1117_v41, %v3522_v57  ;;  %v990_v6 = vpop.f32.mrf.mxu0  ;;  %v1055_v41 = vpop.f32.mrf.mxu1 }
 0x171   : > { %v3530_v29 = vadd.f32 %v990_v6, %v3516_v35 }
 0x172   : > { %1169 = vperm.xlu0 %2466, %v1118_v44   ;;  %2468 = vset.pattern.permute.xlu1 %v2716_v58 }
 0x173   : > { %2469 = vset.pattern.permute.xlu2 %v2715_v33 }
 0x177   : > { %v1120_v19 = vpop.f32.mrf.mxu2 }
 0x178   : > { %v1121_v20 = vadd.f32 %v1120_v19, %v3522_v57  ;;  %v993_v32 = vpop.f32.mrf.mxu0  ;;  %v1058_v19 = vpop.f32.mrf.mxu1 }
 0x179   : > { %v3536_v45 = vadd.f32 %v993_v32, %v3516_v35 }
 0x17a   : > { %2467 = vset.pattern.permute.xlu0 %v2715_v33  ;;  %1174 = vperm.xlu1 %2468, %v1121_v20  }
 0x17b   : > { %1267 = vperm.xlu2 %2469, %v1121_v20   ;;  %1263 = vperm.xlu0 %2467, %v1118_v44  }
 0x17f   : > { %v1123_v47 = vpop.f32.mrf.mxu2 }
 0x180   : > { %v1124_v8 = vadd.f32 %v1123_v47, %v3522_v57  ;;  %v996_v53 = vpop.f32.mrf.mxu0 }
 0x181   : > { %v3541_v52 = vadd.f32 %v996_v53, %v3516_v35 }
 0x182   : > { %2471 = vset.pattern.permute.xlu1 %v2715_v33 }
 0x183   : > { %2470 = vset.pattern.permute.xlu2 %v2716_v58  ;;  %1271 = vperm.xlu1 %2471, %v1124_v8  }
 0x184   : > { %1179 = vperm.xlu2 %2470, %v1124_v8  }
 0x187   : > { %v1126_v25 = vpop.f32.mrf.mxu2 }
 0x188   : > { %v1127_v3 = vadd.f32 %v1126_v25, %v3522_v57  ;;  %v999_v49 = vpop.f32.mrf.mxu0 }
 0x189   : > { %v3547_v46 = vadd.f32 %v999_v49, %v3516_v35 }
 0x18b   : > { %2473 = vset.pattern.permute.xlu1 %v2716_v58 }
 0x18c   : > { %1184 = vperm.xlu2 %2470, %v1127_v3  }
 0x18f   : > { %v1129_v61 = vpop.f32.mrf.mxu2 }
 0x190   : > { %v1130_v62 = vadd.f32 %v1129_v61, %v3522_v57  ;;  %v1002_v55 = vpop.f32.mrf.mxu0 }
 0x191   : > { %v3552_v15 = vadd.f32 %v1002_v55, %v3516_v35 }
 0x192   : > { %1189 = vperm.xlu1 %2473, %v1130_v62  }
 0x194   : > { %2472 = vset.pattern.permute.xlu2 %v2715_v33 }
 0x195   : > { %1275 = vperm.xlu2 %2472, %v1127_v3  }
 0x197   : > { %v1132_v9 = vpop.f32.mrf.mxu2 }
 0x198   : > { %v1133_v28 = vadd.f32 %v1132_v9, %v3522_v57  ;;  %v1005_v7 = vpop.f32.mrf.mxu0 }
 0x199   : > { %v3557_v17 = vadd.f32 %v1005_v7, %v3516_v35 }
 0x19a   : > { %2474 = vset.pattern.permute.xlu1 %v2715_v33  ;;  %1283 = vperm.xlu0 %2467, %v1133_v28  }
 0x19b   : > { %1279 = vperm.xlu1 %2474, %v1130_v62   ;;  %v3594_v62 = vpop.f32.mrf.mxu1 }
 0x19d   : > { %2475 = vset.pattern.permute.xlu2 %v2716_v58 }
 0x19e   : > { %1194 = vperm.xlu2 %2475, %v1133_v28  }
 0x19f   : > { %v1135_v43 = vpop.f32.mrf.mxu2 }
 0x1a0   : > { %v1136_v10 = vadd.f32 %v1135_v43, %v3522_v57 }
 0x1a2   : > { %2478 = vset.pattern.permute.xlu0 %v2716_v58 }
 0x1a3   : > { %2476 = vset.pattern.permute.xlu1 %v2716_v58  ;;  %v1064_v7 = vpop.f32.mrf.mxu1 }
 0x1a4   : > { %1199 = vperm.xlu1 %2476, %v1136_v10  }
 0x1a6   : > { %2477 = vset.pattern.permute.xlu2 %v2715_v33 }
 0x1a7   : > { %1287 = vperm.xlu2 %2477, %v1136_v10   ;;  %v1138_v21 = vpop.f32.mrf.mxu2 }
 0x1a8   : > { %v1139_v59 = vadd.f32 %v1138_v21, %v3522_v57 }
 0x1aa   : > { %1204 = vperm.xlu0 %2478, %v1139_v59  }
 0x1ac   : > { %2479 = vset.pattern.permute.xlu1 %v2715_v33 }
 0x1ad   : > { %1291 = vperm.xlu1 %2479, %v1139_v59   ;;  %v3610_v59 = vperm.slane %v3510_v16, 1 }
 0x1af   : > { %v1141_v22 = vpop.f32.mrf.mxu2  ;;  %2480 = vset.pattern.permute.xlu2 %v2716_v58 }
 0x1b0   : > { %v1142_v5 = vadd.f32 %v1141_v22, %v3522_v57 }
 0x1b2   : > { %2481 = vset.pattern.permute.xlu0 %v2715_v33  ;;  %1209 = vperm.xlu2 %2480, %v1142_v5  }
 0x1b3   : > { %1295 = vperm.xlu0 %2481, %v1142_v5  }
 0x1b5   : > { %2482 = vset.pattern.permute.xlu1 %v2716_v58 }
 0x1b7   : > { %v1144_v11 = vpop.f32.mrf.mxu2 }
 0x1b8   : > { %v1145_v4 = vadd.f32 %v1144_v11, %v3522_v57  ;;  %v1067_v11 = vpop.f32.mrf.mxu1 }
 0x1ba   : > { %2483 = vset.pattern.permute.xlu2 %v2715_v33  ;;  %1214 = vperm.xlu1 %2482, %v1145_v4  }
 0x1bb   : > { %1299 = vperm.xlu2 %2483, %v1145_v4   ;;  %2484 = vset.pattern.permute.xlu0 %v2716_v58 }
 0x1bf   : > { %v1147_v63 = vpop.f32.mrf.mxu2 }
 0x1c0   : > { %v1148_v31 = vadd.f32 %v1147_v63, %v3522_v57 }
 0x1c2   : > { %1219 = vperm.xlu0 %2484, %v1148_v31   ;;  %2485 = vset.pattern.permute.xlu1 %v2715_v33 }
 0x1c3   : > { %1303 = vperm.xlu1 %2485, %v1148_v31   ;;  %2486 = vset.pattern.permute.xlu2 %v2716_v58 }
 0x1c4   : > { %v1165_v34 = vpop.permute.xlu2 %1164 }
 0x1c5   : > { %v1242_v27 = vmul.f32 %v1165_v34, %v3519_v39 }
 0x1c7   : > { %v1150_v40 = vpop.f32.mrf.mxu2 }
 0x1c8   : > { %v1151_v51 = vadd.f32 %v1150_v40, %v3522_v57 }
 0x1ca   : > { %2487 = vset.pattern.permute.xlu0 %v2715_v33  ;;  %1224 = vperm.xlu2 %2486, %v1151_v51  }
 0x1cb   : > { %1307 = vperm.xlu0 %2487, %v1151_v51   ;;  %2488 = vset.pattern.permute.xlu1 %v2716_v58 }
 0x1cf   : > { %v1153_v44 = vpop.f32.mrf.mxu2 }
 0x1d0   : > { %v1154_v6 = vadd.f32 %v1153_v44, %v3522_v57 }
 0x1d2   : > { %2489 = vset.pattern.permute.xlu2 %v2715_v33  ;;  %1229 = vperm.xlu1 %2488, %v1154_v6  }
 0x1d3   : > { %1311 = vperm.xlu2 %2489, %v1154_v6   ;;  %2490 = vset.pattern.permute.xlu0 %v2716_v58 }
 0x1d5   : > { %v1268_v39 = vpop.permute.xlu2 %1267 }
 0x1d7   : > { %v1156_v20 = vpop.f32.mrf.mxu2 }
 0x1d8   : > { %v1157_v32 = vadd.f32 %v1156_v20, %v3522_v57  ;;  %v1056_v20 = vadd.f32 %v1055_v41, %v3610_v59 }
 0x1da   : > { %1234 = vperm.xlu0 %2490, %v1157_v32   ;;  %2491 = vset.pattern.permute.xlu1 %v2715_v33 }
 0x1db   : > { %1315 = vperm.xlu1 %2491, %v1157_v32   ;;  %2492 = vset.pattern.permute.xlu2 %v2716_v58  ;;  %v3628_v32 = vpop.f32.mrf.mxu1 }
 0x1dc   : > { %v1260_v47 = vpop.permute.xlu1 %1259 }
 0x1dd   : > { %v3589_v8 = vadd.f32 %v1260_v47, %v1242_v27  ;;  %v3621_v27 = vpop.f32.mrf.mxu0 }
 0x1de   : > { %v1180_v53 = vpop.permute.xlu2 %1179 }
 0x1df   : > { %v1245_v3 = vmul.f32 %v1180_v53, %v3536_v45  ;;  %v1159_v49 = vpop.f32.mrf.mxu2 }
 0x1e0   : > { %v1160_v61 = vadd.f32 %v1159_v49, %v3522_v57 }
 0x1e2   : > { %2493 = vset.pattern.permute.xlu0 %v2715_v33  ;;  %1239 = vperm.xlu2 %2492, %v1160_v61  }
 0x1e3   : > { %1319 = vperm.xlu0 %2493, %v1160_v61  }
 0x1e4   : > { %v1170_v55 = vpop.permute.xlu0 %1169 }
 0x1e5   : > { %v1243_v58 = vmul.f32 %v1170_v55, %v3526_v23  ;;  %v1011_v49 = vpop.f32.mrf.mxu0 }
 0x1e6   : > { %v3598_v9 = vpop.permute.xlu2 %1184 }
 0x1e7   : > { %v1246_v28 = vmul.f32 %v3598_v9, %v3541_v52 }
 0x1ec   : > { %v1175_v43 = vpop.permute.xlu1 %1174 }
 0x1ed   : > { %v1244_v45 = vmul.f32 %v1175_v43, %v3530_v29  ;;  %v1264_v10 = vpop.permute.xlu0 %1263  ;;  %v1050_v29 = vadd.f32 %v1049_v37, %v3610_v59  ;;  %v1356_v37 = vmul.f32 %v1175_v43, %v1056_v20 }
 0x1ee   : > { %v3603_v57 = vadd.f32 %v1264_v10, %v1243_v58 }
 0x1ef   : > { %v3605_v21 = vadd.f32 %v1268_v39, %v1244_v45  ;;  %v3607_v33 = vpop.permute.xlu2 %1275  ;;  %v1354_v63 = vmul.f32 %v1165_v34, %v1050_v29  ;;  %v1372_v61 = vadd.f32 %v1356_v37, %v1268_v39  ;;  %v1059_v45 = vadd.f32 %v1058_v19, %v3610_v59  ;;  %v3646_v37 = vpop.f32.mrf.mxu0 }
 0x1f0   : > { %v3614_v22 = vadd.f32 %v3607_v33, %v1246_v28  ;;  %v1065_v19 = vadd.f32 %v1064_v7, %v3610_v59 }
 0x1f1   : > { %v1370_v16 = vadd.f32 %v1354_v63, %v1260_v47  ;;  %v1357_v43 = vmul.f32 %v1180_v53, %v1059_v45  ;;  %v3639_v63 = vmax.f32 %v1372_v61, 0.0 }
 0x1f3   : > { %v3625_v6 = vmax.f32 %v1370_v16, 0.0  ;;  %v1073_v16 = vpop.f32.mrf.mxu1  ;;  %v1410_v53 = vsel %vm453_vm0, %v3639_v63, 0.0 }
 0x1f5   : > { %v1272_v4 = vpop.permute.xlu1 %1271  ;;  %v1468_v34 = vmul.f32 %v3625_v6, %v3625_v6  ;;  %v1404_v39 = vsel %vm453_vm0, %v3625_v6, 0.0 }
 0x1f6   : > { %v3619_v31 = vadd.f32 %v1272_v4, %v1245_v3  ;;  %v1053_v3 = vadd.f32 %v3576_v56, %v3610_v59  ;;  %v1373_v56 = vadd.f32 %v1357_v43, %v1272_v4 }
 0x1f8   : > { %v1195_v51 = vpop.permute.xlu2 %1194  ;;  %v1355_v47 = vmul.f32 %v1170_v55, %v1053_v3  ;;  %v1012_v55 = vadd.f32 %v1011_v49, %v3516_v35 }
 0x1f9   : > { %v1248_v44 = vmul.f32 %v1195_v51, %v3552_v15  ;;  %v1484_v15 = vsel %vm453_vm0, %v1468_v34, 0.0  ;;  %v3653_v34 = vmax.f32 %v1373_v56, 0.0  ;;  %v1062_v56 = vadd.f32 %v3594_v62, %v3610_v59 }
 0x1fa   : > { %v1371_v41 = vadd.f32 %v1355_v47, %v1264_v10 }
 0x1fc   : > { %v3641_v20 = vmax.f32 %v1371_v41, 0.0 }
 0x1fe   : > { %v1407_v49 = vsel %vm453_vm0, %v3641_v20, 0.0 }
 0x201   : > { %v3634_v58 = vpop.permute.xlu2 %1287 }
 0x204   : > { %v1190_v28 = vpop.permute.xlu1 %1189 }
 0x205   : > { %v1247_v29 = vmul.f32 %v1190_v28, %v3547_v46  ;;  %1485 = vadd.xlane.f32.xlu1 %v1484_v15  ;;  %v1359_v61 = vmul.f32 %v1190_v28, %v1065_v19  ;;  %v1469_v15 = vmul.f32 %v3641_v20, %v3641_v20  ;;  %v1471_v28 = vmul.f32 %v3653_v34, %v3653_v34 }
 0x207   : > { %v1493_v62 = vsel %vm453_vm0, %v1471_v28, 0.0  ;;  %v1074_v28 = vadd.f32 %v1073_v16, %v3610_v59  ;;  %v1071_v16 = vadd.f32 %v3628_v32, %v3610_v59 }
 0x20b   : > { %1405 = vadd.xlane.f32.xlu2 %v1404_v39  ;;  %v1076_v39 = vpop.f32.mrf.mxu1 }
 0x20c   : > { %v3649_v10 = vpop.permute.xlu2 %1209  ;;  %v1284_v46 = vpop.permute.xlu0 %1283 }
 0x20d   : > { %v3656_v4 = vmul.f32 %v3649_v10, %v1012_v55  ;;  %v3658_v3 = vadd.f32 %v1284_v46, %v1248_v44  ;;  %v1280_v47 = vpop.permute.xlu1 %1279  ;;  %1411 = vadd.xlane.f32.xlu0 %v1410_v53  ;;  %1408 = vadd.xlane.f32.xlu1 %v1407_v49  ;;  %v1470_v44 = vmul.f32 %v3639_v63, %v3639_v63 }
 0x20e   : > { %v3662_v7 = vadd.f32 %v1280_v47, %v1247_v29  ;;  %v1375_v43 = vadd.f32 %v1359_v61, %v1280_v47  ;;  %v1487_v29 = vsel %vm453_vm0, %v1469_v15, 0.0  ;;  %v1358_v55 = vmul.f32 %v3598_v9, %v1062_v56  ;;  %v3682_v61 = vpop.f32.mrf.mxu0 }
 0x20f   : > { %v1490_v53 = vsel %vm453_vm0, %v1470_v44, 0.0  ;;  %v1068_v47 = vadd.f32 %v1067_v11, %v3610_v59  ;;  %v1009_v56 = vadd.f32 %v3621_v27, %v3516_v35 }
 0x210   : > { %v3676_v19 = vmax.f32 %v1375_v43, 0.0  ;;  %v1374_v49 = vadd.f32 %v1358_v55, %v3607_v33  ;;  %v1413_v33 = vsel %vm453_vm0, %v3653_v34, 0.0 }
 0x211   : > { %v1360_v15 = vmul.f32 %v1195_v51, %v1068_v47 }
 0x212   : > { %v1473_v9 = vmul.f32 %v3676_v19, %v3676_v19  ;;  %v3687_v43 = vmax.f32 %v1374_v49, 0.0 }
 0x213   : > { %1488 = vadd.xlane.f32.xlu2 %v1487_v29  ;;  %v1376_v44 = vadd.f32 %v1360_v15, %v1284_v46 }
 0x214   : > { %v1499_v55 = vsel %vm453_vm0, %v1473_v9, 0.0  ;;  %v1416_v49 = vsel %vm453_vm0, %v3687_v43, 0.0  ;;  %v1472_v27 = vmul.f32 %v3687_v43, %v3687_v43 }
 0x215   : > { %1491 = vadd.xlane.f32.xlu0 %v1490_v53  ;;  %1494 = vadd.xlane.f32.xlu1 %v1493_v62  ;;  %v1079_v53 = vpop.f32.mrf.mxu1  ;;  %v3699_v46 = vmax.f32 %v1376_v44, 0.0 }
 0x216   : > { %v1200_v45 = vpop.permute.xlu1 %1199  ;;  %v1020_v15 = vpop.f32.mrf.mxu0 }
 0x217   : > { %v1249_v41 = vmul.f32 %v1200_v45, %v3557_v17  ;;  %v1300_v17 = vpop.permute.xlu2 %1299  ;;  %v1361_v44 = vmul.f32 %v1200_v45, %v1071_v16  ;;  %v1422_v32 = vsel %vm453_vm0, %v3699_v46, 0.0 }
 0x219   : > { %v3690_v11 = vadd.f32 %v3634_v58, %v1249_v41  ;;  %v1377_v45 = vadd.f32 %v1361_v44, %v3634_v58  ;;  %v1419_v44 = vsel %vm453_vm0, %v3676_v19, 0.0 }
 0x21b   : > { %1414 = vadd.xlane.f32.xlu2 %v1413_v33 }
 0x21c   : > { %v1205_v29 = vpop.permute.xlu0 %1204 }
 0x21d   : > { %v1250_v41 = vmul.f32 %v1205_v29, %v1009_v56  ;;  %v1362_v47 = vmul.f32 %v1205_v29, %v1074_v28  ;;  %1500 = vadd.xlane.f32.xlu0 %v1499_v55  ;;  %1417 = vadd.xlane.f32.xlu1 %v1416_v49  ;;  %v1474_v56 = vmul.f32 %v3699_v46, %v3699_v46  ;;  %v1496_v29 = vsel %vm453_vm0, %v1472_v27, 0.0 }
 0x21e   : > { %v1021_v55 = vadd.f32 %v1020_v15, %v3516_v35  ;;  %v1082_v15 = vpop.f32.mrf.mxu1 }
 0x21f   : > { %v1292_v62 = vpop.permute.xlu1 %1291  ;;  %v1502_v16 = vsel %vm453_vm0, %v1474_v56, 0.0  ;;  %v1015_v56 = vadd.f32 %v3646_v37, %v3516_v35 }
 0x220   : > { %v3707_v33 = vadd.f32 %v1292_v62, %v1250_v41  ;;  %v1378_v9 = vadd.f32 %v1362_v47, %v1292_v62  ;;  %v1077_v41 = vadd.f32 %v1076_v39, %v3610_v59  ;;  %v3728_v39 = vmax.f32 %v1377_v45, 0.0 }
 0x222   : > { %v3714_v49 = vmax.f32 %v1378_v9, 0.0  ;;  %v1363_v9 = vmul.f32 %v3649_v10, %v1077_v41  ;;  %v1425_v41 = vsel %vm453_vm0, %v3728_v39, 0.0  ;;  %v1475_v45 = vmul.f32 %v3728_v39, %v3728_v39 }
 0x223   : > { %1497 = vadd.xlane.f32.xlu2 %v1496_v29 }
 0x224   : > { %v1225_v51 = vpop.permute.xlu2 %1224  ;;  %v1476_v28 = vmul.f32 %v3714_v49, %v3714_v49 }
 0x225   : > { %v1254_v47 = vmul.f32 %v1225_v51, %v1021_v55  ;;  %1423 = vadd.xlane.f32.xlu0 %v1422_v32  ;;  %v1296_v62 = vpop.permute.xlu0 %1295  ;;  %1503 = vadd.xlane.f32.xlu1 %v1502_v16  ;;  %v1080_v16 = vadd.f32 %v1079_v53, %v3610_v59 }
 0x226   : > { %v3722_v27 = vadd.f32 %v1296_v62, %v3656_v4  ;;  %v1379_v58 = vadd.f32 %v1363_v9, %v1296_v62  ;;  %v1508_v55 = vsel %vm453_vm0, %v1476_v28, 0.0  ;;  %v1085_v37 = vpop.f32.mrf.mxu1 }
 0x228   : > { %v3735_v32 = vmax.f32 %v1379_v58, 0.0  ;;  %v1505_v58 = vsel %vm453_vm0, %v1475_v45, 0.0 }
 0x22a   : > { %v1477_v28 = vmul.f32 %v3735_v32, %v3735_v32  ;;  %v1431_v53 = vsel %vm453_vm0, %v3735_v32, 0.0 }
 0x22b   : > { %1420 = vadd.xlane.f32.xlu2 %v1419_v44 }
 0x22c   : > { %v1215_v4 = vpop.permute.xlu1 %1214 }
 0x22d   : > { %v1252_v10 = vmul.f32 %v1215_v4, %v1015_v56  ;;  %1509 = vadd.xlane.f32.xlu0 %v1508_v55  ;;  %1426 = vadd.xlane.f32.xlu1 %v1425_v41  ;;  %v1364_v44 = vmul.f32 %v1215_v4, %v1080_v16  ;;  %v1018_v56 = vadd.f32 %v3682_v61, %v3516_v35  ;;  %v1511_v4 = vsel %vm453_vm0, %v1477_v28, 0.0 }
 0x22e   : > { %v1083_v55 = vadd.f32 %v1082_v15, %v3610_v59 }
 0x22f   : > { %v3742_v62 = vadd.f32 %v1300_v17, %v1252_v10  ;;  %v1380_v10 = vadd.f32 %v1364_v44, %v1300_v17  ;;  %v1428_v17 = vsel %vm453_vm0, %v3714_v49, 0.0  ;;  %v1023_v44 = vpop.f32.mrf.mxu0 }
 0x231   : > { %v3756_v40 = vmax.f32 %v1380_v10, 0.0  ;;  %v1312_v10 = vpop.permute.xlu2 %1311 }
 0x233   : > { %1506 = vadd.xlane.f32.xlu2 %v1505_v58  ;;  %v1086_v58 = vadd.f32 %v1085_v37, %v3610_v59 }
 0x234   : > { %v1220_v41 = vpop.permute.xlu0 %1219 }
 0x235   : > { %v1253_v29 = vmul.f32 %v1220_v41, %v1018_v56  ;;  %v1365_v5 = vmul.f32 %v1220_v41, %v1083_v55  ;;  %v1304_v9 = vpop.permute.xlu1 %1303  ;;  %1432 = vadd.xlane.f32.xlu0 %v1431_v53  ;;  %1512 = vadd.xlane.f32.xlu1 %v1511_v4  ;;  %v1088_v56 = vpop.f32.mrf.mxu1  ;;  %v1478_v53 = vmul.f32 %v3756_v40, %v3756_v40 }
 0x237   : > { %v3754_v16 = vadd.f32 %v1304_v9, %v1253_v29  ;;  %v1381_v45 = vadd.f32 %v1365_v5, %v1304_v9  ;;  %v1366_v29 = vmul.f32 %v1225_v51, %v1086_v58  ;;  %v1434_v5 = vsel %vm453_vm0, %v3756_v40, 0.0 }
 0x238   : > { %v1514_v51 = vsel %vm453_vm0, %v1478_v53, 0.0  ;;  %v1024_v58 = vadd.f32 %v1023_v44, %v3516_v35 }
 0x239   : > { %v3759_v15 = vmax.f32 %v1381_v45, 0.0 }
 0x23b   : > { %1429 = vadd.xlane.f32.xlu2 %v1428_v17  ;;  %v1479_v28 = vmul.f32 %v3759_v15, %v3759_v15  ;;  %v1089_v17 = vadd.f32 %v1088_v56, %v3610_v59 }
 0x23c   : > { %v1240_v52 = vpop.permute.xlu2 %1239 }
 0x23d   : > { %v1308_v9 = vpop.permute.xlu0 %1307  ;;  %v1517_v55 = vsel %vm453_vm0, %v1479_v28, 0.0  ;;  %1435 = vadd.xlane.f32.xlu1 %v1434_v5  ;;  %v1091_v5 = vpop.f32.mrf.mxu1 }
 0x23e   : > { %v3769_v41 = vadd.f32 %v1308_v9, %v1254_v47  ;;  %v1382_v37 = vadd.f32 %v1366_v29, %v1308_v9  ;;  %1518 = vadd.xlane.f32.xlu0 %v1517_v55  ;;  %v1026_v29 = vpop.f32.mrf.mxu0 }
 0x240   : > { %v3774_v4 = vmax.f32 %v1382_v37, 0.0 }
 0x242   : > { %v1480_v45 = vmul.f32 %v3774_v4, %v3774_v4  ;;  %v1440_v37 = vsel %vm453_vm0, %v3774_v4, 0.0 }
 0x243   : > { %1515 = vadd.xlane.f32.xlu2 %v1514_v51  ;;  %v1437_v51 = vsel %vm453_vm0, %v3759_v15, 0.0 }
 0x244   : > { %v1230_v47 = vpop.permute.xlu1 %1229  ;;  %v1520_v28 = vsel %vm453_vm0, %v1480_v45, 0.0  ;;  %v1027_v45 = vadd.f32 %v1026_v29, %v3516_v35 }
 0x245   : > { %v1255_v9 = vmul.f32 %v1230_v47, %v1024_v58  ;;  %v1367_v55 = vmul.f32 %v1230_v47, %v1089_v17  ;;  %1521 = vadd.xlane.f32.xlu1 %v1520_v28  ;;  %v1092_v58 = vadd.f32 %v1091_v5, %v3610_v59 }
 0x246   : > { %1441 = vadd.xlane.f32.xlu0 %v1440_v37 }
 0x247   : > { %v3784_v53 = vadd.f32 %v1312_v10, %v1255_v9  ;;  %v1383_v61 = vadd.f32 %v1367_v55, %v1312_v10  ;;  %v1029_v10 = vpop.f32.mrf.mxu0  ;;  %v1094_v55 = vpop.f32.mrf.mxu1 }
 0x248   : > { %v1030_v5 = vadd.f32 %v1029_v10, %v3516_v35 }
 0x249   : > { %v3787_v56 = vmax.f32 %v1383_v61, 0.0 }
 0x24b   : > { %1438 = vadd.xlane.f32.xlu2 %v1437_v51  ;;  %v1443_v17 = vsel %vm453_vm0, %v3787_v56, 0.0  ;;  %v1095_v51 = vadd.f32 %v1094_v55, %v3610_v59 }
 0x24c   : > { %v1235_v47 = vpop.permute.xlu0 %1234 }
 0x24d   : > { %v1256_v28 = vmul.f32 %v1235_v47, %v1027_v45  ;;  %v1368_v9 = vmul.f32 %v1235_v47, %v1092_v58  ;;  %v1316_v37 = vpop.permute.xlu1 %1315  ;;  %1444 = vadd.xlane.f32.xlu1 %v1443_v17  ;;  %v1257_v58 = vmul.f32 %v1240_v52, %v1030_v5  ;;  %v1369_v47 = vmul.f32 %v1240_v52, %v1095_v51 }
 0x24f   : > { %v3795_v61 = vadd.f32 %v1316_v37, %v1256_v28  ;;  %v1384_v44 = vadd.f32 %v1368_v9, %v1316_v37  ;;  %v1481_v9 = vmul.f32 %v3787_v56, %v3787_v56 }
 0x251   : > { %v3798_v29 = vmax.f32 %v1384_v44, 0.0  ;;  %v1523_v52 = vsel %vm453_vm0, %v1481_v9, 0.0 }
 0x253   : > { %v1446_v45 = vsel %vm453_vm0, %v3798_v29, 0.0  ;;  %v1482_v55 = vmul.f32 %v3798_v29, %v3798_v29 }
 0x254   : > { %1447 = vadd.xlane.f32.xlu2 %v1446_v45 }
 0x255   : > { %v1320_v17 = vpop.permute.xlu0 %1319  ;;  %v1526_v5 = vsel %vm453_vm0, %v1482_v55, 0.0 }
 0x256   : > { %v3804_v25 = vadd.f32 %v1320_v17, %v1257_v58  ;;  %v1385_v28 = vadd.f32 %v1369_v47, %v1320_v17 }
 0x258   : > { %v3809_v37 = vmax.f32 %v1385_v28, 0.0 }
 0x25a   : > { %v1449_v35 = vsel %vm453_vm0, %v3809_v37, 0.0  ;;  %v1483_v59 = vmul.f32 %v3809_v37, %v3809_v37 }
 0x25b   : > { %1450 = vadd.xlane.f32.xlu0 %v1449_v35 }
 0x25c   : > { %1524 = vadd.xlane.f32.xlu2 %v1523_v52  ;;  %v1529_v10 = vsel %vm453_vm0, %v1483_v59, 0.0 }
 0x25d   : > { %1530 = vadd.xlane.f32.xlu1 %v1529_v10 }
 0x263   : > { %1527 = vadd.xlane.f32.xlu0 %v1526_v5 }
 0x278   : > { %v1486_v51 = vpop.xlane.xlu1 %1485 }
 0x279   : > { %v1532_v17 = vmul.f32 %v1486_v51, %v3029_v13 }
 0x27e   : > { %v1406_v45 = vpop.xlane.xlu2 %1405 }
 0x27f   : > { %v3821_v58 = vmul.f32 %v1406_v45, %v3029_v13 }
 0x280   : > { %v1412_v47 = vpop.xlane.xlu0 %1411  ;;  %v1409_v9 = vpop.xlane.xlu1 %1408 }
 0x281   : > { %v1548_v28 = vmul.f32 %v3821_v58, %v3821_v58  ;;  %v3827_v59 = vmul.f32 %v1409_v9, %v3029_v13  ;;  %v3830_v10 = vmul.f32 %v1412_v47, %v3029_v13 }
 0x283   : > { %v1564_v35 = vsub.f32 %v1532_v17, %v1548_v28  ;;  %v1549_v45 = vmul.f32 %v3827_v59, %v3827_v59  ;;  %v1550_v23 = vmul.f32 %v3830_v10, %v3830_v10 }
 0x285   : > { %v1580_v52 = vmax.f32 %v1564_v35, 0.0 }
 0x286   : > { %v1489_v55 = vpop.xlane.xlu2 %1488 }
 0x287   : > { %v1612_v5 = vadd.f32 1e-05, %v1580_v52  ;;  %v1533_v44 = vmul.f32 %v1489_v55, %v3029_v13 }
 0x288   : > { %v1492_v51 = vpop.xlane.xlu0 %1491  ;;  %v1495_v28 = vpop.xlane.xlu1 %1494 }
 0x289   : > { %2532 = vrsqrt.f32 %v1612_v5  ;;  %v1565_v17 = vsub.f32 %v1533_v44, %v1549_v45  ;;  %v1534_v9 = vmul.f32 %v1492_v51, %v3029_v13  ;;  %v1535_v44 = vmul.f32 %v1495_v28, %v3029_v13 }
 0x28a   : > { %vm1634_vm6 = vweird.f32 %v1612_v5 }
 0x28b   : > { %v1581_v35 = vmax.f32 %v1565_v17, 0.0  ;;  %v1566_v60 = vsub.f32 %v1534_v9, %v1550_v23 }
 0x28d   : > { %v1613_v47 = vadd.f32 1e-05, %v1581_v35  ;;  %v1582_v54 = vmax.f32 %v1566_v60, 0.0 }
 0x28e   : > { %v1415_v50 = vpop.xlane.xlu2 %1414 }
 0x28f   : > { %v2533_v52 = vpop.eup %2532  ;;  %2534 = vrsqrt.f32 %v1613_v47  ;;  %v3838_v48 = vadd.f32 1e-05, %v1582_v54  ;;  %v3841_v55 = vmul.f32 %v1415_v50, %v3029_v13  ;;  %vm1644_vm9 = vweird.f32 %v1613_v47 }
 0x290   : > { %v1629_v42 = vmul.f32 %v2533_v52, %v1612_v5  ;;  %v3843_v38 = vpop.xlane.xlu0 %1500  ;;  %v1418_v45 = vpop.xlane.xlu1 %1417  ;;  %vm1635_vm5 = vweird.f32 %v2533_v52 }
 0x291   : > { %2536 = vrsqrt.f32 %v3838_v48  ;;  %v1551_v23 = vmul.f32 %v3841_v55, %v3841_v55  ;;  %v3850_v17 = vmul.f32 %v1418_v45, %v3029_v13  ;;  %vm1636_vm7 = vmor %vm1634_vm6, %vm1635_vm5  ;;  %vm1654_vm12 = vweird.f32 %v3838_v48 }
 0x292   : > { %v1630_v60 = vmul.f32 %v2533_v52, %v1629_v42 }
 0x293   : > { %v1567_v51 = vsub.f32 %v1535_v44, %v1551_v23  ;;  %v1552_v24 = vmul.f32 %v3850_v17, %v3850_v17 }
 0x294   : > { %v1631_v54 = vmul.f32 0.5, %v1630_v60  ;;  %v3861_v60 = vld [vmem:[%s4298_s5] ss:$0 sm:$0xff] }
 0x295   : > { %v2535_v9 = vpop.eup %2534  ;;  %v1583_v50 = vmax.f32 %v1567_v51, 0.0  ;;  %v1596_v51 = vsub.f32 %v3625_v6, %v3821_v58 }
 0x296   : > { %v1632_v35 = vsub.f32 1.5, %v1631_v54  ;;  %v1639_v36 = vmul.f32 %v2535_v9, %v1613_v47  ;;  %v1498_v30 = vpop.xlane.xlu2 %1497  ;;  %vm1645_vm8 = vweird.f32 %v2535_v9 }
 0x297   : > { %v2537_v26 = vpop.eup %2536  ;;  %v3852_v28 = vadd.f32 1e-05, %v1583_v50  ;;  %v1536_v18 = vmul.f32 %v1498_v30, %v3029_v13  ;;  %vm1646_vm11 = vmor %vm1644_vm9, %vm1645_vm8 }
 0x298   : > { %v1633_v42 = vmul.f32 %v2533_v52, %v1632_v35  ;;  %v1640_v44 = vmul.f32 %v2535_v9, %v1639_v36  ;;  %v1649_v23 = vmul.f32 %v2537_v26, %v3838_v48  ;;  %v1424_v45 = vpop.xlane.xlu0 %1423  ;;  %v1504_v50 = vpop.xlane.xlu1 %1503  ;;  %vm1655_vm10 = vweird.f32 %v2537_v26 }
 0x299   : > { %2538 = vrsqrt.f32 %v3852_v28  ;;  %v1568_v54 = vsub.f32 %v1536_v18, %v1552_v24  ;;  %v3867_v30 = vmul.f32 %v1424_v45, %v3029_v13  ;;  %v1538_v6 = vmul.f32 %v1504_v50, %v3029_v13  ;;  %vm1656_vm13 = vmor %vm1654_vm12, %vm1655_vm10 }
 0x29a   : > { %v1637_v36 = vsel %vm1636_vm7, %v2533_v52, %v1633_v42  ;;  %v1641_v5 = vmul.f32 0.5, %v1640_v44  ;;  %v1650_v35 = vmul.f32 %v2537_v26, %v1649_v23  ;;  %v1597_v50 = vsub.f32 %v3641_v20, %v3827_v59 }
 0x29b   : > { %v1788_v12 = vmul.f32 %v1637_v36, %v1596_v51  ;;  %v1584_v0 = vmax.f32 %v1568_v54, 0.0  ;;  %v1554_v58 = vmul.f32 %v3867_v30, %v3867_v30  ;;  %vm1664_vm15 = vweird.f32 %v3852_v28 }
 0x29c   : > { %v1642_v18 = vsub.f32 1.5, %v1641_v5  ;;  %v1651_v24 = vmul.f32 0.5, %v1650_v35  ;;  %v1598_v35 = vsub.f32 %v3639_v63, %v3830_v10  ;;  %v1537_v10 = vmul.f32 %v3843_v38, %v3029_v13 }
 0x29d   : > { %v1807_v45 = vmul.f32 %v3861_v60, %v1788_v12  ;;  %v3878_v52 = vadd.f32 1e-05, %v1584_v0  ;;  %v1570_v42 = vsub.f32 %v1538_v6, %v1554_v58 }
 0x29e   : > { %v1643_v44 = vmul.f32 %v2535_v9, %v1642_v18  ;;  %v1652_v23 = vsub.f32 1.5, %v1651_v24  ;;  %v1421_v1 = vpop.xlane.xlu2 %1420 }
 0x29f   : > { %v2539_v51 = vpop.eup %2538  ;;  %v1826_v54 = vadd.f32 %v3872_v14, %v1807_v45  ;;  %2540 = vrsqrt.f32 %v3878_v52  ;;  %v1586_v36 = vmax.f32 %v1570_v42, 0.0  ;;  %v3895_v59 = vmul.f32 %v1421_v1, %v3029_v13 }
 0x2a0   : > { %v1647_v5 = vsel %vm1646_vm11, %v2535_v9, %v1643_v44  ;;  %v1653_v12 = vmul.f32 %v2537_v26, %v1652_v23  ;;  %v1659_v0 = vmul.f32 %v2539_v51, %v3852_v28  ;;  %v3886_v47 = vpop.xlane.xlu0 %1509  ;;  %v1427_v9 = vpop.xlane.xlu1 %1426  ;;  %vm1665_vm14 = vweird.f32 %v2539_v51 }
 0x2a1   : > { %1842 = vst.msk [vmem:[#allocation2] sm:$0xff] %vm453_vm0, %v1826_v54  ;;  %v1789_v6 = vmul.f32 %v1647_v5, %v1597_v50  ;;  %v3892_v20 = vadd.f32 1e-05, %v1586_v36  ;;  %v3900_v45 = vmul.f32 %v1427_v9, %v3029_v13  ;;  %v1553_v42 = vmul.f32 %v3895_v59, %v3895_v59  ;;  %vm1666_vm1 = vmor %vm1664_vm15, %vm1665_vm14 }
 0x2a2   : > { %v1657_v58 = vsel %vm1656_vm13, %v2537_v26, %v1653_v12  ;;  %v1660_v48 = vmul.f32 %v2539_v51, %v1659_v0  ;;  %vm1674_vm3 = vweird.f32 %v3878_v52 }
 0x2a3   : > { %v1808_v18 = vmul.f32 %v3861_v60, %v1789_v6  ;;  %v1790_v24 = vmul.f32 %v1657_v58, %v1598_v35  ;;  %2542 = vrsqrt.f32 %v3892_v20  ;;  %v1569_v50 = vsub.f32 %v1537_v10, %v1553_v42 }
 0x2a4   : > { %v1661_v63 = vmul.f32 0.5, %v1660_v48  ;;  %v1555_v38 = vmul.f32 %v3900_v45, %v3900_v45  ;;  %v1599_v48 = vsub.f32 %v3653_v34, %v3841_v55  ;;  %vm1694_vm6 = vweird.f32 %v3892_v20 }
 0x2a5   : > { %v2541_v1 = vpop.eup %2540  ;;  %v1827_v44 = vadd.f32 %v3872_v14, %v1808_v18  ;;  %v1809_v26 = vmul.f32 %v3861_v60, %v1790_v24  ;;  %v1585_v6 = vmax.f32 %v1569_v50, 0.0 }
 0x2a6   : > { %v1662_v23 = vsub.f32 1.5, %v1661_v63  ;;  %v1669_v54 = vmul.f32 %v2541_v1, %v3878_v52  ;;  %v1507_v36 = vpop.xlane.xlu2 %1506  ;;  %vm1675_vm2 = vweird.f32 %v2541_v1 }
 0x2a7   : > { %1843 = vst.msk [vmem:[#allocation2 + $0x8] sm:$0xff] %vm453_vm0, %v1827_v44  ;;  %v1828_v5 = vadd.f32 %v3872_v14, %v1809_v26  ;;  %v1539_v12 = vmul.f32 %v1507_v36, %v3029_v13  ;;  %v3923_v26 = vadd.f32 1e-05, %v1585_v6  ;;  %v1600_v6 = vsub.f32 %v3687_v43, %v3850_v17  ;;  %vm1676_vm4 = vmor %vm1674_vm3, %vm1675_vm2 }
 0x2a8   : > { %v1663_v0 = vmul.f32 %v2539_v51, %v1662_v23  ;;  %v1670_v35 = vmul.f32 %v2541_v1, %v1669_v54  ;;  %v1433_v9 = vpop.xlane.xlu0 %1432  ;;  %v1513_v24 = vpop.xlane.xlu1 %1512 }
 0x2a9   : > { %v2543_v58 = vpop.eup %2542  ;;  %1844 = vst.msk [vmem:[#allocation2 + $0x10] sm:$0xff] %vm453_vm0, %v1828_v5  ;;  %v1571_v18 = vsub.f32 %v1539_v12, %v1555_v38  ;;  %v3920_v63 = vmul.f32 %v1433_v9, %v3029_v13  ;;  %v1541_v34 = vmul.f32 %v1513_v24, %v3029_v13  ;;  %2544 = vrsqrt.f32 %v3923_v26 }
 0x2aa   : > { %v1667_v10 = vsel %vm1666_vm1, %v2539_v51, %v1663_v0  ;;  %v1671_v42 = vmul.f32 0.5, %v1670_v35  ;;  %v1689_v28 = vmul.f32 %v2543_v58, %v3892_v20  ;;  %vm1695_vm5 = vweird.f32 %v2543_v58 }
 0x2ab   : > { %v1791_v44 = vmul.f32 %v1667_v10, %v1599_v48  ;;  %v1587_v23 = vmax.f32 %v1571_v18, 0.0  ;;  %v1557_v55 = vmul.f32 %v3920_v63, %v3920_v63  ;;  %v1540_v10 = vmul.f32 %v3886_v47, %v3029_v13  ;;  %vm1696_vm7 = vmor %vm1694_vm6, %vm1695_vm5 }
 0x2ac   : > { %v1672_v54 = vsub.f32 1.5, %v1671_v42  ;;  %v1690_v50 = vmul.f32 %v2543_v58, %v1689_v28  ;;  %vm1684_vm9 = vweird.f32 %v3923_v26 }
 0x2ad   : > { %v1810_v36 = vmul.f32 %v3861_v60, %v1791_v44  ;;  %v3930_v51 = vadd.f32 1e-05, %v1587_v23  ;;  %v1573_v12 = vsub.f32 %v1541_v34, %v1557_v55 }
 0x2ae   : > { %v1673_v5 = vmul.f32 %v2541_v1, %v1672_v54  ;;  %v1691_v38 = vmul.f32 0.5, %v1690_v50  ;;  %v1430_v0 = vpop.xlane.xlu2 %1429  ;;  %v1602_v54 = vsub.f32 %v3699_v46, %v3867_v30 }
 0x2af   : > { %v1829_v35 = vadd.f32 %v3872_v14, %v1810_v36  ;;  %2546 = vrsqrt.f32 %v3930_v51  ;;  %v3939_v9 = vmul.f32 %v1430_v0, %v3029_v13  ;;  %v1589_v24 = vmax.f32 %v1573_v12, 0.0 }
 0x2b0   : > { %v1677_v48 = vsel %vm1676_vm4, %v2541_v1, %v1673_v5  ;;  %v1692_v18 = vsub.f32 1.5, %v1691_v38  ;;  %v1436_v17 = vpop.xlane.xlu1 %1435  ;;  %v2545_v1 = vpop.eup %2544  ;;  %vm1704_vm12 = vweird.f32 %v3930_v51 }
 0x2b1   : > { %1845 = vst.msk [vmem:[#allocation2 + $0x18] sm:$0xff] %vm453_vm0, %v1829_v35  ;;  %v1792_v52 = vmul.f32 %v1677_v48, %v1600_v6  ;;  %v1556_v43 = vmul.f32 %v3939_v9, %v3939_v9  ;;  %v3946_v42 = vpop.xlane.xlu0 %1518  ;;  %v3949_v44 = vadd.f32 1e-05, %v1589_v24  ;;  %v3955_v47 = vmul.f32 %v1436_v17, %v3029_v13 }
 0x2b2   : > { %v1693_v28 = vmul.f32 %v2543_v58, %v1692_v18  ;;  %v1679_v55 = vmul.f32 %v2545_v1, %v3923_v26  ;;  %vm1685_vm8 = vweird.f32 %v2545_v1 }
 0x2b3   : > { %v1811_v23 = vmul.f32 %v3861_v60, %v1792_v52  ;;  %v1572_v50 = vsub.f32 %v1540_v10, %v1556_v43  ;;  %2548 = vrsqrt.f32 %v3949_v44  ;;  %vm1686_vm11 = vmor %vm1684_vm9, %vm1685_vm8  ;;  %vm1724_vm15 = vweird.f32 %v3949_v44 }
 0x2b4   : > { %v1697_v34 = vsel %vm1696_vm7, %v2543_v58, %v1693_v28  ;;  %v1680_v12 = vmul.f32 %v2545_v1, %v1679_v55  ;;  %v1558_v58 = vmul.f32 %v3955_v47, %v3955_v47 }
 0x2b5   : > { %v2547_v36 = vpop.eup %2546  ;;  %v1830_v20 = vadd.f32 %v3872_v14, %v1811_v23  ;;  %v1794_v5 = vmul.f32 %v1697_v34, %v1602_v54  ;;  %v1588_v38 = vmax.f32 %v1572_v50, 0.0 }
 0x2b6   : > { %v1699_v0 = vmul.f32 %v2547_v36, %v3930_v51  ;;  %v1516_v35 = vpop.xlane.xlu2 %1515  ;;  %v1681_v48 = vmul.f32 0.5, %v1680_v12  ;;  %vm1705_vm10 = vweird.f32 %v2547_v36  ;;  %v1601_v12 = vsub.f32 %v3676_v19, %v3895_v59 }
 0x2b7   : > { %1846 = vst.msk [vmem:[#allocation2 + $0x20] sm:$0xff] %vm453_vm0, %v1830_v20  ;;  %v1813_v46 = vmul.f32 %v3861_v60, %v1794_v5  ;;  %v3963_v30 = vadd.f32 1e-05, %v1588_v38  ;;  %v1542_v6 = vmul.f32 %v1516_v35, %v3029_v13  ;;  %vm1706_vm13 = vmor %vm1704_vm12, %vm1705_vm10 }
 0x2b8   : > { %v1700_v18 = vmul.f32 %v2547_v36, %v1699_v0  ;;  %v1522_v10 = vpop.xlane.xlu1 %1521  ;;  %v1682_v28 = vsub.f32 1.5, %v1681_v48 }
 0x2b9   : > { %v1832_v24 = vadd.f32 %v3872_v14, %v1813_v46  ;;  %2550 = vrsqrt.f32 %v3963_v30  ;;  %v1574_v52 = vsub.f32 %v1542_v6, %v1558_v58  ;;  %v1442_v43 = vpop.xlane.xlu0 %1441  ;;  %v2549_v17 = vpop.eup %2548  ;;  %v1544_v5 = vmul.f32 %v1522_v10, %v3029_v13 }
 0x2ba   : > { %v1701_v23 = vmul.f32 0.5, %v1700_v18  ;;  %v3971_v54 = vmul.f32 %v1442_v43, %v3029_v13  ;;  %v1719_v50 = vmul.f32 %v2549_v17, %v3949_v44  ;;  %v1683_v55 = vmul.f32 %v2545_v1, %v1682_v28 }
 0x2bb   : > { %1848 = vst.msk [vmem:[#allocation2 + $0x30] sm:$0xff] %vm453_vm0, %v1832_v24  ;;  %v1590_v34 = vmax.f32 %v1574_v52, 0.0  ;;  %v1603_v24 = vsub.f32 %v3728_v39, %v3900_v45  ;;  %vm1725_vm14 = vweird.f32 %v2549_v17  ;;  %v1543_v45 = vmul.f32 %v3946_v42, %v3029_v13 }
 0x2bc   : > { %v1702_v20 = vsub.f32 1.5, %v1701_v23  ;;  %v1560_v38 = vmul.f32 %v3971_v54, %v3971_v54  ;;  %v1720_v0 = vmul.f32 %v2549_v17, %v1719_v50  ;;  %v1687_v46 = vsel %vm1686_vm11, %v2545_v1, %v1683_v55  ;;  %vm1726_vm1 = vmor %vm1724_vm15, %vm1725_vm14 }
 0x2bd   : > { %v3981_v35 = vadd.f32 1e-05, %v1590_v34  ;;  %v1793_v18 = vmul.f32 %v1687_v46, %v1601_v12  ;;  %vm1714_vm3 = vweird.f32 %v3963_v30 }
 0x2be   : > { %v1703_v26 = vmul.f32 %v2547_v36, %v1702_v20  ;;  %v1576_v58 = vsub.f32 %v1544_v5, %v1560_v38  ;;  %v1439_v6 = vpop.xlane.xlu2 %1438  ;;  %v1721_v52 = vmul.f32 0.5, %v1720_v0  ;;  %v1605_v20 = vsub.f32 %v3735_v32, %v3920_v63 }
 0x2bf   : > { %v2551_v48 = vpop.eup %2550  ;;  %2552 = vrsqrt.f32 %v3981_v35  ;;  %v1812_v10 = vmul.f32 %v3861_v60, %v1793_v18  ;;  %v3991_v28 = vmul.f32 %v1439_v6, %v3029_v13  ;;  %vm1734_vm6 = vweird.f32 %v3981_v35 }
 0x2c0   : > { %v1707_v19 = vsel %vm1706_vm13, %v2547_v36, %v1703_v26  ;;  %v1709_v59 = vmul.f32 %v2551_v48, %v3963_v30  ;;  %v1592_v1 = vmax.f32 %v1576_v58, 0.0  ;;  %v1722_v43 = vsub.f32 1.5, %v1721_v52 }
 0x2c1   : > { %v1795_v51 = vmul.f32 %v1707_v19, %v1603_v24  ;;  %v1831_v36 = vadd.f32 %v3872_v14, %v1812_v10  ;;  %v1559_v55 = vmul.f32 %v3991_v28, %v3991_v28  ;;  %vm1715_vm2 = vweird.f32 %v2551_v48  ;;  %v1445_v24 = vpop.xlane.xlu1 %1444 }
 0x2c2   : > { %v1710_v39 = vmul.f32 %v2551_v48, %v1709_v59  ;;  %v3996_v23 = vadd.f32 1e-05, %v1592_v1  ;;  %v1723_v34 = vmul.f32 %v2549_v17, %v1722_v43  ;;  %vm1716_vm4 = vmor %vm1714_vm3, %vm1715_vm2 }
 0x2c3   : > { %v1814_v50 = vmul.f32 %v3861_v60, %v1795_v51  ;;  %1847 = vst.msk [vmem:[#allocation2 + $0x28] sm:$0xff] %vm453_vm0, %v1831_v36  ;;  %v1575_v12 = vsub.f32 %v1543_v45, %v1559_v55 }
 0x2c4   : > { %v1711_v44 = vmul.f32 0.5, %v1710_v39  ;;  %2554 = vrsqrt.f32 %v3996_v23  ;;  %v1727_v38 = vsel %vm1726_vm1, %v2549_v17, %v1723_v34  ;;  %v1604_v17 = vsub.f32 %v3714_v49, %v3939_v9 }
 0x2c5   : > { %v2553_v5 = vpop.eup %2552  ;;  %v1833_v42 = vadd.f32 %v3872_v14, %v1814_v50  ;;  %v1797_v0 = vmul.f32 %v1727_v38, %v1605_v20  ;;  %v1591_v32 = vmax.f32 %v1575_v12, 0.0  ;;  %v4021_v39 = vmul.f32 %v1445_v24, %v3029_v13 }
 0x2c6   : > { %v1712_v46 = vsub.f32 1.5, %v1711_v44  ;;  %v1729_v26 = vmul.f32 %v2553_v5, %v3981_v35  ;;  %vm1735_vm5 = vweird.f32 %v2553_v5  ;;  %v1606_v50 = vsub.f32 %v3756_v40, %v3955_v47 }
 0x2c7   : > { %1849 = vst.msk [vmem:[#allocation2 + $0x38] sm:$0xff] %vm453_vm0, %v1833_v42  ;;  %v1448_v63 = vpop.xlane.xlu2 %1447  ;;  %v1816_v58 = vmul.f32 %v3861_v60, %v1797_v0  ;;  %v4014_v52 = vadd.f32 1e-05, %v1591_v32  ;;  %vm1736_vm7 = vmor %vm1734_vm6, %vm1735_vm5  ;;  %v1561_v42 = vmul.f32 %v4021_v39, %v4021_v39  ;;  %vm1754_vm9 = vweird.f32 %v3996_v23 }
 0x2c8   : > { %v1713_v6 = vmul.f32 %v2551_v48, %v1712_v46  ;;  %v1730_v18 = vmul.f32 %v2553_v5, %v1729_v26 }
 0x2c9   : > { %v1835_v59 = vadd.f32 %v3872_v14, %v1816_v58  ;;  %2556 = vrsqrt.f32 %v4014_v52  ;;  %vm1744_vm12 = vweird.f32 %v4014_v52 }
 0x2ca   : > { %v2555_v19 = vpop.eup %2554  ;;  %v1717_v1 = vsel %vm1716_vm4, %v2551_v48, %v1713_v6  ;;  %v1731_v10 = vmul.f32 0.5, %v1730_v18  ;;  %v4042_v6 = vmul.f32 %v1448_v63, %v3029_v13  ;;  %v1608_v18 = vsub.f32 %v3774_v4, %v3971_v54 }
 0x2cb   : > { %v1796_v51 = vmul.f32 %v1717_v1, %v1604_v17  ;;  %v1749_v43 = vmul.f32 %v2555_v19, %v3996_v23  ;;  %1851 = vst.msk [vmem:[#allocation2 + $0x48] sm:$0xff] %vm453_vm0, %v1835_v59  ;;  %vm1755_vm8 = vweird.f32 %v2555_v19 }
 0x2cc   : > { %v1732_v30 = vsub.f32 1.5, %v1731_v10  ;;  %vm1756_vm10 = vmor %vm1754_vm9, %vm1755_vm8  ;;  %v1562_v23 = vmul.f32 %v4042_v6, %v4042_v6 }
 0x2cd   : > { %v1815_v49 = vmul.f32 %v3861_v60, %v1796_v51  ;;  %v1750_v9 = vmul.f32 %v2555_v19, %v1749_v43 }
 0x2ce   : > { %v1733_v45 = vmul.f32 %v2553_v5, %v1732_v30  ;;  %v1451_v48 = vpop.xlane.xlu0 %1450 }
 0x2cf   : > { %v1834_v36 = vadd.f32 %v3872_v14, %v1815_v49  ;;  %v1751_v34 = vmul.f32 0.5, %v1750_v9  ;;  %v4029_v55 = vmul.f32 %v1451_v48, %v3029_v13  ;;  %v1525_v20 = vpop.xlane.xlu2 %1524  ;;  %v2557_v35 = vpop.eup %2556 }
 0x2d0   : > { %v1737_v44 = vsel %vm1736_vm7, %v2553_v5, %v1733_v45  ;;  %v1545_v38 = vmul.f32 %v1525_v20, %v3029_v13  ;;  %v1531_v12 = vpop.xlane.xlu1 %1530  ;;  %v1739_v47 = vmul.f32 %v2557_v35, %v4014_v52  ;;  %vm1745_vm11 = vweird.f32 %v2557_v35 }
 0x2d1   : > { %1850 = vst.msk [vmem:[#allocation2 + $0x40] sm:$0xff] %vm453_vm0, %v1834_v36  ;;  %v1798_v0 = vmul.f32 %v1737_v44, %v1606_v50  ;;  %v1752_v46 = vsub.f32 1.5, %v1751_v34  ;;  %v1563_v40 = vmul.f32 %v4029_v55, %v4029_v55  ;;  %v1547_v5 = vmul.f32 %v1531_v12, %v3029_v13  ;;  %vm1746_vm13 = vmor %vm1744_vm12, %vm1745_vm11 }
 0x2d2   : > { %v1577_v26 = vsub.f32 %v1545_v38, %v1561_v42  ;;  %v1740_v24 = vmul.f32 %v2557_v35, %v1739_v47  ;;  %v1607_v50 = vsub.f32 %v3759_v15, %v3991_v28 }
 0x2d3   : > { %v1817_v32 = vmul.f32 %v3861_v60, %v1798_v0  ;;  %v1753_v58 = vmul.f32 %v2555_v19, %v1752_v46  ;;  %v1579_v59 = vsub.f32 %v1547_v5, %v1563_v40 }
 0x2d4   : > { %v1593_v17 = vmax.f32 %v1577_v26, 0.0  ;;  %v1741_v43 = vmul.f32 0.5, %v1740_v24 }
 0x2d5   : > { %v1836_v1 = vadd.f32 %v3872_v14, %v1817_v32  ;;  %v1757_v10 = vsel %vm1756_vm10, %v2555_v19, %v1753_v58  ;;  %v1595_v49 = vmax.f32 %v1579_v59, 0.0  ;;  %v1609_v58 = vsub.f32 %v3787_v56, %v4021_v39 }
 0x2d6   : > { %v1800_v51 = vmul.f32 %v1757_v10, %v1608_v18  ;;  %v1625_v30 = vadd.f32 1e-05, %v1593_v17  ;;  %v1528_v9 = vpop.xlane.xlu0 %1527  ;;  %v1742_v54 = vsub.f32 1.5, %v1741_v43 }
 0x2d7   : > { %1852 = vst.msk [vmem:[#allocation2 + $0x50] sm:$0xff] %vm453_vm0, %v1836_v1  ;;  %v1546_v63 = vmul.f32 %v1528_v9, %v3029_v13  ;;  %v1627_v45 = vadd.f32 1e-05, %v1595_v49 }
 0x2d8   : > { %v1819_v4 = vmul.f32 %v3861_v60, %v1800_v51  ;;  %2558 = vrsqrt.f32 %v1625_v30  ;;  %v1743_v36 = vmul.f32 %v2557_v35, %v1742_v54  ;;  %vm1764_vm15 = vweird.f32 %v1625_v30 }
 0x2d9   : > { %v1578_v48 = vsub.f32 %v1546_v63, %v1562_v23  ;;  %2560 = vrsqrt.f32 %v1627_v45  ;;  %vm1784_vm3 = vweird.f32 %v1627_v45  ;;  %v1611_v51 = vsub.f32 %v3809_v37, %v4029_v55 }
 0x2da   : > { %v1838_v19 = vadd.f32 %v3872_v14, %v1819_v4  ;;  %v1747_v13 = vsel %vm1746_vm13, %v2557_v35, %v1743_v36  ;;  %v1610_v23 = vsub.f32 %v3798_v29, %v4042_v6 }
 0x2db   : > { %v1594_v34 = vmax.f32 %v1578_v48, 0.0  ;;  %v1799_v20 = vmul.f32 %v1747_v13, %v1607_v50 }
 0x2dc   : > { %1854 = vst.msk [vmem:[#allocation2 + $0x60] sm:$0xff] %vm453_vm0, %v1838_v19 }
 0x2dd   : > { %v1626_v44 = vadd.f32 1e-05, %v1594_v34  ;;  %v1818_v38 = vmul.f32 %v3861_v60, %v1799_v20 }
 0x2de   : > { %v2559_v42 = vpop.eup %2558 }
 0x2df   : > { %v1759_v12 = vmul.f32 %v2559_v42, %v1625_v30  ;;  %2562 = vrsqrt.f32 %v1626_v44  ;;  %v2561_v0 = vpop.eup %2560  ;;  %v1837_v46 = vadd.f32 %v3872_v14, %v1818_v38  ;;  %vm1765_vm14 = vweird.f32 %v2559_v42 }
 0x2e0   : > { %v1779_v40 = vmul.f32 %v2561_v0, %v1627_v45  ;;  %vm1766_vm1 = vmor %vm1764_vm15, %vm1765_vm14  ;;  %vm1785_vm2 = vweird.f32 %v2561_v0  ;;  %vm1774_vm6 = vweird.f32 %v1626_v44 }
 0x2e1   : > { %v1760_v52 = vmul.f32 %v2559_v42, %v1759_v12  ;;  %1853 = vst.msk [vmem:[#allocation2 + $0x58] sm:$0xff] %vm453_vm0, %v1837_v46  ;;  %vm1786_vm4 = vmor %vm1784_vm3, %vm1785_vm2 }
 0x2e2   : > { %v1780_v28 = vmul.f32 %v2561_v0, %v1779_v40 }
 0x2e3   : > { %v1761_v15 = vmul.f32 0.5, %v1760_v52 }
 0x2e4   : > { %v1781_v35 = vmul.f32 0.5, %v1780_v28 }
 0x2e5   : > { %v2563_v47 = vpop.eup %2562  ;;  %v1762_v26 = vsub.f32 1.5, %v1761_v15 }
 0x2e6   : > { %v1769_v5 = vmul.f32 %v2563_v47, %v1626_v44  ;;  %v1782_v18 = vsub.f32 1.5, %v1781_v35  ;;  %vm1775_vm5 = vweird.f32 %v2563_v47 }
 0x2e7   : > { %v1763_v32 = vmul.f32 %v2559_v42, %v1762_v26  ;;  %vm1776_vm7 = vmor %vm1774_vm6, %vm1775_vm5 }
 0x2e8   : > { %v1770_v24 = vmul.f32 %v2563_v47, %v1769_v5  ;;  %v1783_v1 = vmul.f32 %v2561_v0, %v1782_v18 }
 0x2e9   : > { %v1767_v17 = vsel %vm1766_vm1, %v2559_v42, %v1763_v32 }
 0x2ea   : > { %v1801_v59 = vmul.f32 %v1767_v17, %v1609_v58  ;;  %v1771_v10 = vmul.f32 0.5, %v1770_v24  ;;  %v1787_v49 = vsel %vm1786_vm4, %v2561_v0, %v1783_v1 }
 0x2eb   : > { %v1803_v56 = vmul.f32 %v1787_v49, %v1611_v51 }
 0x2ec   : > { %v1820_v43 = vmul.f32 %v3861_v60, %v1801_v59  ;;  %v1772_v30 = vsub.f32 1.5, %v1771_v10 }
 0x2ed   : > { %v1822_v63 = vmul.f32 %v3861_v60, %v1803_v56 }
 0x2ee   : > { %v1839_v39 = vadd.f32 %v3872_v14, %v1820_v43  ;;  %v1773_v9 = vmul.f32 %v2563_v47, %v1772_v30 }
 0x2ef   : > { %v1841_v55 = vadd.f32 %v3872_v14, %v1822_v63 }
 0x2f0   : > { %1855 = vst.msk [vmem:[#allocation2 + $0x68] sm:$0xff] %vm453_vm0, %v1839_v39  ;;  %v1777_v37 = vsel %vm1776_vm7, %v2563_v47, %v1773_v9 }
 0x2f1   : > { %v1802_v4 = vmul.f32 %v1777_v37, %v1610_v23  ;;  %1857 = vst.msk [vmem:[#allocation2 + $0x78] sm:$0xff] %vm453_vm0, %v1841_v55 }
 0x2f3   : > { %v1821_v54 = vmul.f32 %v3861_v60, %v1802_v4 }
 0x2f5   : > { %v1840_v45 = vadd.f32 %v3872_v14, %v1821_v54 }
 0x2f7   : > { %1856 = vst.msk [vmem:[#allocation2 + $0x70] sm:$0xff] %vm453_vm0, %v1840_v45 }
 0x2f8 LB: >> { %s1864_s15 = sld [smem:[#allocation9 + %s2707_s7]]  ;;  %s4086_s12 = sshll.u32 %s2707_s7, 7  ;;  %v1866_v14 = vld [vmem:[#allocation2] sm:$0xff]  ;;  %v1873_v29 = vld [vmem:[#allocation2 + $0x8] sm:$0xff]  ;;  %v1880_v48 = vld [vmem:[#allocation2 + $0x10] sm:$0xff]  ;;  %s2707_s7 = sphi %s4079_s7, %s1863_s7  }
 0x2f9   : >> { %s1868_s19 = sld [smem:[#allocation8 + %s4086_s12]]  ;;  %s1874_s27 = sadd.s32 1, %s4086_s12  ;;  %v1887_v13 = vld [vmem:[#allocation2 + $0x18] sm:$0xff]  ;;  %v1894_v38 = vld [vmem:[#allocation2 + $0x20] sm:$0xff]  ;;  %v1901_v52 = vld [vmem:[#allocation2 + $0x28] sm:$0xff] }
 0x2fa   : >> { %s1875_s16 = sld [smem:[#allocation8 + %s1874_s27]]  ;;  %s1881_s30 = sadd.s32 2, %s4086_s12  ;;  %v1908_v47 = vld [vmem:[#allocation2 + $0x30] sm:$0xff]  ;;  %v1915_v32 = vld [vmem:[#allocation2 + $0x38] sm:$0xff]  ;;  %v1922_v17 = vld [vmem:[#allocation2 + $0x40] sm:$0xff] }
 0x2fb   : >> { %s1882_s13 = sld [smem:[#allocation8 + %s1881_s30]]  ;;  %s1888_s8 = sadd.s32 3, %s4086_s12  ;;  %v1929_v51 = vld [vmem:[#allocation2 + $0x48] sm:$0xff]  ;;  %v1936_v56 = vld [vmem:[#allocation2 + $0x50] sm:$0xff]  ;;  %v1943_v63 = vld [vmem:[#allocation2 + $0x58] sm:$0xff] }
 0x2fc   : >> { %s1889_s20 = sld [smem:[#allocation8 + %s1888_s8]]  ;;  %s1895_s23 = sadd.s32 4, %s4086_s12  ;;  %v1950_v54 = vld [vmem:[#allocation2 + $0x60] sm:$0xff] }
 0x2fd   : >> { %s4093_s28 = sld [smem:[#allocation8 + %s1895_s23]]  ;;  %s1902_s22 = sadd.s32 5, %s4086_s12 }
 0x2fe   : >> { %s4096_s26 = sld [smem:[#allocation8 + %s1902_s22]]  ;;  %s1909_s0 = sadd.s32 6, %s4086_s12  ;;  %v1865_v60 = vstv %s1864_s15 }
 0x2ff   : >> { %v1869_v6 = vstv %s1868_s19  ;;  %s4099_s27 = sld [smem:[#allocation8 + %s1909_s0]]  ;;  %s1916_s30 = sadd.s32 7, %s4086_s12 }
 0x300   : >> { %v1870_v19 = vmul.f32 %v1869_v6, %v1866_v14  ;;  %v1876_v36 = vstv %s1875_s16  ;;  %s1923_s8 = sadd.s32 8, %s4086_s12  ;;  %s4103_s23 = sld [smem:[#allocation8 + %s1916_s30]] }
 0x301   : >> { %v1877_v50 = vmul.f32 %v1876_v36, %v1873_v29  ;;  %v1883_v34 = vstv %s1882_s13  ;;  %s1930_s15 = sadd.s32 9, %s4086_s12  ;;  %s4107_s0 = sld [smem:[#allocation8 + %s1923_s8]]  ;;  %v1964_v36 = vld [vmem:[#allocation2 + $0x70] sm:$0xff] }
 0x302   : >> { %v1871_v20 = vadd.f32 %v1870_v19, %v1865_v60  ;;  %v1884_v44 = vmul.f32 %v1883_v34, %v1880_v48  ;;  %v1890_v42 = vstv %s1889_s20  ;;  %s1937_s19 = sadd.s32 10, %s4086_s12  ;;  %s4111_s16 = sld [smem:[#allocation8 + %s1930_s15]]  ;;  %v1957_v60 = vld [vmem:[#allocation2 + $0x68] sm:$0xff] }
 0x303   : >> { %v1897_v12 = vstv %s4093_s28  ;;  %v1891_v46 = vmul.f32 %v1890_v42, %v1887_v13  ;;  %s1944_s13 = sadd.s32 11, %s4086_s12  ;;  %s4115_s20 = sld [smem:[#allocation8 + %s1937_s19]] }
 0x304   : >> { %v1878_v0 = vadd.f32 %v1877_v50, %v1871_v20  ;;  %v1904_v40 = vstv %s4096_s26  ;;  %v1898_v28 = vmul.f32 %v1897_v12, %v1894_v38  ;;  %s1951_s28 = sadd.s32 12, %s4086_s12  ;;  %s1945_s22 = sld [smem:[#allocation8 + %s1944_s13]]  ;;  %v1971_v20 = vld [vmem:[#allocation2 + $0x78] sm:$0xff] }
 0x305   : >> { %v1911_v26 = vstv %s4099_s27  ;;  %v1905_v5 = vmul.f32 %v1904_v40, %v1901_v52  ;;  %s1958_s26 = sadd.s32 13, %s4086_s12  ;;  %s1952_s30 = sld [smem:[#allocation8 + %s1951_s28]] }
 0x306   : >> { %v1885_v15 = vadd.f32 %v1884_v44, %v1878_v0  ;;  %v1918_v58 = vstv %s4103_s23  ;;  %v1912_v24 = vmul.f32 %v1911_v26, %v1908_v47  ;;  %s1965_s27 = sadd.s32 14, %s4086_s12  ;;  %s1959_s8 = sld [smem:[#allocation8 + %s1958_s26]] }
 0x307   : >> { %v1925_v59 = vstv %s4107_s0  ;;  %v1919_v10 = vmul.f32 %v1918_v58, %v1915_v32  ;;  %s1972_s15 = sadd.s32 15, %s4086_s12  ;;  %s1966_s23 = sld [smem:[#allocation8 + %s1965_s27]] }
 0x308   : >> { %v1892_v35 = vadd.f32 %v1891_v46, %v1885_v15  ;;  %v1932_v43 = vstv %s4111_s16  ;;  %v1926_v30 = vmul.f32 %v1925_v59, %v1922_v17  ;;  %s1973_s19 = sld [smem:[#allocation8 + %s1972_s15]]  ;;  %s2359_s12 = sshll.u32 %s2707_s7, 3 }
 0x309   : >> { %v1939_v39 = vstv %s4115_s20  ;;  %v1933_v23 = vmul.f32 %v1932_v43, %v1929_v51  ;;  %s1978_s0 = scalar_lea.vmem [#allocation3], %s2359_s12  ;;  %s1863_s7 = sadd.s32 1, %s2707_s7  }
 0x30a   : >> { %v1899_v18 = vadd.f32 %v1898_v28, %v1892_v35  ;;  %v1946_v37 = vstv %s1945_s22  ;;  %v1940_v4 = vmul.f32 %v1939_v39, %v1936_v56  ;;  %p1860_p1 = scmp.ge.s32.totalorder %s1863_s7, 16  }
 0x30b   : >> { %v1953_v45 = vstv %s1952_s30  ;;  %v1947_v29 = vmul.f32 %v1946_v37, %v1943_v63  ;;  %v2015_v40 = vld [vmem:[%s4302_s9 + $0x18] sm:$0xff] (%p1860_p1)  ;;  %v2014_v15 = vld [vmem:[%s4302_s9 + $0x10] sm:$0xff] (%p1860_p1)  ;;  %v2013_v47 = vld [vmem:[%s4302_s9 + $0x8] sm:$0xff] (%p1860_p1)  ;;  %v4378_v35 = vmax.f32 (%p1860_p1), %v3589_v8, 0.0  ;;  %v4379_v58 = vmax.f32 (%p1860_p1), %v3603_v57, 0.0  ;;  %s2377_s15 = sshll.u32 (%p1860_p1), %s2801_s21, 3 }
 0x30c   : >> { %v1906_v1 = vadd.f32 %v1905_v5, %v1899_v18  ;;  %v1960_v6 = vstv %s1959_s8  ;;  %v1954_v19 = vmul.f32 %v1953_v45, %v1950_v54  ;;  %2080 = vmatpush.msra.mxu3 (%p1860_p1), %v2015_v40  ;;  %v2012_v26 = vld [vmem:[%s4302_s9] sm:$0xff] (%p1860_p1)  ;;  %v4380_v17 = vmax.f32 (%p1860_p1), %v3605_v21, 0.0  ;;  %s2192_s12 = scalar_lea.hbm (%p1860_p1), %s4304_s11, %s2377_s15  ;;  %s2182_s21 = scalar_lea.sflag (%p1860_p1), [#allocation6], %s2881_s14 }
 0x30d   : >> { %v1967_v50 = vstv %s1966_s23  ;;  %v1961_v13 = vmul.f32 %v1960_v6, %v1957_v60  ;;  %v4381_v8 = vmax.f32 (%p1860_p1), %v3619_v31, 0.0  ;;  %v4382_v43 = vmax.f32 (%p1860_p1), %v3614_v22, 0.0  ;;  %s2195_s16 = sshll.u32 (%p1860_p1), %s2192_s12, 4  ;;  %s2645_s26 = scalar_lea.hbm (%p1860_p1), %s4304_s11, 256  ;;  %s2196_s16 = int_to_ptr.hbm [resolvable:$true] %s2195_s16 }
 0x30e   : >> { %v1913_v49 = vadd.f32 %v1912_v24, %v1906_v1  ;;  %v1974_v44 = vstv %s1973_s19  ;;  %v1968_v38 = vmul.f32 %v1967_v50, %v1964_v36  ;;  %2081 = vmatpush.msra.mxu3 (%p1860_p1), %v2014_v15  ;;  %v4384_v39 = vmax.f32 (%p1860_p1), %v3658_v3, 0.0  ;;  %s2639_s13 = sshra.s32 (%p1860_p1), %s2196_s16, 4  ;;  %s2640_s13 = int_to_ptr.hbm [resolvable:$true] %s2639_s13 }
 0x30f   : >> { %v1975_v0 = vmul.f32 %v1974_v44, %v1971_v20  ;;  %v4386_v37 = vmax.f32 (%p1860_p1), %v3707_v33, 0.0  ;;  %v4388_v45 = vmax.f32 (%p1860_p1), %v3742_v62, 0.0  ;;  %v4390_v6 = vmax.f32 (%p1860_p1), %v3769_v41, 0.0  ;;  %s2641_s20 = scalar_lea.hbm (%p1860_p1), %s2640_s13, 128  ;;  %p2646_p2 = scmp.lt.s32.totalorder (%p1860_p1), %s2640_s13, %s4304_s11 }
 0x310   : >> { %v1920_v9 = vadd.f32 %v1919_v10, %v1913_v49  ;;  %2082 = vmatpush.msra.mxu3 (%p1860_p1), %v2013_v47  ;;  %v4392_v50 = vmax.f32 (%p1860_p1), %v3795_v61, 0.0  ;;  %v4393_v41 = vmax.f32 (%p1860_p1), %v3804_v25, 0.0  ;;  %p2642_p4 = scmp.ne.s32.totalorder (%p1860_p1), %s2640_s13, %s2641_s20  ;;  %p2647_p9 = scmp.lt.s32.totalorder (%p1860_p1), %s2645_s26, %s2641_s20 }
 0x312   : >> { %v1927_v55 = vadd.f32 %v1926_v30, %v1920_v9  ;;  %2083 = vmatpush.msra.mxu3 (%p1860_p1), %v2012_v26  ;;  %v4383_v30 = vmax.f32 (%p1860_p1), %v3662_v7, 0.0  ;;  %p2643_p8 = pnand (%p1860_p1), %p2642_p4, %p2849_p3  ;;  %p2648_p11 = por (%p1860_p1), %p2647_p9, %p2646_p2 }
 0x314   : >> { %v1934_v14 = vadd.f32 %v1933_v23, %v1927_v55  ;;  %v4385_v23 = vmax.f32 (%p1860_p1), %v3690_v11, 0.0  ;;  %p2644_p10 = pneg (%p1860_p1), %p2643_p8 }
 0x316   : >> { %v1941_v48 = vadd.f32 %v1940_v4, %v1934_v14  ;;  %v4387_v4 = vmax.f32 (%p1860_p1), %v3722_v27, 0.0  ;;  %p2649_p12 = pnand (%p1860_p1), %p2648_p11, %p2644_p10 }
 0x318   : >> { %v1948_v34 = vadd.f32 %v1947_v29, %v1941_v48  ;;  %v4389_v29 = vmax.f32 (%p1860_p1), %v3754_v16, 0.0 }
 0x31a   : >> { %v1955_v42 = vadd.f32 %v1954_v19, %v1948_v34  ;;  %v4391_v19 = vmax.f32 (%p1860_p1), %v3784_v53, 0.0  ;;  %v4193_v53 = vld [vmem:[%s4303_s10] ss:$0 sm:$0xff] (%p1860_p1) }
 0x31c   : >> { %v1962_v12 = vadd.f32 %v1961_v13, %v1955_v42 }
 0x31e   : >> { %v1969_v46 = vadd.f32 %v1968_v38, %v1962_v12  ;;  %1862 = sbr.rel (!%p1860_p1) target bundleno = 760 (0x2f8), region = 141 }
 0x320   : >> { %v1976_v52 = vadd.f32 %v1975_v0, %v1969_v46  ;;  %v4394_v0 = vld [vmem:[#allocation21_spill] sm:$0xff] (%p1860_p1) }
 0x322   : >> { %1979 = vst.msk [vmem:[%s1978_s0] sm:$0xff] %vm453_vm0, %v1976_v52  ;;  %s2193_s0 = sshll.u32 (%p1860_p1), %s4077_s25, 4  ;;  %s2194_s0 = int_to_ptr.vmem [resolvable:$true] %s2193_s0 }
 0x329   : > { %v1980_v28 = vld [vmem:[#allocation3] sm:$0xff]  ;;  %v1981_v32 = vld [vmem:[#allocation3 + $0x8] sm:$0xff]  ;;  %v1982_v24 = vld [vmem:[#allocation3 + $0x10] sm:$0xff] }
 0x32a   : > { %v1996_v5 = vmul.f32 %v1980_v28, %v4378_v35  ;;  %v1997_v18 = vmul.f32 %v1981_v32, %v4379_v58  ;;  %v1998_v59 = vmul.f32 %v1982_v24, %v4380_v17  ;;  %v1983_v1 = vld [vmem:[#allocation3 + $0x18] sm:$0xff]  ;;  %v1984_v51 = vld [vmem:[#allocation3 + $0x20] sm:$0xff]  ;;  %v1985_v57 = vld [vmem:[#allocation3 + $0x28] sm:$0xff] }
 0x32b   : > { %v1999_v10 = vmul.f32 %v1983_v1, %v4381_v8  ;;  %v2000_v49 = vmul.f32 %v1984_v51, %v4382_v43  ;;  %v2001_v56 = vmul.f32 %v1985_v57, %v4383_v30  ;;  %v1986_v21 = vld [vmem:[#allocation3 + $0x30] sm:$0xff]  ;;  %v1987_v31 = vld [vmem:[#allocation3 + $0x38] sm:$0xff]  ;;  %v1988_v22 = vld [vmem:[#allocation3 + $0x40] sm:$0xff] }
 0x32c   : > { %2360 = vmatmul.msk.f32.vlgmr.msra.gmra.mxu3 %vm453_vm0, %v1996_v5  ;;  %v2002_v9 = vmul.f32 %v1986_v21, %v4384_v39  ;;  %v2003_v63 = vmul.f32 %v1987_v31, %v4385_v23  ;;  %v2004_v55 = vmul.f32 %v1988_v22, %v4386_v37  ;;  %v1989_v7 = vld [vmem:[#allocation3 + $0x48] sm:$0xff]  ;;  %v1990_v3 = vld [vmem:[#allocation3 + $0x50] sm:$0xff]  ;;  %v1991_v11 = vld [vmem:[#allocation3 + $0x58] sm:$0xff] }
 0x32d   : > { %v2005_v54 = vmul.f32 %v1989_v7, %v4387_v4  ;;  %v2006_v14 = vmul.f32 %v1990_v3, %v4388_v45  ;;  %v2007_v60 = vmul.f32 %v1991_v11, %v4389_v29  ;;  %v1992_v33 = vld [vmem:[#allocation3 + $0x60] sm:$0xff]  ;;  %v1993_v27 = vld [vmem:[#allocation3 + $0x68] sm:$0xff]  ;;  %v1994_v36 = vld [vmem:[#allocation3 + $0x70] sm:$0xff] }
 0x32e   : > { %v2008_v48 = vmul.f32 %v1992_v33, %v4390_v6  ;;  %v2009_v62 = vmul.f32 %v1993_v27, %v4391_v19  ;;  %v2010_v16 = vmul.f32 %v1994_v36, %v4392_v50  ;;  %v1995_v34 = vld [vmem:[#allocation3 + $0x78] sm:$0xff]  ;;  %v4395_v28 = vld [vmem:[#allocation20_spill] sm:$0xff]  ;;  %v4396_v5 = vld [vmem:[#allocation22_spill] sm:$0xff] }
 0x32f   : > { %v2011_v13 = vmul.f32 %v1995_v34, %v4393_v41  ;;  %v4397_v17 = vld [vmem:[#allocation23_spill] sm:$0xff]  ;;  %v4398_v51 = vld [vmem:[#allocation24_spill] sm:$0xff]  ;;  %v4400_v23 = vld [vmem:[#allocation26_spill] sm:$0xff] }
 0x330   : > { %v4401_v7 = vld [vmem:[#allocation27_spill] sm:$0xff]  ;;  %v4403_v6 = vld [vmem:[#allocation29_spill] sm:$0xff]  ;;  %v4404_v36 = vld [vmem:[#allocation30_spill] sm:$0xff] }
 0x334   : > { %2361 = vmatmul.msk.f32.gmra.mxu3 %vm453_vm0, %v1997_v18 }
 0x33c   : > { %2362 = vmatmul.msk.f32.gmra.mxu3 %vm453_vm0, %v1998_v59 }
 0x344   : > { %2363 = vmatmul.msk.f32.gmra.mxu3 %vm453_vm0, %v1999_v10 }
 0x34c   : > { %2364 = vmatmul.msk.f32.gmra.mxu3 %vm453_vm0, %v2000_v49 }
 0x354   : > { %2365 = vmatmul.msk.f32.gmra.mxu3 %vm453_vm0, %v2001_v56  ;;  %v4399_v56 = vld [vmem:[#allocation25_spill] sm:$0xff] }
 0x35c   : > { %2366 = vmatmul.msk.f32.gmra.mxu3 %vm453_vm0, %v2002_v9 }
 0x364   : > { %2367 = vmatmul.msk.f32.gmra.mxu3 %vm453_vm0, %v2003_v63 }
 0x36c   : > { %2368 = vmatmul.msk.f32.gmra.mxu3 %vm453_vm0, %v2004_v55 }
 0x374   : > { %2369 = vmatmul.msk.f32.gmra.mxu3 %vm453_vm0, %v2005_v54 }
 0x37c   : > { %2370 = vmatmul.msk.f32.gmra.mxu3 %vm453_vm0, %v2006_v14  ;;  %v4402_v14 = vld [vmem:[#allocation28_spill] sm:$0xff] }
 0x384   : > { %2371 = vmatmul.msk.f32.gmra.mxu3 %vm453_vm0, %v2007_v60 }
 0x38c   : > { %2372 = vmatmul.msk.f32.gmra.mxu3 %vm453_vm0, %v2008_v48 }
 0x394   : > { %2373 = vmatmul.msk.f32.gmra.mxu3 %vm453_vm0, %v2009_v62 }
 0x39c   : > { %2374 = vmatmul.msk.f32.gmra.mxu3 %vm453_vm0, %v2010_v16 }
 0x3a4   : > { %2375 = vmatmul.msk.f32.gmra.mxu3 %vm453_vm0, %v2011_v13  ;;  %v4405_v13 = vld [vmem:[#allocation31_spill] sm:$0xff] }
 0x3af   : > { %v2085_v20 = vpop.f32.mrf.mxu3 }
 0x3b0   : > { %v2086_v44 = vadd.f32 %v4193_v53, %v2085_v20 }
 0x3b2   : > { %v2133_v61 = vmax.f32 %v2086_v44, 0.0 }
 0x3b4   : > { %v2149_v42 = vadd.f32 %v2133_v61, %v2908_v2 }
 0x3b6   : > { %2165 = vst.msk [vmem:[%s4077_s25] sm:$0xff] %vm453_vm0, %v2149_v42 }
 0x3b7   : > { %v2088_v38 = vpop.f32.mrf.mxu3 }
 0x3b8   : > { %v2089_v25 = vadd.f32 %v4193_v53, %v2088_v38  ;;  %v4406_v38 = vld [vmem:[#allocation32_spill] sm:$0xff] }
 0x3ba   : > { %v2134_v12 = vmax.f32 %v2089_v25, 0.0 }
 0x3bc   : > { %v2150_v46 = vadd.f32 %v2134_v12, %v4394_v0 }
 0x3be   : > { %2166 = vst.msk [vmem:[%s4077_s25 + $0x8] sm:$0xff] %vm453_vm0, %v2150_v46 }
 0x3bf   : > { %v2091_v52 = vpop.f32.mrf.mxu3 }
 0x3c0   : > { %v2092_v40 = vadd.f32 %v4193_v53, %v2091_v52  ;;  %v4407_v52 = vld [vmem:[#allocation33_spill] sm:$0xff] }
 0x3c2   : > { %v2135_v15 = vmax.f32 %v2092_v40, 0.0 }
 0x3c4   : > { %v2151_v47 = vadd.f32 %v2135_v15, %v4395_v28 }
 0x3c6   : > { %2167 = vst.msk [vmem:[%s4077_s25 + $0x10] sm:$0xff] %vm453_vm0, %v2151_v47 }
 0x3c7   : > { %v2094_v2 = vpop.f32.mrf.mxu3 }
 0x3c8   : > { %v2095_v26 = vadd.f32 %v4193_v53, %v2094_v2  ;;  %v4408_v2 = vld [vmem:[#allocation34_spill] sm:$0xff] }
 0x3ca   : > { %v2136_v35 = vmax.f32 %v2095_v26, 0.0 }
 0x3cc   : > { %v2152_v32 = vadd.f32 %v2136_v35, %v4396_v5 }
 0x3ce   : > { %2168 = vst.msk [vmem:[%s4077_s25 + $0x18] sm:$0xff] %vm453_vm0, %v2152_v32 }
 0x3cf   : > { %v2097_v58 = vpop.f32.mrf.mxu3 }
 0x3d0   : > { %v2098_v18 = vadd.f32 %v4193_v53, %v2097_v58 }
 0x3d2   : > { %v2137_v24 = vmax.f32 %v2098_v18, 0.0 }
 0x3d4   : > { %v2153_v59 = vadd.f32 %v2137_v24, %v4397_v17 }
 0x3d6   : > { %2169 = vst.msk [vmem:[%s4077_s25 + $0x20] sm:$0xff] %vm453_vm0, %v2153_v59 }
 0x3d7   : > { %v2100_v1 = vpop.f32.mrf.mxu3 }
 0x3d8   : > { %v2101_v8 = vadd.f32 %v4193_v53, %v2100_v1 }
 0x3da   : > { %v2138_v10 = vmax.f32 %v2101_v8, 0.0 }
 0x3dc   : > { %v2154_v43 = vadd.f32 %v2138_v10, %v4398_v51 }
 0x3de   : > { %2170 = vst.msk [vmem:[%s4077_s25 + $0x28] sm:$0xff] %vm453_vm0, %v2154_v43 }
 0x3df   : > { %v2103_v49 = vpop.f32.mrf.mxu3 }
 0x3e0   : > { %v2104_v57 = vadd.f32 %v4193_v53, %v2103_v49 }
 0x3e2   : > { %v2139_v30 = vmax.f32 %v2104_v57, 0.0 }
 0x3e4   : > { %v2155_v21 = vadd.f32 %v2139_v30, %v4399_v56 }
 0x3e6   : > { %2171 = vst.msk [vmem:[%s4077_s25 + $0x30] sm:$0xff] %vm453_vm0, %v2155_v21 }
 0x3e7   : > { %v2106_v39 = vpop.f32.mrf.mxu3 }
 0x3e8   : > { %v2107_v9 = vadd.f32 %v4193_v53, %v2106_v39 }
 0x3ea   : > { %v2140_v31 = vmax.f32 %v2107_v9, 0.0 }
 0x3ec   : > { %v2156_v63 = vadd.f32 %v2140_v31, %v4400_v23 }
 0x3ee   : > { %2172 = vst.msk [vmem:[%s4077_s25 + $0x38] sm:$0xff] %vm453_vm0, %v2156_v63 }
 0x3ef   : > { %v2109_v22 = vpop.f32.mrf.mxu3 }
 0x3f0   : > { %v2110_v37 = vadd.f32 %v4193_v53, %v2109_v22 }
 0x3f2   : > { %v2141_v55 = vmax.f32 %v2110_v37, 0.0 }
 0x3f4   : > { %v2157_v4 = vadd.f32 %v2141_v55, %v4401_v7 }
 0x3f6   : > { %2173 = vst.msk [vmem:[%s4077_s25 + $0x40] sm:$0xff] %vm453_vm0, %v2157_v4 }
 0x3f7   : > { %v2112_v54 = vpop.f32.mrf.mxu3 }
 0x3f8   : > { %v2113_v3 = vadd.f32 %v4193_v53, %v2112_v54 }
 0x3fa   : > { %v2142_v45 = vmax.f32 %v2113_v3, 0.0 }
 0x3fc   : > { %v2158_v11 = vadd.f32 %v2142_v45, %v4402_v14 }
 0x3fe   : > { %2174 = vst.msk [vmem:[%s4077_s25 + $0x48] sm:$0xff] %vm453_vm0, %v2158_v11 }
 0x3ff   : > { %v2115_v29 = vpop.f32.mrf.mxu3 }
 0x400   : > { %v2116_v60 = vadd.f32 %v4193_v53, %v2115_v29 }
 0x402   : > { %v2143_v33 = vmax.f32 %v2116_v60, 0.0 }
 0x404   : > { %v2159_v48 = vadd.f32 %v2143_v33, %v4403_v6 }
 0x406   : > { %2175 = vst.msk [vmem:[%s4077_s25 + $0x50] sm:$0xff] %vm453_vm0, %v2159_v48 }
 0x407   : > { %v2118_v27 = vpop.f32.mrf.mxu3 }
 0x408   : > { %v2119_v19 = vadd.f32 %v4193_v53, %v2118_v27 }
 0x40a   : > { %v2144_v62 = vmax.f32 %v2119_v19, 0.0 }
 0x40c   : > { %v2160_v50 = vadd.f32 %v2144_v62, %v4404_v36 }
 0x40e   : > { %2176 = vst.msk [vmem:[%s4077_s25 + $0x58] sm:$0xff] %vm453_vm0, %v2160_v50 }
 0x40f   : > { %v2121_v16 = vpop.f32.mrf.mxu3 }
 0x410   : > { %v2122_v34 = vadd.f32 %v4193_v53, %v2121_v16 }
 0x412   : > { %v2145_v41 = vmax.f32 %v2122_v34, 0.0 }
 0x414   : > { %v2161_v20 = vadd.f32 %v2145_v41, %v4405_v13 }
 0x416   : > { %2177 = vst.msk [vmem:[%s4077_s25 + $0x60] sm:$0xff] %vm453_vm0, %v2161_v20 }
 0x417   : > { %v2124_v44 = vpop.f32.mrf.mxu3 }
 0x418   : > { %v2125_v61 = vadd.f32 %v4193_v53, %v2124_v44 }
 0x41a   : > { %v2146_v42 = vmax.f32 %v2125_v61, 0.0 }
 0x41c   : > { %v2162_v25 = vadd.f32 %v2146_v42, %v4406_v38 }
 0x41e   : > { %2178 = vst.msk [vmem:[%s4077_s25 + $0x68] sm:$0xff] %vm453_vm0, %v2162_v25 }
 0x41f   : > { %v2127_v12 = vpop.f32.mrf.mxu3 }
 0x420   : > { %v2128_v0 = vadd.f32 %v4193_v53, %v2127_v12 }
 0x422   : > { %v2147_v46 = vmax.f32 %v2128_v0, 0.0 }
 0x424   : > { %v2163_v40 = vadd.f32 %v2147_v46, %v4407_v52 }
 0x426   : > { %2179 = vst.msk [vmem:[%s4077_s25 + $0x70] sm:$0xff] %vm453_vm0, %v2163_v40 }
 0x427   : > { %v2130_v15 = vpop.f32.mrf.mxu3 }
 0x428   : > { %v2131_v28 = vadd.f32 %v4193_v53, %v2130_v15 }
 0x42a   : > { %v2148_v47 = vmax.f32 %v2131_v28, 0.0 }
 0x42c   : > { %v2164_v26 = vadd.f32 %v2148_v47, %v4408_v2 }
 0x42e   : > { %2180 = vst.msk [vmem:[%s4077_s25 + $0x78] sm:$0xff] %vm453_vm0, %v2164_v26 }
 0x42f   : > { %2652 = shalt.err (!%p2649_p12)
}
 0x430   : > { %s2717_s14 = smov 128   ;;  %s2718_s25 = smov 256  }
 0x431   : > { %s2719_s7 = smov 8  }
 0x432   : > { %2390 = dma.vmem_to_hbm [thread:$0]  (%p2849_p3), %s2194_s0, 2048, %s2196_s16, %s2182_s21, %s2717_s14, %s2718_s25, %s2719_s7  }
 0x433 PF: > { %s4409_s8 = sld [smem:[#allocation17_spill]]  ;;  %s2210_s15 = sand.u32 1, %s2691_s17  }
 0x434   : > { %s2211_s23 = scalar_lea.sflag [#allocation6], %s2210_s15 }
 0x439   : > { %p4410_p13 = scmp.ge.s32.totalorder %s4409_s8, 2 }
 0x43b   : > { %p2404_p0 = pnand %p4410_p13, %p2815_p6 }
 0x43d   : > { %p2405_p5 = pneg %p2404_p0 }
 0x43f   : > { %2686 = dma.done.wait (%p2405_p5), %s2211_s23, 2048  }
 0x440   : > { %2688 = vsyncadd (%p2405_p5), %s2211_s23, 4294965248  ;;  %s4411_s20 = sld [smem:[#allocation18_spill]]  ;;  %s4414_s17 = smov %s2695_s18 }
 0x441   : > { %s4412_s19 = sld [smem:[#allocation16_spill]] }
 0x442   : > { %s4413_s12 = sld [smem:[#allocation19_spill]] }
 0x446   : > { %p26_p7 = scmp.ge.s32.totalorder %s4411_s20, 4  }
 0x447   : > { %s4415_s18 = smov %s4412_s19 }
 0x448   : > { %s4416_s19 = smov %s4413_s12  ;;  %28 = sbr.rel (!%p26_p7) target bundleno = 11 (0xb), region = 152 }
 0x44d   :  { %2217 = vsyncpa [#allocation5], 1 }
 0x44e   :  { %2219 = vsyncpa [#allocation5 + $0x1], 1 }
 0x44f   :  { %2220 = vsyncpa [#allocation6], 1 }
 0x450   :  { %2222 = vsyncpa [#allocation6 + $0x1], 1 }
 0x451   :  { %2223 = vsyncpa [#allocation7], 1 }
 0x452   :  { %2225 = vsyncpa [#allocation7 + $0x1], 1 }
 0x453   :  { %2226 = vsyncpa [#allocation10], 1 }

// kernel: tpu_custom_call.1
= control target key start
LH: loop header
LB: loop body
LE: loop exit
PB: predicated region body
PF: predicated region fallthrough
CT: control target
= control target key end

     0   :  { %s4576_s0 = inlined_call_operand.hbm [shape: f32[16,16,32], index: 0, kind: input, shape index: {}]   ;;  %s4577_s1 = inlined_call_operand.hbm [shape: f32[1,32], index: 1, kind: input, shape index: {}]   ;;  %s4578_s2 = inlined_call_operand.hbm [shape: f32[1,32], index: 2, kind: input, shape index: {}]   ;;  %s4579_s3 = inlined_call_operand.hbm [shape: f32[32,384], index: 3, kind: input, shape index: {}]   ;;  %s4580_s4 = inlined_call_operand.vmem [shape: f32[1,384], index: 4, kind: input, shape index: {}]   ;;  %s4581_s5 = inlined_call_operand.vmem [shape: f32[1,32], index: 5, kind: input, shape index: {}]   ;;  %s4582_s6 = inlined_call_operand.vmem [shape: f32[1,32], index: 6, kind: input, shape index: {}]   ;;  %s4583_s7 = inlined_call_operand.hbm [shape: f32[16,16], index: 7, kind: input, shape index: {}]   ;;  %s4584_s8 = inlined_call_operand.vmem [shape: f32[16], index: 8, kind: input, shape index: {}]   ;;  %s4585_s9 = inlined_call_operand.hbm [shape: f32[32,32], index: 9, kind: input, shape index: {}]   ;;  %s4586_s10 = inlined_call_operand.vmem [shape: f32[1,32], index: 10, kind: input, shape index: {}]   ;;  %s4587_s11 = inlined_call_operand.hbm [shape: f32[16,16,32], index: 11, kind: output, shape index: {}]  }
   0x1   :  { %4605 = sst [smem:[#allocation40_spill]] %s4576_s0 }
   0x2   :  { %4606 = sst [smem:[#allocation41_spill]] %s4577_s1 }
   0x3   :  { %4607 = sst [smem:[#allocation42_spill]] %s4578_s2 }
   0x4   :  { %4608 = sst [smem:[#allocation43_spill]] %s4579_s3 }
   0x5   :  { %4609 = sst [smem:[#allocation44_spill]] %s4583_s7 }
   0x6   :  { %4610 = sst [smem:[#allocation45_spill]] %s4584_s8 }
   0x7   :  { %4611 = sst [smem:[#allocation46_spill]] %s4585_s9 }
   0x8   :  { %16 = vsyncpa [#allocation5], 0 }
   0x9   :  { %18 = vsyncpa [#allocation5 + $0x1], 0 }
   0xa   :  { %19 = vsyncpa [#allocation10], 0 }
   0xb   :  { %20 = vsyncpa [#allocation13], 0 }
   0xc   :  { %21 = vsyncpa [#allocation7], 0 }
   0xd   :  { %22 = vsyncpa [#allocation8], 0 }
   0xe   :  { %23 = vsyncpa [#allocation6], 0 }
   0xf   :  { %25 = vsyncpa [#allocation6 + $0x1], 0  ;;  %s3070_s17 = smov 0   ;;  %s3072_s18 = smov 0  }
  0x10   :  { %s3074_s19 = smov 0   ;;  %s3076_s20 = smov 0  }
  0x11 LB: > { %s4612_s1 = sld [smem:[#allocation41_spill]]  ;;  %s3094_s24 = sadd.s32 4294967295, %s2987_s20   ;;  %s2987_s20 = sphi %s3076_s20, %s4698_s20   ;;  %s2983_s19 = sphi %s3074_s19, %s4697_s19   ;;  %s2979_s18 = sphi %s3072_s18, %s4696_s18   ;;  %s2975_s17 = sphi %s3070_s17, %s4695_s17  }
  0x12   : > { %p2401_p0 = scmp.ge.s32.totalorder %s2987_s20, 1  ;;  %p52_p1 = scmp.eq.s32.totalorder %s3094_s24, 0 }
  0x13   : > { %p298_p2 = scmp.lt.s32.totalorder %s2987_s20, 3  ;;  %s2993_s26 = smov [#allocation9]  }
  0x14   : > { %s312_s27 = sshll.u32 %s2993_s26, 4  ;;  %s4614_s3 = sld [smem:[#allocation43_spill]]  ;;  %s313_s27 = int_to_ptr.vmem [resolvable:$true] %s312_s27 }
  0x15   : > { %p3099_p3 = pnand %p2401_p0, %p298_p2  ;;  %s2994_s13 = smov [#allocation12]  }
  0x16   : > { %s335_s14 = sshll.u32 %s2994_s13, 4  ;;  %s2995_s15 = smov 384   ;;  %s336_s14 = int_to_ptr.vmem [resolvable:$true] %s335_s14 }
  0x17   : > { %s310_s23 = sshll.u32 %s4612_s1, 4  ;;  %p2518_p5 = pneg %p3099_p3  ;;  %s311_s23 = int_to_ptr.hbm [resolvable:$true] %s310_s23 }
  0x18   : > { %s2996_s16 = smov 24   ;;  %s4616_s2 = sld [smem:[#allocation42_spill]] }
  0x19   : > { %p3111_p6 = pnand %p2518_p5, %p52_p1  ;;  %s2997_s28 = smov [#allocation11]  }
  0x1a   : > { %s333_s30 = sshll.u32 %s4614_s3, 4  ;;  %s324_s29 = sshll.u32 %s2997_s28, 4  ;;  %s334_s30 = int_to_ptr.hbm [resolvable:$true] %s333_s30  ;;  %s325_s29 = int_to_ptr.vmem [resolvable:$true] %s324_s29 }
  0x1b   : > { %2521 = dma.hbm_to_vmem [thread:$0]  (!%p3111_p6), %s311_s23, 16, %s313_s27, [#allocation10]  }
  0x1c   : > { %2527 = dma.hbm_to_vmem [thread:$0]  (!%p3111_p6), %s334_s30, 1536, %s336_s14, [#allocation13], %s2995_s15, %s2995_s15, %s2996_s16  }
  0x1d   : > { %s4617_s7 = sld [smem:[#allocation44_spill]]  ;;  %s2998_s23 = smov [#allocation14]  }
  0x1e   : > { %s322_s26 = sshll.u32 %s4616_s2, 4  ;;  %s4588_s27 = smov 128   ;;  %s323_s26 = int_to_ptr.hbm [resolvable:$true] %s322_s26 }
  0x1f   : > { %2524 = dma.hbm_to_vmem [thread:$0]  (!%p3111_p6), %s323_s26, 16, %s325_s29, [#allocation10]  }
  0x20   : > { %s4589_s30 = smov 8   ;;  %s4618_s8 = sld [smem:[#allocation45_spill]] }
  0x21   : > { %s4619_s9 = sld [smem:[#allocation46_spill]]  ;;  %s3001_s22 = smov [#allocation15]  }
  0x22   : > { %s3002_s26 = smov [#allocation16]   ;;  %s2400_s29 = sadd.s32 4294967294, %s2987_s20  }
  0x23   : > { %s356_s13 = sshll.u32 %s4617_s7, 4  ;;  %s380_s28 = sshll.u32 %s3002_s26, 4  ;;  %s357_s13 = int_to_ptr.hbm [resolvable:$true] %s356_s13  ;;  %s381_s28 = int_to_ptr.vmem [resolvable:$true] %s380_s28 }
  0x24   : > { %2530 = dma.hbm_to_smem (!%p3111_p6), %s357_s13, 256, %s2998_s23, [#allocation7], %s4588_s27, %s4588_s27, %s4589_s30  }
  0x25   : > { %s3147_s13 = sadd.s32 1, %s2987_s20   ;;  %s38_s14 = sadd.s32 1, %s2983_s19 }
  0x26   : > { %s369_s1 = sshll.u32 %s4618_s8, 4  ;;  %s35_s23 = ssub.s32 %s2987_s20, %s3147_s13  ;;  %s370_s1 = int_to_ptr.vmem [resolvable:$true] %s369_s1 }
  0x27   : > { %s378_s21 = sshll.u32 %s4619_s9, 4  ;;  %p36_p7 = scmp.eq.s32.totalorder %s35_s23, 0  ;;  %s379_s21 = int_to_ptr.hbm [resolvable:$true] %s378_s21 }
  0x28   : > { %2533 = dma.vmem_to_smem (!%p3111_p6), %s370_s1, 16, %s3001_s22, [#allocation8]  }
  0x29   : > { %2536 = dma.hbm_to_vmem [thread:$0]  (!%p3111_p6), %s379_s21, 512, %s381_s28, [#allocation13], %s4588_s27, %s4588_s27, %s4589_s30  }
  0x2a   : > { %p45_p8 = scmp.ne.s32.totalorder %s2983_s19, %s2979_s18  ;;  %p46_p9 = scmp.eq.s32.totalorder %s2987_s20, 0 }
  0x2b   : > { %p51_p10 = scmp.ne.s32.totalorder %s2979_s18, %s2975_s17  ;;  %p285_p13 = scmp.eq.s32.totalorder %s3094_s24, 1 }
  0x2c   : > { %s3158_s15 = scalar_select %p36_p7, %s2983_s19, %s38_s14  }
  0x2d   : > { %p3160_p11 = por %p46_p9, %p45_p8  ;;  %p3166_p12 = por %p52_p1, %p51_p10 }
  0x2e   : > { %p291_p0 = scmp.eq.s32.totalorder %s2400_s29, 1  ;;  %p2551_p2 = scmp.lt.s32.totalorder %s2987_s20, 2 }
  0x2f   : > { %s397_s3 = sand.u32 1, %s2983_s19   ;;  %p3173_p5 = por %p285_p13, %p45_p8 }
  0x30   : > { %p3177_p6 = por %p291_p0, %p51_p10  ;;  %s2409_s22 = sshll.u32 %s397_s3, 7 }
  0x31   : > { %s2410_s26 = sshll.u32 %s2987_s20, 3  ;;  %s4624_s0 = sld [smem:[#allocation40_spill]] }
  0x32   : > { %s401_s27 = scalar_lea.vmem [#allocation4], %s2409_s22  ;;  %p3187_p7 = pnand %p2551_p2, %p3160_p11 }
  0x33   : > { %s408_s30 = sshll.u32 %s401_s27, 4  ;;  %s398_s7 = scalar_lea.sflag [#allocation5], %s397_s3  ;;  %s409_s30 = int_to_ptr.vmem [resolvable:$true] %s408_s30 }
  0x34   : > { %p2871_p9 = pneg %p3187_p7 }
  0x37   : > { %s405_s14 = scalar_lea.hbm %s4624_s0, %s2410_s26  ;;  %s2874_s26 = scalar_lea.hbm %s4624_s0, 256 }
  0x38   : > { %s406_s2 = sshll.u32 %s405_s14, 4  ;;  %s407_s2 = int_to_ptr.hbm [resolvable:$true] %s406_s2 }
  0x39   : > { %s2867_s8 = sshra.s32 %s407_s2, 4  ;;  %s2868_s8 = int_to_ptr.hbm [resolvable:$true] %s2867_s8 }
  0x3a   : > { %s2869_s9 = scalar_lea.hbm %s2868_s8, 128  ;;  %p2875_p11 = scmp.lt.s32.totalorder %s2868_s8, %s4624_s0 }
  0x3b   : > { %p2870_p8 = scmp.ne.s32.totalorder %s2868_s8, %s2869_s9  ;;  %p2876_p0 = scmp.lt.s32.totalorder %s2874_s26, %s2869_s9 }
  0x3d   : > { %p2872_p10 = pnand %p2871_p9, %p2870_p8  ;;  %p2877_p2 = por %p2876_p0, %p2875_p11 }
  0x3f   : > { %p2873_p13 = pneg %p2872_p10 }
  0x41   : > { %p2878_p4 = pnand %p2877_p2, %p2873_p13 }
  0x43   : > { %2881 = shalt.err (!%p2878_p4)
}
  0x44   : > { %s3003_s3 = smov 256   ;;  %s4626_s23 = smov 8  }
  0x45   : > { %s4627_s14 = smov 128   ;;  %420 = sbr.rel (%p3099_p3) target bundleno = 1098 (0x44a), region = 64 }
  0x46   : > { %2540 = dma.hbm_to_vmem [thread:$0]  (!%p3187_p7), %s407_s2, 2048, %s409_s30, %s398_s7, %s3003_s3, %s4627_s14, %s4626_s23  }
  0x4a   : > { %s3206_s22 = sand.u32 1, %s2979_s18  }
  0x4b   : > { %s2412_s8 = sshll.u32 %s3206_s22, 7  ;;  %s423_s9 = scalar_lea.sflag [#allocation5], %s3206_s22 }
  0x4c   : > { %s3212_s27 = scalar_lea.vmem [#allocation4], %s2412_s8 }
  0x4d   : > { %2946 = dma.done.wait (%p3166_p12), %s423_s9, 2048  }
  0x4e   : > { %2948 = vsyncadd (%p3166_p12), %s423_s9, 4294965248 }
  0x4f   : > { %2950 = dma.done.wait (%p52_p1), [#allocation10], 32  }
  0x50   : > { %2952 = vsyncadd (%p52_p1), [#allocation10], 4294967264 }
  0x51   : > { %2954 = dma.done.wait (%p52_p1), [#allocation13], 1536  }
  0x52   : > { %2956 = vsyncadd (%p52_p1), [#allocation13], 4294965760 }
  0x53   : > { %2958 = dma.done.wait (%p52_p1), [#allocation7], 256  }
  0x54   : > { %2960 = vsyncadd (%p52_p1), [#allocation7], 4294967040 }
  0x55   : > { %2962 = dma.done.wait (%p52_p1), [#allocation8], 16  }
  0x56   : > { %2964 = vsyncadd (%p52_p1), [#allocation8], 4294967280 }
  0x57   : > { %2966 = dma.done.wait (%p52_p1), [#allocation13], 512  }
  0x58   : > { %2968 = vsyncadd (%p52_p1), [#allocation13], 4294966784 }
  0x59   : > { %462 = sfence }
  0x5a   : > { %v3239_v0 = vld [vmem:[%s3212_s27 + $0x10] sm:$0xff]  ;;  %vm515_vm0 = vcmask 261120   ;;  %v3242_v1 = vld [vmem:[%s3212_s27 + $0x8] sm:$0xff]  ;;  %v3245_v2 = vld [vmem:[%s3212_s27] sm:$0xff]  ;;  %s4372_s26 = scalar_lea.vmem [#allocation17], %s2412_s8  ;;  %s4374_s28 = smov 0  }
  0x5b   : > { %4628 = vst [vmem:[#allocation25_spill] sm:$0xff] %v3239_v0  ;;  %v522_v3 = vsel %vm515_vm0, %v3239_v0, 0.0  ;;  %v519_v4 = vsel %vm515_vm0, %v3242_v1, 0.0  ;;  %v516_v5 = vsel %vm515_vm0, %v3245_v2, 0.0  ;;  %v589_v6 = vmul.f32 %v3239_v0, %v3239_v0  ;;  %v3263_v12 = vld [vmem:[%s3212_s27 + $0x18] sm:$0xff]  ;;  %v3268_v14 = vld [vmem:[%s3212_s27 + $0x20] sm:$0xff] }
  0x5c   : > { %4629 = vst [vmem:[#allocation26_spill] sm:$0xff] %v3242_v1  ;;  %523 = vadd.xlane.f32.xlu2 %v522_v3  ;;  %520 = vadd.xlane.f32.xlu1 %v519_v4  ;;  %v588_v7 = vmul.f32 %v3242_v1, %v3242_v1  ;;  %v587_v8 = vmul.f32 %v3245_v2, %v3245_v2  ;;  %v528_v16 = vsel %vm515_vm0, %v3268_v14, 0.0  ;;  %v525_v17 = vsel %vm515_vm0, %v3263_v12, 0.0  ;;  %v3276_v18 = vld [vmem:[%s3212_s27 + $0x28] sm:$0xff]  ;;  %v3287_v24 = vld [vmem:[%s3212_s27 + $0x30] sm:$0xff]  ;;  %v3292_v26 = vld [vmem:[%s3212_s27 + $0x38] sm:$0xff] }
  0x5d   : > { %517 = vadd.xlane.f32.xlu0 %v516_v5  ;;  %v609_v9 = vsel %vm515_vm0, %v589_v6, 0.0  ;;  %4630 = vst [vmem:[#allocation27_spill] sm:$0xff] %v3263_v12  ;;  %v590_v13 = vmul.f32 %v3263_v12, %v3263_v12  ;;  %v592_v19 = vmul.f32 %v3276_v18, %v3276_v18  ;;  %v591_v20 = vmul.f32 %v3268_v14, %v3268_v14  ;;  %v3300_v30 = vld [vmem:[%s3212_s27 + $0x40] sm:$0xff]  ;;  %v3311_v36 = vld [vmem:[%s3212_s27 + $0x48] sm:$0xff]  ;;  %v3316_v38 = vld [vmem:[%s3212_s27 + $0x50] sm:$0xff] }
  0x5e   : > { %v606_v10 = vsel %vm515_vm0, %v588_v7, 0.0  ;;  %v603_v11 = vsel %vm515_vm0, %v587_v8, 0.0  ;;  %4631 = vst [vmem:[#allocation28_spill] sm:$0xff] %v3268_v14  ;;  %v531_v21 = vsel %vm515_vm0, %v3276_v18, 0.0  ;;  %v593_v25 = vmul.f32 %v3287_v24, %v3287_v24  ;;  %v3324_v42 = vld [vmem:[%s3212_s27 + $0x58] sm:$0xff]  ;;  %v3335_v48 = vld [vmem:[%s3212_s27 + $0x60] sm:$0xff] }
  0x5f   : > { %v612_v15 = vsel %vm515_vm0, %v590_v13, 0.0  ;;  %4632 = vst [vmem:[#allocation29_spill] sm:$0xff] %v3276_v18  ;;  %v618_v22 = vsel %vm515_vm0, %v592_v19, 0.0  ;;  %v615_v23 = vsel %vm515_vm0, %v591_v20, 0.0  ;;  %v537_v28 = vsel %vm515_vm0, %v3292_v26, 0.0  ;;  %v3340_v50 = vld [vmem:[%s3212_s27 + $0x68] sm:$0xff] }
  0x60   : > { %4633 = vst [vmem:[#allocation30_spill] sm:$0xff] %v3287_v24  ;;  %v621_v27 = vsel %vm515_vm0, %v593_v25, 0.0  ;;  %v534_v29 = vsel %vm515_vm0, %v3287_v24, 0.0  ;;  %v595_v31 = vmul.f32 %v3300_v30, %v3300_v30  ;;  %v594_v32 = vmul.f32 %v3292_v26, %v3292_v26  ;;  %v3348_v54 = vld [vmem:[%s3212_s27 + $0x70] sm:$0xff]  ;;  %v3359_v60 = vld [vmem:[%s3212_s27 + $0x78] sm:$0xff] }
  0x61   : > { %4634 = vst [vmem:[#allocation31_spill] sm:$0xff] %v3292_v26  ;;  %v540_v33 = vsel %vm515_vm0, %v3300_v30, 0.0  ;;  %v596_v37 = vmul.f32 %v3311_v36, %v3311_v36  ;;  %v546_v40 = vsel %vm515_vm0, %v3316_v38, 0.0  ;;  %v543_v41 = vsel %vm515_vm0, %v3311_v36, 0.0  ;;  %v971_v19 = vld [vmem:[#allocation12 + $0x50] sm:$0xff]  ;;  %v972_v20 = vld [vmem:[#allocation12 + $0x58] sm:$0xff] }
  0x62   : > { %4635 = vst [vmem:[#allocation32_spill] sm:$0xff] %v3300_v30  ;;  %v627_v34 = vsel %vm515_vm0, %v595_v31, 0.0  ;;  %v624_v35 = vsel %vm515_vm0, %v594_v32, 0.0  ;;  %v598_v43 = vmul.f32 %v3324_v42, %v3324_v42  ;;  %v597_v44 = vmul.f32 %v3316_v38, %v3316_v38  ;;  %1106 = vmatpush.msra.mxu1 %v971_v19  ;;  %1171 = vmatpush.msra.mxu2 %v972_v20  ;;  %v965_v31 = vld [vmem:[#allocation12 + $0x20] sm:$0xff]  ;;  %v966_v32 = vld [vmem:[#allocation12 + $0x28] sm:$0xff] }
  0x63   : > { %4636 = vst [vmem:[#allocation33_spill] sm:$0xff] %v3311_v36  ;;  %v630_v39 = vsel %vm515_vm0, %v596_v37, 0.0  ;;  %v549_v45 = vsel %vm515_vm0, %v3324_v42, 0.0  ;;  %v599_v49 = vmul.f32 %v3335_v48, %v3335_v48  ;;  %v555_v52 = vsel %vm515_vm0, %v3340_v50, 0.0 }
  0x64   : > { %610 = vadd.xlane.f32.xlu2 %v609_v9  ;;  %607 = vadd.xlane.f32.xlu1 %v606_v10  ;;  %4637 = vst [vmem:[#allocation34_spill] sm:$0xff] %v3316_v38  ;;  %v636_v46 = vsel %vm515_vm0, %v598_v43, 0.0  ;;  %v633_v47 = vsel %vm515_vm0, %v597_v44, 0.0  ;;  %v552_v53 = vsel %vm515_vm0, %v3335_v48, 0.0  ;;  %v601_v55 = vmul.f32 %v3348_v54, %v3348_v54  ;;  %v963_v43 = vld [vmem:[#allocation12 + $0x10] sm:$0xff] }
  0x65   : > { %604 = vadd.xlane.f32.xlu0 %v603_v11  ;;  %4638 = vst [vmem:[#allocation35_spill] sm:$0xff] %v3324_v42  ;;  %v639_v51 = vsel %vm515_vm0, %v599_v49, 0.0  ;;  %v600_v56 = vmul.f32 %v3340_v50, %v3340_v50  ;;  %v558_v57 = vsel %vm515_vm0, %v3348_v54, 0.0  ;;  %v602_v61 = vmul.f32 %v3359_v60, %v3359_v60 }
  0x66   : > { %4639 = vst [vmem:[#allocation36_spill] sm:$0xff] %v3335_v48  ;;  %v645_v58 = vsel %vm515_vm0, %v601_v55, 0.0  ;;  %v561_v63 = vsel %vm515_vm0, %v3359_v60, 0.0  ;;  %v3004_v3 = vmov 32.0  }
  0x67   : > { %4640 = vst [vmem:[#allocation37_spill] sm:$0xff] %v3340_v50  ;;  %v642_v59 = vsel %vm515_vm0, %v600_v56, 0.0  ;;  %v648_v62 = vsel %vm515_vm0, %v602_v61, 0.0  ;;  %2650 = vrcp.f32 %v3004_v3 }
  0x68   : > { %4641 = vst [vmem:[#allocation38_spill] sm:$0xff] %v3348_v54 }
  0x69   : > { %4642 = vst [vmem:[#allocation39_spill] sm:$0xff] %v3359_v60 }
  0x6c   : > { %613 = vadd.xlane.f32.xlu1 %v612_v15  ;;  %529 = vadd.xlane.f32.xlu2 %v528_v16 }
  0x6d   : > { %526 = vadd.xlane.f32.xlu0 %v525_v17  ;;  %v2651_v4 = vpop.eup %2650  ;;  %v970_v17 = vld [vmem:[#allocation12 + $0x48] sm:$0xff] }
  0x6e   : > { %v565_v5 = vmul.f32 32.0, %v2651_v4  ;;  %vm569_vm1 = vweird.f32 %v2651_v4  ;;  %1041 = vmatpush.msra.mxu0 %v970_v17 }
  0x70   : > { %v566_v6 = vsub.f32 1.0, %v565_v5 }
  0x72   : > { %v567_v7 = vmul.f32 %v2651_v4, %v566_v6 }
  0x74   : > { %532 = vadd.xlane.f32.xlu1 %v531_v21  ;;  %619 = vadd.xlane.f32.xlu2 %v618_v22  ;;  %v568_v8 = vadd.f32 %v2651_v4, %v567_v7  ;;  %v967_v21 = vld [vmem:[#allocation12 + $0x30] sm:$0xff]  ;;  %v968_v22 = vld [vmem:[#allocation12 + $0x38] sm:$0xff] }
  0x75   : > { %616 = vadd.xlane.f32.xlu0 %v615_v23  ;;  %v969_v23 = vld [vmem:[#allocation12 + $0x40] sm:$0xff]  ;;  %1042 = vmatpush.msra.mxu0 %v967_v21 }
  0x76   : > { %v3366_v13 = vsel %vm569_vm1, %v2651_v4, %v568_v8  ;;  %1107 = vmatpush.msra.mxu1 %v968_v22  ;;  %1172 = vmatpush.msra.mxu2 %v969_v23 }
  0x78   : > { %1108 = vmatpush.msra.mxu1 %v965_v31  ;;  %1173 = vmatpush.msra.mxu2 %v966_v32 }
  0x7a   : > { %1174 = vmatpush.msra.mxu2 %v963_v43 }
  0x7c   : > { %622 = vadd.xlane.f32.xlu1 %v621_v27  ;;  %538 = vadd.xlane.f32.xlu2 %v537_v28 }
  0x7d   : > { %535 = vadd.xlane.f32.xlu0 %v534_v29  ;;  %v964_v29 = vld [vmem:[#allocation12 + $0x18] sm:$0xff] }
  0x7e   : > { %1043 = vmatpush.msra.mxu0 %v964_v29 }
  0x84   : > { %541 = vadd.xlane.f32.xlu1 %v540_v33  ;;  %628 = vadd.xlane.f32.xlu2 %v627_v34 }
  0x85   : > { %625 = vadd.xlane.f32.xlu0 %v624_v35 }
  0x8c   : > { %631 = vadd.xlane.f32.xlu1 %v630_v39  ;;  %547 = vadd.xlane.f32.xlu2 %v546_v40  ;;  %v961_v40 = vld [vmem:[#allocation12] sm:$0xff] }
  0x8d   : > { %544 = vadd.xlane.f32.xlu0 %v543_v41  ;;  %v962_v41 = vld [vmem:[#allocation12 + $0x8] sm:$0xff]  ;;  %1044 = vmatpush.msra.mxu0 %v961_v40 }
  0x8e   : > { %1109 = vmatpush.msra.mxu1 %v962_v41 }
  0x94   : > { %550 = vadd.xlane.f32.xlu1 %v549_v45  ;;  %637 = vadd.xlane.f32.xlu2 %v636_v46 }
  0x95   : > { %634 = vadd.xlane.f32.xlu0 %v633_v47 }
  0x9c   : > { %640 = vadd.xlane.f32.xlu1 %v639_v51  ;;  %556 = vadd.xlane.f32.xlu2 %v555_v52 }
  0x9d   : > { %553 = vadd.xlane.f32.xlu0 %v552_v53 }
  0xa4   : > { %559 = vadd.xlane.f32.xlu1 %v558_v57  ;;  %646 = vadd.xlane.f32.xlu2 %v645_v58 }
  0xa5   : > { %643 = vadd.xlane.f32.xlu0 %v642_v59 }
  0xac   : > { %649 = vadd.xlane.f32.xlu1 %v648_v62 }
  0xad   : > { %562 = vadd.xlane.f32.xlu0 %v561_v63 }
  0xcf   : > { %v524_v9 = vpop.xlane.xlu2 %523  ;;  %v521_v10 = vpop.xlane.xlu1 %520 }
  0xd0   : > { %v518_v11 = vpop.xlane.xlu0 %517  ;;  %v3369_v15 = vmul.f32 %v3366_v13, %v524_v9  ;;  %v3372_v16 = vmul.f32 %v3366_v13, %v521_v10 }
  0xd1   : > { %v3375_v25 = vmul.f32 %v3366_v13, %v518_v11 }
  0xd2   : > { %v669_v27 = vmul.f32 %v3369_v15, %v3369_v15  ;;  %v668_v28 = vmul.f32 %v3372_v16, %v3372_v16 }
  0xd3   : > { %v667_v44 = vmul.f32 %v3375_v25, %v3375_v25 }
  0xd7   : > { %v611_v33 = vpop.xlane.xlu2 %610  ;;  %v608_v34 = vpop.xlane.xlu1 %607 }
  0xd8   : > { %v653_v35 = vmul.f32 %v611_v33, %v3366_v13  ;;  %v652_v37 = vmul.f32 %v608_v34, %v3366_v13  ;;  %v605_v39 = vpop.xlane.xlu0 %604 }
  0xd9   : > { %v651_v45 = vmul.f32 %v605_v39, %v3366_v13 }
  0xda   : > { %v685_v46 = vsub.f32 %v653_v35, %v669_v27  ;;  %v684_v47 = vsub.f32 %v652_v37, %v668_v28 }
  0xdb   : > { %v683_v49 = vsub.f32 %v651_v45, %v667_v44 }
  0xdc   : > { %v701_v51 = vmax.f32 %v685_v46, 0.0  ;;  %v700_v52 = vmax.f32 %v684_v47, 0.0 }
  0xdd   : > { %v699_v53 = vmax.f32 %v683_v49, 0.0 }
  0xde   : > { %v3386_v55 = vadd.f32 1e-05, %v701_v51  ;;  %v3388_v56 = vadd.f32 1e-05, %v700_v52 }
  0xdf   : > { %v731_v57 = vadd.f32 1e-05, %v699_v53  ;;  %v614_v58 = vpop.xlane.xlu1 %613  ;;  %v530_v59 = vpop.xlane.xlu2 %529 }
  0xe0   : > { %2652 = vrsqrt.f32 %v3386_v55  ;;  %v527_v61 = vpop.xlane.xlu0 %526  ;;  %v654_v62 = vmul.f32 %v614_v58, %v3366_v13  ;;  %v3399_v4 = vmul.f32 %v3366_v13, %v530_v59  ;;  %vm763_vm6 = vweird.f32 %v3388_v56 }
  0xe1   : > { %2654 = vrsqrt.f32 %v3388_v56  ;;  %v3394_v63 = vmul.f32 %v3366_v13, %v527_v61  ;;  %vm753_vm3 = vweird.f32 %v731_v57  ;;  %vm773_vm8 = vweird.f32 %v3386_v55 }
  0xe2   : > { %2656 = vrsqrt.f32 %v731_v57  ;;  %v671_v19 = vmul.f32 %v3399_v4, %v3399_v4 }
  0xe3   : > { %v670_v3 = vmul.f32 %v3394_v63, %v3394_v63 }
  0xe5   : > { %v686_v5 = vsub.f32 %v654_v62, %v670_v3  ;;  %v715_v3 = vsub.f32 %v3245_v2, %v3375_v25 }
  0xe6   : > { %v3401_v6 = vpop.eup %2652 }
  0xe7   : > { %v3403_v7 = vpop.eup %2654  ;;  %v702_v8 = vmax.f32 %v686_v5, 0.0  ;;  %v533_v9 = vpop.xlane.xlu1 %532  ;;  %v768_v23 = vmul.f32 %v3401_v6, %v3386_v55  ;;  %vm774_vm9 = vweird.f32 %v3401_v6  ;;  %v717_v55 = vsub.f32 %v3239_v0, %v3369_v15 }
  0xe8   : > { %v620_v10 = vpop.xlane.xlu2 %619  ;;  %v2657_v11 = vpop.eup %2656  ;;  %v758_v17 = vmul.f32 %v3403_v7, %v3388_v56  ;;  %v3410_v20 = vmul.f32 %v3366_v13, %v533_v9  ;;  %vm764_vm4 = vweird.f32 %v3403_v7  ;;  %v3441_v9 = vld [vmem:[#allocation9] ss:$0 sm:$0xff]  ;;  %vm3481_vm10 = vmor %vm773_vm8, %vm774_vm9 }
  0xe9   : > { %v617_v21 = vpop.xlane.xlu0 %616  ;;  %v656_v22 = vmul.f32 %v620_v10, %v3366_v13  ;;  %v748_v27 = vmul.f32 %v2657_v11, %v731_v57  ;;  %v3415_v28 = vadd.f32 1e-05, %v702_v8  ;;  %v769_v39 = vmul.f32 %v3401_v6, %v768_v23  ;;  %vm3449_vm7 = vmor %vm763_vm6, %vm764_vm4 }
  0xea   : > { %v759_v29 = vmul.f32 %v3403_v7, %v758_v17  ;;  %v672_v31 = vmul.f32 %v3410_v20, %v3410_v20  ;;  %v655_v32 = vmul.f32 %v617_v21, %v3366_v13  ;;  %vm754_vm2 = vweird.f32 %v2657_v11 }
  0xeb   : > { %v749_v33 = vmul.f32 %v2657_v11, %v748_v27  ;;  %2658 = vrsqrt.f32 %v3415_v28  ;;  %v770_v52 = vmul.f32 0.5, %v769_v39  ;;  %vm755_vm5 = vmor %vm753_vm3, %vm754_vm2  ;;  %v3454_v27 = vld [vmem:[#allocation11] ss:$0 sm:$0xff]  ;;  %vm783_vm11 = vweird.f32 %v3415_v28 }
  0xec   : > { %v760_v34 = vmul.f32 0.5, %v759_v29  ;;  %v687_v35 = vsub.f32 %v655_v32, %v671_v19  ;;  %v688_v37 = vsub.f32 %v656_v22, %v672_v31  ;;  %v716_v31 = vsub.f32 %v3242_v1, %v3372_v16 }
  0xed   : > { %v750_v40 = vmul.f32 0.5, %v749_v33  ;;  %v771_v17 = vsub.f32 1.5, %v770_v52 }
  0xee   : > { %v703_v41 = vmax.f32 %v687_v35, 0.0  ;;  %v761_v43 = vsub.f32 1.5, %v760_v34  ;;  %v704_v47 = vmax.f32 %v688_v37, 0.0 }
  0xef   : > { %v751_v44 = vsub.f32 1.5, %v750_v40  ;;  %v623_v45 = vpop.xlane.xlu1 %622  ;;  %v772_v33 = vmul.f32 %v3401_v6, %v771_v17 }
  0xf0   : > { %v3423_v46 = vadd.f32 1e-05, %v703_v41  ;;  %v657_v59 = vmul.f32 %v623_v45, %v3366_v13  ;;  %v539_v62 = vpop.xlane.xlu2 %538  ;;  %v762_v5 = vmul.f32 %v3403_v7, %v761_v43  ;;  %v3444_v57 = vadd.f32 1e-05, %v704_v47 }
  0xf1   : > { %v536_v49 = vpop.xlane.xlu0 %535  ;;  %v3425_v51 = vpop.eup %2658  ;;  %v752_v53 = vmul.f32 %v2657_v11, %v751_v44  ;;  %v3447_v25 = vmul.f32 %v3366_v13, %v539_v62 }
  0xf2   : > { %v3428_v58 = vmul.f32 %v3366_v13, %v536_v49  ;;  %v778_v61 = vmul.f32 %v3425_v51, %v3415_v28  ;;  %2660 = vrsqrt.f32 %v3423_v46  ;;  %v766_v56 = vsel %vm3449_vm7, %v3403_v7, %v762_v5 }
  0xf3   : > { %v756_v10 = vsel %vm755_vm5, %v2657_v11, %v752_v53  ;;  %2662 = vrsqrt.f32 %v3444_v57  ;;  %v674_v35 = vmul.f32 %v3447_v25, %v3447_v25  ;;  %v908_v16 = vmul.f32 %v766_v56, %v716_v31 }
  0xf4   : > { %v673_v8 = vmul.f32 %v3428_v58, %v3428_v58  ;;  %v907_v21 = vmul.f32 %v756_v10, %v715_v3  ;;  %v779_v23 = vmul.f32 %v3425_v51, %v778_v61  ;;  %v776_v61 = vsel %vm3481_vm10, %v3401_v6, %v772_v33 }
  0xf5   : > { %vm784_vm12 = vweird.f32 %v3425_v51  ;;  %v909_v6 = vmul.f32 %v776_v61, %v717_v55  ;;  %vm793_vm14 = vweird.f32 %v3423_v46  ;;  %vm803_vm2 = vweird.f32 %v3444_v57 }
  0xf6   : > { %v689_v19 = vsub.f32 %v657_v59, %v673_v8  ;;  %v926_v29 = vmul.f32 %v3441_v9, %v907_v21  ;;  %v780_v7 = vmul.f32 0.5, %v779_v23  ;;  %v927_v59 = vmul.f32 %v3441_v9, %v908_v16  ;;  %vm3507_vm13 = vmor %vm783_vm11, %vm784_vm12 }
  0xf7   : > { %v542_v37 = vpop.xlane.xlu1 %541 }
  0xf8   : > { %v3460_v11 = vpop.eup %2660  ;;  %v705_v34 = vmax.f32 %v689_v19, 0.0  ;;  %v945_v40 = vadd.f32 %v3454_v27, %v926_v29  ;;  %v3477_v43 = vmul.f32 %v3366_v13, %v542_v37  ;;  %v629_v47 = vpop.xlane.xlu2 %628  ;;  %v781_v52 = vsub.f32 1.5, %v780_v7 }
  0xf9   : > { %v626_v32 = vpop.xlane.xlu0 %625  ;;  %v788_v41 = vmul.f32 %v3460_v11, %v3423_v46  ;;  %v3488_v49 = vpop.eup %2662  ;;  %v659_v5 = vmul.f32 %v629_v47, %v3366_v13  ;;  %v946_v17 = vadd.f32 %v3454_v27, %v927_v59  ;;  %v928_v29 = vmul.f32 %v3441_v9, %v909_v6 }
  0xfa   : > { %v658_v39 = vmul.f32 %v626_v32, %v3366_v13  ;;  %2420 = vmatmul.msk.f32.vlgmr.msra.gmra.mxu0 %vm515_vm0, %v945_v40  ;;  %2436 = vmatmul.msk.f32.vlgmr.msra.gmra.mxu1 %vm515_vm0, %v945_v40  ;;  %v3485_v45 = vadd.f32 1e-05, %v705_v34  ;;  %v675_v3 = vmul.f32 %v3477_v43, %v3477_v43  ;;  %v798_v8 = vmul.f32 %v3488_v49, %v3444_v57 }
  0xfb   : > { %2452 = vmatmul.msk.f32.vlgmr.msra.gmra.mxu2 %vm515_vm0, %v945_v40  ;;  %v789_v62 = vmul.f32 %v3460_v11, %v788_v41  ;;  %v782_v10 = vmul.f32 %v3425_v51, %v781_v52  ;;  %v718_v34 = vsub.f32 %v3263_v12, %v3394_v63  ;;  %vm794_vm15 = vweird.f32 %v3460_v11 }
  0xfc   : > { %v690_v53 = vsub.f32 %v658_v39, %v674_v35  ;;  %2664 = vrsqrt.f32 %v3485_v45  ;;  %v691_v22 = vsub.f32 %v659_v5, %v675_v3  ;;  %v799_v23 = vmul.f32 %v3488_v49, %v798_v8  ;;  %vm3538_vm1 = vmor %vm793_vm14, %vm794_vm15 }
  0xfd   : > { %v790_v19 = vmul.f32 0.5, %v789_v62  ;;  %v786_v56 = vsel %vm3507_vm13, %v3425_v51, %v782_v10  ;;  %v947_v51 = vadd.f32 %v3454_v27, %v928_v29  ;;  %vm804_vm3 = vweird.f32 %v3488_v49 }
  0xfe   : > { %v706_v15 = vmax.f32 %v690_v53, 0.0  ;;  %v707_v7 = vmax.f32 %v691_v22, 0.0  ;;  %v910_v39 = vmul.f32 %v786_v56, %v718_v34  ;;  %v800_v40 = vmul.f32 0.5, %v799_v23  ;;  %vm3566_vm4 = vmor %vm803_vm2, %vm804_vm3 }
  0xff   : > { %v791_v35 = vsub.f32 1.5, %v790_v19  ;;  %v632_v37 = vpop.xlane.xlu1 %631  ;;  %v719_v6 = vsub.f32 %v3268_v14, %v3399_v4  ;;  %vm813_vm5 = vweird.f32 %v3485_v45  ;;  %v4167_v14 = vld [vmem:[%s4582_s6] ss:$0 sm:$0xff] }
 0x100   : > { %v3519_v31 = vadd.f32 1e-05, %v706_v15  ;;  %v660_v63 = vmul.f32 %v632_v37, %v3366_v13  ;;  %v548_v44 = vpop.xlane.xlu2 %547  ;;  %v3542_v52 = vadd.f32 1e-05, %v707_v7  ;;  %v801_v53 = vsub.f32 1.5, %v800_v40 }
 0x101   : > { %v545_v21 = vpop.xlane.xlu0 %544  ;;  %v792_v46 = vmul.f32 %v3460_v11, %v791_v35  ;;  %v3548_v59 = vmul.f32 %v3366_v13, %v548_v44  ;;  %v929_v61 = vmul.f32 %v3441_v9, %v910_v39  ;;  %v720_v40 = vsub.f32 %v3276_v18, %v3410_v20 }
 0x102   : > { %2421 = vmatmul.msk.f32.gmra.mxu0 %vm515_vm0, %v946_v17  ;;  %2437 = vmatmul.msk.f32.gmra.mxu1 %vm515_vm0, %v946_v17  ;;  %v3522_v32 = vmul.f32 %v3366_v13, %v545_v21  ;;  %v3524_v33 = vpop.eup %2664  ;;  %2666 = vrsqrt.f32 %v3519_v31  ;;  %v802_v10 = vmul.f32 %v3488_v49, %v801_v53  ;;  %vm823_vm8 = vweird.f32 %v3519_v31 }
 0x103   : > { %2453 = vmatmul.msk.f32.gmra.mxu2 %vm515_vm0, %v946_v17  ;;  %v808_v16 = vmul.f32 %v3524_v33, %v3485_v45  ;;  %v796_v5 = vsel %vm3538_vm1, %v3460_v11, %v792_v46  ;;  %2668 = vrsqrt.f32 %v3542_v52  ;;  %v677_v15 = vmul.f32 %v3548_v59, %v3548_v59 }
 0x104   : > { %v676_v41 = vmul.f32 %v3522_v32, %v3522_v32  ;;  %v948_v57 = vadd.f32 %v3454_v27, %v929_v61  ;;  %v911_v22 = vmul.f32 %v796_v5, %v719_v6  ;;  %v806_v29 = vsel %vm3566_vm4, %v3488_v49, %v802_v10 }
 0x105   : > { %v809_v55 = vmul.f32 %v3524_v33, %v808_v16  ;;  %vm814_vm6 = vweird.f32 %v3524_v33  ;;  %v721_v10 = vsub.f32 %v3287_v24, %v3428_v58  ;;  %vm833_vm11 = vweird.f32 %v3542_v52 }
 0x106   : > { %v692_v62 = vsub.f32 %v660_v63, %v676_v41  ;;  %v930_v39 = vmul.f32 %v3441_v9, %v911_v22  ;;  %v912_v63 = vmul.f32 %v806_v29, %v720_v40  ;;  %vm3600_vm7 = vmor %vm813_vm5, %vm814_vm6 }
 0x107   : > { %v810_v28 = vmul.f32 0.5, %v809_v55  ;;  %v551_v21 = vpop.xlane.xlu1 %550 }
 0x108   : > { %v3557_v8 = vpop.eup %2666  ;;  %v708_v11 = vmax.f32 %v692_v62, 0.0  ;;  %v3577_v23 = vmul.f32 %v3366_v13, %v551_v21  ;;  %v638_v7 = vpop.xlane.xlu2 %637  ;;  %v949_v46 = vadd.f32 %v3454_v27, %v930_v39  ;;  %v931_v5 = vmul.f32 %v3441_v9, %v912_v63 }
 0x109   : > { %v635_v3 = vpop.xlane.xlu0 %634  ;;  %v818_v4 = vmul.f32 %v3557_v8, %v3519_v31  ;;  %v3582_v56 = vpop.eup %2668  ;;  %v811_v34 = vsub.f32 1.5, %v810_v28  ;;  %v662_v41 = vmul.f32 %v638_v7, %v3366_v13  ;;  %vm824_vm9 = vweird.f32 %v3557_v8 }
 0x10a   : > { %2422 = vmatmul.msk.f32.gmra.mxu0 %vm515_vm0, %v947_v51  ;;  %2438 = vmatmul.msk.f32.gmra.mxu1 %vm515_vm0, %v947_v51  ;;  %v661_v19 = vmul.f32 %v635_v3, %v3366_v13  ;;  %v3584_v35 = vadd.f32 1e-05, %v708_v11  ;;  %v828_v49 = vmul.f32 %v3582_v56, %v3542_v52  ;;  %v678_v16 = vmul.f32 %v3577_v23, %v3577_v23  ;;  %vm3631_vm10 = vmor %vm823_vm8, %vm824_vm9 }
 0x10b   : > { %2454 = vmatmul.msk.f32.gmra.mxu2 %vm515_vm0, %v947_v51  ;;  %v819_v51 = vmul.f32 %v3557_v8, %v818_v4  ;;  %v812_v44 = vmul.f32 %v3524_v33, %v811_v34  ;;  %v950_v58 = vadd.f32 %v3454_v27, %v931_v5  ;;  %v722_v39 = vsub.f32 %v3292_v26, %v3447_v25 }
 0x10c   : > { %v693_v37 = vsub.f32 %v661_v19, %v677_v15  ;;  %2670 = vrsqrt.f32 %v3584_v35  ;;  %v829_v61 = vmul.f32 %v3582_v56, %v828_v49  ;;  %v694_v55 = vsub.f32 %v662_v41, %v678_v16 }
 0x10d   : > { %v820_v47 = vmul.f32 0.5, %v819_v51  ;;  %v816_v6 = vsel %vm3600_vm7, %v3524_v33, %v812_v44  ;;  %vm834_vm12 = vweird.f32 %v3582_v56  ;;  %vm843_vm14 = vweird.f32 %v3584_v35 }
 0x10e   : > { %v709_v20 = vmax.f32 %v693_v37, 0.0  ;;  %v830_v28 = vmul.f32 0.5, %v829_v61  ;;  %v710_v11 = vmax.f32 %v694_v55, 0.0  ;;  %v913_v19 = vmul.f32 %v816_v6, %v721_v10  ;;  %vm3660_vm13 = vmor %vm833_vm11, %vm834_vm12 }
 0x10f   : > { %v821_v15 = vsub.f32 1.5, %v820_v47  ;;  %v723_v55 = vsub.f32 %v3300_v30, %v3477_v43 }
 0x110   : > { %v3608_v62 = vadd.f32 1e-05, %v709_v20  ;;  %v557_v22 = vpop.xlane.xlu2 %556  ;;  %v831_v34 = vsub.f32 1.5, %v830_v28  ;;  %v3637_v37 = vadd.f32 1e-05, %v710_v11  ;;  %v932_v51 = vmul.f32 %v3441_v9, %v913_v19 }
 0x111   : > { %v554_v53 = vpop.xlane.xlu0 %553  ;;  %v822_v4 = vmul.f32 %v3557_v8, %v821_v15  ;;  %v3641_v7 = vmul.f32 %v3366_v13, %v557_v22 }
 0x112   : > { %2423 = vmatmul.msk.f32.gmra.mxu0 %vm515_vm0, %v948_v57  ;;  %2439 = vmatmul.msk.f32.gmra.mxu1 %vm515_vm0, %v948_v57  ;;  %v3611_v3 = vmul.f32 %v3366_v13, %v554_v53  ;;  %v3619_v17 = vpop.eup %2670  ;;  %2672 = vrsqrt.f32 %v3608_v62  ;;  %v832_v44 = vmul.f32 %v3582_v56, %v831_v34  ;;  %v951_v45 = vadd.f32 %v3454_v27, %v932_v51 }
 0x113   : > { %2455 = vmatmul.msk.f32.gmra.mxu2 %vm515_vm0, %v948_v57  ;;  %v641_v57 = vpop.xlane.xlu1 %640  ;;  %v838_v31 = vmul.f32 %v3619_v17, %v3584_v35  ;;  %v826_v41 = vsel %vm3631_vm10, %v3557_v8, %v822_v4  ;;  %2674 = vrsqrt.f32 %v3637_v37  ;;  %v680_v25 = vmul.f32 %v3641_v7, %v3641_v7 }
 0x114   : > { %v679_v21 = vmul.f32 %v3611_v3, %v3611_v3  ;;  %v663_v33 = vmul.f32 %v641_v57, %v3366_v13  ;;  %v914_v8 = vmul.f32 %v826_v41, %v722_v39  ;;  %v836_v28 = vsel %vm3660_vm13, %v3582_v56, %v832_v44 }
 0x115   : > { %v839_v49 = vmul.f32 %v3619_v17, %v838_v31  ;;  %vm844_vm15 = vweird.f32 %v3619_v17  ;;  %v724_v51 = vsub.f32 %v3311_v36, %v3522_v32  ;;  %vm853_vm2 = vweird.f32 %v3608_v62 }
 0x116   : > { %v695_v40 = vsub.f32 %v663_v33, %v679_v21  ;;  %v933_v57 = vmul.f32 %v3441_v9, %v914_v8  ;;  %vm3693_vm1 = vmor %vm843_vm14, %vm844_vm15  ;;  %vm863_vm5 = vweird.f32 %v3637_v37 }
 0x117   : > { %v840_v52 = vmul.f32 0.5, %v839_v49 }
 0x118   : > { %v3650_v63 = vpop.eup %2672  ;;  %v711_v20 = vmax.f32 %v695_v40, 0.0  ;;  %v647_v15 = vpop.xlane.xlu2 %646  ;;  %v952_v56 = vadd.f32 %v3454_v27, %v933_v57 }
 0x119   : > { %v644_v16 = vpop.xlane.xlu0 %643  ;;  %v848_v61 = vmul.f32 %v3650_v63, %v3608_v62  ;;  %v3680_v11 = vpop.eup %2674  ;;  %v841_v19 = vsub.f32 1.5, %v840_v52  ;;  %v665_v33 = vmul.f32 %v647_v15, %v3366_v13  ;;  %vm854_vm3 = vweird.f32 %v3650_v63 }
 0x11a   : > { %2424 = vmatmul.msk.f32.gmra.mxu0 %vm515_vm0, %v949_v46  ;;  %2440 = vmatmul.msk.f32.gmra.mxu1 %vm515_vm0, %v949_v46  ;;  %v3674_v6 = vadd.f32 1e-05, %v711_v20  ;;  %v858_v29 = vmul.f32 %v3680_v11, %v3637_v37  ;;  %vm3724_vm4 = vmor %vm853_vm2, %vm854_vm3  ;;  %vm864_vm6 = vweird.f32 %v3680_v11  ;;  %v726_v37 = vsub.f32 %v3324_v42, %v3577_v23 }
 0x11b   : > { %2456 = vmatmul.msk.f32.gmra.mxu2 %vm515_vm0, %v949_v46  ;;  %v664_v46 = vmul.f32 %v644_v16, %v3366_v13  ;;  %v560_v47 = vpop.xlane.xlu1 %559  ;;  %v849_v43 = vmul.f32 %v3650_v63, %v848_v61  ;;  %v842_v4 = vmul.f32 %v3619_v17, %v841_v19  ;;  %vm865_vm7 = vmor %vm863_vm5, %vm864_vm6 }
 0x11c   : > { %v3672_v5 = vmul.f32 %v3366_v13, %v560_v47  ;;  %2676 = vrsqrt.f32 %v3674_v6  ;;  %v859_v44 = vmul.f32 %v3680_v11, %v858_v29  ;;  %vm873_vm8 = vweird.f32 %v3674_v6 }
 0x11d   : > { %v696_v10 = vsub.f32 %v664_v46, %v680_v25  ;;  %v850_v31 = vmul.f32 0.5, %v849_v43  ;;  %v846_v20 = vsel %vm3693_vm1, %v3619_v17, %v842_v4 }
 0x11e   : > { %v681_v21 = vmul.f32 %v3672_v5, %v3672_v5  ;;  %v916_v53 = vmul.f32 %v846_v20, %v724_v51  ;;  %v860_v17 = vmul.f32 0.5, %v859_v44 }
 0x11f   : > { %v712_v22 = vmax.f32 %v696_v10, 0.0  ;;  %v851_v41 = vsub.f32 1.5, %v850_v31 }
 0x120   : > { %v697_v39 = vsub.f32 %v665_v33, %v681_v21  ;;  %v935_v57 = vmul.f32 %v3441_v9, %v916_v53 }
 0x121   : > { %v563_v35 = vpop.xlane.xlu0 %562  ;;  %v3703_v49 = vadd.f32 1e-05, %v712_v22  ;;  %v852_v52 = vmul.f32 %v3650_v63, %v851_v41 }
 0x122   : > { %2425 = vmatmul.msk.f32.gmra.mxu0 %vm515_vm0, %v950_v58  ;;  %2441 = vmatmul.msk.f32.gmra.mxu1 %vm515_vm0, %v950_v58  ;;  %v3706_v16 = vmul.f32 %v3366_v13, %v563_v35  ;;  %v3712_v46 = vpop.eup %2676  ;;  %v713_v32 = vmax.f32 %v697_v39, 0.0  ;;  %v954_v33 = vadd.f32 %v3454_v27, %v935_v57 }
 0x123   : > { %2457 = vmatmul.msk.f32.gmra.mxu2 %vm515_vm0, %v950_v58  ;;  %v915_v58 = vmul.f32 %v836_v28, %v723_v55  ;;  %v650_v25 = vpop.xlane.xlu1 %649  ;;  %2678 = vrsqrt.f32 %v3703_v49  ;;  %v868_v61 = vmul.f32 %v3712_v46, %v3674_v6  ;;  %v725_v55 = vsub.f32 %v3316_v38, %v3548_v59 }
 0x124   : > { %v682_v47 = vmul.f32 %v3706_v16, %v3706_v16  ;;  %v666_v8 = vmul.f32 %v650_v25, %v3366_v13  ;;  %v3733_v10 = vadd.f32 1e-05, %v713_v32  ;;  %v861_v28 = vsub.f32 1.5, %v860_v17 }
 0x125   : > { %v934_v40 = vmul.f32 %v3441_v9, %v915_v58  ;;  %v869_v19 = vmul.f32 %v3712_v46, %v868_v61  ;;  %v856_v43 = vsel %vm3724_vm4, %v3650_v63, %v852_v52  ;;  %vm874_vm9 = vweird.f32 %v3712_v46 }
 0x126   : > { %v698_v15 = vsub.f32 %v666_v8, %v682_v47  ;;  %2680 = vrsqrt.f32 %v3733_v10  ;;  %v917_v58 = vmul.f32 %v856_v43, %v725_v55  ;;  %v862_v22 = vmul.f32 %v3680_v11, %v861_v28  ;;  %vm875_vm10 = vmor %vm873_vm8, %vm874_vm9 }
 0x127   : > { %v727_v6 = vsub.f32 %v3335_v48, %v3611_v3  ;;  %vm883_vm11 = vweird.f32 %v3703_v49  ;;  %v728_v3 = vsub.f32 %v3340_v50, %v3641_v7  ;;  %vm893_vm14 = vweird.f32 %v3733_v10 }
 0x128   : > { %v714_v59 = vmax.f32 %v698_v15, 0.0  ;;  %v936_v31 = vmul.f32 %v3441_v9, %v917_v58  ;;  %v866_v34 = vsel %vm865_vm7, %v3680_v11, %v862_v22  ;;  %v729_v7 = vsub.f32 %v3348_v54, %v3672_v5 }
 0x129   : > { %v2679_v21 = vpop.eup %2678  ;;  %v918_v51 = vmul.f32 %v866_v34, %v726_v37  ;;  %v3006_v58 = vmov 0   ;;  %v730_v5 = vsub.f32 %v3359_v60, %v3706_v16  ;;  %v3805_v16 = vld [vmem:[%s4580_s4] sm:$0x7] }
 0x12a   : > { %2426 = vmatmul.msk.f32.gmra.mxu0 %vm515_vm0, %v951_v45  ;;  %2442 = vmatmul.msk.f32.gmra.mxu1 %vm515_vm0, %v951_v45  ;;  %v878_v4 = vmul.f32 %v2679_v21, %v3703_v49  ;;  %v3751_v63 = vadd.f32 1e-05, %v714_v59  ;;  %vm884_vm12 = vweird.f32 %v2679_v21 }
 0x12b   : > { %2458 = vmatmul.msk.f32.gmra.mxu2 %vm515_vm0, %v951_v45  ;;  %v953_v45 = vadd.f32 %v3454_v27, %v934_v40  ;;  %v955_v40 = vadd.f32 %v3454_v27, %v936_v31  ;;  %v937_v11 = vmul.f32 %v3441_v9, %v918_v51  ;;  %vm885_vm13 = vmor %vm883_vm11, %vm884_vm12  ;;  %2616 = vset.pattern.permute.xlu2 %v3006_v58 }
 0x12c   : > { %v879_v35 = vmul.f32 %v2679_v21, %v878_v4  ;;  %v2681_v39 = vpop.eup %2680  ;;  %2682 = vrsqrt.f32 %v3751_v63  ;;  %vm903_vm2 = vweird.f32 %v3751_v63  ;;  %2618 = vset.pattern.permute.xlu0 %v3006_v58 }
 0x12d   : > { %v888_v44 = vmul.f32 %v2681_v39, %v3733_v10  ;;  %v956_v47 = vadd.f32 %v3454_v27, %v937_v11  ;;  %vm894_vm15 = vweird.f32 %v2681_v39 }
 0x12e   : > { %v880_v41 = vmul.f32 0.5, %v879_v35  ;;  %vm895_vm1 = vmor %vm893_vm14, %vm894_vm15  ;;  %v3811_v35 = vperm.slane %v3805_v16, 0 }
 0x12f   : > { %v889_v20 = vmul.f32 %v2681_v39, %v888_v44 }
 0x130   : > { %v881_v25 = vsub.f32 1.5, %v880_v41 }
 0x131   : > { %v890_v52 = vmul.f32 0.5, %v889_v20 }
 0x132   : > { %2427 = vmatmul.msk.f32.gmra.mxu0 %vm515_vm0, %v952_v56  ;;  %2443 = vmatmul.msk.f32.gmra.mxu1 %vm515_vm0, %v952_v56  ;;  %v882_v53 = vmul.f32 %v2679_v21, %v881_v25 }
 0x133   : > { %2459 = vmatmul.msk.f32.gmra.mxu2 %vm515_vm0, %v952_v56  ;;  %v870_v56 = vmul.f32 0.5, %v869_v19 }
 0x134   : > { %v886_v62 = vsel %vm885_vm13, %v2679_v21, %v882_v53 }
 0x135   : > { %v871_v29 = vsub.f32 1.5, %v870_v56  ;;  %v920_v15 = vmul.f32 %v886_v62, %v728_v3 }
 0x137   : > { %v872_v23 = vmul.f32 %v3712_v46, %v871_v29  ;;  %v939_v19 = vmul.f32 %v3441_v9, %v920_v15 }
 0x139   : > { %v876_v32 = vsel %vm875_vm10, %v3712_v46, %v872_v23  ;;  %v891_v46 = vsub.f32 1.5, %v890_v52  ;;  %v958_v21 = vadd.f32 %v3454_v27, %v939_v19 }
 0x13a   : > { %2428 = vmatmul.msk.f32.gmra.mxu0 %vm515_vm0, %v953_v45  ;;  %2444 = vmatmul.msk.f32.gmra.mxu1 %vm515_vm0, %v953_v45  ;;  %v919_v8 = vmul.f32 %v876_v32, %v727_v6 }
 0x13b   : > { %2460 = vmatmul.msk.f32.gmra.mxu2 %vm515_vm0, %v953_v45  ;;  %v2683_v45 = vpop.eup %2682  ;;  %v892_v57 = vmul.f32 %v2681_v39, %v891_v46 }
 0x13c   : > { %v898_v17 = vmul.f32 %v2683_v45, %v3751_v63  ;;  %v938_v49 = vmul.f32 %v3441_v9, %v919_v8  ;;  %vm904_vm3 = vweird.f32 %v2683_v45 }
 0x13d   : > { %v896_v10 = vsel %vm895_vm1, %v2681_v39, %v892_v57  ;;  %vm905_vm4 = vmor %vm903_vm2, %vm904_vm3 }
 0x13e   : > { %v899_v61 = vmul.f32 %v2683_v45, %v898_v17  ;;  %v957_v55 = vadd.f32 %v3454_v27, %v938_v49  ;;  %v921_v59 = vmul.f32 %v896_v10, %v729_v7 }
 0x140   : > { %v900_v28 = vmul.f32 0.5, %v899_v61  ;;  %v940_v56 = vmul.f32 %v3441_v9, %v921_v59 }
 0x142   : > { %2429 = vmatmul.msk.f32.gmra.mxu0 %vm515_vm0, %v954_v33  ;;  %2445 = vmatmul.msk.f32.gmra.mxu1 %vm515_vm0, %v954_v33  ;;  %v901_v43 = vsub.f32 1.5, %v900_v28  ;;  %v959_v37 = vadd.f32 %v3454_v27, %v940_v56 }
 0x143   : > { %2461 = vmatmul.msk.f32.gmra.mxu2 %vm515_vm0, %v954_v33  ;;  %v3005_v33 = vmov 1  }
 0x144   : > { %2617 = vset.pattern.permute.xlu1 %v3005_v33  ;;  %v902_v22 = vmul.f32 %v2683_v45, %v901_v43 }
 0x146   : > { %v906_v4 = vsel %vm905_vm4, %v2683_v45, %v902_v22 }
 0x147   : > { %v922_v63 = vmul.f32 %v906_v4, %v730_v5 }
 0x149   : > { %v941_v31 = vmul.f32 %v3441_v9, %v922_v63  ;;  %v3817_v9 = vperm.slane %v3805_v16, 2 }
 0x14a   : > { %2430 = vmatmul.msk.f32.gmra.mxu0 %vm515_vm0, %v955_v40  ;;  %2446 = vmatmul.msk.f32.gmra.mxu1 %vm515_vm0, %v955_v40 }
 0x14b   : > { %2462 = vmatmul.msk.f32.gmra.mxu2 %vm515_vm0, %v955_v40  ;;  %v960_v29 = vadd.f32 %v3454_v27, %v941_v31 }
 0x152   : > { %2431 = vmatmul.msk.f32.gmra.mxu0 %vm515_vm0, %v956_v47  ;;  %2447 = vmatmul.msk.f32.gmra.mxu1 %vm515_vm0, %v956_v47 }
 0x153   : > { %2463 = vmatmul.msk.f32.gmra.mxu2 %vm515_vm0, %v956_v47 }
 0x15a   : > { %2432 = vmatmul.msk.f32.gmra.mxu0 %vm515_vm0, %v957_v55  ;;  %2448 = vmatmul.msk.f32.gmra.mxu1 %vm515_vm0, %v957_v55 }
 0x15b   : > { %2464 = vmatmul.msk.f32.gmra.mxu2 %vm515_vm0, %v957_v55 }
 0x162   : > { %2433 = vmatmul.msk.f32.gmra.mxu0 %vm515_vm0, %v958_v21  ;;  %2449 = vmatmul.msk.f32.gmra.mxu1 %vm515_vm0, %v958_v21 }
 0x163   : > { %2465 = vmatmul.msk.f32.gmra.mxu2 %vm515_vm0, %v958_v21 }
 0x16a   : > { %2434 = vmatmul.msk.f32.gmra.mxu0 %vm515_vm0, %v959_v37  ;;  %2450 = vmatmul.msk.f32.gmra.mxu1 %vm515_vm0, %v959_v37 }
 0x16b   : > { %2466 = vmatmul.msk.f32.gmra.mxu2 %vm515_vm0, %v959_v37 }
 0x172   : > { %2435 = vmatmul.msk.f32.gmra.mxu0 %vm515_vm0, %v960_v29  ;;  %2451 = vmatmul.msk.f32.gmra.mxu1 %vm515_vm0, %v960_v29 }
 0x173   : > { %2467 = vmatmul.msk.f32.gmra.mxu2 %vm515_vm0, %v960_v29 }
 0x177   : > { %v1046_v34 = vpop.f32.mrf.mxu0  ;;  %v1111_v37 = vpop.f32.mrf.mxu1 }
 0x178   : > { %v3814_v39 = vadd.f32 %v1046_v34, %v3811_v35 }
 0x17e   : > { %v1176_v27 = vpop.f32.mrf.mxu2 }
 0x17f   : > { %v1177_v40 = vadd.f32 %v1176_v27, %v3817_v9  ;;  %v1049_v51 = vpop.f32.mrf.mxu0  ;;  %v3871_v29 = vpop.f32.mrf.mxu1 }
 0x180   : > { %v3821_v23 = vadd.f32 %v1049_v51, %v3811_v35 }
 0x181   : > { %1321 = vperm.xlu1 %2617, %v1177_v40   ;;  %1226 = vperm.xlu2 %2616, %v1177_v40  }
 0x186   : > { %v1179_v41 = vpop.f32.mrf.mxu2 }
 0x187   : > { %v1180_v44 = vadd.f32 %v1179_v41, %v3817_v9  ;;  %v1052_v6 = vpop.f32.mrf.mxu0  ;;  %v1117_v41 = vpop.f32.mrf.mxu1 }
 0x188   : > { %v3825_v11 = vadd.f32 %v1052_v6, %v3811_v35 }
 0x189   : > { %1231 = vperm.xlu0 %2618, %v1180_v44   ;;  %2620 = vset.pattern.permute.xlu1 %v3006_v58 }
 0x18a   : > { %2621 = vset.pattern.permute.xlu2 %v3005_v33 }
 0x18e   : > { %v1182_v25 = vpop.f32.mrf.mxu2 }
 0x18f   : > { %v1183_v20 = vadd.f32 %v1182_v25, %v3817_v9  ;;  %v1055_v32 = vpop.f32.mrf.mxu0  ;;  %v1120_v25 = vpop.f32.mrf.mxu1 }
 0x190   : > { %v3831_v45 = vadd.f32 %v1055_v32, %v3811_v35 }
 0x191   : > { %2619 = vset.pattern.permute.xlu0 %v3005_v33  ;;  %1236 = vperm.xlu1 %2620, %v1183_v20  }
 0x192   : > { %1329 = vperm.xlu2 %2621, %v1183_v20   ;;  %1325 = vperm.xlu0 %2619, %v1180_v44  }
 0x196   : > { %v1185_v47 = vpop.f32.mrf.mxu2 }
 0x197   : > { %v1186_v8 = vadd.f32 %v1185_v47, %v3817_v9  ;;  %v1058_v53 = vpop.f32.mrf.mxu0 }
 0x198   : > { %v3836_v52 = vadd.f32 %v1058_v53, %v3811_v35 }
 0x199   : > { %2623 = vset.pattern.permute.xlu1 %v3005_v33 }
 0x19a   : > { %2622 = vset.pattern.permute.xlu2 %v3006_v58  ;;  %1333 = vperm.xlu1 %2623, %v1186_v8  }
 0x19b   : > { %1241 = vperm.xlu2 %2622, %v1186_v8  }
 0x19e   : > { %v1188_v17 = vpop.f32.mrf.mxu2 }
 0x19f   : > { %v1189_v3 = vadd.f32 %v1188_v17, %v3817_v9  ;;  %v1061_v49 = vpop.f32.mrf.mxu0 }
 0x1a0   : > { %v3842_v46 = vadd.f32 %v1061_v49, %v3811_v35 }
 0x1a2   : > { %2625 = vset.pattern.permute.xlu1 %v3006_v58 }
 0x1a3   : > { %1246 = vperm.xlu2 %2622, %v1189_v3  }
 0x1a6   : > { %v1191_v61 = vpop.f32.mrf.mxu2 }
 0x1a7   : > { %v1192_v62 = vadd.f32 %v1191_v61, %v3817_v9  ;;  %v1064_v55 = vpop.f32.mrf.mxu0 }
 0x1a8   : > { %v3847_v15 = vadd.f32 %v1064_v55, %v3811_v35 }
 0x1a9   : > { %1251 = vperm.xlu1 %2625, %v1192_v62  }
 0x1ab   : > { %2624 = vset.pattern.permute.xlu2 %v3005_v33 }
 0x1ac   : > { %1337 = vperm.xlu2 %2624, %v1189_v3  }
 0x1ae   : > { %v1194_v57 = vpop.f32.mrf.mxu2 }
 0x1af   : > { %v1195_v28 = vadd.f32 %v1194_v57, %v3817_v9  ;;  %v1067_v7 = vpop.f32.mrf.mxu0 }
 0x1b0   : > { %v3852_v19 = vadd.f32 %v1067_v7, %v3811_v35 }
 0x1b1   : > { %2626 = vset.pattern.permute.xlu1 %v3005_v33  ;;  %1345 = vperm.xlu0 %2619, %v1195_v28  }
 0x1b2   : > { %1341 = vperm.xlu1 %2626, %v1192_v62   ;;  %v3889_v62 = vpop.f32.mrf.mxu1 }
 0x1b4   : > { %2627 = vset.pattern.permute.xlu2 %v3006_v58 }
 0x1b5   : > { %1256 = vperm.xlu2 %2627, %v1195_v28  }
 0x1b6   : > { %v1197_v43 = vpop.f32.mrf.mxu2 }
 0x1b7   : > { %v1198_v10 = vadd.f32 %v1197_v43, %v3817_v9 }
 0x1b9   : > { %2630 = vset.pattern.permute.xlu0 %v3006_v58 }
 0x1ba   : > { %2628 = vset.pattern.permute.xlu1 %v3006_v58  ;;  %v1126_v7 = vpop.f32.mrf.mxu1 }
 0x1bb   : > { %1261 = vperm.xlu1 %2628, %v1198_v10  }
 0x1bd   : > { %2629 = vset.pattern.permute.xlu2 %v3005_v33 }
 0x1be   : > { %1349 = vperm.xlu2 %2629, %v1198_v10   ;;  %v1200_v21 = vpop.f32.mrf.mxu2 }
 0x1bf   : > { %v1201_v59 = vadd.f32 %v1200_v21, %v3817_v9 }
 0x1c1   : > { %1266 = vperm.xlu0 %2630, %v1201_v59  }
 0x1c3   : > { %2631 = vset.pattern.permute.xlu1 %v3005_v33 }
 0x1c4   : > { %1353 = vperm.xlu1 %2631, %v1201_v59   ;;  %v3905_v59 = vperm.slane %v3805_v16, 1 }
 0x1c6   : > { %v1203_v22 = vpop.f32.mrf.mxu2  ;;  %2632 = vset.pattern.permute.xlu2 %v3006_v58 }
 0x1c7   : > { %v1204_v5 = vadd.f32 %v1203_v22, %v3817_v9 }
 0x1c9   : > { %2633 = vset.pattern.permute.xlu0 %v3005_v33  ;;  %1271 = vperm.xlu2 %2632, %v1204_v5  }
 0x1ca   : > { %1357 = vperm.xlu0 %2633, %v1204_v5  }
 0x1cc   : > { %2634 = vset.pattern.permute.xlu1 %v3006_v58 }
 0x1ce   : > { %v1206_v56 = vpop.f32.mrf.mxu2 }
 0x1cf   : > { %v1207_v4 = vadd.f32 %v1206_v56, %v3817_v9  ;;  %v1129_v56 = vpop.f32.mrf.mxu1 }
 0x1d1   : > { %2635 = vset.pattern.permute.xlu2 %v3005_v33  ;;  %1276 = vperm.xlu1 %2634, %v1207_v4  }
 0x1d2   : > { %1361 = vperm.xlu2 %2635, %v1207_v4   ;;  %2636 = vset.pattern.permute.xlu0 %v3006_v58 }
 0x1d6   : > { %v1209_v63 = vpop.f32.mrf.mxu2 }
 0x1d7   : > { %v1210_v31 = vadd.f32 %v1209_v63, %v3817_v9 }
 0x1d9   : > { %1281 = vperm.xlu0 %2636, %v1210_v31   ;;  %2637 = vset.pattern.permute.xlu1 %v3005_v33 }
 0x1da   : > { %1365 = vperm.xlu1 %2637, %v1210_v31   ;;  %2638 = vset.pattern.permute.xlu2 %v3006_v58 }
 0x1db   : > { %v1227_v34 = vpop.permute.xlu2 %1226 }
 0x1dc   : > { %v1304_v27 = vmul.f32 %v1227_v34, %v3814_v39 }
 0x1de   : > { %v1212_v40 = vpop.f32.mrf.mxu2 }
 0x1df   : > { %v1213_v51 = vadd.f32 %v1212_v40, %v3817_v9 }
 0x1e1   : > { %2639 = vset.pattern.permute.xlu0 %v3005_v33  ;;  %1286 = vperm.xlu2 %2638, %v1213_v51  }
 0x1e2   : > { %1369 = vperm.xlu0 %2639, %v1213_v51   ;;  %2640 = vset.pattern.permute.xlu1 %v3006_v58 }
 0x1e6   : > { %v1215_v44 = vpop.f32.mrf.mxu2 }
 0x1e7   : > { %v1216_v6 = vadd.f32 %v1215_v44, %v3817_v9 }
 0x1e9   : > { %2641 = vset.pattern.permute.xlu2 %v3005_v33  ;;  %1291 = vperm.xlu1 %2640, %v1216_v6  }
 0x1ea   : > { %1373 = vperm.xlu2 %2641, %v1216_v6   ;;  %2642 = vset.pattern.permute.xlu0 %v3006_v58 }
 0x1ec   : > { %v1330_v39 = vpop.permute.xlu2 %1329 }
 0x1ee   : > { %v1218_v20 = vpop.f32.mrf.mxu2 }
 0x1ef   : > { %v1219_v32 = vadd.f32 %v1218_v20, %v3817_v9  ;;  %v1118_v20 = vadd.f32 %v1117_v41, %v3905_v59 }
 0x1f1   : > { %1296 = vperm.xlu0 %2642, %v1219_v32   ;;  %2643 = vset.pattern.permute.xlu1 %v3005_v33 }
 0x1f2   : > { %1377 = vperm.xlu1 %2643, %v1219_v32   ;;  %2644 = vset.pattern.permute.xlu2 %v3006_v58  ;;  %v3923_v32 = vpop.f32.mrf.mxu1 }
 0x1f3   : > { %v1322_v47 = vpop.permute.xlu1 %1321 }
 0x1f4   : > { %v3884_v8 = vadd.f32 %v1322_v47, %v1304_v27  ;;  %v3916_v27 = vpop.f32.mrf.mxu0 }
 0x1f5   : > { %v1242_v53 = vpop.permute.xlu2 %1241 }
 0x1f6   : > { %v1307_v3 = vmul.f32 %v1242_v53, %v3831_v45  ;;  %v1221_v49 = vpop.f32.mrf.mxu2 }
 0x1f7   : > { %v1222_v61 = vadd.f32 %v1221_v49, %v3817_v9 }
 0x1f9   : > { %2645 = vset.pattern.permute.xlu0 %v3005_v33  ;;  %1301 = vperm.xlu2 %2644, %v1222_v61  }
 0x1fa   : > { %1381 = vperm.xlu0 %2645, %v1222_v61  }
 0x1fb   : > { %v1232_v55 = vpop.permute.xlu0 %1231 }
 0x1fc   : > { %v1305_v58 = vmul.f32 %v1232_v55, %v3821_v23  ;;  %v1073_v49 = vpop.f32.mrf.mxu0 }
 0x1fd   : > { %v3893_v57 = vpop.permute.xlu2 %1246 }
 0x1fe   : > { %v1308_v28 = vmul.f32 %v3893_v57, %v3836_v52 }
 0x203   : > { %v1237_v43 = vpop.permute.xlu1 %1236 }
 0x204   : > { %v1306_v45 = vmul.f32 %v1237_v43, %v3825_v11  ;;  %v1326_v10 = vpop.permute.xlu0 %1325  ;;  %v1112_v11 = vadd.f32 %v1111_v37, %v3905_v59  ;;  %v1418_v37 = vmul.f32 %v1237_v43, %v1118_v20 }
 0x205   : > { %v3898_v9 = vadd.f32 %v1326_v10, %v1305_v58 }
 0x206   : > { %v3900_v21 = vadd.f32 %v1330_v39, %v1306_v45  ;;  %v3902_v33 = vpop.permute.xlu2 %1337  ;;  %v1416_v63 = vmul.f32 %v1227_v34, %v1112_v11  ;;  %v1434_v61 = vadd.f32 %v1418_v37, %v1330_v39  ;;  %v1121_v45 = vadd.f32 %v1120_v25, %v3905_v59  ;;  %v3941_v37 = vpop.f32.mrf.mxu0 }
 0x207   : > { %v3909_v22 = vadd.f32 %v3902_v33, %v1308_v28  ;;  %v1127_v25 = vadd.f32 %v1126_v7, %v3905_v59 }
 0x208   : > { %v1432_v16 = vadd.f32 %v1416_v63, %v1322_v47  ;;  %v1419_v43 = vmul.f32 %v1242_v53, %v1121_v45  ;;  %v3934_v63 = vmax.f32 %v1434_v61, 0.0 }
 0x20a   : > { %v3920_v6 = vmax.f32 %v1432_v16, 0.0  ;;  %v1135_v16 = vpop.f32.mrf.mxu1  ;;  %v1472_v53 = vsel %vm515_vm0, %v3934_v63, 0.0 }
 0x20c   : > { %v1334_v4 = vpop.permute.xlu1 %1333  ;;  %v1530_v34 = vmul.f32 %v3920_v6, %v3920_v6  ;;  %v1466_v39 = vsel %vm515_vm0, %v3920_v6, 0.0 }
 0x20d   : > { %v3914_v31 = vadd.f32 %v1334_v4, %v1307_v3  ;;  %v1115_v3 = vadd.f32 %v3871_v29, %v3905_v59  ;;  %v1435_v29 = vadd.f32 %v1419_v43, %v1334_v4 }
 0x20f   : > { %v1257_v51 = vpop.permute.xlu2 %1256  ;;  %v1417_v47 = vmul.f32 %v1232_v55, %v1115_v3  ;;  %v1074_v55 = vadd.f32 %v1073_v49, %v3811_v35 }
 0x210   : > { %v1310_v44 = vmul.f32 %v1257_v51, %v3847_v15  ;;  %v1546_v15 = vsel %vm515_vm0, %v1530_v34, 0.0  ;;  %v3948_v34 = vmax.f32 %v1435_v29, 0.0  ;;  %v1124_v29 = vadd.f32 %v3889_v62, %v3905_v59 }
 0x211   : > { %v1433_v41 = vadd.f32 %v1417_v47, %v1326_v10 }
 0x213   : > { %v3936_v20 = vmax.f32 %v1433_v41, 0.0 }
 0x215   : > { %v1469_v49 = vsel %vm515_vm0, %v3936_v20, 0.0 }
 0x218   : > { %v3929_v58 = vpop.permute.xlu2 %1349 }
 0x21b   : > { %v1252_v28 = vpop.permute.xlu1 %1251 }
 0x21c   : > { %v1309_v11 = vmul.f32 %v1252_v28, %v3842_v46  ;;  %1547 = vadd.xlane.f32.xlu1 %v1546_v15  ;;  %v1421_v61 = vmul.f32 %v1252_v28, %v1127_v25  ;;  %v1531_v15 = vmul.f32 %v3936_v20, %v3936_v20  ;;  %v1533_v28 = vmul.f32 %v3948_v34, %v3948_v34 }
 0x21e   : > { %v1555_v62 = vsel %vm515_vm0, %v1533_v28, 0.0  ;;  %v1136_v28 = vadd.f32 %v1135_v16, %v3905_v59  ;;  %v1133_v16 = vadd.f32 %v3923_v32, %v3905_v59 }
 0x222   : > { %1467 = vadd.xlane.f32.xlu2 %v1466_v39  ;;  %v1138_v39 = vpop.f32.mrf.mxu1 }
 0x223   : > { %v3944_v10 = vpop.permute.xlu2 %1271  ;;  %v1346_v46 = vpop.permute.xlu0 %1345 }
 0x224   : > { %v3951_v4 = vmul.f32 %v3944_v10, %v1074_v55  ;;  %v3953_v3 = vadd.f32 %v1346_v46, %v1310_v44  ;;  %v1342_v47 = vpop.permute.xlu1 %1341  ;;  %1473 = vadd.xlane.f32.xlu0 %v1472_v53  ;;  %1470 = vadd.xlane.f32.xlu1 %v1469_v49  ;;  %v1532_v44 = vmul.f32 %v3934_v63, %v3934_v63 }
 0x225   : > { %v3957_v7 = vadd.f32 %v1342_v47, %v1309_v11  ;;  %v1437_v43 = vadd.f32 %v1421_v61, %v1342_v47  ;;  %v1549_v11 = vsel %vm515_vm0, %v1531_v15, 0.0  ;;  %v1420_v55 = vmul.f32 %v3893_v57, %v1124_v29  ;;  %v3977_v61 = vpop.f32.mrf.mxu0 }
 0x226   : > { %v1552_v53 = vsel %vm515_vm0, %v1532_v44, 0.0  ;;  %v1130_v47 = vadd.f32 %v1129_v56, %v3905_v59  ;;  %v1071_v29 = vadd.f32 %v3916_v27, %v3811_v35 }
 0x227   : > { %v3971_v25 = vmax.f32 %v1437_v43, 0.0  ;;  %v1436_v49 = vadd.f32 %v1420_v55, %v3902_v33  ;;  %v1475_v33 = vsel %vm515_vm0, %v3948_v34, 0.0 }
 0x228   : > { %v1422_v15 = vmul.f32 %v1257_v51, %v1130_v47 }
 0x229   : > { %v1535_v57 = vmul.f32 %v3971_v25, %v3971_v25  ;;  %v3982_v43 = vmax.f32 %v1436_v49, 0.0 }
 0x22a   : > { %1550 = vadd.xlane.f32.xlu2 %v1549_v11  ;;  %v1438_v44 = vadd.f32 %v1422_v15, %v1346_v46 }
 0x22b   : > { %v1561_v55 = vsel %vm515_vm0, %v1535_v57, 0.0  ;;  %v1478_v49 = vsel %vm515_vm0, %v3982_v43, 0.0  ;;  %v1534_v27 = vmul.f32 %v3982_v43, %v3982_v43 }
 0x22c   : > { %1553 = vadd.xlane.f32.xlu0 %v1552_v53  ;;  %1556 = vadd.xlane.f32.xlu1 %v1555_v62  ;;  %v1141_v53 = vpop.f32.mrf.mxu1  ;;  %v3994_v46 = vmax.f32 %v1438_v44, 0.0 }
 0x22d   : > { %v1262_v45 = vpop.permute.xlu1 %1261  ;;  %v1082_v15 = vpop.f32.mrf.mxu0 }
 0x22e   : > { %v1311_v41 = vmul.f32 %v1262_v45, %v3852_v19  ;;  %v1362_v19 = vpop.permute.xlu2 %1361  ;;  %v1423_v44 = vmul.f32 %v1262_v45, %v1133_v16  ;;  %v1484_v32 = vsel %vm515_vm0, %v3994_v46, 0.0 }
 0x230   : > { %v3985_v56 = vadd.f32 %v3929_v58, %v1311_v41  ;;  %v1439_v45 = vadd.f32 %v1423_v44, %v3929_v58  ;;  %v1481_v44 = vsel %vm515_vm0, %v3971_v25, 0.0 }
 0x232   : > { %1476 = vadd.xlane.f32.xlu2 %v1475_v33 }
 0x233   : > { %v1267_v11 = vpop.permute.xlu0 %1266 }
 0x234   : > { %v1312_v41 = vmul.f32 %v1267_v11, %v1071_v29  ;;  %v1424_v47 = vmul.f32 %v1267_v11, %v1136_v28  ;;  %1562 = vadd.xlane.f32.xlu0 %v1561_v55  ;;  %1479 = vadd.xlane.f32.xlu1 %v1478_v49  ;;  %v1536_v29 = vmul.f32 %v3994_v46, %v3994_v46  ;;  %v1558_v11 = vsel %vm515_vm0, %v1534_v27, 0.0 }
 0x235   : > { %v1083_v55 = vadd.f32 %v1082_v15, %v3811_v35  ;;  %v1144_v15 = vpop.f32.mrf.mxu1 }
 0x236   : > { %v1354_v62 = vpop.permute.xlu1 %1353  ;;  %v1564_v16 = vsel %vm515_vm0, %v1536_v29, 0.0  ;;  %v1077_v29 = vadd.f32 %v3941_v37, %v3811_v35 }
 0x237   : > { %v4002_v33 = vadd.f32 %v1354_v62, %v1312_v41  ;;  %v1440_v57 = vadd.f32 %v1424_v47, %v1354_v62  ;;  %v1139_v41 = vadd.f32 %v1138_v39, %v3905_v59  ;;  %v4023_v39 = vmax.f32 %v1439_v45, 0.0 }
 0x239   : > { %v4009_v49 = vmax.f32 %v1440_v57, 0.0  ;;  %v1425_v57 = vmul.f32 %v3944_v10, %v1139_v41  ;;  %v1487_v41 = vsel %vm515_vm0, %v4023_v39, 0.0  ;;  %v1537_v45 = vmul.f32 %v4023_v39, %v4023_v39 }
 0x23a   : > { %1559 = vadd.xlane.f32.xlu2 %v1558_v11 }
 0x23b   : > { %v1287_v51 = vpop.permute.xlu2 %1286  ;;  %v1538_v28 = vmul.f32 %v4009_v49, %v4009_v49 }
 0x23c   : > { %v1316_v47 = vmul.f32 %v1287_v51, %v1083_v55  ;;  %1485 = vadd.xlane.f32.xlu0 %v1484_v32  ;;  %v1358_v62 = vpop.permute.xlu0 %1357  ;;  %1565 = vadd.xlane.f32.xlu1 %v1564_v16  ;;  %v1142_v16 = vadd.f32 %v1141_v53, %v3905_v59 }
 0x23d   : > { %v4017_v27 = vadd.f32 %v1358_v62, %v3951_v4  ;;  %v1441_v58 = vadd.f32 %v1425_v57, %v1358_v62  ;;  %v1570_v55 = vsel %vm515_vm0, %v1538_v28, 0.0  ;;  %v1147_v37 = vpop.f32.mrf.mxu1 }
 0x23f   : > { %v4030_v32 = vmax.f32 %v1441_v58, 0.0  ;;  %v1567_v58 = vsel %vm515_vm0, %v1537_v45, 0.0 }
 0x241   : > { %v1539_v28 = vmul.f32 %v4030_v32, %v4030_v32  ;;  %v1493_v53 = vsel %vm515_vm0, %v4030_v32, 0.0 }
 0x242   : > { %1482 = vadd.xlane.f32.xlu2 %v1481_v44 }
 0x243   : > { %v1277_v4 = vpop.permute.xlu1 %1276 }
 0x244   : > { %v1314_v10 = vmul.f32 %v1277_v4, %v1077_v29  ;;  %1571 = vadd.xlane.f32.xlu0 %v1570_v55  ;;  %1488 = vadd.xlane.f32.xlu1 %v1487_v41  ;;  %v1426_v44 = vmul.f32 %v1277_v4, %v1142_v16  ;;  %v1080_v29 = vadd.f32 %v3977_v61, %v3811_v35  ;;  %v1573_v4 = vsel %vm515_vm0, %v1539_v28, 0.0 }
 0x245   : > { %v1145_v55 = vadd.f32 %v1144_v15, %v3905_v59 }
 0x246   : > { %v4037_v62 = vadd.f32 %v1362_v19, %v1314_v10  ;;  %v1442_v10 = vadd.f32 %v1426_v44, %v1362_v19  ;;  %v1490_v19 = vsel %vm515_vm0, %v4009_v49, 0.0  ;;  %v1085_v44 = vpop.f32.mrf.mxu0 }
 0x248   : > { %v4051_v40 = vmax.f32 %v1442_v10, 0.0  ;;  %v1374_v10 = vpop.permute.xlu2 %1373 }
 0x24a   : > { %1568 = vadd.xlane.f32.xlu2 %v1567_v58  ;;  %v1148_v58 = vadd.f32 %v1147_v37, %v3905_v59 }
 0x24b   : > { %v1282_v41 = vpop.permute.xlu0 %1281 }
 0x24c   : > { %v1315_v11 = vmul.f32 %v1282_v41, %v1080_v29  ;;  %v1427_v5 = vmul.f32 %v1282_v41, %v1145_v55  ;;  %v1366_v57 = vpop.permute.xlu1 %1365  ;;  %1494 = vadd.xlane.f32.xlu0 %v1493_v53  ;;  %1574 = vadd.xlane.f32.xlu1 %v1573_v4  ;;  %v1150_v29 = vpop.f32.mrf.mxu1  ;;  %v1540_v53 = vmul.f32 %v4051_v40, %v4051_v40 }
 0x24e   : > { %v4049_v16 = vadd.f32 %v1366_v57, %v1315_v11  ;;  %v1443_v45 = vadd.f32 %v1427_v5, %v1366_v57  ;;  %v1428_v11 = vmul.f32 %v1287_v51, %v1148_v58  ;;  %v1496_v5 = vsel %vm515_vm0, %v4051_v40, 0.0 }
 0x24f   : > { %v1576_v51 = vsel %vm515_vm0, %v1540_v53, 0.0  ;;  %v1086_v58 = vadd.f32 %v1085_v44, %v3811_v35 }
 0x250   : > { %v4054_v15 = vmax.f32 %v1443_v45, 0.0 }
 0x252   : > { %1491 = vadd.xlane.f32.xlu2 %v1490_v19  ;;  %v1541_v28 = vmul.f32 %v4054_v15, %v4054_v15  ;;  %v1151_v19 = vadd.f32 %v1150_v29, %v3905_v59 }
 0x253   : > { %v1302_v52 = vpop.permute.xlu2 %1301 }
 0x254   : > { %v1370_v57 = vpop.permute.xlu0 %1369  ;;  %v1579_v55 = vsel %vm515_vm0, %v1541_v28, 0.0  ;;  %1497 = vadd.xlane.f32.xlu1 %v1496_v5  ;;  %v1153_v5 = vpop.f32.mrf.mxu1 }
 0x255   : > { %v4064_v41 = vadd.f32 %v1370_v57, %v1316_v47  ;;  %v1444_v37 = vadd.f32 %v1428_v11, %v1370_v57  ;;  %1580 = vadd.xlane.f32.xlu0 %v1579_v55  ;;  %v1088_v11 = vpop.f32.mrf.mxu0 }
 0x257   : > { %v4069_v4 = vmax.f32 %v1444_v37, 0.0 }
 0x259   : > { %v1542_v45 = vmul.f32 %v4069_v4, %v4069_v4  ;;  %v1502_v37 = vsel %vm515_vm0, %v4069_v4, 0.0 }
 0x25a   : > { %1577 = vadd.xlane.f32.xlu2 %v1576_v51  ;;  %v1499_v51 = vsel %vm515_vm0, %v4054_v15, 0.0 }
 0x25b   : > { %v1292_v47 = vpop.permute.xlu1 %1291  ;;  %v1582_v28 = vsel %vm515_vm0, %v1542_v45, 0.0  ;;  %v1089_v45 = vadd.f32 %v1088_v11, %v3811_v35 }
 0x25c   : > { %v1317_v57 = vmul.f32 %v1292_v47, %v1086_v58  ;;  %v1429_v55 = vmul.f32 %v1292_v47, %v1151_v19  ;;  %1583 = vadd.xlane.f32.xlu1 %v1582_v28  ;;  %v1154_v58 = vadd.f32 %v1153_v5, %v3905_v59 }
 0x25d   : > { %1503 = vadd.xlane.f32.xlu0 %v1502_v37 }
 0x25e   : > { %v4079_v53 = vadd.f32 %v1374_v10, %v1317_v57  ;;  %v1445_v61 = vadd.f32 %v1429_v55, %v1374_v10  ;;  %v1091_v10 = vpop.f32.mrf.mxu0  ;;  %v1156_v55 = vpop.f32.mrf.mxu1 }
 0x25f   : > { %v1092_v5 = vadd.f32 %v1091_v10, %v3811_v35 }
 0x260   : > { %v4082_v29 = vmax.f32 %v1445_v61, 0.0 }
 0x262   : > { %1500 = vadd.xlane.f32.xlu2 %v1499_v51  ;;  %v1505_v19 = vsel %vm515_vm0, %v4082_v29, 0.0  ;;  %v1157_v51 = vadd.f32 %v1156_v55, %v3905_v59 }
 0x263   : > { %v1297_v47 = vpop.permute.xlu0 %1296 }
 0x264   : > { %v1318_v28 = vmul.f32 %v1297_v47, %v1089_v45  ;;  %v1430_v57 = vmul.f32 %v1297_v47, %v1154_v58  ;;  %v1378_v37 = vpop.permute.xlu1 %1377  ;;  %1506 = vadd.xlane.f32.xlu1 %v1505_v19  ;;  %v1319_v58 = vmul.f32 %v1302_v52, %v1092_v5  ;;  %v1431_v47 = vmul.f32 %v1302_v52, %v1157_v51 }
 0x266   : > { %v4090_v61 = vadd.f32 %v1378_v37, %v1318_v28  ;;  %v1446_v44 = vadd.f32 %v1430_v57, %v1378_v37  ;;  %v1543_v57 = vmul.f32 %v4082_v29, %v4082_v29 }
 0x268   : > { %v4093_v11 = vmax.f32 %v1446_v44, 0.0  ;;  %v1585_v52 = vsel %vm515_vm0, %v1543_v57, 0.0 }
 0x26a   : > { %v1508_v45 = vsel %vm515_vm0, %v4093_v11, 0.0  ;;  %v1544_v55 = vmul.f32 %v4093_v11, %v4093_v11 }
 0x26b   : > { %1509 = vadd.xlane.f32.xlu2 %v1508_v45 }
 0x26c   : > { %v1382_v19 = vpop.permute.xlu0 %1381  ;;  %v1588_v5 = vsel %vm515_vm0, %v1544_v55, 0.0 }
 0x26d   : > { %v4099_v17 = vadd.f32 %v1382_v19, %v1319_v58  ;;  %v1447_v28 = vadd.f32 %v1431_v47, %v1382_v19 }
 0x26f   : > { %v4104_v37 = vmax.f32 %v1447_v28, 0.0 }
 0x271   : > { %v1511_v35 = vsel %vm515_vm0, %v4104_v37, 0.0  ;;  %v1545_v59 = vmul.f32 %v4104_v37, %v4104_v37 }
 0x272   : > { %1512 = vadd.xlane.f32.xlu0 %v1511_v35 }
 0x273   : > { %1586 = vadd.xlane.f32.xlu2 %v1585_v52  ;;  %v1591_v10 = vsel %vm515_vm0, %v1545_v59, 0.0 }
 0x274   : > { %1592 = vadd.xlane.f32.xlu1 %v1591_v10 }
 0x27a   : > { %1589 = vadd.xlane.f32.xlu0 %v1588_v5 }
 0x28f   : > { %v1548_v51 = vpop.xlane.xlu1 %1547 }
 0x290   : > { %v1594_v19 = vmul.f32 %v1548_v51, %v3366_v13 }
 0x295   : > { %v1468_v45 = vpop.xlane.xlu2 %1467 }
 0x296   : > { %v4116_v58 = vmul.f32 %v1468_v45, %v3366_v13 }
 0x297   : > { %v1474_v47 = vpop.xlane.xlu0 %1473  ;;  %v1471_v57 = vpop.xlane.xlu1 %1470 }
 0x298   : > { %v1610_v28 = vmul.f32 %v4116_v58, %v4116_v58  ;;  %v4122_v59 = vmul.f32 %v1471_v57, %v3366_v13  ;;  %v4125_v10 = vmul.f32 %v1474_v47, %v3366_v13 }
 0x29a   : > { %v1626_v35 = vsub.f32 %v1594_v19, %v1610_v28  ;;  %v1611_v45 = vmul.f32 %v4122_v59, %v4122_v59  ;;  %v1612_v23 = vmul.f32 %v4125_v10, %v4125_v10 }
 0x29c   : > { %v1642_v52 = vmax.f32 %v1626_v35, 0.0 }
 0x29d   : > { %v1551_v55 = vpop.xlane.xlu2 %1550 }
 0x29e   : > { %v1674_v5 = vadd.f32 1e-05, %v1642_v52  ;;  %v1595_v44 = vmul.f32 %v1551_v55, %v3366_v13 }
 0x29f   : > { %v1554_v51 = vpop.xlane.xlu0 %1553  ;;  %v1557_v28 = vpop.xlane.xlu1 %1556 }
 0x2a0   : > { %2684 = vrsqrt.f32 %v1674_v5  ;;  %v1627_v19 = vsub.f32 %v1595_v44, %v1611_v45  ;;  %v1596_v57 = vmul.f32 %v1554_v51, %v3366_v13  ;;  %v1597_v44 = vmul.f32 %v1557_v28, %v3366_v13 }
 0x2a1   : > { %vm1696_vm6 = vweird.f32 %v1674_v5 }
 0x2a2   : > { %v1643_v35 = vmax.f32 %v1627_v19, 0.0  ;;  %v1628_v60 = vsub.f32 %v1596_v57, %v1612_v23 }
 0x2a4   : > { %v1675_v47 = vadd.f32 1e-05, %v1643_v35  ;;  %v1644_v54 = vmax.f32 %v1628_v60, 0.0 }
 0x2a5   : > { %v1477_v50 = vpop.xlane.xlu2 %1476 }
 0x2a6   : > { %v2685_v52 = vpop.eup %2684  ;;  %2686 = vrsqrt.f32 %v1675_v47  ;;  %v4133_v48 = vadd.f32 1e-05, %v1644_v54  ;;  %v4136_v55 = vmul.f32 %v1477_v50, %v3366_v13  ;;  %vm1706_vm9 = vweird.f32 %v1675_v47 }
 0x2a7   : > { %v1691_v42 = vmul.f32 %v2685_v52, %v1674_v5  ;;  %v4138_v38 = vpop.xlane.xlu0 %1562  ;;  %v1480_v45 = vpop.xlane.xlu1 %1479  ;;  %vm1697_vm5 = vweird.f32 %v2685_v52 }
 0x2a8   : > { %2688 = vrsqrt.f32 %v4133_v48  ;;  %v1613_v23 = vmul.f32 %v4136_v55, %v4136_v55  ;;  %v4145_v19 = vmul.f32 %v1480_v45, %v3366_v13  ;;  %vm1698_vm7 = vmor %vm1696_vm6, %vm1697_vm5  ;;  %vm1716_vm12 = vweird.f32 %v4133_v48 }
 0x2a9   : > { %v1692_v60 = vmul.f32 %v2685_v52, %v1691_v42 }
 0x2aa   : > { %v1629_v51 = vsub.f32 %v1597_v44, %v1613_v23  ;;  %v1614_v24 = vmul.f32 %v4145_v19, %v4145_v19 }
 0x2ab   : > { %v1693_v54 = vmul.f32 0.5, %v1692_v60  ;;  %v4156_v60 = vld [vmem:[%s4581_s5] ss:$0 sm:$0xff] }
 0x2ac   : > { %v2687_v57 = vpop.eup %2686  ;;  %v1645_v50 = vmax.f32 %v1629_v51, 0.0  ;;  %v1658_v51 = vsub.f32 %v3920_v6, %v4116_v58 }
 0x2ad   : > { %v1694_v35 = vsub.f32 1.5, %v1693_v54  ;;  %v1701_v36 = vmul.f32 %v2687_v57, %v1675_v47  ;;  %v1560_v30 = vpop.xlane.xlu2 %1559  ;;  %vm1707_vm8 = vweird.f32 %v2687_v57 }
 0x2ae   : > { %v2689_v26 = vpop.eup %2688  ;;  %v4147_v28 = vadd.f32 1e-05, %v1645_v50  ;;  %v1598_v18 = vmul.f32 %v1560_v30, %v3366_v13  ;;  %vm1708_vm11 = vmor %vm1706_vm9, %vm1707_vm8 }
 0x2af   : > { %v1695_v42 = vmul.f32 %v2685_v52, %v1694_v35  ;;  %v1702_v44 = vmul.f32 %v2687_v57, %v1701_v36  ;;  %v1711_v23 = vmul.f32 %v2689_v26, %v4133_v48  ;;  %v1486_v45 = vpop.xlane.xlu0 %1485  ;;  %v1566_v50 = vpop.xlane.xlu1 %1565  ;;  %vm1717_vm10 = vweird.f32 %v2689_v26 }
 0x2b0   : > { %2690 = vrsqrt.f32 %v4147_v28  ;;  %v1630_v54 = vsub.f32 %v1598_v18, %v1614_v24  ;;  %v4162_v30 = vmul.f32 %v1486_v45, %v3366_v13  ;;  %v1600_v6 = vmul.f32 %v1566_v50, %v3366_v13  ;;  %vm1718_vm13 = vmor %vm1716_vm12, %vm1717_vm10 }
 0x2b1   : > { %v1699_v36 = vsel %vm1698_vm7, %v2685_v52, %v1695_v42  ;;  %v1703_v5 = vmul.f32 0.5, %v1702_v44  ;;  %v1712_v35 = vmul.f32 %v2689_v26, %v1711_v23  ;;  %v1659_v50 = vsub.f32 %v3936_v20, %v4122_v59 }
 0x2b2   : > { %v1850_v12 = vmul.f32 %v1699_v36, %v1658_v51  ;;  %v1646_v0 = vmax.f32 %v1630_v54, 0.0  ;;  %v1616_v58 = vmul.f32 %v4162_v30, %v4162_v30  ;;  %vm1726_vm15 = vweird.f32 %v4147_v28 }
 0x2b3   : > { %v1704_v18 = vsub.f32 1.5, %v1703_v5  ;;  %v1713_v24 = vmul.f32 0.5, %v1712_v35  ;;  %v1660_v35 = vsub.f32 %v3934_v63, %v4125_v10  ;;  %v1599_v10 = vmul.f32 %v4138_v38, %v3366_v13 }
 0x2b4   : > { %v1869_v45 = vmul.f32 %v4156_v60, %v1850_v12  ;;  %v4173_v52 = vadd.f32 1e-05, %v1646_v0  ;;  %v1632_v42 = vsub.f32 %v1600_v6, %v1616_v58 }
 0x2b5   : > { %v1705_v44 = vmul.f32 %v2687_v57, %v1704_v18  ;;  %v1714_v23 = vsub.f32 1.5, %v1713_v24  ;;  %v1483_v1 = vpop.xlane.xlu2 %1482 }
 0x2b6   : > { %v2691_v51 = vpop.eup %2690  ;;  %v1888_v54 = vadd.f32 %v4167_v14, %v1869_v45  ;;  %2692 = vrsqrt.f32 %v4173_v52  ;;  %v1648_v36 = vmax.f32 %v1632_v42, 0.0  ;;  %v4190_v59 = vmul.f32 %v1483_v1, %v3366_v13 }
 0x2b7   : > { %v1709_v5 = vsel %vm1708_vm11, %v2687_v57, %v1705_v44  ;;  %v1715_v12 = vmul.f32 %v2689_v26, %v1714_v23  ;;  %v1721_v0 = vmul.f32 %v2691_v51, %v4147_v28  ;;  %v4181_v47 = vpop.xlane.xlu0 %1571  ;;  %v1489_v57 = vpop.xlane.xlu1 %1488  ;;  %vm1727_vm14 = vweird.f32 %v2691_v51 }
 0x2b8   : > { %1904 = vst.msk [vmem:[#allocation2] sm:$0xff] %vm515_vm0, %v1888_v54  ;;  %v1851_v6 = vmul.f32 %v1709_v5, %v1659_v50  ;;  %v4187_v20 = vadd.f32 1e-05, %v1648_v36  ;;  %v4195_v45 = vmul.f32 %v1489_v57, %v3366_v13  ;;  %v1615_v42 = vmul.f32 %v4190_v59, %v4190_v59  ;;  %vm1728_vm1 = vmor %vm1726_vm15, %vm1727_vm14 }
 0x2b9   : > { %v1719_v58 = vsel %vm1718_vm13, %v2689_v26, %v1715_v12  ;;  %v1722_v48 = vmul.f32 %v2691_v51, %v1721_v0  ;;  %vm1736_vm3 = vweird.f32 %v4173_v52 }
 0x2ba   : > { %v1870_v18 = vmul.f32 %v4156_v60, %v1851_v6  ;;  %v1852_v24 = vmul.f32 %v1719_v58, %v1660_v35  ;;  %2694 = vrsqrt.f32 %v4187_v20  ;;  %v1631_v50 = vsub.f32 %v1599_v10, %v1615_v42 }
 0x2bb   : > { %v1723_v63 = vmul.f32 0.5, %v1722_v48  ;;  %v1617_v38 = vmul.f32 %v4195_v45, %v4195_v45  ;;  %v1661_v48 = vsub.f32 %v3948_v34, %v4136_v55  ;;  %vm1756_vm6 = vweird.f32 %v4187_v20 }
 0x2bc   : > { %v2693_v1 = vpop.eup %2692  ;;  %v1889_v44 = vadd.f32 %v4167_v14, %v1870_v18  ;;  %v1871_v26 = vmul.f32 %v4156_v60, %v1852_v24  ;;  %v1647_v6 = vmax.f32 %v1631_v50, 0.0 }
 0x2bd   : > { %v1724_v23 = vsub.f32 1.5, %v1723_v63  ;;  %v1731_v54 = vmul.f32 %v2693_v1, %v4173_v52  ;;  %v1569_v36 = vpop.xlane.xlu2 %1568  ;;  %vm1737_vm2 = vweird.f32 %v2693_v1 }
 0x2be   : > { %1905 = vst.msk [vmem:[#allocation2 + $0x8] sm:$0xff] %vm515_vm0, %v1889_v44  ;;  %v1890_v5 = vadd.f32 %v4167_v14, %v1871_v26  ;;  %v1601_v12 = vmul.f32 %v1569_v36, %v3366_v13  ;;  %v4218_v26 = vadd.f32 1e-05, %v1647_v6  ;;  %v1662_v6 = vsub.f32 %v3982_v43, %v4145_v19  ;;  %vm1738_vm4 = vmor %vm1736_vm3, %vm1737_vm2 }
 0x2bf   : > { %v1725_v0 = vmul.f32 %v2691_v51, %v1724_v23  ;;  %v1732_v35 = vmul.f32 %v2693_v1, %v1731_v54  ;;  %v1495_v57 = vpop.xlane.xlu0 %1494  ;;  %v1575_v24 = vpop.xlane.xlu1 %1574 }
 0x2c0   : > { %v2695_v58 = vpop.eup %2694  ;;  %1906 = vst.msk [vmem:[#allocation2 + $0x10] sm:$0xff] %vm515_vm0, %v1890_v5  ;;  %v1633_v18 = vsub.f32 %v1601_v12, %v1617_v38  ;;  %v4215_v63 = vmul.f32 %v1495_v57, %v3366_v13  ;;  %v1603_v34 = vmul.f32 %v1575_v24, %v3366_v13  ;;  %2696 = vrsqrt.f32 %v4218_v26 }
 0x2c1   : > { %v1729_v10 = vsel %vm1728_vm1, %v2691_v51, %v1725_v0  ;;  %v1733_v42 = vmul.f32 0.5, %v1732_v35  ;;  %v1751_v28 = vmul.f32 %v2695_v58, %v4187_v20  ;;  %vm1757_vm5 = vweird.f32 %v2695_v58 }
 0x2c2   : > { %v1853_v44 = vmul.f32 %v1729_v10, %v1661_v48  ;;  %v1649_v23 = vmax.f32 %v1633_v18, 0.0  ;;  %v1619_v55 = vmul.f32 %v4215_v63, %v4215_v63  ;;  %v1602_v10 = vmul.f32 %v4181_v47, %v3366_v13  ;;  %vm1758_vm7 = vmor %vm1756_vm6, %vm1757_vm5 }
 0x2c3   : > { %v1734_v54 = vsub.f32 1.5, %v1733_v42  ;;  %v1752_v50 = vmul.f32 %v2695_v58, %v1751_v28  ;;  %vm1746_vm9 = vweird.f32 %v4218_v26 }
 0x2c4   : > { %v1872_v36 = vmul.f32 %v4156_v60, %v1853_v44  ;;  %v4225_v51 = vadd.f32 1e-05, %v1649_v23  ;;  %v1635_v12 = vsub.f32 %v1603_v34, %v1619_v55 }
 0x2c5   : > { %v1735_v5 = vmul.f32 %v2693_v1, %v1734_v54  ;;  %v1753_v38 = vmul.f32 0.5, %v1752_v50  ;;  %v1492_v0 = vpop.xlane.xlu2 %1491  ;;  %v1664_v54 = vsub.f32 %v3994_v46, %v4162_v30 }
 0x2c6   : > { %v1891_v35 = vadd.f32 %v4167_v14, %v1872_v36  ;;  %2698 = vrsqrt.f32 %v4225_v51  ;;  %v4234_v57 = vmul.f32 %v1492_v0, %v3366_v13  ;;  %v1651_v24 = vmax.f32 %v1635_v12, 0.0 }
 0x2c7   : > { %v1739_v48 = vsel %vm1738_vm4, %v2693_v1, %v1735_v5  ;;  %v1754_v18 = vsub.f32 1.5, %v1753_v38  ;;  %v1498_v19 = vpop.xlane.xlu1 %1497  ;;  %v2697_v1 = vpop.eup %2696  ;;  %vm1766_vm12 = vweird.f32 %v4225_v51 }
 0x2c8   : > { %1907 = vst.msk [vmem:[#allocation2 + $0x18] sm:$0xff] %vm515_vm0, %v1891_v35  ;;  %v1854_v52 = vmul.f32 %v1739_v48, %v1662_v6  ;;  %v1618_v43 = vmul.f32 %v4234_v57, %v4234_v57  ;;  %v4241_v42 = vpop.xlane.xlu0 %1580  ;;  %v4244_v44 = vadd.f32 1e-05, %v1651_v24  ;;  %v4250_v47 = vmul.f32 %v1498_v19, %v3366_v13 }
 0x2c9   : > { %v1755_v28 = vmul.f32 %v2695_v58, %v1754_v18  ;;  %v1741_v55 = vmul.f32 %v2697_v1, %v4218_v26  ;;  %vm1747_vm8 = vweird.f32 %v2697_v1 }
 0x2ca   : > { %v1873_v23 = vmul.f32 %v4156_v60, %v1854_v52  ;;  %v1634_v50 = vsub.f32 %v1602_v10, %v1618_v43  ;;  %2700 = vrsqrt.f32 %v4244_v44  ;;  %vm1748_vm11 = vmor %vm1746_vm9, %vm1747_vm8  ;;  %vm1786_vm15 = vweird.f32 %v4244_v44 }
 0x2cb   : > { %v1759_v34 = vsel %vm1758_vm7, %v2695_v58, %v1755_v28  ;;  %v1742_v12 = vmul.f32 %v2697_v1, %v1741_v55  ;;  %v1620_v58 = vmul.f32 %v4250_v47, %v4250_v47 }
 0x2cc   : > { %v2699_v36 = vpop.eup %2698  ;;  %v1892_v20 = vadd.f32 %v4167_v14, %v1873_v23  ;;  %v1856_v5 = vmul.f32 %v1759_v34, %v1664_v54  ;;  %v1650_v38 = vmax.f32 %v1634_v50, 0.0 }
 0x2cd   : > { %v1761_v0 = vmul.f32 %v2699_v36, %v4225_v51  ;;  %v1578_v35 = vpop.xlane.xlu2 %1577  ;;  %v1743_v48 = vmul.f32 0.5, %v1742_v12  ;;  %vm1767_vm10 = vweird.f32 %v2699_v36  ;;  %v1663_v12 = vsub.f32 %v3971_v25, %v4190_v59 }
 0x2ce   : > { %1908 = vst.msk [vmem:[#allocation2 + $0x20] sm:$0xff] %vm515_vm0, %v1892_v20  ;;  %v1875_v46 = vmul.f32 %v4156_v60, %v1856_v5  ;;  %v4258_v30 = vadd.f32 1e-05, %v1650_v38  ;;  %v1604_v6 = vmul.f32 %v1578_v35, %v3366_v13  ;;  %vm1768_vm13 = vmor %vm1766_vm12, %vm1767_vm10 }
 0x2cf   : > { %v1762_v18 = vmul.f32 %v2699_v36, %v1761_v0  ;;  %v1584_v10 = vpop.xlane.xlu1 %1583  ;;  %v1744_v28 = vsub.f32 1.5, %v1743_v48 }
 0x2d0   : > { %v1894_v24 = vadd.f32 %v4167_v14, %v1875_v46  ;;  %2702 = vrsqrt.f32 %v4258_v30  ;;  %v1636_v52 = vsub.f32 %v1604_v6, %v1620_v58  ;;  %v1504_v43 = vpop.xlane.xlu0 %1503  ;;  %v2701_v19 = vpop.eup %2700  ;;  %v1606_v5 = vmul.f32 %v1584_v10, %v3366_v13 }
 0x2d1   : > { %v1763_v23 = vmul.f32 0.5, %v1762_v18  ;;  %v4266_v54 = vmul.f32 %v1504_v43, %v3366_v13  ;;  %v1781_v50 = vmul.f32 %v2701_v19, %v4244_v44  ;;  %v1745_v55 = vmul.f32 %v2697_v1, %v1744_v28 }
 0x2d2   : > { %1910 = vst.msk [vmem:[#allocation2 + $0x30] sm:$0xff] %vm515_vm0, %v1894_v24  ;;  %v1652_v34 = vmax.f32 %v1636_v52, 0.0  ;;  %v1665_v24 = vsub.f32 %v4023_v39, %v4195_v45  ;;  %vm1787_vm14 = vweird.f32 %v2701_v19  ;;  %v1605_v45 = vmul.f32 %v4241_v42, %v3366_v13 }
 0x2d3   : > { %v1764_v20 = vsub.f32 1.5, %v1763_v23  ;;  %v1622_v38 = vmul.f32 %v4266_v54, %v4266_v54  ;;  %v1782_v0 = vmul.f32 %v2701_v19, %v1781_v50  ;;  %v1749_v46 = vsel %vm1748_vm11, %v2697_v1, %v1745_v55  ;;  %vm1788_vm1 = vmor %vm1786_vm15, %vm1787_vm14 }
 0x2d4   : > { %v4276_v35 = vadd.f32 1e-05, %v1652_v34  ;;  %v1855_v18 = vmul.f32 %v1749_v46, %v1663_v12  ;;  %vm1776_vm3 = vweird.f32 %v4258_v30 }
 0x2d5   : > { %v1765_v26 = vmul.f32 %v2699_v36, %v1764_v20  ;;  %v1638_v58 = vsub.f32 %v1606_v5, %v1622_v38  ;;  %v1501_v6 = vpop.xlane.xlu2 %1500  ;;  %v1783_v52 = vmul.f32 0.5, %v1782_v0  ;;  %v1667_v20 = vsub.f32 %v4030_v32, %v4215_v63 }
 0x2d6   : > { %v2703_v48 = vpop.eup %2702  ;;  %2704 = vrsqrt.f32 %v4276_v35  ;;  %v1874_v10 = vmul.f32 %v4156_v60, %v1855_v18  ;;  %v4286_v28 = vmul.f32 %v1501_v6, %v3366_v13  ;;  %vm1796_vm6 = vweird.f32 %v4276_v35 }
 0x2d7   : > { %v1769_v25 = vsel %vm1768_vm13, %v2699_v36, %v1765_v26  ;;  %v1771_v59 = vmul.f32 %v2703_v48, %v4258_v30  ;;  %v1654_v1 = vmax.f32 %v1638_v58, 0.0  ;;  %v1784_v43 = vsub.f32 1.5, %v1783_v52 }
 0x2d8   : > { %v1857_v51 = vmul.f32 %v1769_v25, %v1665_v24  ;;  %v1893_v36 = vadd.f32 %v4167_v14, %v1874_v10  ;;  %v1621_v55 = vmul.f32 %v4286_v28, %v4286_v28  ;;  %vm1777_vm2 = vweird.f32 %v2703_v48  ;;  %v1507_v24 = vpop.xlane.xlu1 %1506 }
 0x2d9   : > { %v1772_v39 = vmul.f32 %v2703_v48, %v1771_v59  ;;  %v4291_v23 = vadd.f32 1e-05, %v1654_v1  ;;  %v1785_v34 = vmul.f32 %v2701_v19, %v1784_v43  ;;  %vm1778_vm4 = vmor %vm1776_vm3, %vm1777_vm2 }
 0x2da   : > { %v1876_v50 = vmul.f32 %v4156_v60, %v1857_v51  ;;  %1909 = vst.msk [vmem:[#allocation2 + $0x28] sm:$0xff] %vm515_vm0, %v1893_v36  ;;  %v1637_v12 = vsub.f32 %v1605_v45, %v1621_v55 }
 0x2db   : > { %v1773_v44 = vmul.f32 0.5, %v1772_v39  ;;  %2706 = vrsqrt.f32 %v4291_v23  ;;  %v1789_v38 = vsel %vm1788_vm1, %v2701_v19, %v1785_v34  ;;  %v1666_v19 = vsub.f32 %v4009_v49, %v4234_v57 }
 0x2dc   : > { %v2705_v5 = vpop.eup %2704  ;;  %v1895_v42 = vadd.f32 %v4167_v14, %v1876_v50  ;;  %v1859_v0 = vmul.f32 %v1789_v38, %v1667_v20  ;;  %v1653_v32 = vmax.f32 %v1637_v12, 0.0  ;;  %v4316_v39 = vmul.f32 %v1507_v24, %v3366_v13 }
 0x2dd   : > { %v1774_v46 = vsub.f32 1.5, %v1773_v44  ;;  %v1791_v26 = vmul.f32 %v2705_v5, %v4276_v35  ;;  %vm1797_vm5 = vweird.f32 %v2705_v5  ;;  %v1668_v50 = vsub.f32 %v4051_v40, %v4250_v47 }
 0x2de   : > { %1911 = vst.msk [vmem:[#allocation2 + $0x38] sm:$0xff] %vm515_vm0, %v1895_v42  ;;  %v1510_v63 = vpop.xlane.xlu2 %1509  ;;  %v1878_v58 = vmul.f32 %v4156_v60, %v1859_v0  ;;  %v4309_v52 = vadd.f32 1e-05, %v1653_v32  ;;  %vm1798_vm7 = vmor %vm1796_vm6, %vm1797_vm5  ;;  %v1623_v42 = vmul.f32 %v4316_v39, %v4316_v39  ;;  %vm1816_vm9 = vweird.f32 %v4291_v23 }
 0x2df   : > { %v1775_v6 = vmul.f32 %v2703_v48, %v1774_v46  ;;  %v1792_v18 = vmul.f32 %v2705_v5, %v1791_v26 }
 0x2e0   : > { %v1897_v59 = vadd.f32 %v4167_v14, %v1878_v58  ;;  %2708 = vrsqrt.f32 %v4309_v52  ;;  %vm1806_vm12 = vweird.f32 %v4309_v52 }
 0x2e1   : > { %v2707_v25 = vpop.eup %2706  ;;  %v1779_v1 = vsel %vm1778_vm4, %v2703_v48, %v1775_v6  ;;  %v1793_v10 = vmul.f32 0.5, %v1792_v18  ;;  %v4337_v6 = vmul.f32 %v1510_v63, %v3366_v13  ;;  %v1670_v18 = vsub.f32 %v4069_v4, %v4266_v54 }
 0x2e2   : > { %v1858_v51 = vmul.f32 %v1779_v1, %v1666_v19  ;;  %v1811_v43 = vmul.f32 %v2707_v25, %v4291_v23  ;;  %1913 = vst.msk [vmem:[#allocation2 + $0x48] sm:$0xff] %vm515_vm0, %v1897_v59  ;;  %vm1817_vm8 = vweird.f32 %v2707_v25 }
 0x2e3   : > { %v1794_v30 = vsub.f32 1.5, %v1793_v10  ;;  %vm1818_vm10 = vmor %vm1816_vm9, %vm1817_vm8  ;;  %v1624_v23 = vmul.f32 %v4337_v6, %v4337_v6 }
 0x2e4   : > { %v1877_v49 = vmul.f32 %v4156_v60, %v1858_v51  ;;  %v1812_v57 = vmul.f32 %v2707_v25, %v1811_v43 }
 0x2e5   : > { %v1795_v45 = vmul.f32 %v2705_v5, %v1794_v30  ;;  %v1513_v48 = vpop.xlane.xlu0 %1512 }
 0x2e6   : > { %v1896_v36 = vadd.f32 %v4167_v14, %v1877_v49  ;;  %v1813_v34 = vmul.f32 0.5, %v1812_v57  ;;  %v4324_v55 = vmul.f32 %v1513_v48, %v3366_v13  ;;  %v1587_v20 = vpop.xlane.xlu2 %1586  ;;  %v2709_v35 = vpop.eup %2708 }
 0x2e7   : > { %v1799_v44 = vsel %vm1798_vm7, %v2705_v5, %v1795_v45  ;;  %v1607_v38 = vmul.f32 %v1587_v20, %v3366_v13  ;;  %v1593_v12 = vpop.xlane.xlu1 %1592  ;;  %v1801_v47 = vmul.f32 %v2709_v35, %v4309_v52  ;;  %vm1807_vm11 = vweird.f32 %v2709_v35 }
 0x2e8   : > { %1912 = vst.msk [vmem:[#allocation2 + $0x40] sm:$0xff] %vm515_vm0, %v1896_v36  ;;  %v1860_v0 = vmul.f32 %v1799_v44, %v1668_v50  ;;  %v1814_v46 = vsub.f32 1.5, %v1813_v34  ;;  %v1625_v40 = vmul.f32 %v4324_v55, %v4324_v55  ;;  %v1609_v5 = vmul.f32 %v1593_v12, %v3366_v13  ;;  %vm1808_vm13 = vmor %vm1806_vm12, %vm1807_vm11 }
 0x2e9   : > { %v1639_v26 = vsub.f32 %v1607_v38, %v1623_v42  ;;  %v1802_v24 = vmul.f32 %v2709_v35, %v1801_v47  ;;  %v1669_v50 = vsub.f32 %v4054_v15, %v4286_v28 }
 0x2ea   : > { %v1879_v32 = vmul.f32 %v4156_v60, %v1860_v0  ;;  %v1815_v58 = vmul.f32 %v2707_v25, %v1814_v46  ;;  %v1641_v59 = vsub.f32 %v1609_v5, %v1625_v40 }
 0x2eb   : > { %v1655_v19 = vmax.f32 %v1639_v26, 0.0  ;;  %v1803_v43 = vmul.f32 0.5, %v1802_v24 }
 0x2ec   : > { %v1898_v1 = vadd.f32 %v4167_v14, %v1879_v32  ;;  %v1819_v10 = vsel %vm1818_vm10, %v2707_v25, %v1815_v58  ;;  %v1657_v49 = vmax.f32 %v1641_v59, 0.0  ;;  %v1671_v58 = vsub.f32 %v4082_v29, %v4316_v39 }
 0x2ed   : > { %v1862_v51 = vmul.f32 %v1819_v10, %v1670_v18  ;;  %v1687_v30 = vadd.f32 1e-05, %v1655_v19  ;;  %v1590_v57 = vpop.xlane.xlu0 %1589  ;;  %v1804_v54 = vsub.f32 1.5, %v1803_v43 }
 0x2ee   : > { %1914 = vst.msk [vmem:[#allocation2 + $0x50] sm:$0xff] %vm515_vm0, %v1898_v1  ;;  %v1608_v63 = vmul.f32 %v1590_v57, %v3366_v13  ;;  %v1689_v45 = vadd.f32 1e-05, %v1657_v49 }
 0x2ef   : > { %v1881_v4 = vmul.f32 %v4156_v60, %v1862_v51  ;;  %2710 = vrsqrt.f32 %v1687_v30  ;;  %v1805_v36 = vmul.f32 %v2709_v35, %v1804_v54  ;;  %vm1826_vm15 = vweird.f32 %v1687_v30 }
 0x2f0   : > { %v1640_v48 = vsub.f32 %v1608_v63, %v1624_v23  ;;  %2712 = vrsqrt.f32 %v1689_v45  ;;  %vm1846_vm3 = vweird.f32 %v1689_v45  ;;  %v1673_v51 = vsub.f32 %v4104_v37, %v4324_v55 }
 0x2f1   : > { %v1900_v25 = vadd.f32 %v4167_v14, %v1881_v4  ;;  %v1809_v13 = vsel %vm1808_vm13, %v2709_v35, %v1805_v36  ;;  %v1672_v23 = vsub.f32 %v4093_v11, %v4337_v6 }
 0x2f2   : > { %v1656_v34 = vmax.f32 %v1640_v48, 0.0  ;;  %v1861_v20 = vmul.f32 %v1809_v13, %v1669_v50 }
 0x2f3   : > { %1916 = vst.msk [vmem:[#allocation2 + $0x60] sm:$0xff] %vm515_vm0, %v1900_v25 }
 0x2f4   : > { %v1688_v44 = vadd.f32 1e-05, %v1656_v34  ;;  %v1880_v38 = vmul.f32 %v4156_v60, %v1861_v20 }
 0x2f5   : > { %v2711_v42 = vpop.eup %2710 }
 0x2f6   : > { %v1821_v12 = vmul.f32 %v2711_v42, %v1687_v30  ;;  %2714 = vrsqrt.f32 %v1688_v44  ;;  %v2713_v0 = vpop.eup %2712  ;;  %v1899_v46 = vadd.f32 %v4167_v14, %v1880_v38  ;;  %vm1827_vm14 = vweird.f32 %v2711_v42 }
 0x2f7   : > { %v1841_v40 = vmul.f32 %v2713_v0, %v1689_v45  ;;  %vm1828_vm1 = vmor %vm1826_vm15, %vm1827_vm14  ;;  %vm1847_vm2 = vweird.f32 %v2713_v0  ;;  %vm1836_vm6 = vweird.f32 %v1688_v44 }
 0x2f8   : > { %v1822_v52 = vmul.f32 %v2711_v42, %v1821_v12  ;;  %1915 = vst.msk [vmem:[#allocation2 + $0x58] sm:$0xff] %vm515_vm0, %v1899_v46  ;;  %vm1848_vm4 = vmor %vm1846_vm3, %vm1847_vm2 }
 0x2f9   : > { %v1842_v28 = vmul.f32 %v2713_v0, %v1841_v40 }
 0x2fa   : > { %v1823_v15 = vmul.f32 0.5, %v1822_v52 }
 0x2fb   : > { %v1843_v35 = vmul.f32 0.5, %v1842_v28 }
 0x2fc   : > { %v2715_v47 = vpop.eup %2714  ;;  %v1824_v26 = vsub.f32 1.5, %v1823_v15 }
 0x2fd   : > { %v1831_v5 = vmul.f32 %v2715_v47, %v1688_v44  ;;  %v1844_v18 = vsub.f32 1.5, %v1843_v35  ;;  %vm1837_vm5 = vweird.f32 %v2715_v47 }
 0x2fe   : > { %v1825_v32 = vmul.f32 %v2711_v42, %v1824_v26  ;;  %vm1838_vm7 = vmor %vm1836_vm6, %vm1837_vm5 }
 0x2ff   : > { %v1832_v24 = vmul.f32 %v2715_v47, %v1831_v5  ;;  %v1845_v1 = vmul.f32 %v2713_v0, %v1844_v18 }
 0x300   : > { %v1829_v19 = vsel %vm1828_vm1, %v2711_v42, %v1825_v32 }
 0x301   : > { %v1863_v59 = vmul.f32 %v1829_v19, %v1671_v58  ;;  %v1833_v10 = vmul.f32 0.5, %v1832_v24  ;;  %v1849_v49 = vsel %vm1848_vm4, %v2713_v0, %v1845_v1 }
 0x302   : > { %v1865_v29 = vmul.f32 %v1849_v49, %v1673_v51 }
 0x303   : > { %v1882_v43 = vmul.f32 %v4156_v60, %v1863_v59  ;;  %v1834_v30 = vsub.f32 1.5, %v1833_v10 }
 0x304   : > { %v1884_v63 = vmul.f32 %v4156_v60, %v1865_v29 }
 0x305   : > { %v1901_v39 = vadd.f32 %v4167_v14, %v1882_v43  ;;  %v1835_v57 = vmul.f32 %v2715_v47, %v1834_v30 }
 0x306   : > { %v1903_v55 = vadd.f32 %v4167_v14, %v1884_v63 }
 0x307   : > { %1917 = vst.msk [vmem:[#allocation2 + $0x68] sm:$0xff] %vm515_vm0, %v1901_v39  ;;  %v1839_v37 = vsel %vm1838_vm7, %v2715_v47, %v1835_v57 }
 0x308   : > { %v1864_v4 = vmul.f32 %v1839_v37, %v1672_v23  ;;  %1919 = vst.msk [vmem:[#allocation2 + $0x78] sm:$0xff] %vm515_vm0, %v1903_v55 }
 0x30a   : > { %v1883_v54 = vmul.f32 %v4156_v60, %v1864_v4 }
 0x30c   : > { %v1902_v45 = vadd.f32 %v4167_v14, %v1883_v54 }
 0x30e   : > { %1918 = vst.msk [vmem:[#allocation2 + $0x70] sm:$0xff] %vm515_vm0, %v1902_v45 }
 0x30f LB: >> { %s1926_s12 = sld [smem:[#allocation15 + %s2991_s28]]  ;;  %s4381_s3 = sshll.u32 %s2991_s28, 7  ;;  %v1928_v14 = vld [vmem:[#allocation2] sm:$0xff]  ;;  %v1935_v11 = vld [vmem:[#allocation2 + $0x8] sm:$0xff]  ;;  %v1942_v48 = vld [vmem:[#allocation2 + $0x10] sm:$0xff]  ;;  %s2991_s28 = sphi %s4374_s28, %s1925_s28  }
 0x310   : >> { %s1930_s23 = sld [smem:[#allocation14 + %s4381_s3]]  ;;  %s1936_s14 = sadd.s32 1, %s4381_s3  ;;  %v1949_v13 = vld [vmem:[#allocation2 + $0x18] sm:$0xff]  ;;  %v1956_v38 = vld [vmem:[#allocation2 + $0x20] sm:$0xff]  ;;  %v1963_v52 = vld [vmem:[#allocation2 + $0x28] sm:$0xff] }
 0x311   : >> { %s1937_s8 = sld [smem:[#allocation14 + %s1936_s14]]  ;;  %s1943_s9 = sadd.s32 2, %s4381_s3  ;;  %v1970_v47 = vld [vmem:[#allocation2 + $0x30] sm:$0xff]  ;;  %v1977_v32 = vld [vmem:[#allocation2 + $0x38] sm:$0xff]  ;;  %v1984_v19 = vld [vmem:[#allocation2 + $0x40] sm:$0xff] }
 0x312   : >> { %s1944_s27 = sld [smem:[#allocation14 + %s1943_s9]]  ;;  %s1950_s2 = sadd.s32 3, %s4381_s3  ;;  %v1991_v51 = vld [vmem:[#allocation2 + $0x48] sm:$0xff]  ;;  %v1998_v29 = vld [vmem:[#allocation2 + $0x50] sm:$0xff]  ;;  %v2005_v63 = vld [vmem:[#allocation2 + $0x58] sm:$0xff] }
 0x313   : >> { %s1951_s7 = sld [smem:[#allocation14 + %s1950_s2]]  ;;  %s1957_s25 = sadd.s32 4, %s4381_s3  ;;  %v2012_v54 = vld [vmem:[#allocation2 + $0x60] sm:$0xff] }
 0x314   : >> { %s4388_s30 = sld [smem:[#allocation14 + %s1957_s25]]  ;;  %s1964_s1 = sadd.s32 5, %s4381_s3 }
 0x315   : >> { %s4391_s29 = sld [smem:[#allocation14 + %s1964_s1]]  ;;  %s1971_s0 = sadd.s32 6, %s4381_s3  ;;  %v1927_v60 = vstv %s1926_s12 }
 0x316   : >> { %v1931_v6 = vstv %s1930_s23  ;;  %s4394_s14 = sld [smem:[#allocation14 + %s1971_s0]]  ;;  %s1978_s9 = sadd.s32 7, %s4381_s3 }
 0x317   : >> { %v1932_v25 = vmul.f32 %v1931_v6, %v1928_v14  ;;  %v1938_v36 = vstv %s1937_s8  ;;  %s1985_s2 = sadd.s32 8, %s4381_s3  ;;  %s4398_s25 = sld [smem:[#allocation14 + %s1978_s9]] }
 0x318   : >> { %v1939_v50 = vmul.f32 %v1938_v36, %v1935_v11  ;;  %v1945_v34 = vstv %s1944_s27  ;;  %s1992_s12 = sadd.s32 9, %s4381_s3  ;;  %s4402_s0 = sld [smem:[#allocation14 + %s1985_s2]]  ;;  %v2026_v36 = vld [vmem:[#allocation2 + $0x70] sm:$0xff] }
 0x319   : >> { %v1933_v20 = vadd.f32 %v1932_v25, %v1927_v60  ;;  %v1946_v44 = vmul.f32 %v1945_v34, %v1942_v48  ;;  %v1952_v42 = vstv %s1951_s7  ;;  %s1999_s23 = sadd.s32 10, %s4381_s3  ;;  %s4406_s8 = sld [smem:[#allocation14 + %s1992_s12]]  ;;  %v2019_v60 = vld [vmem:[#allocation2 + $0x68] sm:$0xff] }
 0x31a   : >> { %v1959_v12 = vstv %s4388_s30  ;;  %v1953_v46 = vmul.f32 %v1952_v42, %v1949_v13  ;;  %s2006_s27 = sadd.s32 11, %s4381_s3  ;;  %s4410_s7 = sld [smem:[#allocation14 + %s1999_s23]] }
 0x31b   : >> { %v1940_v0 = vadd.f32 %v1939_v50, %v1933_v20  ;;  %v1966_v40 = vstv %s4391_s29  ;;  %v1960_v28 = vmul.f32 %v1959_v12, %v1956_v38  ;;  %s2013_s30 = sadd.s32 12, %s4381_s3  ;;  %s2007_s1 = sld [smem:[#allocation14 + %s2006_s27]]  ;;  %v2033_v20 = vld [vmem:[#allocation2 + $0x78] sm:$0xff] }
 0x31c   : >> { %v1973_v26 = vstv %s4394_s14  ;;  %v1967_v5 = vmul.f32 %v1966_v40, %v1963_v52  ;;  %s2020_s29 = sadd.s32 13, %s4381_s3  ;;  %s2014_s9 = sld [smem:[#allocation14 + %s2013_s30]] }
 0x31d   : >> { %v1947_v15 = vadd.f32 %v1946_v44, %v1940_v0  ;;  %v1980_v58 = vstv %s4398_s25  ;;  %v1974_v24 = vmul.f32 %v1973_v26, %v1970_v47  ;;  %s2027_s14 = sadd.s32 14, %s4381_s3  ;;  %s2021_s2 = sld [smem:[#allocation14 + %s2020_s29]] }
 0x31e   : >> { %v1987_v59 = vstv %s4402_s0  ;;  %v1981_v10 = vmul.f32 %v1980_v58, %v1977_v32  ;;  %s2034_s12 = sadd.s32 15, %s4381_s3  ;;  %s2028_s25 = sld [smem:[#allocation14 + %s2027_s14]] }
 0x31f   : >> { %v1954_v35 = vadd.f32 %v1953_v46, %v1947_v15  ;;  %v1994_v43 = vstv %s4406_s8  ;;  %v1988_v30 = vmul.f32 %v1987_v59, %v1984_v19  ;;  %s2035_s23 = sld [smem:[#allocation14 + %s2034_s12]]  ;;  %s2469_s3 = sshll.u32 %s2991_s28, 3 }
 0x320   : >> { %v2001_v39 = vstv %s4410_s7  ;;  %v1995_v23 = vmul.f32 %v1994_v43, %v1991_v51  ;;  %s2040_s0 = scalar_lea.vmem [#allocation3], %s2469_s3  ;;  %s1925_s28 = sadd.s32 1, %s2991_s28  }
 0x321   : >> { %v1961_v18 = vadd.f32 %v1960_v28, %v1954_v35  ;;  %v2008_v37 = vstv %s2007_s1  ;;  %v2002_v4 = vmul.f32 %v2001_v39, %v1998_v29  ;;  %p1922_p1 = scmp.ge.s32.totalorder %s1925_s28, 16  }
 0x322   : >> { %v2015_v45 = vstv %s2014_s9  ;;  %v2009_v11 = vmul.f32 %v2008_v37, %v2005_v63  ;;  %v2077_v40 = vld [vmem:[#allocation16 + $0x18] sm:$0xff] (%p1922_p1)  ;;  %v2076_v15 = vld [vmem:[#allocation16 + $0x10] sm:$0xff] (%p1922_p1)  ;;  %v2075_v47 = vld [vmem:[#allocation16 + $0x8] sm:$0xff] (%p1922_p1)  ;;  %v4663_v35 = vmax.f32 (%p1922_p1), %v3884_v8, 0.0  ;;  %v4664_v58 = vmax.f32 (%p1922_p1), %v3898_v9, 0.0  ;;  %s2487_s27 = sshll.u32 (%p1922_p1), %s3094_s24, 3 }
 0x323   : >> { %v1968_v1 = vadd.f32 %v1967_v5, %v1961_v18  ;;  %v2022_v6 = vstv %s2021_s2  ;;  %v2016_v25 = vmul.f32 %v2015_v45, %v2012_v54  ;;  %2142 = vmatpush.msra.mxu3 (%p1922_p1), %v2077_v40  ;;  %v2074_v26 = vld [vmem:[#allocation16] sm:$0xff] (%p1922_p1)  ;;  %v4665_v19 = vmax.f32 (%p1922_p1), %v3900_v21, 0.0  ;;  %s2254_s1 = scalar_lea.hbm (%p1922_p1), %s4587_s11, %s2487_s27  ;;  %s2255_s29 = sshll.u32 (%p1922_p1), %s4372_s26, 4  ;;  %s2256_s29 = int_to_ptr.vmem [resolvable:$true] %s2255_s29 }
 0x324   : >> { %v2029_v50 = vstv %s2028_s25  ;;  %v2023_v13 = vmul.f32 %v2022_v6, %v2019_v60  ;;  %v4666_v8 = vmax.f32 (%p1922_p1), %v3914_v31, 0.0  ;;  %v4667_v43 = vmax.f32 (%p1922_p1), %v3909_v22, 0.0  ;;  %s2257_s9 = sshll.u32 (%p1922_p1), %s2254_s1, 4  ;;  %s2244_s24 = scalar_lea.sflag (%p1922_p1), [#allocation6], %s3206_s22  ;;  %s2258_s9 = int_to_ptr.hbm [resolvable:$true] %s2257_s9 }
 0x325   : >> { %v1975_v49 = vadd.f32 %v1974_v24, %v1968_v1  ;;  %v2036_v44 = vstv %s2035_s23  ;;  %v2030_v38 = vmul.f32 %v2029_v50, %v2026_v36  ;;  %2143 = vmatpush.msra.mxu3 (%p1922_p1), %v2076_v15  ;;  %v4669_v39 = vmax.f32 (%p1922_p1), %v3953_v3, 0.0  ;;  %s2911_s14 = sshra.s32 (%p1922_p1), %s2258_s9, 4  ;;  %s2917_s23 = scalar_lea.hbm (%p1922_p1), %s4587_s11, 256  ;;  %s2912_s14 = int_to_ptr.hbm [resolvable:$true] %s2911_s14 }
 0x326   : >> { %v2037_v0 = vmul.f32 %v2036_v44, %v2033_v20  ;;  %v4671_v37 = vmax.f32 (%p1922_p1), %v4002_v33, 0.0  ;;  %v4673_v45 = vmax.f32 (%p1922_p1), %v4037_v62, 0.0  ;;  %v4675_v6 = vmax.f32 (%p1922_p1), %v4064_v41, 0.0  ;;  %s2913_s2 = scalar_lea.hbm (%p1922_p1), %s2912_s14, 128  ;;  %p2918_p7 = scmp.lt.s32.totalorder (%p1922_p1), %s2912_s14, %s4587_s11 }
 0x327   : >> { %v1982_v57 = vadd.f32 %v1981_v10, %v1975_v49  ;;  %2144 = vmatpush.msra.mxu3 (%p1922_p1), %v2075_v47  ;;  %v4677_v50 = vmax.f32 (%p1922_p1), %v4090_v61, 0.0  ;;  %v4678_v41 = vmax.f32 (%p1922_p1), %v4099_v17, 0.0  ;;  %p2914_p3 = scmp.ne.s32.totalorder (%p1922_p1), %s2912_s14, %s2913_s2  ;;  %p2919_p8 = scmp.lt.s32.totalorder (%p1922_p1), %s2917_s23, %s2913_s2 }
 0x329   : >> { %v1989_v55 = vadd.f32 %v1988_v30, %v1982_v57  ;;  %2145 = vmatpush.msra.mxu3 (%p1922_p1), %v2074_v26  ;;  %v4668_v30 = vmax.f32 (%p1922_p1), %v3957_v7, 0.0  ;;  %p2915_p4 = pnand (%p1922_p1), %p2914_p3, %p3173_p5  ;;  %p2920_p9 = por (%p1922_p1), %p2919_p8, %p2918_p7 }
 0x32b   : >> { %v1996_v14 = vadd.f32 %v1995_v23, %v1989_v55  ;;  %v4670_v23 = vmax.f32 (%p1922_p1), %v3985_v56, 0.0  ;;  %p2916_p12 = pneg (%p1922_p1), %p2915_p4 }
 0x32d   : >> { %v2003_v48 = vadd.f32 %v2002_v4, %v1996_v14  ;;  %v4672_v4 = vmax.f32 (%p1922_p1), %v4017_v27, 0.0  ;;  %p2921_p10 = pnand (%p1922_p1), %p2920_p9, %p2916_p12 }
 0x32f   : >> { %v2010_v34 = vadd.f32 %v2009_v11, %v2003_v48  ;;  %v4674_v11 = vmax.f32 (%p1922_p1), %v4049_v16, 0.0 }
 0x331   : >> { %v2017_v42 = vadd.f32 %v2016_v25, %v2010_v34  ;;  %v4676_v25 = vmax.f32 (%p1922_p1), %v4079_v53, 0.0  ;;  %v4476_v53 = vld [vmem:[%s4586_s10] ss:$0 sm:$0xff] (%p1922_p1) }
 0x333   : >> { %v2024_v12 = vadd.f32 %v2023_v13, %v2017_v42 }
 0x335   : >> { %v2031_v46 = vadd.f32 %v2030_v38, %v2024_v12  ;;  %1924 = sbr.rel (!%p1922_p1) target bundleno = 783 (0x30f), region = 158 }
 0x337   : >> { %v2038_v52 = vadd.f32 %v2037_v0, %v2031_v46  ;;  %v4679_v0 = vld [vmem:[#allocation26_spill] sm:$0xff] (%p1922_p1) }
 0x339   : >> { %2041 = vst.msk [vmem:[%s2040_s0] sm:$0xff] %vm515_vm0, %v2038_v52 }
 0x340   : > { %v2042_v28 = vld [vmem:[#allocation3] sm:$0xff]  ;;  %v2043_v32 = vld [vmem:[#allocation3 + $0x8] sm:$0xff]  ;;  %v2044_v24 = vld [vmem:[#allocation3 + $0x10] sm:$0xff] }
 0x341   : > { %v2058_v5 = vmul.f32 %v2042_v28, %v4663_v35  ;;  %v2059_v18 = vmul.f32 %v2043_v32, %v4664_v58  ;;  %v2060_v59 = vmul.f32 %v2044_v24, %v4665_v19  ;;  %v2045_v1 = vld [vmem:[#allocation3 + $0x18] sm:$0xff]  ;;  %v2046_v51 = vld [vmem:[#allocation3 + $0x20] sm:$0xff]  ;;  %v2047_v9 = vld [vmem:[#allocation3 + $0x28] sm:$0xff] }
 0x342   : > { %v2061_v10 = vmul.f32 %v2045_v1, %v4666_v8  ;;  %v2062_v49 = vmul.f32 %v2046_v51, %v4667_v43  ;;  %v2063_v29 = vmul.f32 %v2047_v9, %v4668_v30  ;;  %v2048_v21 = vld [vmem:[#allocation3 + $0x30] sm:$0xff]  ;;  %v2049_v31 = vld [vmem:[#allocation3 + $0x38] sm:$0xff]  ;;  %v2050_v22 = vld [vmem:[#allocation3 + $0x40] sm:$0xff] }
 0x343   : > { %2470 = vmatmul.msk.f32.vlgmr.msra.gmra.mxu3 %vm515_vm0, %v2058_v5  ;;  %v2064_v57 = vmul.f32 %v2048_v21, %v4669_v39  ;;  %v2065_v63 = vmul.f32 %v2049_v31, %v4670_v23  ;;  %v2066_v55 = vmul.f32 %v2050_v22, %v4671_v37  ;;  %v2051_v7 = vld [vmem:[#allocation3 + $0x48] sm:$0xff]  ;;  %v2052_v3 = vld [vmem:[#allocation3 + $0x50] sm:$0xff]  ;;  %v2053_v56 = vld [vmem:[#allocation3 + $0x58] sm:$0xff] }
 0x344   : > { %v2067_v54 = vmul.f32 %v2051_v7, %v4672_v4  ;;  %v2068_v14 = vmul.f32 %v2052_v3, %v4673_v45  ;;  %v2069_v60 = vmul.f32 %v2053_v56, %v4674_v11  ;;  %v2054_v33 = vld [vmem:[#allocation3 + $0x60] sm:$0xff]  ;;  %v2055_v27 = vld [vmem:[#allocation3 + $0x68] sm:$0xff]  ;;  %v2056_v36 = vld [vmem:[#allocation3 + $0x70] sm:$0xff] }
 0x345   : > { %v2070_v48 = vmul.f32 %v2054_v33, %v4675_v6  ;;  %v2071_v62 = vmul.f32 %v2055_v27, %v4676_v25  ;;  %v2072_v16 = vmul.f32 %v2056_v36, %v4677_v50  ;;  %v2057_v34 = vld [vmem:[#allocation3 + $0x78] sm:$0xff]  ;;  %v4680_v28 = vld [vmem:[#allocation25_spill] sm:$0xff]  ;;  %v4688_v6 = vld [vmem:[#allocation34_spill] sm:$0xff] }
 0x346   : > { %v2073_v13 = vmul.f32 %v2057_v34, %v4678_v41  ;;  %v4681_v5 = vld [vmem:[#allocation27_spill] sm:$0xff]  ;;  %v4682_v19 = vld [vmem:[#allocation28_spill] sm:$0xff]  ;;  %v4683_v51 = vld [vmem:[#allocation29_spill] sm:$0xff] }
 0x347   : > { %v4685_v23 = vld [vmem:[#allocation31_spill] sm:$0xff]  ;;  %v4686_v7 = vld [vmem:[#allocation32_spill] sm:$0xff] }
 0x348   : > { %v4689_v36 = vld [vmem:[#allocation35_spill] sm:$0xff] }
 0x34b   : > { %2471 = vmatmul.msk.f32.gmra.mxu3 %vm515_vm0, %v2059_v18 }
 0x353   : > { %2472 = vmatmul.msk.f32.gmra.mxu3 %vm515_vm0, %v2060_v59 }
 0x35b   : > { %2473 = vmatmul.msk.f32.gmra.mxu3 %vm515_vm0, %v2061_v10 }
 0x363   : > { %2474 = vmatmul.msk.f32.gmra.mxu3 %vm515_vm0, %v2062_v49 }
 0x36b   : > { %2475 = vmatmul.msk.f32.gmra.mxu3 %vm515_vm0, %v2063_v29  ;;  %v4684_v29 = vld [vmem:[#allocation30_spill] sm:$0xff] }
 0x373   : > { %2476 = vmatmul.msk.f32.gmra.mxu3 %vm515_vm0, %v2064_v57 }
 0x37b   : > { %2477 = vmatmul.msk.f32.gmra.mxu3 %vm515_vm0, %v2065_v63 }
 0x383   : > { %2478 = vmatmul.msk.f32.gmra.mxu3 %vm515_vm0, %v2066_v55 }
 0x38b   : > { %2479 = vmatmul.msk.f32.gmra.mxu3 %vm515_vm0, %v2067_v54 }
 0x393   : > { %2480 = vmatmul.msk.f32.gmra.mxu3 %vm515_vm0, %v2068_v14  ;;  %v4687_v14 = vld [vmem:[#allocation33_spill] sm:$0xff] }
 0x39b   : > { %2481 = vmatmul.msk.f32.gmra.mxu3 %vm515_vm0, %v2069_v60 }
 0x3a3   : > { %2482 = vmatmul.msk.f32.gmra.mxu3 %vm515_vm0, %v2070_v48 }
 0x3ab   : > { %2483 = vmatmul.msk.f32.gmra.mxu3 %vm515_vm0, %v2071_v62 }
 0x3b3   : > { %2484 = vmatmul.msk.f32.gmra.mxu3 %vm515_vm0, %v2072_v16 }
 0x3bb   : > { %2485 = vmatmul.msk.f32.gmra.mxu3 %vm515_vm0, %v2073_v13  ;;  %v4690_v13 = vld [vmem:[#allocation36_spill] sm:$0xff] }
 0x3c6   : > { %v2147_v20 = vpop.f32.mrf.mxu3 }
 0x3c7   : > { %v2148_v44 = vadd.f32 %v4476_v53, %v2147_v20 }
 0x3c9   : > { %v2195_v61 = vmax.f32 %v2148_v44, 0.0 }
 0x3cb   : > { %v2211_v42 = vadd.f32 %v2195_v61, %v3245_v2 }
 0x3cd   : > { %2227 = vst.msk [vmem:[%s4372_s26] sm:$0xff] %vm515_vm0, %v2211_v42 }
 0x3ce   : > { %v2150_v38 = vpop.f32.mrf.mxu3 }
 0x3cf   : > { %v2151_v17 = vadd.f32 %v4476_v53, %v2150_v38  ;;  %v4691_v38 = vld [vmem:[#allocation37_spill] sm:$0xff] }
 0x3d1   : > { %v2196_v12 = vmax.f32 %v2151_v17, 0.0 }
 0x3d3   : > { %v2212_v46 = vadd.f32 %v2196_v12, %v4679_v0 }
 0x3d5   : > { %2228 = vst.msk [vmem:[%s4372_s26 + $0x8] sm:$0xff] %vm515_vm0, %v2212_v46 }
 0x3d6   : > { %v2153_v52 = vpop.f32.mrf.mxu3 }
 0x3d7   : > { %v2154_v40 = vadd.f32 %v4476_v53, %v2153_v52  ;;  %v4692_v52 = vld [vmem:[#allocation38_spill] sm:$0xff] }
 0x3d9   : > { %v2197_v15 = vmax.f32 %v2154_v40, 0.0 }
 0x3db   : > { %v2213_v47 = vadd.f32 %v2197_v15, %v4680_v28 }
 0x3dd   : > { %2229 = vst.msk [vmem:[%s4372_s26 + $0x10] sm:$0xff] %vm515_vm0, %v2213_v47 }
 0x3de   : > { %v2156_v2 = vpop.f32.mrf.mxu3 }
 0x3df   : > { %v2157_v26 = vadd.f32 %v4476_v53, %v2156_v2  ;;  %v4693_v2 = vld [vmem:[#allocation39_spill] sm:$0xff] }
 0x3e1   : > { %v2198_v35 = vmax.f32 %v2157_v26, 0.0 }
 0x3e3   : > { %v2214_v32 = vadd.f32 %v2198_v35, %v4681_v5 }
 0x3e5   : > { %2230 = vst.msk [vmem:[%s4372_s26 + $0x18] sm:$0xff] %vm515_vm0, %v2214_v32 }
 0x3e6   : > { %v2159_v58 = vpop.f32.mrf.mxu3 }
 0x3e7   : > { %v2160_v18 = vadd.f32 %v4476_v53, %v2159_v58 }
 0x3e9   : > { %v2199_v24 = vmax.f32 %v2160_v18, 0.0 }
 0x3eb   : > { %v2215_v59 = vadd.f32 %v2199_v24, %v4682_v19 }
 0x3ed   : > { %2231 = vst.msk [vmem:[%s4372_s26 + $0x20] sm:$0xff] %vm515_vm0, %v2215_v59 }
 0x3ee   : > { %v2162_v1 = vpop.f32.mrf.mxu3 }
 0x3ef   : > { %v2163_v8 = vadd.f32 %v4476_v53, %v2162_v1 }
 0x3f1   : > { %v2200_v10 = vmax.f32 %v2163_v8, 0.0 }
 0x3f3   : > { %v2216_v43 = vadd.f32 %v2200_v10, %v4683_v51 }
 0x3f5   : > { %2232 = vst.msk [vmem:[%s4372_s26 + $0x28] sm:$0xff] %vm515_vm0, %v2216_v43 }
 0x3f6   : > { %v2165_v49 = vpop.f32.mrf.mxu3 }
 0x3f7   : > { %v2166_v9 = vadd.f32 %v4476_v53, %v2165_v49 }
 0x3f9   : > { %v2201_v30 = vmax.f32 %v2166_v9, 0.0 }
 0x3fb   : > { %v2217_v21 = vadd.f32 %v2201_v30, %v4684_v29 }
 0x3fd   : > { %2233 = vst.msk [vmem:[%s4372_s26 + $0x30] sm:$0xff] %vm515_vm0, %v2217_v21 }
 0x3fe   : > { %v2168_v39 = vpop.f32.mrf.mxu3 }
 0x3ff   : > { %v2169_v57 = vadd.f32 %v4476_v53, %v2168_v39 }
 0x401   : > { %v2202_v31 = vmax.f32 %v2169_v57, 0.0 }
 0x403   : > { %v2218_v63 = vadd.f32 %v2202_v31, %v4685_v23 }
 0x405   : > { %2234 = vst.msk [vmem:[%s4372_s26 + $0x38] sm:$0xff] %vm515_vm0, %v2218_v63 }
 0x406   : > { %v2171_v22 = vpop.f32.mrf.mxu3 }
 0x407   : > { %v2172_v37 = vadd.f32 %v4476_v53, %v2171_v22 }
 0x409   : > { %v2203_v55 = vmax.f32 %v2172_v37, 0.0 }
 0x40b   : > { %v2219_v4 = vadd.f32 %v2203_v55, %v4686_v7 }
 0x40d   : > { %2235 = vst.msk [vmem:[%s4372_s26 + $0x40] sm:$0xff] %vm515_vm0, %v2219_v4 }
 0x40e   : > { %v2174_v54 = vpop.f32.mrf.mxu3 }
 0x40f   : > { %v2175_v3 = vadd.f32 %v4476_v53, %v2174_v54 }
 0x411   : > { %v2204_v45 = vmax.f32 %v2175_v3, 0.0 }
 0x413   : > { %v2220_v56 = vadd.f32 %v2204_v45, %v4687_v14 }
 0x415   : > { %2236 = vst.msk [vmem:[%s4372_s26 + $0x48] sm:$0xff] %vm515_vm0, %v2220_v56 }
 0x416   : > { %v2177_v11 = vpop.f32.mrf.mxu3 }
 0x417   : > { %v2178_v60 = vadd.f32 %v4476_v53, %v2177_v11 }
 0x419   : > { %v2205_v33 = vmax.f32 %v2178_v60, 0.0 }
 0x41b   : > { %v2221_v48 = vadd.f32 %v2205_v33, %v4688_v6 }
 0x41d   : > { %2237 = vst.msk [vmem:[%s4372_s26 + $0x50] sm:$0xff] %vm515_vm0, %v2221_v48 }
 0x41e   : > { %v2180_v27 = vpop.f32.mrf.mxu3 }
 0x41f   : > { %v2181_v25 = vadd.f32 %v4476_v53, %v2180_v27 }
 0x421   : > { %v2206_v62 = vmax.f32 %v2181_v25, 0.0 }
 0x423   : > { %v2222_v50 = vadd.f32 %v2206_v62, %v4689_v36 }
 0x425   : > { %2238 = vst.msk [vmem:[%s4372_s26 + $0x58] sm:$0xff] %vm515_vm0, %v2222_v50 }
 0x426   : > { %v2183_v16 = vpop.f32.mrf.mxu3 }
 0x427   : > { %v2184_v34 = vadd.f32 %v4476_v53, %v2183_v16 }
 0x429   : > { %v2207_v41 = vmax.f32 %v2184_v34, 0.0 }
 0x42b   : > { %v2223_v20 = vadd.f32 %v2207_v41, %v4690_v13 }
 0x42d   : > { %2239 = vst.msk [vmem:[%s4372_s26 + $0x60] sm:$0xff] %vm515_vm0, %v2223_v20 }
 0x42e   : > { %v2186_v44 = vpop.f32.mrf.mxu3 }
 0x42f   : > { %v2187_v61 = vadd.f32 %v4476_v53, %v2186_v44 }
 0x431   : > { %v2208_v42 = vmax.f32 %v2187_v61, 0.0 }
 0x433   : > { %v2224_v17 = vadd.f32 %v2208_v42, %v4691_v38 }
 0x435   : > { %2240 = vst.msk [vmem:[%s4372_s26 + $0x68] sm:$0xff] %vm515_vm0, %v2224_v17 }
 0x436   : > { %v2189_v12 = vpop.f32.mrf.mxu3 }
 0x437   : > { %v2190_v0 = vadd.f32 %v4476_v53, %v2189_v12 }
 0x439   : > { %v2209_v46 = vmax.f32 %v2190_v0, 0.0 }
 0x43b   : > { %v2225_v40 = vadd.f32 %v2209_v46, %v4692_v52 }
 0x43d   : > { %2241 = vst.msk [vmem:[%s4372_s26 + $0x70] sm:$0xff] %vm515_vm0, %v2225_v40 }
 0x43e   : > { %v2192_v15 = vpop.f32.mrf.mxu3 }
 0x43f   : > { %v2193_v28 = vadd.f32 %v4476_v53, %v2192_v15 }
 0x441   : > { %v2210_v47 = vmax.f32 %v2193_v28, 0.0 }
 0x443   : > { %v2226_v26 = vadd.f32 %v2210_v47, %v4693_v2 }
 0x445   : > { %2242 = vst.msk [vmem:[%s4372_s26 + $0x78] sm:$0xff] %vm515_vm0, %v2226_v26 }
 0x446   : > { %2924 = shalt.err (!%p2921_p10)
}
 0x447   : > { %s3007_s22 = smov 128   ;;  %s3008_s26 = smov 256  }
 0x448   : > { %s3009_s28 = smov 8  }
 0x449   : > { %2516 = dma.vmem_to_hbm [thread:$0]  (%p3173_p5), %s2256_s29, 2048, %s2258_s9, %s2244_s24, %s3007_s22, %s3008_s26, %s3009_s28  }
 0x44a PF: > { %s2272_s8 = sand.u32 1, %s2975_s17   ;;  %p4694_p13 = scmp.ge.s32.totalorder %s2987_s20, 2 }
 0x44b   : > { %s2273_s27 = scalar_lea.sflag [#allocation6], %s2272_s8 }
 0x44c   : > { %p2542_p11 = pnand %p4694_p13, %p3177_p6 }
 0x44e   : > { %p2543_p0 = pneg %p2542_p11 }
 0x450   : > { %2970 = dma.done.wait (%p2543_p0), %s2273_s27, 2048  }
 0x451   : > { %2972 = vsyncadd (%p2543_p0), %s2273_s27, 4294965248  ;;  %p28_p2 = scmp.ge.s32.totalorder %s3147_s13, 4   ;;  %s4695_s17 = smov %s2979_s18 }
 0x452   : > { %s4696_s18 = smov %s2983_s19  ;;  %s4697_s19 = smov %s3158_s15 }
 0x453   : > { %s4698_s20 = smov %s3147_s13  ;;  %30 = sbr.rel (!%p28_p2) target bundleno = 17 (0x11), region = 169 }
 0x458   :  { %2279 = vsyncpa [#allocation5], 1 }
 0x459   :  { %2281 = vsyncpa [#allocation5 + $0x1], 1 }
 0x45a   :  { %2282 = vsyncpa [#allocation10], 1 }
 0x45b   :  { %2283 = vsyncpa [#allocation13], 1 }
 0x45c   :  { %2284 = vsyncpa [#allocation6], 1 }
 0x45d   :  { %2286 = vsyncpa [#allocation6 + $0x1], 1 }
 0x45e   :  { %2287 = vsyncpa [#allocation7], 1 }
 0x45f   :  { %2289 = vsyncpa [#allocation7 + $0x1], 1 }
 0x460   :  { %2290 = vsyncpa [#allocation8], 1 }
 0x461   :  { %2292 = vsyncpa [#allocation8 + $0x1], 1 }

</bundles_post_ra>
